<compile_context>
chip_gen: v6e
topology: v6e:2x2x1
jax: 0.10.0
libtpu: 0.0.40
codegen_flags: <defaults>
</compile_context>

<pallas_src>
import functools

import jax
import jax.numpy as jnp
from jax.experimental import pallas as pl
from jax.experimental.pallas import tpu as pltpu  # noqa: F401  (VMEM defaults)


# ----------------------------------------------------------------------------
# In-kernel building blocks (operate on values; whole problem is VMEM-resident)
# ----------------------------------------------------------------------------
def _conv_relu_2d(x2, w0_ref, w1_ref, w2_ref, b_ref, B):
    """Conv1d(k=3, s=1, p=1) + ReLU, time-major flattened layout.

    x2: (T*B, Cin) f32 value (row t*B+b == time t, batch b)
    w0/w1/w2: (Cin, Cout) bf16 refs (taps k=0,1,2);  b: (1, Cout) f32 ref.
    out[t] = x[t-1]@W0 + x[t]@W1 + x[t+1]@W2 + b  (zero time padding)
    """
    TB = x2.shape[0]
    xb = x2.astype(jnp.bfloat16)
    y0 = jnp.dot(xb, w0_ref[...], preferred_element_type=jnp.float32)
    y1 = jnp.dot(xb, w1_ref[...], preferred_element_type=jnp.float32)
    y2 = jnp.dot(xb, w2_ref[...], preferred_element_type=jnp.float32)
    Cout = y0.shape[1]
    zrow = jnp.zeros((B, Cout), jnp.float32)
    out = (y1
           + jnp.concatenate([zrow, y0[:TB - B]], axis=0)     # y0 shifted +1 step
           + jnp.concatenate([y2[B:], zrow], axis=0)          # y2 shifted -1 step
           + b_ref[...])
    return jnp.maximum(out, 0.0)


def _gru_layer(x2, T, B, wih_ref, whh_ref, bih_ref, bhh_ref, h0, need_seq):
    """One GRU layer over a time-major flattened sequence.

    x2: (T*B, Din) f32; weights bf16, biases f32; h0: (B, H) f32.
    Returns (seq (T*B, H) f32 or None, h_final (B, H) f32).
    PyTorch gate order (r, z, n); f32 accumulation and f32 gate math.
    """
    H = whh_ref.shape[0]
    # Hoisted input projection: one full-sequence MXU matmul, b_ih folded in.
    gi = jnp.dot(x2.astype(jnp.bfloat16), wih_ref[...],
                 preferred_element_type=jnp.float32) + bih_ref[...]
    whh = whh_ref[...]          # loaded once, reused across all timesteps
    bhh = bhh_ref[...]
    h = h0
    hs = []
    for t in range(T):          # fully unrolled; static, sublane-aligned slices
        g = gi[t * B:(t + 1) * B]
        gh = jnp.dot(h.astype(jnp.bfloat16), whh,
                     preferred_element_type=jnp.float32) + bhh
        r = jax.nn.sigmoid(g[:, 0:H] + gh[:, 0:H])
        z = jax.nn.sigmoid(g[:, H:2 * H] + gh[:, H:2 * H])
        n = jnp.tanh(g[:, 2 * H:3 * H] + r * gh[:, 2 * H:3 * H])
        h = (1.0 - z) * n + z * h
        if need_seq:
            hs.append(h)
    seq = jnp.concatenate(hs, axis=0) if need_seq else None
    return seq, h


# ----------------------------------------------------------------------------
# Fused kernels (one pallas_call each, no grid)
# ----------------------------------------------------------------------------
def _encoder_kernel(*refs, n_conv, n_gru, T, B):
    """refs = [x2, (w0,w1,w2,b)*n_conv, (wih,whh,bih,bhh)*n_gru, hn_out]."""
    i = 0
    x_ref = refs[i]; i += 1
    conv_refs = refs[i:i + 4 * n_conv]; i += 4 * n_conv
    gru_refs = refs[i:i + 4 * n_gru]; i += 4 * n_gru
    hn_ref = refs[i]

    x = x_ref[...]                                      # (T*B, n_mels)
    for li in range(n_conv):
        w0, w1, w2, b = conv_refs[4 * li:4 * li + 4]
        x = _conv_relu_2d(x, w0, w1, w2, b, B)

    seq = x
    for li in range(n_gru):
        wih, whh, bih, bhh = gru_refs[4 * li:4 * li + 4]
        H = whh.shape[0]
        h0 = jnp.zeros((B, H), jnp.float32)
        need_seq = li < n_gru - 1                       # last layer: hn only
        seq, h_last = _gru_layer(seq, T, B, wih, whh, bih, bhh, h0, need_seq)
        hn_ref[li * B:(li + 1) * B, :] = h_last


def _decoder_kernel(*refs, n_gru, T, B):
    """refs = [emb2, hn2, (wih,whh,bih,bhh)*n_gru, lin_w, lin_b, out]."""
    i = 0
    emb_ref = refs[i]; i += 1
    h0_ref = refs[i]; i += 1
    gru_refs = refs[i:i + 4 * n_gru]; i += 4 * n_gru
    lin_w_ref = refs[i]; i += 1
    lin_b_ref = refs[i]; i += 1
    out_ref = refs[i]

    seq = jnp.maximum(emb_ref[...], 0.0)                # Embedding + ReLU
    for li in range(n_gru):
        wih, whh, bih, bhh = gru_refs[4 * li:4 * li + 4]
        h0 = h0_ref[li * B:(li + 1) * B, :]
        seq, _ = _gru_layer(seq, T, B, wih, whh, bih, bhh, h0, True)

    logits = jnp.dot(seq.astype(jnp.bfloat16), lin_w_ref[...],
                     preferred_element_type=jnp.float32) + lin_b_ref[...]
    out_ref[...] = logits                               # lane-dense (Vp % 128 == 0)


# ----------------------------------------------------------------------------
# Wrappers
# ----------------------------------------------------------------------------
def encoder_forward(params, x2, *, T, B):
    """x2: (T*B, n_mels) f32 -> hn2: (n_layers*B, H) f32."""
    n_conv = len(params["cnn"])
    n_gru = len(params["enc_gru"])
    H = params["enc_gru"][-1]["whh"].shape[0]
    assert B % 8 == 0 and H % 128 == 0, "need sublane/lane-aligned B, H"

    args = [x2]
    for (w, b) in params["cnn"]:                        # w: (3, Cin, Cout)
        args += [w[0].astype(jnp.bfloat16), w[1].astype(jnp.bfloat16),
                 w[2].astype(jnp.bfloat16), b]
    for p in params["enc_gru"]:
        args += [p["wih"].astype(jnp.bfloat16), p["whh"].astype(jnp.bfloat16),
                 p["bih"], p["bhh"]]

    return pl.pallas_call(
        functools.partial(_encoder_kernel, n_conv=n_conv, n_gru=n_gru, T=T, B=B),
        out_shape=jax.ShapeDtypeStruct((n_gru * B, H), jnp.float32),
    )(*args)


def decoder_forward(dec, emb2, hn2, *, T, B):
    """emb2: (T*B, E) f32, hn2: (n_layers*B, H) f32 -> logits (T*B, vocab)."""
    n_gru = len(dec["gru"])
    H = dec["gru"][-1]["whh"].shape[0]
    V = dec["lin_w"].shape[1]
    assert B % 8 == 0 and H % 128 == 0, "need sublane/lane-aligned B, H"

    Vp = pl.cdiv(V, 128) * 128                          # lane-dense output slab
    lin_w, lin_b = dec["lin_w"], dec["lin_b"]
    if Vp != V:
        lin_w = jnp.pad(lin_w, ((0, 0), (0, Vp - V)))
        lin_b = jnp.pad(lin_b, ((0, 0), (0, Vp - V)))

    args = [emb2, hn2]
    for p in dec["gru"]:
        args += [p["wih"].astype(jnp.bfloat16), p["whh"].astype(jnp.bfloat16),
                 p["bih"], p["bhh"]]
    args += [lin_w.astype(jnp.bfloat16), lin_b]

    out = pl.pallas_call(
        functools.partial(_decoder_kernel, n_gru=n_gru, T=T, B=B),
        out_shape=jax.ShapeDtypeStruct((T * B, Vp), jnp.float32),
    )(*args)
    return out[:, :V]


# ----------------------------------------------------------------------------
# Parameters (deterministic)
# ----------------------------------------------------------------------------
def init_params(key, *, n_mels, cnn_channels, num_hidden, num_layers,
                dim_embed, vocab_size):
    keys = iter(jax.random.split(key, 128))

    def rand(shape, scale=0.1):
        return scale * jax.random.normal(next(keys), shape, dtype=jnp.float32)

    # Encoder CNN: Conv1d(n_mels,32)+ReLU, then 3x [Conv1d(32,32)+ReLU]
    cnn = []
    c_in = n_mels
    for _ in range(4):
        cnn.append((rand((3, c_in, cnn_channels)), rand((1, cnn_channels))))
        c_in = cnn_channels

    def gru_layers(in_dim, hidden, n_layers):
        layers = []
        d = in_dim
        for _ in range(n_layers):
            layers.append({
                "wih": rand((d, 3 * hidden)),
                "whh": rand((hidden, 3 * hidden)),
                "bih": rand((1, 3 * hidden)),
                "bhh": rand((1, 3 * hidden)),
            })
            d = hidden
        return layers

    enc_gru = gru_layers(cnn_channels, num_hidden, num_layers)
    dec = {
        "embed": rand((vocab_size, dim_embed)),
        "gru": gru_layers(dim_embed, num_hidden, num_layers),
        "lin_w": rand((num_hidden, vocab_size)),
        "lin_b": rand((1, vocab_size)),
    }
    return {"cnn": cnn, "enc_gru": enc_gru, "dec": dec}


# ----------------------------------------------------------------------------
# Model forward (teacher forcing)
# ----------------------------------------------------------------------------
def model_forward(params, inputs, gt_outputs):
    """
    inputs:     (B, T, n_mels) float32 spectrogram (full-length, no padding)
    gt_outputs: (B, L) int32 target token ids
    returns:    (B, L-1, vocab_size) logits
    """
    B, T, n_mels = inputs.shape

    # --- Encoder: one fused pallas_call (CNN stack + multi-layer GRU -> hn) ---
    x2 = jnp.transpose(inputs, (1, 0, 2)).reshape(T * B, n_mels)  # time-major
    hn2 = encoder_forward(params, x2, T=T, B=B)          # (num_layers*B, H)

    # --- Decoder (teacher forcing): one fused pallas_call ---
    dec = params["dec"]
    _, L = gt_outputs.shape
    Td = L - 1
    tokens = gt_outputs[:, :Td]
    # TODO(synk): embedding gather stays in XLA (no dedicated Pallas gather
    # kernel); ReLU of the Embedding is applied inside the decoder kernel.
    emb = dec["embed"][tokens]                           # (B, Td, E)
    emb2 = jnp.transpose(emb, (1, 0, 2)).reshape(Td * B, -1)
    logits2 = decoder_forward(dec, emb2, hn2, T=Td, B=B)  # (Td*B, vocab)
    V = logits2.shape[1]
    logits = logits2.reshape(Td, B, V)
    return jnp.transpose(logits, (1, 0, 2))              # (B, L-1, vocab)


# ----------------------------------------------------------------------------
if __name__ == "__main__":
    # Small, lane/sublane-aligned shapes (B multiple of 8, H multiple of 128).
    B = 8
    T = 16
    n_mels = 16
    cnn_channels = 32           # fixed at 32 in the PyTorch Encoder
    num_hidden = 128            # encoder hidden == decoder hidden (h0 wiring)
    num_layers = 2              # encoder layers == decoder layers (h0 wiring)
    dim_embed = 32
    vocab_size = 32
    L = 9                       # target length incl. <sos>; L-1 decode steps

    key = jax.random.PRNGKey(0)
    k_params, k_inp, k_tok = jax.random.split(key, 3)

    params = init_params(k_params, n_mels=n_mels, cnn_channels=cnn_channels,
                         num_hidden=num_hidden, num_layers=num_layers,
                         dim_embed=dim_embed, vocab_size=vocab_size)
    inputs = jax.random.normal(k_inp, (B, T, n_mels), dtype=jnp.float32)
    gt_outputs = jax.random.randint(k_tok, (B, L), 0, vocab_size,
                                    dtype=jnp.int32)

    logits = jax.jit(model_forward)(params, inputs, gt_outputs)
    logits = jax.block_until_ready(logits)

    assert logits.shape == (B, L - 1, vocab_size), logits.shape
    assert logits.dtype == jnp.float32
    assert bool(jnp.all(jnp.isfinite(logits)))
    print("KERNEL_OK")
</pallas_src>

<mosaic_0001>
module attributes {stable_mosaic.version = 11 : i64} {
  func.func @_encoder_kernel(%arg0: memref<128x16xf32, #tpu.memory_space<vmem>>, %arg1: memref<16x32xbf16, #tpu.memory_space<vmem>>, %arg2: memref<16x32xbf16, #tpu.memory_space<vmem>>, %arg3: memref<16x32xbf16, #tpu.memory_space<vmem>>, %arg4: memref<1x32xf32, #tpu.memory_space<vmem>>, %arg5: memref<32x32xbf16, #tpu.memory_space<vmem>>, %arg6: memref<32x32xbf16, #tpu.memory_space<vmem>>, %arg7: memref<32x32xbf16, #tpu.memory_space<vmem>>, %arg8: memref<1x32xf32, #tpu.memory_space<vmem>>, %arg9: memref<32x32xbf16, #tpu.memory_space<vmem>>, %arg10: memref<32x32xbf16, #tpu.memory_space<vmem>>, %arg11: memref<32x32xbf16, #tpu.memory_space<vmem>>, %arg12: memref<1x32xf32, #tpu.memory_space<vmem>>, %arg13: memref<32x32xbf16, #tpu.memory_space<vmem>>, %arg14: memref<32x32xbf16, #tpu.memory_space<vmem>>, %arg15: memref<32x32xbf16, #tpu.memory_space<vmem>>, %arg16: memref<1x32xf32, #tpu.memory_space<vmem>>, %arg17: memref<32x384xbf16, #tpu.memory_space<vmem>>, %arg18: memref<128x384xbf16, #tpu.memory_space<vmem>>, %arg19: memref<1x384xf32, #tpu.memory_space<vmem>>, %arg20: memref<1x384xf32, #tpu.memory_space<vmem>>, %arg21: memref<128x384xbf16, #tpu.memory_space<vmem>>, %arg22: memref<128x384xbf16, #tpu.memory_space<vmem>>, %arg23: memref<1x384xf32, #tpu.memory_space<vmem>>, %arg24: memref<1x384xf32, #tpu.memory_space<vmem>>, %arg25: memref<16x128xf32, #tpu.memory_space<vmem>>) attributes {dimension_semantics = [], scalar_prefetch = 0 : i64, scratch_operands = 0 : i64, tpu.core_type = #tpu.core_type<tc>} {
    %c0 = arith.constant 0 : index
    %c0_0 = arith.constant 0 : index
    %0 = vector.load %arg0[%c0, %c0_0] : memref<128x16xf32, #tpu.memory_space<vmem>>, vector<128x16xf32>
    %1 = arith.truncf %0 : vector<128x16xf32> to vector<128x16xbf16>
    %c0_1 = arith.constant 0 : index
    %c0_2 = arith.constant 0 : index
    %2 = vector.load %arg1[%c0_1, %c0_2] : memref<16x32xbf16, #tpu.memory_space<vmem>>, vector<16x32xbf16>
    %cst = arith.constant dense<0.000000e+00> : vector<128x32xf32>
    %3 = tpu.matmul %1, %2, %cst {dimension_numbers = #tpu.dot_dimension_numbers<[1], [0], [0], [1], [0, 0, 1, 1], [], []>} : vector<128x16xbf16>, vector<16x32xbf16>, vector<128x32xf32> -> vector<128x32xf32>
    %c0_3 = arith.constant 0 : index
    %c0_4 = arith.constant 0 : index
    %4 = vector.load %arg2[%c0_3, %c0_4] : memref<16x32xbf16, #tpu.memory_space<vmem>>, vector<16x32xbf16>
    %cst_5 = arith.constant dense<0.000000e+00> : vector<128x32xf32>
    %5 = tpu.matmul %1, %4, %cst_5 {dimension_numbers = #tpu.dot_dimension_numbers<[1], [0], [0], [1], [0, 0, 1, 1], [], []>} : vector<128x16xbf16>, vector<16x32xbf16>, vector<128x32xf32> -> vector<128x32xf32>
    %c0_6 = arith.constant 0 : index
    %c0_7 = arith.constant 0 : index
    %6 = vector.load %arg3[%c0_6, %c0_7] : memref<16x32xbf16, #tpu.memory_space<vmem>>, vector<16x32xbf16>
    %cst_8 = arith.constant dense<0.000000e+00> : vector<128x32xf32>
    %7 = tpu.matmul %1, %6, %cst_8 {dimension_numbers = #tpu.dot_dimension_numbers<[1], [0], [0], [1], [0, 0, 1, 1], [], []>} : vector<128x16xbf16>, vector<16x32xbf16>, vector<128x32xf32> -> vector<128x32xf32>
    %cst_9 = arith.constant 0.000000e+00 : f32
    %8 = vector.broadcast %cst_9 : f32 to vector<8x32xf32>
    %9 = vector.extract_strided_slice %3 {offsets = [0, 0], sizes = [120, 32], strides = [1, 1]} : vector<128x32xf32> to vector<120x32xf32>
    %10 = tpu.concatenate %8, %9 in 0 : vector<8x32xf32>, vector<120x32xf32> -> vector<128x32xf32>
    %11 = arith.addf %5, %10 : vector<128x32xf32>
    %12 = vector.extract_strided_slice %7 {offsets = [8, 0], sizes = [120, 32], strides = [1, 1]} : vector<128x32xf32> to vector<120x32xf32>
    %13 = tpu.concatenate %12, %8 in 0 : vector<120x32xf32>, vector<8x32xf32> -> vector<128x32xf32>
    %14 = arith.addf %11, %13 : vector<128x32xf32>
    %c0_10 = arith.constant 0 : index
    %c0_11 = arith.constant 0 : index
    %15 = vector.load %arg4[%c0_10, %c0_11] : memref<1x32xf32, #tpu.memory_space<vmem>>, vector<1x32xf32>
    %16 = vector.broadcast %15 : vector<1x32xf32> to vector<128x32xf32>
    %17 = arith.addf %14, %16 : vector<128x32xf32>
    %cst_12 = arith.constant 0.000000e+00 : f32
    %18 = vector.broadcast %cst_12 : f32 to vector<128x32xf32>
    %19 = arith.maximumf %17, %18 : vector<128x32xf32>
    %20 = arith.truncf %19 : vector<128x32xf32> to vector<128x32xbf16>
    %c0_13 = arith.constant 0 : index
    %c0_14 = arith.constant 0 : index
    %21 = vector.load %arg5[%c0_13, %c0_14] : memref<32x32xbf16, #tpu.memory_space<vmem>>, vector<32x32xbf16>
    %cst_15 = arith.constant dense<0.000000e+00> : vector<128x32xf32>
    %22 = tpu.matmul %20, %21, %cst_15 {dimension_numbers = #tpu.dot_dimension_numbers<[1], [0], [0], [1], [0, 0, 1, 1], [], []>} : vector<128x32xbf16>, vector<32x32xbf16>, vector<128x32xf32> -> vector<128x32xf32>
    %c0_16 = arith.constant 0 : index
    %c0_17 = arith.constant 0 : index
    %23 = vector.load %arg6[%c0_16, %c0_17] : memref<32x32xbf16, #tpu.memory_space<vmem>>, vector<32x32xbf16>
    %cst_18 = arith.constant dense<0.000000e+00> : vector<128x32xf32>
    %24 = tpu.matmul %20, %23, %cst_18 {dimension_numbers = #tpu.dot_dimension_numbers<[1], [0], [0], [1], [0, 0, 1, 1], [], []>} : vector<128x32xbf16>, vector<32x32xbf16>, vector<128x32xf32> -> vector<128x32xf32>
    %c0_19 = arith.constant 0 : index
    %c0_20 = arith.constant 0 : index
    %25 = vector.load %arg7[%c0_19, %c0_20] : memref<32x32xbf16, #tpu.memory_space<vmem>>, vector<32x32xbf16>
    %cst_21 = arith.constant dense<0.000000e+00> : vector<128x32xf32>
    %26 = tpu.matmul %20, %25, %cst_21 {dimension_numbers = #tpu.dot_dimension_numbers<[1], [0], [0], [1], [0, 0, 1, 1], [], []>} : vector<128x32xbf16>, vector<32x32xbf16>, vector<128x32xf32> -> vector<128x32xf32>
    %cst_22 = arith.constant 0.000000e+00 : f32
    %27 = vector.broadcast %cst_22 : f32 to vector<8x32xf32>
    %28 = vector.extract_strided_slice %22 {offsets = [0, 0], sizes = [120, 32], strides = [1, 1]} : vector<128x32xf32> to vector<120x32xf32>
    %29 = tpu.concatenate %27, %28 in 0 : vector<8x32xf32>, vector<120x32xf32> -> vector<128x32xf32>
    %30 = arith.addf %24, %29 : vector<128x32xf32>
    %31 = vector.extract_strided_slice %26 {offsets = [8, 0], sizes = [120, 32], strides = [1, 1]} : vector<128x32xf32> to vector<120x32xf32>
    %32 = tpu.concatenate %31, %27 in 0 : vector<120x32xf32>, vector<8x32xf32> -> vector<128x32xf32>
    %33 = arith.addf %30, %32 : vector<128x32xf32>
    %c0_23 = arith.constant 0 : index
    %c0_24 = arith.constant 0 : index
    %34 = vector.load %arg8[%c0_23, %c0_24] : memref<1x32xf32, #tpu.memory_space<vmem>>, vector<1x32xf32>
    %35 = vector.broadcast %34 : vector<1x32xf32> to vector<128x32xf32>
    %36 = arith.addf %33, %35 : vector<128x32xf32>
    %cst_25 = arith.constant 0.000000e+00 : f32
    %37 = vector.broadcast %cst_25 : f32 to vector<128x32xf32>
    %38 = arith.maximumf %36, %37 : vector<128x32xf32>
    %39 = arith.truncf %38 : vector<128x32xf32> to vector<128x32xbf16>
    %c0_26 = arith.constant 0 : index
    %c0_27 = arith.constant 0 : index
    %40 = vector.load %arg9[%c0_26, %c0_27] : memref<32x32xbf16, #tpu.memory_space<vmem>>, vector<32x32xbf16>
    %cst_28 = arith.constant dense<0.000000e+00> : vector<128x32xf32>
    %41 = tpu.matmul %39, %40, %cst_28 {dimension_numbers = #tpu.dot_dimension_numbers<[1], [0], [0], [1], [0, 0, 1, 1], [], []>} : vector<128x32xbf16>, vector<32x32xbf16>, vector<128x32xf32> -> vector<128x32xf32>
    %c0_29 = arith.constant 0 : index
    %c0_30 = arith.constant 0 : index
    %42 = vector.load %arg10[%c0_29, %c0_30] : memref<32x32xbf16, #tpu.memory_space<vmem>>, vector<32x32xbf16>
    %cst_31 = arith.constant dense<0.000000e+00> : vector<128x32xf32>
    %43 = tpu.matmul %39, %42, %cst_31 {dimension_numbers = #tpu.dot_dimension_numbers<[1], [0], [0], [1], [0, 0, 1, 1], [], []>} : vector<128x32xbf16>, vector<32x32xbf16>, vector<128x32xf32> -> vector<128x32xf32>
    %c0_32 = arith.constant 0 : index
    %c0_33 = arith.constant 0 : index
    %44 = vector.load %arg11[%c0_32, %c0_33] : memref<32x32xbf16, #tpu.memory_space<vmem>>, vector<32x32xbf16>
    %cst_34 = arith.constant dense<0.000000e+00> : vector<128x32xf32>
    %45 = tpu.matmul %39, %44, %cst_34 {dimension_numbers = #tpu.dot_dimension_numbers<[1], [0], [0], [1], [0, 0, 1, 1], [], []>} : vector<128x32xbf16>, vector<32x32xbf16>, vector<128x32xf32> -> vector<128x32xf32>
    %cst_35 = arith.constant 0.000000e+00 : f32
    %46 = vector.broadcast %cst_35 : f32 to vector<8x32xf32>
    %47 = vector.extract_strided_slice %41 {offsets = [0, 0], sizes = [120, 32], strides = [1, 1]} : vector<128x32xf32> to vector<120x32xf32>
    %48 = tpu.concatenate %46, %47 in 0 : vector<8x32xf32>, vector<120x32xf32> -> vector<128x32xf32>
    %49 = arith.addf %43, %48 : vector<128x32xf32>
    %50 = vector.extract_strided_slice %45 {offsets = [8, 0], sizes = [120, 32], strides = [1, 1]} : vector<128x32xf32> to vector<120x32xf32>
    %51 = tpu.concatenate %50, %46 in 0 : vector<120x32xf32>, vector<8x32xf32> -> vector<128x32xf32>
    %52 = arith.addf %49, %51 : vector<128x32xf32>
    %c0_36 = arith.constant 0 : index
    %c0_37 = arith.constant 0 : index
    %53 = vector.load %arg12[%c0_36, %c0_37] : memref<1x32xf32, #tpu.memory_space<vmem>>, vector<1x32xf32>
    %54 = vector.broadcast %53 : vector<1x32xf32> to vector<128x32xf32>
    %55 = arith.addf %52, %54 : vector<128x32xf32>
    %cst_38 = arith.constant 0.000000e+00 : f32
    %56 = vector.broadcast %cst_38 : f32 to vector<128x32xf32>
    %57 = arith.maximumf %55, %56 : vector<128x32xf32>
    %58 = arith.truncf %57 : vector<128x32xf32> to vector<128x32xbf16>
    %c0_39 = arith.constant 0 : index
    %c0_40 = arith.constant 0 : index
    %59 = vector.load %arg13[%c0_39, %c0_40] : memref<32x32xbf16, #tpu.memory_space<vmem>>, vector<32x32xbf16>
    %cst_41 = arith.constant dense<0.000000e+00> : vector<128x32xf32>
    %60 = tpu.matmul %58, %59, %cst_41 {dimension_numbers = #tpu.dot_dimension_numbers<[1], [0], [0], [1], [0, 0, 1, 1], [], []>} : vector<128x32xbf16>, vector<32x32xbf16>, vector<128x32xf32> -> vector<128x32xf32>
    %c0_42 = arith.constant 0 : index
    %c0_43 = arith.constant 0 : index
    %61 = vector.load %arg14[%c0_42, %c0_43] : memref<32x32xbf16, #tpu.memory_space<vmem>>, vector<32x32xbf16>
    %cst_44 = arith.constant dense<0.000000e+00> : vector<128x32xf32>
    %62 = tpu.matmul %58, %61, %cst_44 {dimension_numbers = #tpu.dot_dimension_numbers<[1], [0], [0], [1], [0, 0, 1, 1], [], []>} : vector<128x32xbf16>, vector<32x32xbf16>, vector<128x32xf32> -> vector<128x32xf32>
    %c0_45 = arith.constant 0 : index
    %c0_46 = arith.constant 0 : index
    %63 = vector.load %arg15[%c0_45, %c0_46] : memref<32x32xbf16, #tpu.memory_space<vmem>>, vector<32x32xbf16>
    %cst_47 = arith.constant dense<0.000000e+00> : vector<128x32xf32>
    %64 = tpu.matmul %58, %63, %cst_47 {dimension_numbers = #tpu.dot_dimension_numbers<[1], [0], [0], [1], [0, 0, 1, 1], [], []>} : vector<128x32xbf16>, vector<32x32xbf16>, vector<128x32xf32> -> vector<128x32xf32>
    %cst_48 = arith.constant 0.000000e+00 : f32
    %65 = vector.broadcast %cst_48 : f32 to vector<8x32xf32>
    %66 = vector.extract_strided_slice %60 {offsets = [0, 0], sizes = [120, 32], strides = [1, 1]} : vector<128x32xf32> to vector<120x32xf32>
    %67 = tpu.concatenate %65, %66 in 0 : vector<8x32xf32>, vector<120x32xf32> -> vector<128x32xf32>
    %68 = arith.addf %62, %67 : vector<128x32xf32>
    %69 = vector.extract_strided_slice %64 {offsets = [8, 0], sizes = [120, 32], strides = [1, 1]} : vector<128x32xf32> to vector<120x32xf32>
    %70 = tpu.concatenate %69, %65 in 0 : vector<120x32xf32>, vector<8x32xf32> -> vector<128x32xf32>
    %71 = arith.addf %68, %70 : vector<128x32xf32>
    %c0_49 = arith.constant 0 : index
    %c0_50 = arith.constant 0 : index
    %72 = vector.load %arg16[%c0_49, %c0_50] : memref<1x32xf32, #tpu.memory_space<vmem>>, vector<1x32xf32>
    %73 = vector.broadcast %72 : vector<1x32xf32> to vector<128x32xf32>
    %74 = arith.addf %71, %73 : vector<128x32xf32>
    %cst_51 = arith.constant 0.000000e+00 : f32
    %75 = vector.broadcast %cst_51 : f32 to vector<128x32xf32>
    %76 = arith.maximumf %74, %75 : vector<128x32xf32>
    %cst_52 = arith.constant 0.000000e+00 : f32
    %77 = vector.broadcast %cst_52 : f32 to vector<8x128xf32>
    %78 = arith.truncf %76 : vector<128x32xf32> to vector<128x32xbf16>
    %c0_53 = arith.constant 0 : index
    %c0_54 = arith.constant 0 : index
    %79 = vector.load %arg17[%c0_53, %c0_54] : memref<32x384xbf16, #tpu.memory_space<vmem>>, vector<32x384xbf16>
    %cst_55 = arith.constant dense<0.000000e+00> : vector<128x384xf32>
    %80 = tpu.matmul %78, %79, %cst_55 {dimension_numbers = #tpu.dot_dimension_numbers<[1], [0], [0], [1], [0, 0, 1, 1], [], []>} : vector<128x32xbf16>, vector<32x384xbf16>, vector<128x384xf32> -> vector<128x384xf32>
    %c0_56 = arith.constant 0 : index
    %c0_57 = arith.constant 0 : index
    %81 = vector.load %arg19[%c0_56, %c0_57] : memref<1x384xf32, #tpu.memory_space<vmem>>, vector<1x384xf32>
    %82 = vector.broadcast %81 : vector<1x384xf32> to vector<128x384xf32>
    %83 = arith.addf %80, %82 : vector<128x384xf32>
    %c0_58 = arith.constant 0 : index
    %c0_59 = arith.constant 0 : index
    %84 = vector.load %arg18[%c0_58, %c0_59] : memref<128x384xbf16, #tpu.memory_space<vmem>>, vector<128x384xbf16>
    %c0_60 = arith.constant 0 : index
    %c0_61 = arith.constant 0 : index
    %85 = vector.load %arg20[%c0_60, %c0_61] : memref<1x384xf32, #tpu.memory_space<vmem>>, vector<1x384xf32>
    %86 = vector.extract_strided_slice %83 {offsets = [0, 0], sizes = [8, 384], strides = [1, 1]} : vector<128x384xf32> to vector<8x384xf32>
    %87 = arith.truncf %77 : vector<8x128xf32> to vector<8x128xbf16>
    %cst_62 = arith.constant dense<0.000000e+00> : vector<8x384xf32>
    %88 = tpu.matmul %87, %84, %cst_62 {dimension_numbers = #tpu.dot_dimension_numbers<[1], [0], [0], [1], [0, 0, 1, 1], [], []>} : vector<8x128xbf16>, vector<128x384xbf16>, vector<8x384xf32> -> vector<8x384xf32>
    %89 = vector.broadcast %85 : vector<1x384xf32> to vector<8x384xf32>
    %90 = arith.addf %88, %89 : vector<8x384xf32>
    %91 = vector.extract_strided_slice %86 {offsets = [0, 0], sizes = [8, 128], strides = [1, 1]} : vector<8x384xf32> to vector<8x128xf32>
    %92 = vector.extract_strided_slice %90 {offsets = [0, 0], sizes = [8, 128], strides = [1, 1]} : vector<8x384xf32> to vector<8x128xf32>
    %93 = arith.addf %91, %92 : vector<8x128xf32>
    %94 = arith.negf %93 : vector<8x128xf32>
    %95 = math.exp %94 : vector<8x128xf32>
    %cst_63 = arith.constant 1.000000e+00 : f32
    %96 = vector.broadcast %cst_63 : f32 to vector<8x128xf32>
    %97 = arith.addf %96, %95 : vector<8x128xf32>
    %98 = arith.divf %96, %97 : vector<8x128xf32>
    %99 = vector.extract_strided_slice %86 {offsets = [0, 128], sizes = [8, 128], strides = [1, 1]} : vector<8x384xf32> to vector<8x128xf32>
    %100 = vector.extract_strided_slice %90 {offsets = [0, 128], sizes = [8, 128], strides = [1, 1]} : vector<8x384xf32> to vector<8x128xf32>
    %101 = arith.addf %99, %100 : vector<8x128xf32>
    %102 = arith.negf %101 : vector<8x128xf32>
    %103 = math.exp %102 : vector<8x128xf32>
    %cst_64 = arith.constant 1.000000e+00 : f32
    %104 = vector.broadcast %cst_64 : f32 to vector<8x128xf32>
    %105 = arith.addf %104, %103 : vector<8x128xf32>
    %106 = arith.divf %104, %105 : vector<8x128xf32>
    %107 = vector.extract_strided_slice %86 {offsets = [0, 256], sizes = [8, 128], strides = [1, 1]} : vector<8x384xf32> to vector<8x128xf32>
    %108 = vector.extract_strided_slice %90 {offsets = [0, 256], sizes = [8, 128], strides = [1, 1]} : vector<8x384xf32> to vector<8x128xf32>
    %109 = arith.mulf %98, %108 : vector<8x128xf32>
    %110 = arith.addf %107, %109 : vector<8x128xf32>
    %111 = math.tanh %110 : vector<8x128xf32>
    %cst_65 = arith.constant 1.000000e+00 : f32
    %112 = vector.broadcast %cst_65 : f32 to vector<8x128xf32>
    %113 = arith.subf %112, %106 : vector<8x128xf32>
    %114 = arith.mulf %113, %111 : vector<8x128xf32>
    %115 = arith.mulf %106, %77 : vector<8x128xf32>
    %116 = arith.addf %114, %115 : vector<8x128xf32>
    %117 = vector.extract_strided_slice %83 {offsets = [8, 0], sizes = [8, 384], strides = [1, 1]} : vector<128x384xf32> to vector<8x384xf32>
    %118 = arith.truncf %116 : vector<8x128xf32> to vector<8x128xbf16>
    %cst_66 = arith.constant dense<0.000000e+00> : vector<8x384xf32>
    %119 = tpu.matmul %118, %84, %cst_66 {dimension_numbers = #tpu.dot_dimension_numbers<[1], [0], [0], [1], [0, 0, 1, 1], [], []>} : vector<8x128xbf16>, vector<128x384xbf16>, vector<8x384xf32> -> vector<8x384xf32>
    %120 = vector.broadcast %85 : vector<1x384xf32> to vector<8x384xf32>
    %121 = arith.addf %119, %120 : vector<8x384xf32>
    %122 = vector.extract_strided_slice %117 {offsets = [0, 0], sizes = [8, 128], strides = [1, 1]} : vector<8x384xf32> to vector<8x128xf32>
    %123 = vector.extract_strided_slice %121 {offsets = [0, 0], sizes = [8, 128], strides = [1, 1]} : vector<8x384xf32> to vector<8x128xf32>
    %124 = arith.addf %122, %123 : vector<8x128xf32>
    %125 = arith.negf %124 : vector<8x128xf32>
    %126 = math.exp %125 : vector<8x128xf32>
    %cst_67 = arith.constant 1.000000e+00 : f32
    %127 = vector.broadcast %cst_67 : f32 to vector<8x128xf32>
    %128 = arith.addf %127, %126 : vector<8x128xf32>
    %129 = arith.divf %127, %128 : vector<8x128xf32>
    %130 = vector.extract_strided_slice %117 {offsets = [0, 128], sizes = [8, 128], strides = [1, 1]} : vector<8x384xf32> to vector<8x128xf32>
    %131 = vector.extract_strided_slice %121 {offsets = [0, 128], sizes = [8, 128], strides = [1, 1]} : vector<8x384xf32> to vector<8x128xf32>
    %132 = arith.addf %130, %131 : vector<8x128xf32>
    %133 = arith.negf %132 : vector<8x128xf32>
    %134 = math.exp %133 : vector<8x128xf32>
    %cst_68 = arith.constant 1.000000e+00 : f32
    %135 = vector.broadcast %cst_68 : f32 to vector<8x128xf32>
    %136 = arith.addf %135, %134 : vector<8x128xf32>
    %137 = arith.divf %135, %136 : vector<8x128xf32>
    %138 = vector.extract_strided_slice %117 {offsets = [0, 256], sizes = [8, 128], strides = [1, 1]} : vector<8x384xf32> to vector<8x128xf32>
    %139 = vector.extract_strided_slice %121 {offsets = [0, 256], sizes = [8, 128], strides = [1, 1]} : vector<8x384xf32> to vector<8x128xf32>
    %140 = arith.mulf %129, %139 : vector<8x128xf32>
    %141 = arith.addf %138, %140 : vector<8x128xf32>
    %142 = math.tanh %141 : vector<8x128xf32>
    %cst_69 = arith.constant 1.000000e+00 : f32
    %143 = vector.broadcast %cst_69 : f32 to vector<8x128xf32>
    %144 = arith.subf %143, %137 : vector<8x128xf32>
    %145 = arith.mulf %144, %142 : vector<8x128xf32>
    %146 = arith.mulf %137, %116 : vector<8x128xf32>
    %147 = arith.addf %145, %146 : vector<8x128xf32>
    %148 = vector.extract_strided_slice %83 {offsets = [16, 0], sizes = [8, 384], strides = [1, 1]} : vector<128x384xf32> to vector<8x384xf32>
    %149 = arith.truncf %147 : vector<8x128xf32> to vector<8x128xbf16>
    %cst_70 = arith.constant dense<0.000000e+00> : vector<8x384xf32>
    %150 = tpu.matmul %149, %84, %cst_70 {dimension_numbers = #tpu.dot_dimension_numbers<[1], [0], [0], [1], [0, 0, 1, 1], [], []>} : vector<8x128xbf16>, vector<128x384xbf16>, vector<8x384xf32> -> vector<8x384xf32>
    %151 = vector.broadcast %85 : vector<1x384xf32> to vector<8x384xf32>
    %152 = arith.addf %150, %151 : vector<8x384xf32>
    %153 = vector.extract_strided_slice %148 {offsets = [0, 0], sizes = [8, 128], strides = [1, 1]} : vector<8x384xf32> to vector<8x128xf32>
    %154 = vector.extract_strided_slice %152 {offsets = [0, 0], sizes = [8, 128], strides = [1, 1]} : vector<8x384xf32> to vector<8x128xf32>
    %155 = arith.addf %153, %154 : vector<8x128xf32>
    %156 = arith.negf %155 : vector<8x128xf32>
    %157 = math.exp %156 : vector<8x128xf32>
    %cst_71 = arith.constant 1.000000e+00 : f32
    %158 = vector.broadcast %cst_71 : f32 to vector<8x128xf32>
    %159 = arith.addf %158, %157 : vector<8x128xf32>
    %160 = arith.divf %158, %159 : vector<8x128xf32>
    %161 = vector.extract_strided_slice %148 {offsets = [0, 128], sizes = [8, 128], strides = [1, 1]} : vector<8x384xf32> to vector<8x128xf32>
    %162 = vector.extract_strided_slice %152 {offsets = [0, 128], sizes = [8, 128], strides = [1, 1]} : vector<8x384xf32> to vector<8x128xf32>
    %163 = arith.addf %161, %162 : vector<8x128xf32>
    %164 = arith.negf %163 : vector<8x128xf32>
    %165 = math.exp %164 : vector<8x128xf32>
    %cst_72 = arith.constant 1.000000e+00 : f32
    %166 = vector.broadcast %cst_72 : f32 to vector<8x128xf32>
    %167 = arith.addf %166, %165 : vector<8x128xf32>
    %168 = arith.divf %166, %167 : vector<8x128xf32>
    %169 = vector.extract_strided_slice %148 {offsets = [0, 256], sizes = [8, 128], strides = [1, 1]} : vector<8x384xf32> to vector<8x128xf32>
    %170 = vector.extract_strided_slice %152 {offsets = [0, 256], sizes = [8, 128], strides = [1, 1]} : vector<8x384xf32> to vector<8x128xf32>
    %171 = arith.mulf %160, %170 : vector<8x128xf32>
    %172 = arith.addf %169, %171 : vector<8x128xf32>
    %173 = math.tanh %172 : vector<8x128xf32>
    %cst_73 = arith.constant 1.000000e+00 : f32
    %174 = vector.broadcast %cst_73 : f32 to vector<8x128xf32>
    %175 = arith.subf %174, %168 : vector<8x128xf32>
    %176 = arith.mulf %175, %173 : vector<8x128xf32>
    %177 = arith.mulf %168, %147 : vector<8x128xf32>
    %178 = arith.addf %176, %177 : vector<8x128xf32>
    %179 = vector.extract_strided_slice %83 {offsets = [24, 0], sizes = [8, 384], strides = [1, 1]} : vector<128x384xf32> to vector<8x384xf32>
    %180 = arith.truncf %178 : vector<8x128xf32> to vector<8x128xbf16>
    %cst_74 = arith.constant dense<0.000000e+00> : vector<8x384xf32>
    %181 = tpu.matmul %180, %84, %cst_74 {dimension_numbers = #tpu.dot_dimension_numbers<[1], [0], [0], [1], [0, 0, 1, 1], [], []>} : vector<8x128xbf16>, vector<128x384xbf16>, vector<8x384xf32> -> vector<8x384xf32>
    %182 = vector.broadcast %85 : vector<1x384xf32> to vector<8x384xf32>
    %183 = arith.addf %181, %182 : vector<8x384xf32>
    %184 = vector.extract_strided_slice %179 {offsets = [0, 0], sizes = [8, 128], strides = [1, 1]} : vector<8x384xf32> to vector<8x128xf32>
    %185 = vector.extract_strided_slice %183 {offsets = [0, 0], sizes = [8, 128], strides = [1, 1]} : vector<8x384xf32> to vector<8x128xf32>
    %186 = arith.addf %184, %185 : vector<8x128xf32>
    %187 = arith.negf %186 : vector<8x128xf32>
    %188 = math.exp %187 : vector<8x128xf32>
    %cst_75 = arith.constant 1.000000e+00 : f32
    %189 = vector.broadcast %cst_75 : f32 to vector<8x128xf32>
    %190 = arith.addf %189, %188 : vector<8x128xf32>
    %191 = arith.divf %189, %190 : vector<8x128xf32>
    %192 = vector.extract_strided_slice %179 {offsets = [0, 128], sizes = [8, 128], strides = [1, 1]} : vector<8x384xf32> to vector<8x128xf32>
    %193 = vector.extract_strided_slice %183 {offsets = [0, 128], sizes = [8, 128], strides = [1, 1]} : vector<8x384xf32> to vector<8x128xf32>
    %194 = arith.addf %192, %193 : vector<8x128xf32>
    %195 = arith.negf %194 : vector<8x128xf32>
    %196 = math.exp %195 : vector<8x128xf32>
    %cst_76 = arith.constant 1.000000e+00 : f32
    %197 = vector.broadcast %cst_76 : f32 to vector<8x128xf32>
    %198 = arith.addf %197, %196 : vector<8x128xf32>
    %199 = arith.divf %197, %198 : vector<8x128xf32>
    %200 = vector.extract_strided_slice %179 {offsets = [0, 256], sizes = [8, 128], strides = [1, 1]} : vector<8x384xf32> to vector<8x128xf32>
    %201 = vector.extract_strided_slice %183 {offsets = [0, 256], sizes = [8, 128], strides = [1, 1]} : vector<8x384xf32> to vector<8x128xf32>
    %202 = arith.mulf %191, %201 : vector<8x128xf32>
    %203 = arith.addf %200, %202 : vector<8x128xf32>
    %204 = math.tanh %203 : vector<8x128xf32>
    %cst_77 = arith.constant 1.000000e+00 : f32
    %205 = vector.broadcast %cst_77 : f32 to vector<8x128xf32>
    %206 = arith.subf %205, %199 : vector<8x128xf32>
    %207 = arith.mulf %206, %204 : vector<8x128xf32>
    %208 = arith.mulf %199, %178 : vector<8x128xf32>
    %209 = arith.addf %207, %208 : vector<8x128xf32>
    %210 = vector.extract_strided_slice %83 {offsets = [32, 0], sizes = [8, 384], strides = [1, 1]} : vector<128x384xf32> to vector<8x384xf32>
    %211 = arith.truncf %209 : vector<8x128xf32> to vector<8x128xbf16>
    %cst_78 = arith.constant dense<0.000000e+00> : vector<8x384xf32>
    %212 = tpu.matmul %211, %84, %cst_78 {dimension_numbers = #tpu.dot_dimension_numbers<[1], [0], [0], [1], [0, 0, 1, 1], [], []>} : vector<8x128xbf16>, vector<128x384xbf16>, vector<8x384xf32> -> vector<8x384xf32>
    %213 = vector.broadcast %85 : vector<1x384xf32> to vector<8x384xf32>
    %214 = arith.addf %212, %213 : vector<8x384xf32>
    %215 = vector.extract_strided_slice %210 {offsets = [0, 0], sizes = [8, 128], strides = [1, 1]} : vector<8x384xf32> to vector<8x128xf32>
    %216 = vector.extract_strided_slice %214 {offsets = [0, 0], sizes = [8, 128], strides = [1, 1]} : vector<8x384xf32> to vector<8x128xf32>
    %217 = arith.addf %215, %216 : vector<8x128xf32>
    %218 = arith.negf %217 : vector<8x128xf32>
    %219 = math.exp %218 : vector<8x128xf32>
    %cst_79 = arith.constant 1.000000e+00 : f32
    %220 = vector.broadcast %cst_79 : f32 to vector<8x128xf32>
    %221 = arith.addf %220, %219 : vector<8x128xf32>
    %222 = arith.divf %220, %221 : vector<8x128xf32>
    %223 = vector.extract_strided_slice %210 {offsets = [0, 128], sizes = [8, 128], strides = [1, 1]} : vector<8x384xf32> to vector<8x128xf32>
    %224 = vector.extract_strided_slice %214 {offsets = [0, 128], sizes = [8, 128], strides = [1, 1]} : vector<8x384xf32> to vector<8x128xf32>
    %225 = arith.addf %223, %224 : vector<8x128xf32>
    %226 = arith.negf %225 : vector<8x128xf32>
    %227 = math.exp %226 : vector<8x128xf32>
    %cst_80 = arith.constant 1.000000e+00 : f32
    %228 = vector.broadcast %cst_80 : f32 to vector<8x128xf32>
    %229 = arith.addf %228, %227 : vector<8x128xf32>
    %230 = arith.divf %228, %229 : vector<8x128xf32>
    %231 = vector.extract_strided_slice %210 {offsets = [0, 256], sizes = [8, 128], strides = [1, 1]} : vector<8x384xf32> to vector<8x128xf32>
    %232 = vector.extract_strided_slice %214 {offsets = [0, 256], sizes = [8, 128], strides = [1, 1]} : vector<8x384xf32> to vector<8x128xf32>
    %233 = arith.mulf %222, %232 : vector<8x128xf32>
    %234 = arith.addf %231, %233 : vector<8x128xf32>
    %235 = math.tanh %234 : vector<8x128xf32>
    %cst_81 = arith.constant 1.000000e+00 : f32
    %236 = vector.broadcast %cst_81 : f32 to vector<8x128xf32>
    %237 = arith.subf %236, %230 : vector<8x128xf32>
    %238 = arith.mulf %237, %235 : vector<8x128xf32>
    %239 = arith.mulf %230, %209 : vector<8x128xf32>
    %240 = arith.addf %238, %239 : vector<8x128xf32>
    %241 = vector.extract_strided_slice %83 {offsets = [40, 0], sizes = [8, 384], strides = [1, 1]} : vector<128x384xf32> to vector<8x384xf32>
    %242 = arith.truncf %240 : vector<8x128xf32> to vector<8x128xbf16>
    %cst_82 = arith.constant dense<0.000000e+00> : vector<8x384xf32>
    %243 = tpu.matmul %242, %84, %cst_82 {dimension_numbers = #tpu.dot_dimension_numbers<[1], [0], [0], [1], [0, 0, 1, 1], [], []>} : vector<8x128xbf16>, vector<128x384xbf16>, vector<8x384xf32> -> vector<8x384xf32>
    %244 = vector.broadcast %85 : vector<1x384xf32> to vector<8x384xf32>
    %245 = arith.addf %243, %244 : vector<8x384xf32>
    %246 = vector.extract_strided_slice %241 {offsets = [0, 0], sizes = [8, 128], strides = [1, 1]} : vector<8x384xf32> to vector<8x128xf32>
    %247 = vector.extract_strided_slice %245 {offsets = [0, 0], sizes = [8, 128], strides = [1, 1]} : vector<8x384xf32> to vector<8x128xf32>
    %248 = arith.addf %246, %247 : vector<8x128xf32>
    %249 = arith.negf %248 : vector<8x128xf32>
    %250 = math.exp %249 : vector<8x128xf32>
    %cst_83 = arith.constant 1.000000e+00 : f32
    %251 = vector.broadcast %cst_83 : f32 to vector<8x128xf32>
    %252 = arith.addf %251, %250 : vector<8x128xf32>
    %253 = arith.divf %251, %252 : vector<8x128xf32>
    %254 = vector.extract_strided_slice %241 {offsets = [0, 128], sizes = [8, 128], strides = [1, 1]} : vector<8x384xf32> to vector<8x128xf32>
    %255 = vector.extract_strided_slice %245 {offsets = [0, 128], sizes = [8, 128], strides = [1, 1]} : vector<8x384xf32> to vector<8x128xf32>
    %256 = arith.addf %254, %255 : vector<8x128xf32>
    %257 = arith.negf %256 : vector<8x128xf32>
    %258 = math.exp %257 : vector<8x128xf32>
    %cst_84 = arith.constant 1.000000e+00 : f32
    %259 = vector.broadcast %cst_84 : f32 to vector<8x128xf32>
    %260 = arith.addf %259, %258 : vector<8x128xf32>
    %261 = arith.divf %259, %260 : vector<8x128xf32>
    %262 = vector.extract_strided_slice %241 {offsets = [0, 256], sizes = [8, 128], strides = [1, 1]} : vector<8x384xf32> to vector<8x128xf32>
    %263 = vector.extract_strided_slice %245 {offsets = [0, 256], sizes = [8, 128], strides = [1, 1]} : vector<8x384xf32> to vector<8x128xf32>
    %264 = arith.mulf %253, %263 : vector<8x128xf32>
    %265 = arith.addf %262, %264 : vector<8x128xf32>
    %266 = math.tanh %265 : vector<8x128xf32>
    %cst_85 = arith.constant 1.000000e+00 : f32
    %267 = vector.broadcast %cst_85 : f32 to vector<8x128xf32>
    %268 = arith.subf %267, %261 : vector<8x128xf32>
    %269 = arith.mulf %268, %266 : vector<8x128xf32>
    %270 = arith.mulf %261, %240 : vector<8x128xf32>
    %271 = arith.addf %269, %270 : vector<8x128xf32>
    %272 = vector.extract_strided_slice %83 {offsets = [48, 0], sizes = [8, 384], strides = [1, 1]} : vector<128x384xf32> to vector<8x384xf32>
    %273 = arith.truncf %271 : vector<8x128xf32> to vector<8x128xbf16>
    %cst_86 = arith.constant dense<0.000000e+00> : vector<8x384xf32>
    %274 = tpu.matmul %273, %84, %cst_86 {dimension_numbers = #tpu.dot_dimension_numbers<[1], [0], [0], [1], [0, 0, 1, 1], [], []>} : vector<8x128xbf16>, vector<128x384xbf16>, vector<8x384xf32> -> vector<8x384xf32>
    %275 = vector.broadcast %85 : vector<1x384xf32> to vector<8x384xf32>
    %276 = arith.addf %274, %275 : vector<8x384xf32>
    %277 = vector.extract_strided_slice %272 {offsets = [0, 0], sizes = [8, 128], strides = [1, 1]} : vector<8x384xf32> to vector<8x128xf32>
    %278 = vector.extract_strided_slice %276 {offsets = [0, 0], sizes = [8, 128], strides = [1, 1]} : vector<8x384xf32> to vector<8x128xf32>
    %279 = arith.addf %277, %278 : vector<8x128xf32>
    %280 = arith.negf %279 : vector<8x128xf32>
    %281 = math.exp %280 : vector<8x128xf32>
    %cst_87 = arith.constant 1.000000e+00 : f32
    %282 = vector.broadcast %cst_87 : f32 to vector<8x128xf32>
    %283 = arith.addf %282, %281 : vector<8x128xf32>
    %284 = arith.divf %282, %283 : vector<8x128xf32>
    %285 = vector.extract_strided_slice %272 {offsets = [0, 128], sizes = [8, 128], strides = [1, 1]} : vector<8x384xf32> to vector<8x128xf32>
    %286 = vector.extract_strided_slice %276 {offsets = [0, 128], sizes = [8, 128], strides = [1, 1]} : vector<8x384xf32> to vector<8x128xf32>
    %287 = arith.addf %285, %286 : vector<8x128xf32>
    %288 = arith.negf %287 : vector<8x128xf32>
    %289 = math.exp %288 : vector<8x128xf32>
    %cst_88 = arith.constant 1.000000e+00 : f32
    %290 = vector.broadcast %cst_88 : f32 to vector<8x128xf32>
    %291 = arith.addf %290, %289 : vector<8x128xf32>
    %292 = arith.divf %290, %291 : vector<8x128xf32>
    %293 = vector.extract_strided_slice %272 {offsets = [0, 256], sizes = [8, 128], strides = [1, 1]} : vector<8x384xf32> to vector<8x128xf32>
    %294 = vector.extract_strided_slice %276 {offsets = [0, 256], sizes = [8, 128], strides = [1, 1]} : vector<8x384xf32> to vector<8x128xf32>
    %295 = arith.mulf %284, %294 : vector<8x128xf32>
    %296 = arith.addf %293, %295 : vector<8x128xf32>
    %297 = math.tanh %296 : vector<8x128xf32>
    %cst_89 = arith.constant 1.000000e+00 : f32
    %298 = vector.broadcast %cst_89 : f32 to vector<8x128xf32>
    %299 = arith.subf %298, %292 : vector<8x128xf32>
    %300 = arith.mulf %299, %297 : vector<8x128xf32>
    %301 = arith.mulf %292, %271 : vector<8x128xf32>
    %302 = arith.addf %300, %301 : vector<8x128xf32>
    %303 = vector.extract_strided_slice %83 {offsets = [56, 0], sizes = [8, 384], strides = [1, 1]} : vector<128x384xf32> to vector<8x384xf32>
    %304 = arith.truncf %302 : vector<8x128xf32> to vector<8x128xbf16>
    %cst_90 = arith.constant dense<0.000000e+00> : vector<8x384xf32>
    %305 = tpu.matmul %304, %84, %cst_90 {dimension_numbers = #tpu.dot_dimension_numbers<[1], [0], [0], [1], [0, 0, 1, 1], [], []>} : vector<8x128xbf16>, vector<128x384xbf16>, vector<8x384xf32> -> vector<8x384xf32>
    %306 = vector.broadcast %85 : vector<1x384xf32> to vector<8x384xf32>
    %307 = arith.addf %305, %306 : vector<8x384xf32>
    %308 = vector.extract_strided_slice %303 {offsets = [0, 0], sizes = [8, 128], strides = [1, 1]} : vector<8x384xf32> to vector<8x128xf32>
    %309 = vector.extract_strided_slice %307 {offsets = [0, 0], sizes = [8, 128], strides = [1, 1]} : vector<8x384xf32> to vector<8x128xf32>
    %310 = arith.addf %308, %309 : vector<8x128xf32>
    %311 = arith.negf %310 : vector<8x128xf32>
    %312 = math.exp %311 : vector<8x128xf32>
    %cst_91 = arith.constant 1.000000e+00 : f32
    %313 = vector.broadcast %cst_91 : f32 to vector<8x128xf32>
    %314 = arith.addf %313, %312 : vector<8x128xf32>
    %315 = arith.divf %313, %314 : vector<8x128xf32>
    %316 = vector.extract_strided_slice %303 {offsets = [0, 128], sizes = [8, 128], strides = [1, 1]} : vector<8x384xf32> to vector<8x128xf32>
    %317 = vector.extract_strided_slice %307 {offsets = [0, 128], sizes = [8, 128], strides = [1, 1]} : vector<8x384xf32> to vector<8x128xf32>
    %318 = arith.addf %316, %317 : vector<8x128xf32>
    %319 = arith.negf %318 : vector<8x128xf32>
    %320 = math.exp %319 : vector<8x128xf32>
    %cst_92 = arith.constant 1.000000e+00 : f32
    %321 = vector.broadcast %cst_92 : f32 to vector<8x128xf32>
    %322 = arith.addf %321, %320 : vector<8x128xf32>
    %323 = arith.divf %321, %322 : vector<8x128xf32>
    %324 = vector.extract_strided_slice %303 {offsets = [0, 256], sizes = [8, 128], strides = [1, 1]} : vector<8x384xf32> to vector<8x128xf32>
    %325 = vector.extract_strided_slice %307 {offsets = [0, 256], sizes = [8, 128], strides = [1, 1]} : vector<8x384xf32> to vector<8x128xf32>
    %326 = arith.mulf %315, %325 : vector<8x128xf32>
    %327 = arith.addf %324, %326 : vector<8x128xf32>
    %328 = math.tanh %327 : vector<8x128xf32>
    %cst_93 = arith.constant 1.000000e+00 : f32
    %329 = vector.broadcast %cst_93 : f32 to vector<8x128xf32>
    %330 = arith.subf %329, %323 : vector<8x128xf32>
    %331 = arith.mulf %330, %328 : vector<8x128xf32>
    %332 = arith.mulf %323, %302 : vector<8x128xf32>
    %333 = arith.addf %331, %332 : vector<8x128xf32>
    %334 = vector.extract_strided_slice %83 {offsets = [64, 0], sizes = [8, 384], strides = [1, 1]} : vector<128x384xf32> to vector<8x384xf32>
    %335 = arith.truncf %333 : vector<8x128xf32> to vector<8x128xbf16>
    %cst_94 = arith.constant dense<0.000000e+00> : vector<8x384xf32>
    %336 = tpu.matmul %335, %84, %cst_94 {dimension_numbers = #tpu.dot_dimension_numbers<[1], [0], [0], [1], [0, 0, 1, 1], [], []>} : vector<8x128xbf16>, vector<128x384xbf16>, vector<8x384xf32> -> vector<8x384xf32>
    %337 = vector.broadcast %85 : vector<1x384xf32> to vector<8x384xf32>
    %338 = arith.addf %336, %337 : vector<8x384xf32>
    %339 = vector.extract_strided_slice %334 {offsets = [0, 0], sizes = [8, 128], strides = [1, 1]} : vector<8x384xf32> to vector<8x128xf32>
    %340 = vector.extract_strided_slice %338 {offsets = [0, 0], sizes = [8, 128], strides = [1, 1]} : vector<8x384xf32> to vector<8x128xf32>
    %341 = arith.addf %339, %340 : vector<8x128xf32>
    %342 = arith.negf %341 : vector<8x128xf32>
    %343 = math.exp %342 : vector<8x128xf32>
    %cst_95 = arith.constant 1.000000e+00 : f32
    %344 = vector.broadcast %cst_95 : f32 to vector<8x128xf32>
    %345 = arith.addf %344, %343 : vector<8x128xf32>
    %346 = arith.divf %344, %345 : vector<8x128xf32>
    %347 = vector.extract_strided_slice %334 {offsets = [0, 128], sizes = [8, 128], strides = [1, 1]} : vector<8x384xf32> to vector<8x128xf32>
    %348 = vector.extract_strided_slice %338 {offsets = [0, 128], sizes = [8, 128], strides = [1, 1]} : vector<8x384xf32> to vector<8x128xf32>
    %349 = arith.addf %347, %348 : vector<8x128xf32>
    %350 = arith.negf %349 : vector<8x128xf32>
    %351 = math.exp %350 : vector<8x128xf32>
    %cst_96 = arith.constant 1.000000e+00 : f32
    %352 = vector.broadcast %cst_96 : f32 to vector<8x128xf32>
    %353 = arith.addf %352, %351 : vector<8x128xf32>
    %354 = arith.divf %352, %353 : vector<8x128xf32>
    %355 = vector.extract_strided_slice %334 {offsets = [0, 256], sizes = [8, 128], strides = [1, 1]} : vector<8x384xf32> to vector<8x128xf32>
    %356 = vector.extract_strided_slice %338 {offsets = [0, 256], sizes = [8, 128], strides = [1, 1]} : vector<8x384xf32> to vector<8x128xf32>
    %357 = arith.mulf %346, %356 : vector<8x128xf32>
    %358 = arith.addf %355, %357 : vector<8x128xf32>
    %359 = math.tanh %358 : vector<8x128xf32>
    %cst_97 = arith.constant 1.000000e+00 : f32
    %360 = vector.broadcast %cst_97 : f32 to vector<8x128xf32>
    %361 = arith.subf %360, %354 : vector<8x128xf32>
    %362 = arith.mulf %361, %359 : vector<8x128xf32>
    %363 = arith.mulf %354, %333 : vector<8x128xf32>
    %364 = arith.addf %362, %363 : vector<8x128xf32>
    %365 = vector.extract_strided_slice %83 {offsets = [72, 0], sizes = [8, 384], strides = [1, 1]} : vector<128x384xf32> to vector<8x384xf32>
    %366 = arith.truncf %364 : vector<8x128xf32> to vector<8x128xbf16>
    %cst_98 = arith.constant dense<0.000000e+00> : vector<8x384xf32>
    %367 = tpu.matmul %366, %84, %cst_98 {dimension_numbers = #tpu.dot_dimension_numbers<[1], [0], [0], [1], [0, 0, 1, 1], [], []>} : vector<8x128xbf16>, vector<128x384xbf16>, vector<8x384xf32> -> vector<8x384xf32>
    %368 = vector.broadcast %85 : vector<1x384xf32> to vector<8x384xf32>
    %369 = arith.addf %367, %368 : vector<8x384xf32>
    %370 = vector.extract_strided_slice %365 {offsets = [0, 0], sizes = [8, 128], strides = [1, 1]} : vector<8x384xf32> to vector<8x128xf32>
    %371 = vector.extract_strided_slice %369 {offsets = [0, 0], sizes = [8, 128], strides = [1, 1]} : vector<8x384xf32> to vector<8x128xf32>
    %372 = arith.addf %370, %371 : vector<8x128xf32>
    %373 = arith.negf %372 : vector<8x128xf32>
    %374 = math.exp %373 : vector<8x128xf32>
    %cst_99 = arith.constant 1.000000e+00 : f32
    %375 = vector.broadcast %cst_99 : f32 to vector<8x128xf32>
    %376 = arith.addf %375, %374 : vector<8x128xf32>
    %377 = arith.divf %375, %376 : vector<8x128xf32>
    %378 = vector.extract_strided_slice %365 {offsets = [0, 128], sizes = [8, 128], strides = [1, 1]} : vector<8x384xf32> to vector<8x128xf32>
    %379 = vector.extract_strided_slice %369 {offsets = [0, 128], sizes = [8, 128], strides = [1, 1]} : vector<8x384xf32> to vector<8x128xf32>
    %380 = arith.addf %378, %379 : vector<8x128xf32>
    %381 = arith.negf %380 : vector<8x128xf32>
    %382 = math.exp %381 : vector<8x128xf32>
    %cst_100 = arith.constant 1.000000e+00 : f32
    %383 = vector.broadcast %cst_100 : f32 to vector<8x128xf32>
    %384 = arith.addf %383, %382 : vector<8x128xf32>
    %385 = arith.divf %383, %384 : vector<8x128xf32>
    %386 = vector.extract_strided_slice %365 {offsets = [0, 256], sizes = [8, 128], strides = [1, 1]} : vector<8x384xf32> to vector<8x128xf32>
    %387 = vector.extract_strided_slice %369 {offsets = [0, 256], sizes = [8, 128], strides = [1, 1]} : vector<8x384xf32> to vector<8x128xf32>
    %388 = arith.mulf %377, %387 : vector<8x128xf32>
    %389 = arith.addf %386, %388 : vector<8x128xf32>
    %390 = math.tanh %389 : vector<8x128xf32>
    %cst_101 = arith.constant 1.000000e+00 : f32
    %391 = vector.broadcast %cst_101 : f32 to vector<8x128xf32>
    %392 = arith.subf %391, %385 : vector<8x128xf32>
    %393 = arith.mulf %392, %390 : vector<8x128xf32>
    %394 = arith.mulf %385, %364 : vector<8x128xf32>
    %395 = arith.addf %393, %394 : vector<8x128xf32>
    %396 = vector.extract_strided_slice %83 {offsets = [80, 0], sizes = [8, 384], strides = [1, 1]} : vector<128x384xf32> to vector<8x384xf32>
    %397 = arith.truncf %395 : vector<8x128xf32> to vector<8x128xbf16>
    %cst_102 = arith.constant dense<0.000000e+00> : vector<8x384xf32>
    %398 = tpu.matmul %397, %84, %cst_102 {dimension_numbers = #tpu.dot_dimension_numbers<[1], [0], [0], [1], [0, 0, 1, 1], [], []>} : vector<8x128xbf16>, vector<128x384xbf16>, vector<8x384xf32> -> vector<8x384xf32>
    %399 = vector.broadcast %85 : vector<1x384xf32> to vector<8x384xf32>
    %400 = arith.addf %398, %399 : vector<8x384xf32>
    %401 = vector.extract_strided_slice %396 {offsets = [0, 0], sizes = [8, 128], strides = [1, 1]} : vector<8x384xf32> to vector<8x128xf32>
    %402 = vector.extract_strided_slice %400 {offsets = [0, 0], sizes = [8, 128], strides = [1, 1]} : vector<8x384xf32> to vector<8x128xf32>
    %403 = arith.addf %401, %402 : vector<8x128xf32>
    %404 = arith.negf %403 : vector<8x128xf32>
    %405 = math.exp %404 : vector<8x128xf32>
    %cst_103 = arith.constant 1.000000e+00 : f32
    %406 = vector.broadcast %cst_103 : f32 to vector<8x128xf32>
    %407 = arith.addf %406, %405 : vector<8x128xf32>
    %408 = arith.divf %406, %407 : vector<8x128xf32>
    %409 = vector.extract_strided_slice %396 {offsets = [0, 128], sizes = [8, 128], strides = [1, 1]} : vector<8x384xf32> to vector<8x128xf32>
    %410 = vector.extract_strided_slice %400 {offsets = [0, 128], sizes = [8, 128], strides = [1, 1]} : vector<8x384xf32> to vector<8x128xf32>
    %411 = arith.addf %409, %410 : vector<8x128xf32>
    %412 = arith.negf %411 : vector<8x128xf32>
    %413 = math.exp %412 : vector<8x128xf32>
    %cst_104 = arith.constant 1.000000e+00 : f32
    %414 = vector.broadcast %cst_104 : f32 to vector<8x128xf32>
    %415 = arith.addf %414, %413 : vector<8x128xf32>
    %416 = arith.divf %414, %415 : vector<8x128xf32>
    %417 = vector.extract_strided_slice %396 {offsets = [0, 256], sizes = [8, 128], strides = [1, 1]} : vector<8x384xf32> to vector<8x128xf32>
    %418 = vector.extract_strided_slice %400 {offsets = [0, 256], sizes = [8, 128], strides = [1, 1]} : vector<8x384xf32> to vector<8x128xf32>
    %419 = arith.mulf %408, %418 : vector<8x128xf32>
    %420 = arith.addf %417, %419 : vector<8x128xf32>
    %421 = math.tanh %420 : vector<8x128xf32>
    %cst_105 = arith.constant 1.000000e+00 : f32
    %422 = vector.broadcast %cst_105 : f32 to vector<8x128xf32>
    %423 = arith.subf %422, %416 : vector<8x128xf32>
    %424 = arith.mulf %423, %421 : vector<8x128xf32>
    %425 = arith.mulf %416, %395 : vector<8x128xf32>
    %426 = arith.addf %424, %425 : vector<8x128xf32>
    %427 = vector.extract_strided_slice %83 {offsets = [88, 0], sizes = [8, 384], strides = [1, 1]} : vector<128x384xf32> to vector<8x384xf32>
    %428 = arith.truncf %426 : vector<8x128xf32> to vector<8x128xbf16>
    %cst_106 = arith.constant dense<0.000000e+00> : vector<8x384xf32>
    %429 = tpu.matmul %428, %84, %cst_106 {dimension_numbers = #tpu.dot_dimension_numbers<[1], [0], [0], [1], [0, 0, 1, 1], [], []>} : vector<8x128xbf16>, vector<128x384xbf16>, vector<8x384xf32> -> vector<8x384xf32>
    %430 = vector.broadcast %85 : vector<1x384xf32> to vector<8x384xf32>
    %431 = arith.addf %429, %430 : vector<8x384xf32>
    %432 = vector.extract_strided_slice %427 {offsets = [0, 0], sizes = [8, 128], strides = [1, 1]} : vector<8x384xf32> to vector<8x128xf32>
    %433 = vector.extract_strided_slice %431 {offsets = [0, 0], sizes = [8, 128], strides = [1, 1]} : vector<8x384xf32> to vector<8x128xf32>
    %434 = arith.addf %432, %433 : vector<8x128xf32>
    %435 = arith.negf %434 : vector<8x128xf32>
    %436 = math.exp %435 : vector<8x128xf32>
    %cst_107 = arith.constant 1.000000e+00 : f32
    %437 = vector.broadcast %cst_107 : f32 to vector<8x128xf32>
    %438 = arith.addf %437, %436 : vector<8x128xf32>
    %439 = arith.divf %437, %438 : vector<8x128xf32>
    %440 = vector.extract_strided_slice %427 {offsets = [0, 128], sizes = [8, 128], strides = [1, 1]} : vector<8x384xf32> to vector<8x128xf32>
    %441 = vector.extract_strided_slice %431 {offsets = [0, 128], sizes = [8, 128], strides = [1, 1]} : vector<8x384xf32> to vector<8x128xf32>
    %442 = arith.addf %440, %441 : vector<8x128xf32>
    %443 = arith.negf %442 : vector<8x128xf32>
    %444 = math.exp %443 : vector<8x128xf32>
    %cst_108 = arith.constant 1.000000e+00 : f32
    %445 = vector.broadcast %cst_108 : f32 to vector<8x128xf32>
    %446 = arith.addf %445, %444 : vector<8x128xf32>
    %447 = arith.divf %445, %446 : vector<8x128xf32>
    %448 = vector.extract_strided_slice %427 {offsets = [0, 256], sizes = [8, 128], strides = [1, 1]} : vector<8x384xf32> to vector<8x128xf32>
    %449 = vector.extract_strided_slice %431 {offsets = [0, 256], sizes = [8, 128], strides = [1, 1]} : vector<8x384xf32> to vector<8x128xf32>
    %450 = arith.mulf %439, %449 : vector<8x128xf32>
    %451 = arith.addf %448, %450 : vector<8x128xf32>
    %452 = math.tanh %451 : vector<8x128xf32>
    %cst_109 = arith.constant 1.000000e+00 : f32
    %453 = vector.broadcast %cst_109 : f32 to vector<8x128xf32>
    %454 = arith.subf %453, %447 : vector<8x128xf32>
    %455 = arith.mulf %454, %452 : vector<8x128xf32>
    %456 = arith.mulf %447, %426 : vector<8x128xf32>
    %457 = arith.addf %455, %456 : vector<8x128xf32>
    %458 = vector.extract_strided_slice %83 {offsets = [96, 0], sizes = [8, 384], strides = [1, 1]} : vector<128x384xf32> to vector<8x384xf32>
    %459 = arith.truncf %457 : vector<8x128xf32> to vector<8x128xbf16>
    %cst_110 = arith.constant dense<0.000000e+00> : vector<8x384xf32>
    %460 = tpu.matmul %459, %84, %cst_110 {dimension_numbers = #tpu.dot_dimension_numbers<[1], [0], [0], [1], [0, 0, 1, 1], [], []>} : vector<8x128xbf16>, vector<128x384xbf16>, vector<8x384xf32> -> vector<8x384xf32>
    %461 = vector.broadcast %85 : vector<1x384xf32> to vector<8x384xf32>
    %462 = arith.addf %460, %461 : vector<8x384xf32>
    %463 = vector.extract_strided_slice %458 {offsets = [0, 0], sizes = [8, 128], strides = [1, 1]} : vector<8x384xf32> to vector<8x128xf32>
    %464 = vector.extract_strided_slice %462 {offsets = [0, 0], sizes = [8, 128], strides = [1, 1]} : vector<8x384xf32> to vector<8x128xf32>
    %465 = arith.addf %463, %464 : vector<8x128xf32>
    %466 = arith.negf %465 : vector<8x128xf32>
    %467 = math.exp %466 : vector<8x128xf32>
    %cst_111 = arith.constant 1.000000e+00 : f32
    %468 = vector.broadcast %cst_111 : f32 to vector<8x128xf32>
    %469 = arith.addf %468, %467 : vector<8x128xf32>
    %470 = arith.divf %468, %469 : vector<8x128xf32>
    %471 = vector.extract_strided_slice %458 {offsets = [0, 128], sizes = [8, 128], strides = [1, 1]} : vector<8x384xf32> to vector<8x128xf32>
    %472 = vector.extract_strided_slice %462 {offsets = [0, 128], sizes = [8, 128], strides = [1, 1]} : vector<8x384xf32> to vector<8x128xf32>
    %473 = arith.addf %471, %472 : vector<8x128xf32>
    %474 = arith.negf %473 : vector<8x128xf32>
    %475 = math.exp %474 : vector<8x128xf32>
    %cst_112 = arith.constant 1.000000e+00 : f32
    %476 = vector.broadcast %cst_112 : f32 to vector<8x128xf32>
    %477 = arith.addf %476, %475 : vector<8x128xf32>
    %478 = arith.divf %476, %477 : vector<8x128xf32>
    %479 = vector.extract_strided_slice %458 {offsets = [0, 256], sizes = [8, 128], strides = [1, 1]} : vector<8x384xf32> to vector<8x128xf32>
    %480 = vector.extract_strided_slice %462 {offsets = [0, 256], sizes = [8, 128], strides = [1, 1]} : vector<8x384xf32> to vector<8x128xf32>
    %481 = arith.mulf %470, %480 : vector<8x128xf32>
    %482 = arith.addf %479, %481 : vector<8x128xf32>
    %483 = math.tanh %482 : vector<8x128xf32>
    %cst_113 = arith.constant 1.000000e+00 : f32
    %484 = vector.broadcast %cst_113 : f32 to vector<8x128xf32>
    %485 = arith.subf %484, %478 : vector<8x128xf32>
    %486 = arith.mulf %485, %483 : vector<8x128xf32>
    %487 = arith.mulf %478, %457 : vector<8x128xf32>
    %488 = arith.addf %486, %487 : vector<8x128xf32>
    %489 = vector.extract_strided_slice %83 {offsets = [104, 0], sizes = [8, 384], strides = [1, 1]} : vector<128x384xf32> to vector<8x384xf32>
    %490 = arith.truncf %488 : vector<8x128xf32> to vector<8x128xbf16>
    %cst_114 = arith.constant dense<0.000000e+00> : vector<8x384xf32>
    %491 = tpu.matmul %490, %84, %cst_114 {dimension_numbers = #tpu.dot_dimension_numbers<[1], [0], [0], [1], [0, 0, 1, 1], [], []>} : vector<8x128xbf16>, vector<128x384xbf16>, vector<8x384xf32> -> vector<8x384xf32>
    %492 = vector.broadcast %85 : vector<1x384xf32> to vector<8x384xf32>
    %493 = arith.addf %491, %492 : vector<8x384xf32>
    %494 = vector.extract_strided_slice %489 {offsets = [0, 0], sizes = [8, 128], strides = [1, 1]} : vector<8x384xf32> to vector<8x128xf32>
    %495 = vector.extract_strided_slice %493 {offsets = [0, 0], sizes = [8, 128], strides = [1, 1]} : vector<8x384xf32> to vector<8x128xf32>
    %496 = arith.addf %494, %495 : vector<8x128xf32>
    %497 = arith.negf %496 : vector<8x128xf32>
    %498 = math.exp %497 : vector<8x128xf32>
    %cst_115 = arith.constant 1.000000e+00 : f32
    %499 = vector.broadcast %cst_115 : f32 to vector<8x128xf32>
    %500 = arith.addf %499, %498 : vector<8x128xf32>
    %501 = arith.divf %499, %500 : vector<8x128xf32>
    %502 = vector.extract_strided_slice %489 {offsets = [0, 128], sizes = [8, 128], strides = [1, 1]} : vector<8x384xf32> to vector<8x128xf32>
    %503 = vector.extract_strided_slice %493 {offsets = [0, 128], sizes = [8, 128], strides = [1, 1]} : vector<8x384xf32> to vector<8x128xf32>
    %504 = arith.addf %502, %503 : vector<8x128xf32>
    %505 = arith.negf %504 : vector<8x128xf32>
    %506 = math.exp %505 : vector<8x128xf32>
    %cst_116 = arith.constant 1.000000e+00 : f32
    %507 = vector.broadcast %cst_116 : f32 to vector<8x128xf32>
    %508 = arith.addf %507, %506 : vector<8x128xf32>
    %509 = arith.divf %507, %508 : vector<8x128xf32>
    %510 = vector.extract_strided_slice %489 {offsets = [0, 256], sizes = [8, 128], strides = [1, 1]} : vector<8x384xf32> to vector<8x128xf32>
    %511 = vector.extract_strided_slice %493 {offsets = [0, 256], sizes = [8, 128], strides = [1, 1]} : vector<8x384xf32> to vector<8x128xf32>
    %512 = arith.mulf %501, %511 : vector<8x128xf32>
    %513 = arith.addf %510, %512 : vector<8x128xf32>
    %514 = math.tanh %513 : vector<8x128xf32>
    %cst_117 = arith.constant 1.000000e+00 : f32
    %515 = vector.broadcast %cst_117 : f32 to vector<8x128xf32>
    %516 = arith.subf %515, %509 : vector<8x128xf32>
    %517 = arith.mulf %516, %514 : vector<8x128xf32>
    %518 = arith.mulf %509, %488 : vector<8x128xf32>
    %519 = arith.addf %517, %518 : vector<8x128xf32>
    %520 = vector.extract_strided_slice %83 {offsets = [112, 0], sizes = [8, 384], strides = [1, 1]} : vector<128x384xf32> to vector<8x384xf32>
    %521 = arith.truncf %519 : vector<8x128xf32> to vector<8x128xbf16>
    %cst_118 = arith.constant dense<0.000000e+00> : vector<8x384xf32>
    %522 = tpu.matmul %521, %84, %cst_118 {dimension_numbers = #tpu.dot_dimension_numbers<[1], [0], [0], [1], [0, 0, 1, 1], [], []>} : vector<8x128xbf16>, vector<128x384xbf16>, vector<8x384xf32> -> vector<8x384xf32>
    %523 = vector.broadcast %85 : vector<1x384xf32> to vector<8x384xf32>
    %524 = arith.addf %522, %523 : vector<8x384xf32>
    %525 = vector.extract_strided_slice %520 {offsets = [0, 0], sizes = [8, 128], strides = [1, 1]} : vector<8x384xf32> to vector<8x128xf32>
    %526 = vector.extract_strided_slice %524 {offsets = [0, 0], sizes = [8, 128], strides = [1, 1]} : vector<8x384xf32> to vector<8x128xf32>
    %527 = arith.addf %525, %526 : vector<8x128xf32>
    %528 = arith.negf %527 : vector<8x128xf32>
    %529 = math.exp %528 : vector<8x128xf32>
    %cst_119 = arith.constant 1.000000e+00 : f32
    %530 = vector.broadcast %cst_119 : f32 to vector<8x128xf32>
    %531 = arith.addf %530, %529 : vector<8x128xf32>
    %532 = arith.divf %530, %531 : vector<8x128xf32>
    %533 = vector.extract_strided_slice %520 {offsets = [0, 128], sizes = [8, 128], strides = [1, 1]} : vector<8x384xf32> to vector<8x128xf32>
    %534 = vector.extract_strided_slice %524 {offsets = [0, 128], sizes = [8, 128], strides = [1, 1]} : vector<8x384xf32> to vector<8x128xf32>
    %535 = arith.addf %533, %534 : vector<8x128xf32>
    %536 = arith.negf %535 : vector<8x128xf32>
    %537 = math.exp %536 : vector<8x128xf32>
    %cst_120 = arith.constant 1.000000e+00 : f32
    %538 = vector.broadcast %cst_120 : f32 to vector<8x128xf32>
    %539 = arith.addf %538, %537 : vector<8x128xf32>
    %540 = arith.divf %538, %539 : vector<8x128xf32>
    %541 = vector.extract_strided_slice %520 {offsets = [0, 256], sizes = [8, 128], strides = [1, 1]} : vector<8x384xf32> to vector<8x128xf32>
    %542 = vector.extract_strided_slice %524 {offsets = [0, 256], sizes = [8, 128], strides = [1, 1]} : vector<8x384xf32> to vector<8x128xf32>
    %543 = arith.mulf %532, %542 : vector<8x128xf32>
    %544 = arith.addf %541, %543 : vector<8x128xf32>
    %545 = math.tanh %544 : vector<8x128xf32>
    %cst_121 = arith.constant 1.000000e+00 : f32
    %546 = vector.broadcast %cst_121 : f32 to vector<8x128xf32>
    %547 = arith.subf %546, %540 : vector<8x128xf32>
    %548 = arith.mulf %547, %545 : vector<8x128xf32>
    %549 = arith.mulf %540, %519 : vector<8x128xf32>
    %550 = arith.addf %548, %549 : vector<8x128xf32>
    %551 = vector.extract_strided_slice %83 {offsets = [120, 0], sizes = [8, 384], strides = [1, 1]} : vector<128x384xf32> to vector<8x384xf32>
    %552 = arith.truncf %550 : vector<8x128xf32> to vector<8x128xbf16>
    %cst_122 = arith.constant dense<0.000000e+00> : vector<8x384xf32>
    %553 = tpu.matmul %552, %84, %cst_122 {dimension_numbers = #tpu.dot_dimension_numbers<[1], [0], [0], [1], [0, 0, 1, 1], [], []>} : vector<8x128xbf16>, vector<128x384xbf16>, vector<8x384xf32> -> vector<8x384xf32>
    %554 = vector.broadcast %85 : vector<1x384xf32> to vector<8x384xf32>
    %555 = arith.addf %553, %554 : vector<8x384xf32>
    %556 = vector.extract_strided_slice %551 {offsets = [0, 0], sizes = [8, 128], strides = [1, 1]} : vector<8x384xf32> to vector<8x128xf32>
    %557 = vector.extract_strided_slice %555 {offsets = [0, 0], sizes = [8, 128], strides = [1, 1]} : vector<8x384xf32> to vector<8x128xf32>
    %558 = arith.addf %556, %557 : vector<8x128xf32>
    %559 = arith.negf %558 : vector<8x128xf32>
    %560 = math.exp %559 : vector<8x128xf32>
    %cst_123 = arith.constant 1.000000e+00 : f32
    %561 = vector.broadcast %cst_123 : f32 to vector<8x128xf32>
    %562 = arith.addf %561, %560 : vector<8x128xf32>
    %563 = arith.divf %561, %562 : vector<8x128xf32>
    %564 = vector.extract_strided_slice %551 {offsets = [0, 128], sizes = [8, 128], strides = [1, 1]} : vector<8x384xf32> to vector<8x128xf32>
    %565 = vector.extract_strided_slice %555 {offsets = [0, 128], sizes = [8, 128], strides = [1, 1]} : vector<8x384xf32> to vector<8x128xf32>
    %566 = arith.addf %564, %565 : vector<8x128xf32>
    %567 = arith.negf %566 : vector<8x128xf32>
    %568 = math.exp %567 : vector<8x128xf32>
    %cst_124 = arith.constant 1.000000e+00 : f32
    %569 = vector.broadcast %cst_124 : f32 to vector<8x128xf32>
    %570 = arith.addf %569, %568 : vector<8x128xf32>
    %571 = arith.divf %569, %570 : vector<8x128xf32>
    %572 = vector.extract_strided_slice %551 {offsets = [0, 256], sizes = [8, 128], strides = [1, 1]} : vector<8x384xf32> to vector<8x128xf32>
    %573 = vector.extract_strided_slice %555 {offsets = [0, 256], sizes = [8, 128], strides = [1, 1]} : vector<8x384xf32> to vector<8x128xf32>
    %574 = arith.mulf %563, %573 : vector<8x128xf32>
    %575 = arith.addf %572, %574 : vector<8x128xf32>
    %576 = math.tanh %575 : vector<8x128xf32>
    %cst_125 = arith.constant 1.000000e+00 : f32
    %577 = vector.broadcast %cst_125 : f32 to vector<8x128xf32>
    %578 = arith.subf %577, %571 : vector<8x128xf32>
    %579 = arith.mulf %578, %576 : vector<8x128xf32>
    %580 = arith.mulf %571, %550 : vector<8x128xf32>
    %581 = arith.addf %579, %580 : vector<8x128xf32>
    %582 = tpu.concatenate %116, %147, %178, %209, %240, %271, %302, %333, %364, %395, %426, %457, %488, %519, %550, %581 in 0 : vector<8x128xf32>, vector<8x128xf32>, vector<8x128xf32>, vector<8x128xf32>, vector<8x128xf32>, vector<8x128xf32>, vector<8x128xf32>, vector<8x128xf32>, vector<8x128xf32>, vector<8x128xf32>, vector<8x128xf32>, vector<8x128xf32>, vector<8x128xf32>, vector<8x128xf32>, vector<8x128xf32>, vector<8x128xf32> -> vector<128x128xf32>
    %c0_126 = arith.constant 0 : index
    %c0_127 = arith.constant 0 : index
    %583 = vector.load %arg25[%c0_126, %c0_127] : memref<16x128xf32, #tpu.memory_space<vmem>>, vector<8x128xf32>
    tpu.vector_store %arg25[%c0_126, %c0_127], %581 {strides = array<i32>} : memref<16x128xf32, #tpu.memory_space<vmem>>, vector<8x128xf32>,
    %cst_128 = arith.constant 0.000000e+00 : f32
    %584 = vector.broadcast %cst_128 : f32 to vector<8x128xf32>
    %585 = arith.truncf %582 : vector<128x128xf32> to vector<128x128xbf16>
    %c0_129 = arith.constant 0 : index
    %c0_130 = arith.constant 0 : index
    %586 = vector.load %arg21[%c0_129, %c0_130] : memref<128x384xbf16, #tpu.memory_space<vmem>>, vector<128x384xbf16>
    %cst_131 = arith.constant dense<0.000000e+00> : vector<128x384xf32>
    %587 = tpu.matmul %585, %586, %cst_131 {dimension_numbers = #tpu.dot_dimension_numbers<[1], [0], [0], [1], [0, 0, 1, 1], [], []>} : vector<128x128xbf16>, vector<128x384xbf16>, vector<128x384xf32> -> vector<128x384xf32>
    %c0_132 = arith.constant 0 : index
    %c0_133 = arith.constant 0 : index
    %588 = vector.load %arg23[%c0_132, %c0_133] : memref<1x384xf32, #tpu.memory_space<vmem>>, vector<1x384xf32>
    %589 = vector.broadcast %588 : vector<1x384xf32> to vector<128x384xf32>
    %590 = arith.addf %587, %589 : vector<128x384xf32>
    %c0_134 = arith.constant 0 : index
    %c0_135 = arith.constant 0 : index
    %591 = vector.load %arg22[%c0_134, %c0_135] : memref<128x384xbf16, #tpu.memory_space<vmem>>, vector<128x384xbf16>
    %c0_136 = arith.constant 0 : index
    %c0_137 = arith.constant 0 : index
    %592 = vector.load %arg24[%c0_136, %c0_137] : memref<1x384xf32, #tpu.memory_space<vmem>>, vector<1x384xf32>
    %593 = vector.extract_strided_slice %590 {offsets = [0, 0], sizes = [8, 384], strides = [1, 1]} : vector<128x384xf32> to vector<8x384xf32>
    %594 = arith.truncf %584 : vector<8x128xf32> to vector<8x128xbf16>
    %cst_138 = arith.constant dense<0.000000e+00> : vector<8x384xf32>
    %595 = tpu.matmul %594, %591, %cst_138 {dimension_numbers = #tpu.dot_dimension_numbers<[1], [0], [0], [1], [0, 0, 1, 1], [], []>} : vector<8x128xbf16>, vector<128x384xbf16>, vector<8x384xf32> -> vector<8x384xf32>
    %596 = vector.broadcast %592 : vector<1x384xf32> to vector<8x384xf32>
    %597 = arith.addf %595, %596 : vector<8x384xf32>
    %598 = vector.extract_strided_slice %593 {offsets = [0, 0], sizes = [8, 128], strides = [1, 1]} : vector<8x384xf32> to vector<8x128xf32>
    %599 = vector.extract_strided_slice %597 {offsets = [0, 0], sizes = [8, 128], strides = [1, 1]} : vector<8x384xf32> to vector<8x128xf32>
    %600 = arith.addf %598, %599 : vector<8x128xf32>
    %601 = arith.negf %600 : vector<8x128xf32>
    %602 = math.exp %601 : vector<8x128xf32>
    %cst_139 = arith.constant 1.000000e+00 : f32
    %603 = vector.broadcast %cst_139 : f32 to vector<8x128xf32>
    %604 = arith.addf %603, %602 : vector<8x128xf32>
    %605 = arith.divf %603, %604 : vector<8x128xf32>
    %606 = vector.extract_strided_slice %593 {offsets = [0, 128], sizes = [8, 128], strides = [1, 1]} : vector<8x384xf32> to vector<8x128xf32>
    %607 = vector.extract_strided_slice %597 {offsets = [0, 128], sizes = [8, 128], strides = [1, 1]} : vector<8x384xf32> to vector<8x128xf32>
    %608 = arith.addf %606, %607 : vector<8x128xf32>
    %609 = arith.negf %608 : vector<8x128xf32>
    %610 = math.exp %609 : vector<8x128xf32>
    %cst_140 = arith.constant 1.000000e+00 : f32
    %611 = vector.broadcast %cst_140 : f32 to vector<8x128xf32>
    %612 = arith.addf %611, %610 : vector<8x128xf32>
    %613 = arith.divf %611, %612 : vector<8x128xf32>
    %614 = vector.extract_strided_slice %593 {offsets = [0, 256], sizes = [8, 128], strides = [1, 1]} : vector<8x384xf32> to vector<8x128xf32>
    %615 = vector.extract_strided_slice %597 {offsets = [0, 256], sizes = [8, 128], strides = [1, 1]} : vector<8x384xf32> to vector<8x128xf32>
    %616 = arith.mulf %605, %615 : vector<8x128xf32>
    %617 = arith.addf %614, %616 : vector<8x128xf32>
    %618 = math.tanh %617 : vector<8x128xf32>
    %cst_141 = arith.constant 1.000000e+00 : f32
    %619 = vector.broadcast %cst_141 : f32 to vector<8x128xf32>
    %620 = arith.subf %619, %613 : vector<8x128xf32>
    %621 = arith.mulf %620, %618 : vector<8x128xf32>
    %622 = arith.mulf %613, %584 : vector<8x128xf32>
    %623 = arith.addf %621, %622 : vector<8x128xf32>
    %624 = vector.extract_strided_slice %590 {offsets = [8, 0], sizes = [8, 384], strides = [1, 1]} : vector<128x384xf32> to vector<8x384xf32>
    %625 = arith.truncf %623 : vector<8x128xf32> to vector<8x128xbf16>
    %cst_142 = arith.constant dense<0.000000e+00> : vector<8x384xf32>
    %626 = tpu.matmul %625, %591, %cst_142 {dimension_numbers = #tpu.dot_dimension_numbers<[1], [0], [0], [1], [0, 0, 1, 1], [], []>} : vector<8x128xbf16>, vector<128x384xbf16>, vector<8x384xf32> -> vector<8x384xf32>
    %627 = vector.broadcast %592 : vector<1x384xf32> to vector<8x384xf32>
    %628 = arith.addf %626, %627 : vector<8x384xf32>
    %629 = vector.extract_strided_slice %624 {offsets = [0, 0], sizes = [8, 128], strides = [1, 1]} : vector<8x384xf32> to vector<8x128xf32>
    %630 = vector.extract_strided_slice %628 {offsets = [0, 0], sizes = [8, 128], strides = [1, 1]} : vector<8x384xf32> to vector<8x128xf32>
    %631 = arith.addf %629, %630 : vector<8x128xf32>
    %632 = arith.negf %631 : vector<8x128xf32>
    %633 = math.exp %632 : vector<8x128xf32>
    %cst_143 = arith.constant 1.000000e+00 : f32
    %634 = vector.broadcast %cst_143 : f32 to vector<8x128xf32>
    %635 = arith.addf %634, %633 : vector<8x128xf32>
    %636 = arith.divf %634, %635 : vector<8x128xf32>
    %637 = vector.extract_strided_slice %624 {offsets = [0, 128], sizes = [8, 128], strides = [1, 1]} : vector<8x384xf32> to vector<8x128xf32>
    %638 = vector.extract_strided_slice %628 {offsets = [0, 128], sizes = [8, 128], strides = [1, 1]} : vector<8x384xf32> to vector<8x128xf32>
    %639 = arith.addf %637, %638 : vector<8x128xf32>
    %640 = arith.negf %639 : vector<8x128xf32>
    %641 = math.exp %640 : vector<8x128xf32>
    %cst_144 = arith.constant 1.000000e+00 : f32
    %642 = vector.broadcast %cst_144 : f32 to vector<8x128xf32>
    %643 = arith.addf %642, %641 : vector<8x128xf32>
    %644 = arith.divf %642, %643 : vector<8x128xf32>
    %645 = vector.extract_strided_slice %624 {offsets = [0, 256], sizes = [8, 128], strides = [1, 1]} : vector<8x384xf32> to vector<8x128xf32>
    %646 = vector.extract_strided_slice %628 {offsets = [0, 256], sizes = [8, 128], strides = [1, 1]} : vector<8x384xf32> to vector<8x128xf32>
    %647 = arith.mulf %636, %646 : vector<8x128xf32>
    %648 = arith.addf %645, %647 : vector<8x128xf32>
    %649 = math.tanh %648 : vector<8x128xf32>
    %cst_145 = arith.constant 1.000000e+00 : f32
    %650 = vector.broadcast %cst_145 : f32 to vector<8x128xf32>
    %651 = arith.subf %650, %644 : vector<8x128xf32>
    %652 = arith.mulf %651, %649 : vector<8x128xf32>
    %653 = arith.mulf %644, %623 : vector<8x128xf32>
    %654 = arith.addf %652, %653 : vector<8x128xf32>
    %655 = vector.extract_strided_slice %590 {offsets = [16, 0], sizes = [8, 384], strides = [1, 1]} : vector<128x384xf32> to vector<8x384xf32>
    %656 = arith.truncf %654 : vector<8x128xf32> to vector<8x128xbf16>
    %cst_146 = arith.constant dense<0.000000e+00> : vector<8x384xf32>
    %657 = tpu.matmul %656, %591, %cst_146 {dimension_numbers = #tpu.dot_dimension_numbers<[1], [0], [0], [1], [0, 0, 1, 1], [], []>} : vector<8x128xbf16>, vector<128x384xbf16>, vector<8x384xf32> -> vector<8x384xf32>
    %658 = vector.broadcast %592 : vector<1x384xf32> to vector<8x384xf32>
    %659 = arith.addf %657, %658 : vector<8x384xf32>
    %660 = vector.extract_strided_slice %655 {offsets = [0, 0], sizes = [8, 128], strides = [1, 1]} : vector<8x384xf32> to vector<8x128xf32>
    %661 = vector.extract_strided_slice %659 {offsets = [0, 0], sizes = [8, 128], strides = [1, 1]} : vector<8x384xf32> to vector<8x128xf32>
    %662 = arith.addf %660, %661 : vector<8x128xf32>
    %663 = arith.negf %662 : vector<8x128xf32>
    %664 = math.exp %663 : vector<8x128xf32>
    %cst_147 = arith.constant 1.000000e+00 : f32
    %665 = vector.broadcast %cst_147 : f32 to vector<8x128xf32>
    %666 = arith.addf %665, %664 : vector<8x128xf32>
    %667 = arith.divf %665, %666 : vector<8x128xf32>
    %668 = vector.extract_strided_slice %655 {offsets = [0, 128], sizes = [8, 128], strides = [1, 1]} : vector<8x384xf32> to vector<8x128xf32>
    %669 = vector.extract_strided_slice %659 {offsets = [0, 128], sizes = [8, 128], strides = [1, 1]} : vector<8x384xf32> to vector<8x128xf32>
    %670 = arith.addf %668, %669 : vector<8x128xf32>
    %671 = arith.negf %670 : vector<8x128xf32>
    %672 = math.exp %671 : vector<8x128xf32>
    %cst_148 = arith.constant 1.000000e+00 : f32
    %673 = vector.broadcast %cst_148 : f32 to vector<8x128xf32>
    %674 = arith.addf %673, %672 : vector<8x128xf32>
    %675 = arith.divf %673, %674 : vector<8x128xf32>
    %676 = vector.extract_strided_slice %655 {offsets = [0, 256], sizes = [8, 128], strides = [1, 1]} : vector<8x384xf32> to vector<8x128xf32>
    %677 = vector.extract_strided_slice %659 {offsets = [0, 256], sizes = [8, 128], strides = [1, 1]} : vector<8x384xf32> to vector<8x128xf32>
    %678 = arith.mulf %667, %677 : vector<8x128xf32>
    %679 = arith.addf %676, %678 : vector<8x128xf32>
    %680 = math.tanh %679 : vector<8x128xf32>
    %cst_149 = arith.constant 1.000000e+00 : f32
    %681 = vector.broadcast %cst_149 : f32 to vector<8x128xf32>
    %682 = arith.subf %681, %675 : vector<8x128xf32>
    %683 = arith.mulf %682, %680 : vector<8x128xf32>
    %684 = arith.mulf %675, %654 : vector<8x128xf32>
    %685 = arith.addf %683, %684 : vector<8x128xf32>
    %686 = vector.extract_strided_slice %590 {offsets = [24, 0], sizes = [8, 384], strides = [1, 1]} : vector<128x384xf32> to vector<8x384xf32>
    %687 = arith.truncf %685 : vector<8x128xf32> to vector<8x128xbf16>
    %cst_150 = arith.constant dense<0.000000e+00> : vector<8x384xf32>
    %688 = tpu.matmul %687, %591, %cst_150 {dimension_numbers = #tpu.dot_dimension_numbers<[1], [0], [0], [1], [0, 0, 1, 1], [], []>} : vector<8x128xbf16>, vector<128x384xbf16>, vector<8x384xf32> -> vector<8x384xf32>
    %689 = vector.broadcast %592 : vector<1x384xf32> to vector<8x384xf32>
    %690 = arith.addf %688, %689 : vector<8x384xf32>
    %691 = vector.extract_strided_slice %686 {offsets = [0, 0], sizes = [8, 128], strides = [1, 1]} : vector<8x384xf32> to vector<8x128xf32>
    %692 = vector.extract_strided_slice %690 {offsets = [0, 0], sizes = [8, 128], strides = [1, 1]} : vector<8x384xf32> to vector<8x128xf32>
    %693 = arith.addf %691, %692 : vector<8x128xf32>
    %694 = arith.negf %693 : vector<8x128xf32>
    %695 = math.exp %694 : vector<8x128xf32>
    %cst_151 = arith.constant 1.000000e+00 : f32
    %696 = vector.broadcast %cst_151 : f32 to vector<8x128xf32>
    %697 = arith.addf %696, %695 : vector<8x128xf32>
    %698 = arith.divf %696, %697 : vector<8x128xf32>
    %699 = vector.extract_strided_slice %686 {offsets = [0, 128], sizes = [8, 128], strides = [1, 1]} : vector<8x384xf32> to vector<8x128xf32>
    %700 = vector.extract_strided_slice %690 {offsets = [0, 128], sizes = [8, 128], strides = [1, 1]} : vector<8x384xf32> to vector<8x128xf32>
    %701 = arith.addf %699, %700 : vector<8x128xf32>
    %702 = arith.negf %701 : vector<8x128xf32>
    %703 = math.exp %702 : vector<8x128xf32>
    %cst_152 = arith.constant 1.000000e+00 : f32
    %704 = vector.broadcast %cst_152 : f32 to vector<8x128xf32>
    %705 = arith.addf %704, %703 : vector<8x128xf32>
    %706 = arith.divf %704, %705 : vector<8x128xf32>
    %707 = vector.extract_strided_slice %686 {offsets = [0, 256], sizes = [8, 128], strides = [1, 1]} : vector<8x384xf32> to vector<8x128xf32>
    %708 = vector.extract_strided_slice %690 {offsets = [0, 256], sizes = [8, 128], strides = [1, 1]} : vector<8x384xf32> to vector<8x128xf32>
    %709 = arith.mulf %698, %708 : vector<8x128xf32>
    %710 = arith.addf %707, %709 : vector<8x128xf32>
    %711 = math.tanh %710 : vector<8x128xf32>
    %cst_153 = arith.constant 1.000000e+00 : f32
    %712 = vector.broadcast %cst_153 : f32 to vector<8x128xf32>
    %713 = arith.subf %712, %706 : vector<8x128xf32>
    %714 = arith.mulf %713, %711 : vector<8x128xf32>
    %715 = arith.mulf %706, %685 : vector<8x128xf32>
    %716 = arith.addf %714, %715 : vector<8x128xf32>
    %717 = vector.extract_strided_slice %590 {offsets = [32, 0], sizes = [8, 384], strides = [1, 1]} : vector<128x384xf32> to vector<8x384xf32>
    %718 = arith.truncf %716 : vector<8x128xf32> to vector<8x128xbf16>
    %cst_154 = arith.constant dense<0.000000e+00> : vector<8x384xf32>
    %719 = tpu.matmul %718, %591, %cst_154 {dimension_numbers = #tpu.dot_dimension_numbers<[1], [0], [0], [1], [0, 0, 1, 1], [], []>} : vector<8x128xbf16>, vector<128x384xbf16>, vector<8x384xf32> -> vector<8x384xf32>
    %720 = vector.broadcast %592 : vector<1x384xf32> to vector<8x384xf32>
    %721 = arith.addf %719, %720 : vector<8x384xf32>
    %722 = vector.extract_strided_slice %717 {offsets = [0, 0], sizes = [8, 128], strides = [1, 1]} : vector<8x384xf32> to vector<8x128xf32>
    %723 = vector.extract_strided_slice %721 {offsets = [0, 0], sizes = [8, 128], strides = [1, 1]} : vector<8x384xf32> to vector<8x128xf32>
    %724 = arith.addf %722, %723 : vector<8x128xf32>
    %725 = arith.negf %724 : vector<8x128xf32>
    %726 = math.exp %725 : vector<8x128xf32>
    %cst_155 = arith.constant 1.000000e+00 : f32
    %727 = vector.broadcast %cst_155 : f32 to vector<8x128xf32>
    %728 = arith.addf %727, %726 : vector<8x128xf32>
    %729 = arith.divf %727, %728 : vector<8x128xf32>
    %730 = vector.extract_strided_slice %717 {offsets = [0, 128], sizes = [8, 128], strides = [1, 1]} : vector<8x384xf32> to vector<8x128xf32>
    %731 = vector.extract_strided_slice %721 {offsets = [0, 128], sizes = [8, 128], strides = [1, 1]} : vector<8x384xf32> to vector<8x128xf32>
    %732 = arith.addf %730, %731 : vector<8x128xf32>
    %733 = arith.negf %732 : vector<8x128xf32>
    %734 = math.exp %733 : vector<8x128xf32>
    %cst_156 = arith.constant 1.000000e+00 : f32
    %735 = vector.broadcast %cst_156 : f32 to vector<8x128xf32>
    %736 = arith.addf %735, %734 : vector<8x128xf32>
    %737 = arith.divf %735, %736 : vector<8x128xf32>
    %738 = vector.extract_strided_slice %717 {offsets = [0, 256], sizes = [8, 128], strides = [1, 1]} : vector<8x384xf32> to vector<8x128xf32>
    %739 = vector.extract_strided_slice %721 {offsets = [0, 256], sizes = [8, 128], strides = [1, 1]} : vector<8x384xf32> to vector<8x128xf32>
    %740 = arith.mulf %729, %739 : vector<8x128xf32>
    %741 = arith.addf %738, %740 : vector<8x128xf32>
    %742 = math.tanh %741 : vector<8x128xf32>
    %cst_157 = arith.constant 1.000000e+00 : f32
    %743 = vector.broadcast %cst_157 : f32 to vector<8x128xf32>
    %744 = arith.subf %743, %737 : vector<8x128xf32>
    %745 = arith.mulf %744, %742 : vector<8x128xf32>
    %746 = arith.mulf %737, %716 : vector<8x128xf32>
    %747 = arith.addf %745, %746 : vector<8x128xf32>
    %748 = vector.extract_strided_slice %590 {offsets = [40, 0], sizes = [8, 384], strides = [1, 1]} : vector<128x384xf32> to vector<8x384xf32>
    %749 = arith.truncf %747 : vector<8x128xf32> to vector<8x128xbf16>
    %cst_158 = arith.constant dense<0.000000e+00> : vector<8x384xf32>
    %750 = tpu.matmul %749, %591, %cst_158 {dimension_numbers = #tpu.dot_dimension_numbers<[1], [0], [0], [1], [0, 0, 1, 1], [], []>} : vector<8x128xbf16>, vector<128x384xbf16>, vector<8x384xf32> -> vector<8x384xf32>
    %751 = vector.broadcast %592 : vector<1x384xf32> to vector<8x384xf32>
    %752 = arith.addf %750, %751 : vector<8x384xf32>
    %753 = vector.extract_strided_slice %748 {offsets = [0, 0], sizes = [8, 128], strides = [1, 1]} : vector<8x384xf32> to vector<8x128xf32>
    %754 = vector.extract_strided_slice %752 {offsets = [0, 0], sizes = [8, 128], strides = [1, 1]} : vector<8x384xf32> to vector<8x128xf32>
    %755 = arith.addf %753, %754 : vector<8x128xf32>
    %756 = arith.negf %755 : vector<8x128xf32>
    %757 = math.exp %756 : vector<8x128xf32>
    %cst_159 = arith.constant 1.000000e+00 : f32
    %758 = vector.broadcast %cst_159 : f32 to vector<8x128xf32>
    %759 = arith.addf %758, %757 : vector<8x128xf32>
    %760 = arith.divf %758, %759 : vector<8x128xf32>
    %761 = vector.extract_strided_slice %748 {offsets = [0, 128], sizes = [8, 128], strides = [1, 1]} : vector<8x384xf32> to vector<8x128xf32>
    %762 = vector.extract_strided_slice %752 {offsets = [0, 128], sizes = [8, 128], strides = [1, 1]} : vector<8x384xf32> to vector<8x128xf32>
    %763 = arith.addf %761, %762 : vector<8x128xf32>
    %764 = arith.negf %763 : vector<8x128xf32>
    %765 = math.exp %764 : vector<8x128xf32>
    %cst_160 = arith.constant 1.000000e+00 : f32
    %766 = vector.broadcast %cst_160 : f32 to vector<8x128xf32>
    %767 = arith.addf %766, %765 : vector<8x128xf32>
    %768 = arith.divf %766, %767 : vector<8x128xf32>
    %769 = vector.extract_strided_slice %748 {offsets = [0, 256], sizes = [8, 128], strides = [1, 1]} : vector<8x384xf32> to vector<8x128xf32>
    %770 = vector.extract_strided_slice %752 {offsets = [0, 256], sizes = [8, 128], strides = [1, 1]} : vector<8x384xf32> to vector<8x128xf32>
    %771 = arith.mulf %760, %770 : vector<8x128xf32>
    %772 = arith.addf %769, %771 : vector<8x128xf32>
    %773 = math.tanh %772 : vector<8x128xf32>
    %cst_161 = arith.constant 1.000000e+00 : f32
    %774 = vector.broadcast %cst_161 : f32 to vector<8x128xf32>
    %775 = arith.subf %774, %768 : vector<8x128xf32>
    %776 = arith.mulf %775, %773 : vector<8x128xf32>
    %777 = arith.mulf %768, %747 : vector<8x128xf32>
    %778 = arith.addf %776, %777 : vector<8x128xf32>
    %779 = vector.extract_strided_slice %590 {offsets = [48, 0], sizes = [8, 384], strides = [1, 1]} : vector<128x384xf32> to vector<8x384xf32>
    %780 = arith.truncf %778 : vector<8x128xf32> to vector<8x128xbf16>
    %cst_162 = arith.constant dense<0.000000e+00> : vector<8x384xf32>
    %781 = tpu.matmul %780, %591, %cst_162 {dimension_numbers = #tpu.dot_dimension_numbers<[1], [0], [0], [1], [0, 0, 1, 1], [], []>} : vector<8x128xbf16>, vector<128x384xbf16>, vector<8x384xf32> -> vector<8x384xf32>
    %782 = vector.broadcast %592 : vector<1x384xf32> to vector<8x384xf32>
    %783 = arith.addf %781, %782 : vector<8x384xf32>
    %784 = vector.extract_strided_slice %779 {offsets = [0, 0], sizes = [8, 128], strides = [1, 1]} : vector<8x384xf32> to vector<8x128xf32>
    %785 = vector.extract_strided_slice %783 {offsets = [0, 0], sizes = [8, 128], strides = [1, 1]} : vector<8x384xf32> to vector<8x128xf32>
    %786 = arith.addf %784, %785 : vector<8x128xf32>
    %787 = arith.negf %786 : vector<8x128xf32>
    %788 = math.exp %787 : vector<8x128xf32>
    %cst_163 = arith.constant 1.000000e+00 : f32
    %789 = vector.broadcast %cst_163 : f32 to vector<8x128xf32>
    %790 = arith.addf %789, %788 : vector<8x128xf32>
    %791 = arith.divf %789, %790 : vector<8x128xf32>
    %792 = vector.extract_strided_slice %779 {offsets = [0, 128], sizes = [8, 128], strides = [1, 1]} : vector<8x384xf32> to vector<8x128xf32>
    %793 = vector.extract_strided_slice %783 {offsets = [0, 128], sizes = [8, 128], strides = [1, 1]} : vector<8x384xf32> to vector<8x128xf32>
    %794 = arith.addf %792, %793 : vector<8x128xf32>
    %795 = arith.negf %794 : vector<8x128xf32>
    %796 = math.exp %795 : vector<8x128xf32>
    %cst_164 = arith.constant 1.000000e+00 : f32
    %797 = vector.broadcast %cst_164 : f32 to vector<8x128xf32>
    %798 = arith.addf %797, %796 : vector<8x128xf32>
    %799 = arith.divf %797, %798 : vector<8x128xf32>
    %800 = vector.extract_strided_slice %779 {offsets = [0, 256], sizes = [8, 128], strides = [1, 1]} : vector<8x384xf32> to vector<8x128xf32>
    %801 = vector.extract_strided_slice %783 {offsets = [0, 256], sizes = [8, 128], strides = [1, 1]} : vector<8x384xf32> to vector<8x128xf32>
    %802 = arith.mulf %791, %801 : vector<8x128xf32>
    %803 = arith.addf %800, %802 : vector<8x128xf32>
    %804 = math.tanh %803 : vector<8x128xf32>
    %cst_165 = arith.constant 1.000000e+00 : f32
    %805 = vector.broadcast %cst_165 : f32 to vector<8x128xf32>
    %806 = arith.subf %805, %799 : vector<8x128xf32>
    %807 = arith.mulf %806, %804 : vector<8x128xf32>
    %808 = arith.mulf %799, %778 : vector<8x128xf32>
    %809 = arith.addf %807, %808 : vector<8x128xf32>
    %810 = vector.extract_strided_slice %590 {offsets = [56, 0], sizes = [8, 384], strides = [1, 1]} : vector<128x384xf32> to vector<8x384xf32>
    %811 = arith.truncf %809 : vector<8x128xf32> to vector<8x128xbf16>
    %cst_166 = arith.constant dense<0.000000e+00> : vector<8x384xf32>
    %812 = tpu.matmul %811, %591, %cst_166 {dimension_numbers = #tpu.dot_dimension_numbers<[1], [0], [0], [1], [0, 0, 1, 1], [], []>} : vector<8x128xbf16>, vector<128x384xbf16>, vector<8x384xf32> -> vector<8x384xf32>
    %813 = vector.broadcast %592 : vector<1x384xf32> to vector<8x384xf32>
    %814 = arith.addf %812, %813 : vector<8x384xf32>
    %815 = vector.extract_strided_slice %810 {offsets = [0, 0], sizes = [8, 128], strides = [1, 1]} : vector<8x384xf32> to vector<8x128xf32>
    %816 = vector.extract_strided_slice %814 {offsets = [0, 0], sizes = [8, 128], strides = [1, 1]} : vector<8x384xf32> to vector<8x128xf32>
    %817 = arith.addf %815, %816 : vector<8x128xf32>
    %818 = arith.negf %817 : vector<8x128xf32>
    %819 = math.exp %818 : vector<8x128xf32>
    %cst_167 = arith.constant 1.000000e+00 : f32
    %820 = vector.broadcast %cst_167 : f32 to vector<8x128xf32>
    %821 = arith.addf %820, %819 : vector<8x128xf32>
    %822 = arith.divf %820, %821 : vector<8x128xf32>
    %823 = vector.extract_strided_slice %810 {offsets = [0, 128], sizes = [8, 128], strides = [1, 1]} : vector<8x384xf32> to vector<8x128xf32>
    %824 = vector.extract_strided_slice %814 {offsets = [0, 128], sizes = [8, 128], strides = [1, 1]} : vector<8x384xf32> to vector<8x128xf32>
    %825 = arith.addf %823, %824 : vector<8x128xf32>
    %826 = arith.negf %825 : vector<8x128xf32>
    %827 = math.exp %826 : vector<8x128xf32>
    %cst_168 = arith.constant 1.000000e+00 : f32
    %828 = vector.broadcast %cst_168 : f32 to vector<8x128xf32>
    %829 = arith.addf %828, %827 : vector<8x128xf32>
    %830 = arith.divf %828, %829 : vector<8x128xf32>
    %831 = vector.extract_strided_slice %810 {offsets = [0, 256], sizes = [8, 128], strides = [1, 1]} : vector<8x384xf32> to vector<8x128xf32>
    %832 = vector.extract_strided_slice %814 {offsets = [0, 256], sizes = [8, 128], strides = [1, 1]} : vector<8x384xf32> to vector<8x128xf32>
    %833 = arith.mulf %822, %832 : vector<8x128xf32>
    %834 = arith.addf %831, %833 : vector<8x128xf32>
    %835 = math.tanh %834 : vector<8x128xf32>
    %cst_169 = arith.constant 1.000000e+00 : f32
    %836 = vector.broadcast %cst_169 : f32 to vector<8x128xf32>
    %837 = arith.subf %836, %830 : vector<8x128xf32>
    %838 = arith.mulf %837, %835 : vector<8x128xf32>
    %839 = arith.mulf %830, %809 : vector<8x128xf32>
    %840 = arith.addf %838, %839 : vector<8x128xf32>
    %841 = vector.extract_strided_slice %590 {offsets = [64, 0], sizes = [8, 384], strides = [1, 1]} : vector<128x384xf32> to vector<8x384xf32>
    %842 = arith.truncf %840 : vector<8x128xf32> to vector<8x128xbf16>
    %cst_170 = arith.constant dense<0.000000e+00> : vector<8x384xf32>
    %843 = tpu.matmul %842, %591, %cst_170 {dimension_numbers = #tpu.dot_dimension_numbers<[1], [0], [0], [1], [0, 0, 1, 1], [], []>} : vector<8x128xbf16>, vector<128x384xbf16>, vector<8x384xf32> -> vector<8x384xf32>
    %844 = vector.broadcast %592 : vector<1x384xf32> to vector<8x384xf32>
    %845 = arith.addf %843, %844 : vector<8x384xf32>
    %846 = vector.extract_strided_slice %841 {offsets = [0, 0], sizes = [8, 128], strides = [1, 1]} : vector<8x384xf32> to vector<8x128xf32>
    %847 = vector.extract_strided_slice %845 {offsets = [0, 0], sizes = [8, 128], strides = [1, 1]} : vector<8x384xf32> to vector<8x128xf32>
    %848 = arith.addf %846, %847 : vector<8x128xf32>
    %849 = arith.negf %848 : vector<8x128xf32>
    %850 = math.exp %849 : vector<8x128xf32>
    %cst_171 = arith.constant 1.000000e+00 : f32
    %851 = vector.broadcast %cst_171 : f32 to vector<8x128xf32>
    %852 = arith.addf %851, %850 : vector<8x128xf32>
    %853 = arith.divf %851, %852 : vector<8x128xf32>
    %854 = vector.extract_strided_slice %841 {offsets = [0, 128], sizes = [8, 128], strides = [1, 1]} : vector<8x384xf32> to vector<8x128xf32>
    %855 = vector.extract_strided_slice %845 {offsets = [0, 128], sizes = [8, 128], strides = [1, 1]} : vector<8x384xf32> to vector<8x128xf32>
    %856 = arith.addf %854, %855 : vector<8x128xf32>
    %857 = arith.negf %856 : vector<8x128xf32>
    %858 = math.exp %857 : vector<8x128xf32>
    %cst_172 = arith.constant 1.000000e+00 : f32
    %859 = vector.broadcast %cst_172 : f32 to vector<8x128xf32>
    %860 = arith.addf %859, %858 : vector<8x128xf32>
    %861 = arith.divf %859, %860 : vector<8x128xf32>
    %862 = vector.extract_strided_slice %841 {offsets = [0, 256], sizes = [8, 128], strides = [1, 1]} : vector<8x384xf32> to vector<8x128xf32>
    %863 = vector.extract_strided_slice %845 {offsets = [0, 256], sizes = [8, 128], strides = [1, 1]} : vector<8x384xf32> to vector<8x128xf32>
    %864 = arith.mulf %853, %863 : vector<8x128xf32>
    %865 = arith.addf %862, %864 : vector<8x128xf32>
    %866 = math.tanh %865 : vector<8x128xf32>
    %cst_173 = arith.constant 1.000000e+00 : f32
    %867 = vector.broadcast %cst_173 : f32 to vector<8x128xf32>
    %868 = arith.subf %867, %861 : vector<8x128xf32>
    %869 = arith.mulf %868, %866 : vector<8x128xf32>
    %870 = arith.mulf %861, %840 : vector<8x128xf32>
    %871 = arith.addf %869, %870 : vector<8x128xf32>
    %872 = vector.extract_strided_slice %590 {offsets = [72, 0], sizes = [8, 384], strides = [1, 1]} : vector<128x384xf32> to vector<8x384xf32>
    %873 = arith.truncf %871 : vector<8x128xf32> to vector<8x128xbf16>
    %cst_174 = arith.constant dense<0.000000e+00> : vector<8x384xf32>
    %874 = tpu.matmul %873, %591, %cst_174 {dimension_numbers = #tpu.dot_dimension_numbers<[1], [0], [0], [1], [0, 0, 1, 1], [], []>} : vector<8x128xbf16>, vector<128x384xbf16>, vector<8x384xf32> -> vector<8x384xf32>
    %875 = vector.broadcast %592 : vector<1x384xf32> to vector<8x384xf32>
    %876 = arith.addf %874, %875 : vector<8x384xf32>
    %877 = vector.extract_strided_slice %872 {offsets = [0, 0], sizes = [8, 128], strides = [1, 1]} : vector<8x384xf32> to vector<8x128xf32>
    %878 = vector.extract_strided_slice %876 {offsets = [0, 0], sizes = [8, 128], strides = [1, 1]} : vector<8x384xf32> to vector<8x128xf32>
    %879 = arith.addf %877, %878 : vector<8x128xf32>
    %880 = arith.negf %879 : vector<8x128xf32>
    %881 = math.exp %880 : vector<8x128xf32>
    %cst_175 = arith.constant 1.000000e+00 : f32
    %882 = vector.broadcast %cst_175 : f32 to vector<8x128xf32>
    %883 = arith.addf %882, %881 : vector<8x128xf32>
    %884 = arith.divf %882, %883 : vector<8x128xf32>
    %885 = vector.extract_strided_slice %872 {offsets = [0, 128], sizes = [8, 128], strides = [1, 1]} : vector<8x384xf32> to vector<8x128xf32>
    %886 = vector.extract_strided_slice %876 {offsets = [0, 128], sizes = [8, 128], strides = [1, 1]} : vector<8x384xf32> to vector<8x128xf32>
    %887 = arith.addf %885, %886 : vector<8x128xf32>
    %888 = arith.negf %887 : vector<8x128xf32>
    %889 = math.exp %888 : vector<8x128xf32>
    %cst_176 = arith.constant 1.000000e+00 : f32
    %890 = vector.broadcast %cst_176 : f32 to vector<8x128xf32>
    %891 = arith.addf %890, %889 : vector<8x128xf32>
    %892 = arith.divf %890, %891 : vector<8x128xf32>
    %893 = vector.extract_strided_slice %872 {offsets = [0, 256], sizes = [8, 128], strides = [1, 1]} : vector<8x384xf32> to vector<8x128xf32>
    %894 = vector.extract_strided_slice %876 {offsets = [0, 256], sizes = [8, 128], strides = [1, 1]} : vector<8x384xf32> to vector<8x128xf32>
    %895 = arith.mulf %884, %894 : vector<8x128xf32>
    %896 = arith.addf %893, %895 : vector<8x128xf32>
    %897 = math.tanh %896 : vector<8x128xf32>
    %cst_177 = arith.constant 1.000000e+00 : f32
    %898 = vector.broadcast %cst_177 : f32 to vector<8x128xf32>
    %899 = arith.subf %898, %892 : vector<8x128xf32>
    %900 = arith.mulf %899, %897 : vector<8x128xf32>
    %901 = arith.mulf %892, %871 : vector<8x128xf32>
    %902 = arith.addf %900, %901 : vector<8x128xf32>
    %903 = vector.extract_strided_slice %590 {offsets = [80, 0], sizes = [8, 384], strides = [1, 1]} : vector<128x384xf32> to vector<8x384xf32>
    %904 = arith.truncf %902 : vector<8x128xf32> to vector<8x128xbf16>
    %cst_178 = arith.constant dense<0.000000e+00> : vector<8x384xf32>
    %905 = tpu.matmul %904, %591, %cst_178 {dimension_numbers = #tpu.dot_dimension_numbers<[1], [0], [0], [1], [0, 0, 1, 1], [], []>} : vector<8x128xbf16>, vector<128x384xbf16>, vector<8x384xf32> -> vector<8x384xf32>
    %906 = vector.broadcast %592 : vector<1x384xf32> to vector<8x384xf32>
    %907 = arith.addf %905, %906 : vector<8x384xf32>
    %908 = vector.extract_strided_slice %903 {offsets = [0, 0], sizes = [8, 128], strides = [1, 1]} : vector<8x384xf32> to vector<8x128xf32>
    %909 = vector.extract_strided_slice %907 {offsets = [0, 0], sizes = [8, 128], strides = [1, 1]} : vector<8x384xf32> to vector<8x128xf32>
    %910 = arith.addf %908, %909 : vector<8x128xf32>
    %911 = arith.negf %910 : vector<8x128xf32>
    %912 = math.exp %911 : vector<8x128xf32>
    %cst_179 = arith.constant 1.000000e+00 : f32
    %913 = vector.broadcast %cst_179 : f32 to vector<8x128xf32>
    %914 = arith.addf %913, %912 : vector<8x128xf32>
    %915 = arith.divf %913, %914 : vector<8x128xf32>
    %916 = vector.extract_strided_slice %903 {offsets = [0, 128], sizes = [8, 128], strides = [1, 1]} : vector<8x384xf32> to vector<8x128xf32>
    %917 = vector.extract_strided_slice %907 {offsets = [0, 128], sizes = [8, 128], strides = [1, 1]} : vector<8x384xf32> to vector<8x128xf32>
    %918 = arith.addf %916, %917 : vector<8x128xf32>
    %919 = arith.negf %918 : vector<8x128xf32>
    %920 = math.exp %919 : vector<8x128xf32>
    %cst_180 = arith.constant 1.000000e+00 : f32
    %921 = vector.broadcast %cst_180 : f32 to vector<8x128xf32>
    %922 = arith.addf %921, %920 : vector<8x128xf32>
    %923 = arith.divf %921, %922 : vector<8x128xf32>
    %924 = vector.extract_strided_slice %903 {offsets = [0, 256], sizes = [8, 128], strides = [1, 1]} : vector<8x384xf32> to vector<8x128xf32>
    %925 = vector.extract_strided_slice %907 {offsets = [0, 256], sizes = [8, 128], strides = [1, 1]} : vector<8x384xf32> to vector<8x128xf32>
    %926 = arith.mulf %915, %925 : vector<8x128xf32>
    %927 = arith.addf %924, %926 : vector<8x128xf32>
    %928 = math.tanh %927 : vector<8x128xf32>
    %cst_181 = arith.constant 1.000000e+00 : f32
    %929 = vector.broadcast %cst_181 : f32 to vector<8x128xf32>
    %930 = arith.subf %929, %923 : vector<8x128xf32>
    %931 = arith.mulf %930, %928 : vector<8x128xf32>
    %932 = arith.mulf %923, %902 : vector<8x128xf32>
    %933 = arith.addf %931, %932 : vector<8x128xf32>
    %934 = vector.extract_strided_slice %590 {offsets = [88, 0], sizes = [8, 384], strides = [1, 1]} : vector<128x384xf32> to vector<8x384xf32>
    %935 = arith.truncf %933 : vector<8x128xf32> to vector<8x128xbf16>
    %cst_182 = arith.constant dense<0.000000e+00> : vector<8x384xf32>
    %936 = tpu.matmul %935, %591, %cst_182 {dimension_numbers = #tpu.dot_dimension_numbers<[1], [0], [0], [1], [0, 0, 1, 1], [], []>} : vector<8x128xbf16>, vector<128x384xbf16>, vector<8x384xf32> -> vector<8x384xf32>
    %937 = vector.broadcast %592 : vector<1x384xf32> to vector<8x384xf32>
    %938 = arith.addf %936, %937 : vector<8x384xf32>
    %939 = vector.extract_strided_slice %934 {offsets = [0, 0], sizes = [8, 128], strides = [1, 1]} : vector<8x384xf32> to vector<8x128xf32>
    %940 = vector.extract_strided_slice %938 {offsets = [0, 0], sizes = [8, 128], strides = [1, 1]} : vector<8x384xf32> to vector<8x128xf32>
    %941 = arith.addf %939, %940 : vector<8x128xf32>
    %942 = arith.negf %941 : vector<8x128xf32>
    %943 = math.exp %942 : vector<8x128xf32>
    %cst_183 = arith.constant 1.000000e+00 : f32
    %944 = vector.broadcast %cst_183 : f32 to vector<8x128xf32>
    %945 = arith.addf %944, %943 : vector<8x128xf32>
    %946 = arith.divf %944, %945 : vector<8x128xf32>
    %947 = vector.extract_strided_slice %934 {offsets = [0, 128], sizes = [8, 128], strides = [1, 1]} : vector<8x384xf32> to vector<8x128xf32>
    %948 = vector.extract_strided_slice %938 {offsets = [0, 128], sizes = [8, 128], strides = [1, 1]} : vector<8x384xf32> to vector<8x128xf32>
    %949 = arith.addf %947, %948 : vector<8x128xf32>
    %950 = arith.negf %949 : vector<8x128xf32>
    %951 = math.exp %950 : vector<8x128xf32>
    %cst_184 = arith.constant 1.000000e+00 : f32
    %952 = vector.broadcast %cst_184 : f32 to vector<8x128xf32>
    %953 = arith.addf %952, %951 : vector<8x128xf32>
    %954 = arith.divf %952, %953 : vector<8x128xf32>
    %955 = vector.extract_strided_slice %934 {offsets = [0, 256], sizes = [8, 128], strides = [1, 1]} : vector<8x384xf32> to vector<8x128xf32>
    %956 = vector.extract_strided_slice %938 {offsets = [0, 256], sizes = [8, 128], strides = [1, 1]} : vector<8x384xf32> to vector<8x128xf32>
    %957 = arith.mulf %946, %956 : vector<8x128xf32>
    %958 = arith.addf %955, %957 : vector<8x128xf32>
    %959 = math.tanh %958 : vector<8x128xf32>
    %cst_185 = arith.constant 1.000000e+00 : f32
    %960 = vector.broadcast %cst_185 : f32 to vector<8x128xf32>
    %961 = arith.subf %960, %954 : vector<8x128xf32>
    %962 = arith.mulf %961, %959 : vector<8x128xf32>
    %963 = arith.mulf %954, %933 : vector<8x128xf32>
    %964 = arith.addf %962, %963 : vector<8x128xf32>
    %965 = vector.extract_strided_slice %590 {offsets = [96, 0], sizes = [8, 384], strides = [1, 1]} : vector<128x384xf32> to vector<8x384xf32>
    %966 = arith.truncf %964 : vector<8x128xf32> to vector<8x128xbf16>
    %cst_186 = arith.constant dense<0.000000e+00> : vector<8x384xf32>
    %967 = tpu.matmul %966, %591, %cst_186 {dimension_numbers = #tpu.dot_dimension_numbers<[1], [0], [0], [1], [0, 0, 1, 1], [], []>} : vector<8x128xbf16>, vector<128x384xbf16>, vector<8x384xf32> -> vector<8x384xf32>
    %968 = vector.broadcast %592 : vector<1x384xf32> to vector<8x384xf32>
    %969 = arith.addf %967, %968 : vector<8x384xf32>
    %970 = vector.extract_strided_slice %965 {offsets = [0, 0], sizes = [8, 128], strides = [1, 1]} : vector<8x384xf32> to vector<8x128xf32>
    %971 = vector.extract_strided_slice %969 {offsets = [0, 0], sizes = [8, 128], strides = [1, 1]} : vector<8x384xf32> to vector<8x128xf32>
    %972 = arith.addf %970, %971 : vector<8x128xf32>
    %973 = arith.negf %972 : vector<8x128xf32>
    %974 = math.exp %973 : vector<8x128xf32>
    %cst_187 = arith.constant 1.000000e+00 : f32
    %975 = vector.broadcast %cst_187 : f32 to vector<8x128xf32>
    %976 = arith.addf %975, %974 : vector<8x128xf32>
    %977 = arith.divf %975, %976 : vector<8x128xf32>
    %978 = vector.extract_strided_slice %965 {offsets = [0, 128], sizes = [8, 128], strides = [1, 1]} : vector<8x384xf32> to vector<8x128xf32>
    %979 = vector.extract_strided_slice %969 {offsets = [0, 128], sizes = [8, 128], strides = [1, 1]} : vector<8x384xf32> to vector<8x128xf32>
    %980 = arith.addf %978, %979 : vector<8x128xf32>
    %981 = arith.negf %980 : vector<8x128xf32>
    %982 = math.exp %981 : vector<8x128xf32>
    %cst_188 = arith.constant 1.000000e+00 : f32
    %983 = vector.broadcast %cst_188 : f32 to vector<8x128xf32>
    %984 = arith.addf %983, %982 : vector<8x128xf32>
    %985 = arith.divf %983, %984 : vector<8x128xf32>
    %986 = vector.extract_strided_slice %965 {offsets = [0, 256], sizes = [8, 128], strides = [1, 1]} : vector<8x384xf32> to vector<8x128xf32>
    %987 = vector.extract_strided_slice %969 {offsets = [0, 256], sizes = [8, 128], strides = [1, 1]} : vector<8x384xf32> to vector<8x128xf32>
    %988 = arith.mulf %977, %987 : vector<8x128xf32>
    %989 = arith.addf %986, %988 : vector<8x128xf32>
    %990 = math.tanh %989 : vector<8x128xf32>
    %cst_189 = arith.constant 1.000000e+00 : f32
    %991 = vector.broadcast %cst_189 : f32 to vector<8x128xf32>
    %992 = arith.subf %991, %985 : vector<8x128xf32>
    %993 = arith.mulf %992, %990 : vector<8x128xf32>
    %994 = arith.mulf %985, %964 : vector<8x128xf32>
    %995 = arith.addf %993, %994 : vector<8x128xf32>
    %996 = vector.extract_strided_slice %590 {offsets = [104, 0], sizes = [8, 384], strides = [1, 1]} : vector<128x384xf32> to vector<8x384xf32>
    %997 = arith.truncf %995 : vector<8x128xf32> to vector<8x128xbf16>
    %cst_190 = arith.constant dense<0.000000e+00> : vector<8x384xf32>
    %998 = tpu.matmul %997, %591, %cst_190 {dimension_numbers = #tpu.dot_dimension_numbers<[1], [0], [0], [1], [0, 0, 1, 1], [], []>} : vector<8x128xbf16>, vector<128x384xbf16>, vector<8x384xf32> -> vector<8x384xf32>
    %999 = vector.broadcast %592 : vector<1x384xf32> to vector<8x384xf32>
    %1000 = arith.addf %998, %999 : vector<8x384xf32>
    %1001 = vector.extract_strided_slice %996 {offsets = [0, 0], sizes = [8, 128], strides = [1, 1]} : vector<8x384xf32> to vector<8x128xf32>
    %1002 = vector.extract_strided_slice %1000 {offsets = [0, 0], sizes = [8, 128], strides = [1, 1]} : vector<8x384xf32> to vector<8x128xf32>
    %1003 = arith.addf %1001, %1002 : vector<8x128xf32>
    %1004 = arith.negf %1003 : vector<8x128xf32>
    %1005 = math.exp %1004 : vector<8x128xf32>
    %cst_191 = arith.constant 1.000000e+00 : f32
    %1006 = vector.broadcast %cst_191 : f32 to vector<8x128xf32>
    %1007 = arith.addf %1006, %1005 : vector<8x128xf32>
    %1008 = arith.divf %1006, %1007 : vector<8x128xf32>
    %1009 = vector.extract_strided_slice %996 {offsets = [0, 128], sizes = [8, 128], strides = [1, 1]} : vector<8x384xf32> to vector<8x128xf32>
    %1010 = vector.extract_strided_slice %1000 {offsets = [0, 128], sizes = [8, 128], strides = [1, 1]} : vector<8x384xf32> to vector<8x128xf32>
    %1011 = arith.addf %1009, %1010 : vector<8x128xf32>
    %1012 = arith.negf %1011 : vector<8x128xf32>
    %1013 = math.exp %1012 : vector<8x128xf32>
    %cst_192 = arith.constant 1.000000e+00 : f32
    %1014 = vector.broadcast %cst_192 : f32 to vector<8x128xf32>
    %1015 = arith.addf %1014, %1013 : vector<8x128xf32>
    %1016 = arith.divf %1014, %1015 : vector<8x128xf32>
    %1017 = vector.extract_strided_slice %996 {offsets = [0, 256], sizes = [8, 128], strides = [1, 1]} : vector<8x384xf32> to vector<8x128xf32>
    %1018 = vector.extract_strided_slice %1000 {offsets = [0, 256], sizes = [8, 128], strides = [1, 1]} : vector<8x384xf32> to vector<8x128xf32>
    %1019 = arith.mulf %1008, %1018 : vector<8x128xf32>
    %1020 = arith.addf %1017, %1019 : vector<8x128xf32>
    %1021 = math.tanh %1020 : vector<8x128xf32>
    %cst_193 = arith.constant 1.000000e+00 : f32
    %1022 = vector.broadcast %cst_193 : f32 to vector<8x128xf32>
    %1023 = arith.subf %1022, %1016 : vector<8x128xf32>
    %1024 = arith.mulf %1023, %1021 : vector<8x128xf32>
    %1025 = arith.mulf %1016, %995 : vector<8x128xf32>
    %1026 = arith.addf %1024, %1025 : vector<8x128xf32>
    %1027 = vector.extract_strided_slice %590 {offsets = [112, 0], sizes = [8, 384], strides = [1, 1]} : vector<128x384xf32> to vector<8x384xf32>
    %1028 = arith.truncf %1026 : vector<8x128xf32> to vector<8x128xbf16>
    %cst_194 = arith.constant dense<0.000000e+00> : vector<8x384xf32>
    %1029 = tpu.matmul %1028, %591, %cst_194 {dimension_numbers = #tpu.dot_dimension_numbers<[1], [0], [0], [1], [0, 0, 1, 1], [], []>} : vector<8x128xbf16>, vector<128x384xbf16>, vector<8x384xf32> -> vector<8x384xf32>
    %1030 = vector.broadcast %592 : vector<1x384xf32> to vector<8x384xf32>
    %1031 = arith.addf %1029, %1030 : vector<8x384xf32>
    %1032 = vector.extract_strided_slice %1027 {offsets = [0, 0], sizes = [8, 128], strides = [1, 1]} : vector<8x384xf32> to vector<8x128xf32>
    %1033 = vector.extract_strided_slice %1031 {offsets = [0, 0], sizes = [8, 128], strides = [1, 1]} : vector<8x384xf32> to vector<8x128xf32>
    %1034 = arith.addf %1032, %1033 : vector<8x128xf32>
    %1035 = arith.negf %1034 : vector<8x128xf32>
    %1036 = math.exp %1035 : vector<8x128xf32>
    %cst_195 = arith.constant 1.000000e+00 : f32
    %1037 = vector.broadcast %cst_195 : f32 to vector<8x128xf32>
    %1038 = arith.addf %1037, %1036 : vector<8x128xf32>
    %1039 = arith.divf %1037, %1038 : vector<8x128xf32>
    %1040 = vector.extract_strided_slice %1027 {offsets = [0, 128], sizes = [8, 128], strides = [1, 1]} : vector<8x384xf32> to vector<8x128xf32>
    %1041 = vector.extract_strided_slice %1031 {offsets = [0, 128], sizes = [8, 128], strides = [1, 1]} : vector<8x384xf32> to vector<8x128xf32>
    %1042 = arith.addf %1040, %1041 : vector<8x128xf32>
    %1043 = arith.negf %1042 : vector<8x128xf32>
    %1044 = math.exp %1043 : vector<8x128xf32>
    %cst_196 = arith.constant 1.000000e+00 : f32
    %1045 = vector.broadcast %cst_196 : f32 to vector<8x128xf32>
    %1046 = arith.addf %1045, %1044 : vector<8x128xf32>
    %1047 = arith.divf %1045, %1046 : vector<8x128xf32>
    %1048 = vector.extract_strided_slice %1027 {offsets = [0, 256], sizes = [8, 128], strides = [1, 1]} : vector<8x384xf32> to vector<8x128xf32>
    %1049 = vector.extract_strided_slice %1031 {offsets = [0, 256], sizes = [8, 128], strides = [1, 1]} : vector<8x384xf32> to vector<8x128xf32>
    %1050 = arith.mulf %1039, %1049 : vector<8x128xf32>
    %1051 = arith.addf %1048, %1050 : vector<8x128xf32>
    %1052 = math.tanh %1051 : vector<8x128xf32>
    %cst_197 = arith.constant 1.000000e+00 : f32
    %1053 = vector.broadcast %cst_197 : f32 to vector<8x128xf32>
    %1054 = arith.subf %1053, %1047 : vector<8x128xf32>
    %1055 = arith.mulf %1054, %1052 : vector<8x128xf32>
    %1056 = arith.mulf %1047, %1026 : vector<8x128xf32>
    %1057 = arith.addf %1055, %1056 : vector<8x128xf32>
    %1058 = vector.extract_strided_slice %590 {offsets = [120, 0], sizes = [8, 384], strides = [1, 1]} : vector<128x384xf32> to vector<8x384xf32>
    %1059 = arith.truncf %1057 : vector<8x128xf32> to vector<8x128xbf16>
    %cst_198 = arith.constant dense<0.000000e+00> : vector<8x384xf32>
    %1060 = tpu.matmul %1059, %591, %cst_198 {dimension_numbers = #tpu.dot_dimension_numbers<[1], [0], [0], [1], [0, 0, 1, 1], [], []>} : vector<8x128xbf16>, vector<128x384xbf16>, vector<8x384xf32> -> vector<8x384xf32>
    %1061 = vector.broadcast %592 : vector<1x384xf32> to vector<8x384xf32>
    %1062 = arith.addf %1060, %1061 : vector<8x384xf32>
    %1063 = vector.extract_strided_slice %1058 {offsets = [0, 0], sizes = [8, 128], strides = [1, 1]} : vector<8x384xf32> to vector<8x128xf32>
    %1064 = vector.extract_strided_slice %1062 {offsets = [0, 0], sizes = [8, 128], strides = [1, 1]} : vector<8x384xf32> to vector<8x128xf32>
    %1065 = arith.addf %1063, %1064 : vector<8x128xf32>
    %1066 = arith.negf %1065 : vector<8x128xf32>
    %1067 = math.exp %1066 : vector<8x128xf32>
    %cst_199 = arith.constant 1.000000e+00 : f32
    %1068 = vector.broadcast %cst_199 : f32 to vector<8x128xf32>
    %1069 = arith.addf %1068, %1067 : vector<8x128xf32>
    %1070 = arith.divf %1068, %1069 : vector<8x128xf32>
    %1071 = vector.extract_strided_slice %1058 {offsets = [0, 128], sizes = [8, 128], strides = [1, 1]} : vector<8x384xf32> to vector<8x128xf32>
    %1072 = vector.extract_strided_slice %1062 {offsets = [0, 128], sizes = [8, 128], strides = [1, 1]} : vector<8x384xf32> to vector<8x128xf32>
    %1073 = arith.addf %1071, %1072 : vector<8x128xf32>
    %1074 = arith.negf %1073 : vector<8x128xf32>
    %1075 = math.exp %1074 : vector<8x128xf32>
    %cst_200 = arith.constant 1.000000e+00 : f32
    %1076 = vector.broadcast %cst_200 : f32 to vector<8x128xf32>
    %1077 = arith.addf %1076, %1075 : vector<8x128xf32>
    %1078 = arith.divf %1076, %1077 : vector<8x128xf32>
    %1079 = vector.extract_strided_slice %1058 {offsets = [0, 256], sizes = [8, 128], strides = [1, 1]} : vector<8x384xf32> to vector<8x128xf32>
    %1080 = vector.extract_strided_slice %1062 {offsets = [0, 256], sizes = [8, 128], strides = [1, 1]} : vector<8x384xf32> to vector<8x128xf32>
    %1081 = arith.mulf %1070, %1080 : vector<8x128xf32>
    %1082 = arith.addf %1079, %1081 : vector<8x128xf32>
    %1083 = math.tanh %1082 : vector<8x128xf32>
    %cst_201 = arith.constant 1.000000e+00 : f32
    %1084 = vector.broadcast %cst_201 : f32 to vector<8x128xf32>
    %1085 = arith.subf %1084, %1078 : vector<8x128xf32>
    %1086 = arith.mulf %1085, %1083 : vector<8x128xf32>
    %1087 = arith.mulf %1078, %1057 : vector<8x128xf32>
    %1088 = arith.addf %1086, %1087 : vector<8x128xf32>
    %c8 = arith.constant 8 : index
    %c0_202 = arith.constant 0 : index
    %1089 = vector.load %arg25[%c8, %c0_202] : memref<16x128xf32, #tpu.memory_space<vmem>>, vector<8x128xf32>
    tpu.vector_store %arg25[%c8, %c0_202], %1088 {strides = array<i32>} : memref<16x128xf32, #tpu.memory_space<vmem>>, vector<8x128xf32>,
    return
  }
}

module attributes {stable_mosaic.version = 11 : i64} {
  func.func @_decoder_kernel(%arg0: memref<64x32xf32, #tpu.memory_space<vmem>>, %arg1: memref<16x128xf32, #tpu.memory_space<vmem>>, %arg2: memref<32x384xbf16, #tpu.memory_space<vmem>>, %arg3: memref<128x384xbf16, #tpu.memory_space<vmem>>, %arg4: memref<1x384xf32, #tpu.memory_space<vmem>>, %arg5: memref<1x384xf32, #tpu.memory_space<vmem>>, %arg6: memref<128x384xbf16, #tpu.memory_space<vmem>>, %arg7: memref<128x384xbf16, #tpu.memory_space<vmem>>, %arg8: memref<1x384xf32, #tpu.memory_space<vmem>>, %arg9: memref<1x384xf32, #tpu.memory_space<vmem>>, %arg10: memref<128x128xbf16, #tpu.memory_space<vmem>>, %arg11: memref<1x128xf32, #tpu.memory_space<vmem>>, %arg12: memref<64x128xf32, #tpu.memory_space<vmem>>) attributes {dimension_semantics = [], scalar_prefetch = 0 : i64, scratch_operands = 0 : i64, tpu.core_type = #tpu.core_type<tc>} {
    %c0 = arith.constant 0 : index
    %c0_0 = arith.constant 0 : index
    %0 = vector.load %arg0[%c0, %c0_0] : memref<64x32xf32, #tpu.memory_space<vmem>>, vector<64x32xf32>
    %cst = arith.constant 0.000000e+00 : f32
    %1 = vector.broadcast %cst : f32 to vector<64x32xf32>
    %2 = arith.maximumf %0, %1 : vector<64x32xf32>
    %c0_1 = arith.constant 0 : index
    %c0_2 = arith.constant 0 : index
    %3 = vector.load %arg1[%c0_1, %c0_2] : memref<16x128xf32, #tpu.memory_space<vmem>>, vector<8x128xf32>
    %4 = arith.truncf %2 : vector<64x32xf32> to vector<64x32xbf16>
    %c0_3 = arith.constant 0 : index
    %c0_4 = arith.constant 0 : index
    %5 = vector.load %arg2[%c0_3, %c0_4] : memref<32x384xbf16, #tpu.memory_space<vmem>>, vector<32x384xbf16>
    %cst_5 = arith.constant dense<0.000000e+00> : vector<64x384xf32>
    %6 = tpu.matmul %4, %5, %cst_5 {dimension_numbers = #tpu.dot_dimension_numbers<[1], [0], [0], [1], [0, 0, 1, 1], [], []>} : vector<64x32xbf16>, vector<32x384xbf16>, vector<64x384xf32> -> vector<64x384xf32>
    %c0_6 = arith.constant 0 : index
    %c0_7 = arith.constant 0 : index
    %7 = vector.load %arg4[%c0_6, %c0_7] : memref<1x384xf32, #tpu.memory_space<vmem>>, vector<1x384xf32>
    %8 = vector.broadcast %7 : vector<1x384xf32> to vector<64x384xf32>
    %9 = arith.addf %6, %8 : vector<64x384xf32>
    %c0_8 = arith.constant 0 : index
    %c0_9 = arith.constant 0 : index
    %10 = vector.load %arg3[%c0_8, %c0_9] : memref<128x384xbf16, #tpu.memory_space<vmem>>, vector<128x384xbf16>
    %c0_10 = arith.constant 0 : index
    %c0_11 = arith.constant 0 : index
    %11 = vector.load %arg5[%c0_10, %c0_11] : memref<1x384xf32, #tpu.memory_space<vmem>>, vector<1x384xf32>
    %12 = vector.extract_strided_slice %9 {offsets = [0, 0], sizes = [8, 384], strides = [1, 1]} : vector<64x384xf32> to vector<8x384xf32>
    %13 = arith.truncf %3 : vector<8x128xf32> to vector<8x128xbf16>
    %cst_12 = arith.constant dense<0.000000e+00> : vector<8x384xf32>
    %14 = tpu.matmul %13, %10, %cst_12 {dimension_numbers = #tpu.dot_dimension_numbers<[1], [0], [0], [1], [0, 0, 1, 1], [], []>} : vector<8x128xbf16>, vector<128x384xbf16>, vector<8x384xf32> -> vector<8x384xf32>
    %15 = vector.broadcast %11 : vector<1x384xf32> to vector<8x384xf32>
    %16 = arith.addf %14, %15 : vector<8x384xf32>
    %17 = vector.extract_strided_slice %12 {offsets = [0, 0], sizes = [8, 128], strides = [1, 1]} : vector<8x384xf32> to vector<8x128xf32>
    %18 = vector.extract_strided_slice %16 {offsets = [0, 0], sizes = [8, 128], strides = [1, 1]} : vector<8x384xf32> to vector<8x128xf32>
    %19 = arith.addf %17, %18 : vector<8x128xf32>
    %20 = arith.negf %19 : vector<8x128xf32>
    %21 = math.exp %20 : vector<8x128xf32>
    %cst_13 = arith.constant 1.000000e+00 : f32
    %22 = vector.broadcast %cst_13 : f32 to vector<8x128xf32>
    %23 = arith.addf %22, %21 : vector<8x128xf32>
    %24 = arith.divf %22, %23 : vector<8x128xf32>
    %25 = vector.extract_strided_slice %12 {offsets = [0, 128], sizes = [8, 128], strides = [1, 1]} : vector<8x384xf32> to vector<8x128xf32>
    %26 = vector.extract_strided_slice %16 {offsets = [0, 128], sizes = [8, 128], strides = [1, 1]} : vector<8x384xf32> to vector<8x128xf32>
    %27 = arith.addf %25, %26 : vector<8x128xf32>
    %28 = arith.negf %27 : vector<8x128xf32>
    %29 = math.exp %28 : vector<8x128xf32>
    %cst_14 = arith.constant 1.000000e+00 : f32
    %30 = vector.broadcast %cst_14 : f32 to vector<8x128xf32>
    %31 = arith.addf %30, %29 : vector<8x128xf32>
    %32 = arith.divf %30, %31 : vector<8x128xf32>
    %33 = vector.extract_strided_slice %12 {offsets = [0, 256], sizes = [8, 128], strides = [1, 1]} : vector<8x384xf32> to vector<8x128xf32>
    %34 = vector.extract_strided_slice %16 {offsets = [0, 256], sizes = [8, 128], strides = [1, 1]} : vector<8x384xf32> to vector<8x128xf32>
    %35 = arith.mulf %24, %34 : vector<8x128xf32>
    %36 = arith.addf %33, %35 : vector<8x128xf32>
    %37 = math.tanh %36 : vector<8x128xf32>
    %cst_15 = arith.constant 1.000000e+00 : f32
    %38 = vector.broadcast %cst_15 : f32 to vector<8x128xf32>
    %39 = arith.subf %38, %32 : vector<8x128xf32>
    %40 = arith.mulf %39, %37 : vector<8x128xf32>
    %41 = arith.mulf %32, %3 : vector<8x128xf32>
    %42 = arith.addf %40, %41 : vector<8x128xf32>
    %43 = vector.extract_strided_slice %9 {offsets = [8, 0], sizes = [8, 384], strides = [1, 1]} : vector<64x384xf32> to vector<8x384xf32>
    %44 = arith.truncf %42 : vector<8x128xf32> to vector<8x128xbf16>
    %cst_16 = arith.constant dense<0.000000e+00> : vector<8x384xf32>
    %45 = tpu.matmul %44, %10, %cst_16 {dimension_numbers = #tpu.dot_dimension_numbers<[1], [0], [0], [1], [0, 0, 1, 1], [], []>} : vector<8x128xbf16>, vector<128x384xbf16>, vector<8x384xf32> -> vector<8x384xf32>
    %46 = vector.broadcast %11 : vector<1x384xf32> to vector<8x384xf32>
    %47 = arith.addf %45, %46 : vector<8x384xf32>
    %48 = vector.extract_strided_slice %43 {offsets = [0, 0], sizes = [8, 128], strides = [1, 1]} : vector<8x384xf32> to vector<8x128xf32>
    %49 = vector.extract_strided_slice %47 {offsets = [0, 0], sizes = [8, 128], strides = [1, 1]} : vector<8x384xf32> to vector<8x128xf32>
    %50 = arith.addf %48, %49 : vector<8x128xf32>
    %51 = arith.negf %50 : vector<8x128xf32>
    %52 = math.exp %51 : vector<8x128xf32>
    %cst_17 = arith.constant 1.000000e+00 : f32
    %53 = vector.broadcast %cst_17 : f32 to vector<8x128xf32>
    %54 = arith.addf %53, %52 : vector<8x128xf32>
    %55 = arith.divf %53, %54 : vector<8x128xf32>
    %56 = vector.extract_strided_slice %43 {offsets = [0, 128], sizes = [8, 128], strides = [1, 1]} : vector<8x384xf32> to vector<8x128xf32>
    %57 = vector.extract_strided_slice %47 {offsets = [0, 128], sizes = [8, 128], strides = [1, 1]} : vector<8x384xf32> to vector<8x128xf32>
    %58 = arith.addf %56, %57 : vector<8x128xf32>
    %59 = arith.negf %58 : vector<8x128xf32>
    %60 = math.exp %59 : vector<8x128xf32>
    %cst_18 = arith.constant 1.000000e+00 : f32
    %61 = vector.broadcast %cst_18 : f32 to vector<8x128xf32>
    %62 = arith.addf %61, %60 : vector<8x128xf32>
    %63 = arith.divf %61, %62 : vector<8x128xf32>
    %64 = vector.extract_strided_slice %43 {offsets = [0, 256], sizes = [8, 128], strides = [1, 1]} : vector<8x384xf32> to vector<8x128xf32>
    %65 = vector.extract_strided_slice %47 {offsets = [0, 256], sizes = [8, 128], strides = [1, 1]} : vector<8x384xf32> to vector<8x128xf32>
    %66 = arith.mulf %55, %65 : vector<8x128xf32>
    %67 = arith.addf %64, %66 : vector<8x128xf32>
    %68 = math.tanh %67 : vector<8x128xf32>
    %cst_19 = arith.constant 1.000000e+00 : f32
    %69 = vector.broadcast %cst_19 : f32 to vector<8x128xf32>
    %70 = arith.subf %69, %63 : vector<8x128xf32>
    %71 = arith.mulf %70, %68 : vector<8x128xf32>
    %72 = arith.mulf %63, %42 : vector<8x128xf32>
    %73 = arith.addf %71, %72 : vector<8x128xf32>
    %74 = vector.extract_strided_slice %9 {offsets = [16, 0], sizes = [8, 384], strides = [1, 1]} : vector<64x384xf32> to vector<8x384xf32>
    %75 = arith.truncf %73 : vector<8x128xf32> to vector<8x128xbf16>
    %cst_20 = arith.constant dense<0.000000e+00> : vector<8x384xf32>
    %76 = tpu.matmul %75, %10, %cst_20 {dimension_numbers = #tpu.dot_dimension_numbers<[1], [0], [0], [1], [0, 0, 1, 1], [], []>} : vector<8x128xbf16>, vector<128x384xbf16>, vector<8x384xf32> -> vector<8x384xf32>
    %77 = vector.broadcast %11 : vector<1x384xf32> to vector<8x384xf32>
    %78 = arith.addf %76, %77 : vector<8x384xf32>
    %79 = vector.extract_strided_slice %74 {offsets = [0, 0], sizes = [8, 128], strides = [1, 1]} : vector<8x384xf32> to vector<8x128xf32>
    %80 = vector.extract_strided_slice %78 {offsets = [0, 0], sizes = [8, 128], strides = [1, 1]} : vector<8x384xf32> to vector<8x128xf32>
    %81 = arith.addf %79, %80 : vector<8x128xf32>
    %82 = arith.negf %81 : vector<8x128xf32>
    %83 = math.exp %82 : vector<8x128xf32>
    %cst_21 = arith.constant 1.000000e+00 : f32
    %84 = vector.broadcast %cst_21 : f32 to vector<8x128xf32>
    %85 = arith.addf %84, %83 : vector<8x128xf32>
    %86 = arith.divf %84, %85 : vector<8x128xf32>
    %87 = vector.extract_strided_slice %74 {offsets = [0, 128], sizes = [8, 128], strides = [1, 1]} : vector<8x384xf32> to vector<8x128xf32>
    %88 = vector.extract_strided_slice %78 {offsets = [0, 128], sizes = [8, 128], strides = [1, 1]} : vector<8x384xf32> to vector<8x128xf32>
    %89 = arith.addf %87, %88 : vector<8x128xf32>
    %90 = arith.negf %89 : vector<8x128xf32>
    %91 = math.exp %90 : vector<8x128xf32>
    %cst_22 = arith.constant 1.000000e+00 : f32
    %92 = vector.broadcast %cst_22 : f32 to vector<8x128xf32>
    %93 = arith.addf %92, %91 : vector<8x128xf32>
    %94 = arith.divf %92, %93 : vector<8x128xf32>
    %95 = vector.extract_strided_slice %74 {offsets = [0, 256], sizes = [8, 128], strides = [1, 1]} : vector<8x384xf32> to vector<8x128xf32>
    %96 = vector.extract_strided_slice %78 {offsets = [0, 256], sizes = [8, 128], strides = [1, 1]} : vector<8x384xf32> to vector<8x128xf32>
    %97 = arith.mulf %86, %96 : vector<8x128xf32>
    %98 = arith.addf %95, %97 : vector<8x128xf32>
    %99 = math.tanh %98 : vector<8x128xf32>
    %cst_23 = arith.constant 1.000000e+00 : f32
    %100 = vector.broadcast %cst_23 : f32 to vector<8x128xf32>
    %101 = arith.subf %100, %94 : vector<8x128xf32>
    %102 = arith.mulf %101, %99 : vector<8x128xf32>
    %103 = arith.mulf %94, %73 : vector<8x128xf32>
    %104 = arith.addf %102, %103 : vector<8x128xf32>
    %105 = vector.extract_strided_slice %9 {offsets = [24, 0], sizes = [8, 384], strides = [1, 1]} : vector<64x384xf32> to vector<8x384xf32>
    %106 = arith.truncf %104 : vector<8x128xf32> to vector<8x128xbf16>
    %cst_24 = arith.constant dense<0.000000e+00> : vector<8x384xf32>
    %107 = tpu.matmul %106, %10, %cst_24 {dimension_numbers = #tpu.dot_dimension_numbers<[1], [0], [0], [1], [0, 0, 1, 1], [], []>} : vector<8x128xbf16>, vector<128x384xbf16>, vector<8x384xf32> -> vector<8x384xf32>
    %108 = vector.broadcast %11 : vector<1x384xf32> to vector<8x384xf32>
    %109 = arith.addf %107, %108 : vector<8x384xf32>
    %110 = vector.extract_strided_slice %105 {offsets = [0, 0], sizes = [8, 128], strides = [1, 1]} : vector<8x384xf32> to vector<8x128xf32>
    %111 = vector.extract_strided_slice %109 {offsets = [0, 0], sizes = [8, 128], strides = [1, 1]} : vector<8x384xf32> to vector<8x128xf32>
    %112 = arith.addf %110, %111 : vector<8x128xf32>
    %113 = arith.negf %112 : vector<8x128xf32>
    %114 = math.exp %113 : vector<8x128xf32>
    %cst_25 = arith.constant 1.000000e+00 : f32
    %115 = vector.broadcast %cst_25 : f32 to vector<8x128xf32>
    %116 = arith.addf %115, %114 : vector<8x128xf32>
    %117 = arith.divf %115, %116 : vector<8x128xf32>
    %118 = vector.extract_strided_slice %105 {offsets = [0, 128], sizes = [8, 128], strides = [1, 1]} : vector<8x384xf32> to vector<8x128xf32>
    %119 = vector.extract_strided_slice %109 {offsets = [0, 128], sizes = [8, 128], strides = [1, 1]} : vector<8x384xf32> to vector<8x128xf32>
    %120 = arith.addf %118, %119 : vector<8x128xf32>
    %121 = arith.negf %120 : vector<8x128xf32>
    %122 = math.exp %121 : vector<8x128xf32>
    %cst_26 = arith.constant 1.000000e+00 : f32
    %123 = vector.broadcast %cst_26 : f32 to vector<8x128xf32>
    %124 = arith.addf %123, %122 : vector<8x128xf32>
    %125 = arith.divf %123, %124 : vector<8x128xf32>
    %126 = vector.extract_strided_slice %105 {offsets = [0, 256], sizes = [8, 128], strides = [1, 1]} : vector<8x384xf32> to vector<8x128xf32>
    %127 = vector.extract_strided_slice %109 {offsets = [0, 256], sizes = [8, 128], strides = [1, 1]} : vector<8x384xf32> to vector<8x128xf32>
    %128 = arith.mulf %117, %127 : vector<8x128xf32>
    %129 = arith.addf %126, %128 : vector<8x128xf32>
    %130 = math.tanh %129 : vector<8x128xf32>
    %cst_27 = arith.constant 1.000000e+00 : f32
    %131 = vector.broadcast %cst_27 : f32 to vector<8x128xf32>
    %132 = arith.subf %131, %125 : vector<8x128xf32>
    %133 = arith.mulf %132, %130 : vector<8x128xf32>
    %134 = arith.mulf %125, %104 : vector<8x128xf32>
    %135 = arith.addf %133, %134 : vector<8x128xf32>
    %136 = vector.extract_strided_slice %9 {offsets = [32, 0], sizes = [8, 384], strides = [1, 1]} : vector<64x384xf32> to vector<8x384xf32>
    %137 = arith.truncf %135 : vector<8x128xf32> to vector<8x128xbf16>
    %cst_28 = arith.constant dense<0.000000e+00> : vector<8x384xf32>
    %138 = tpu.matmul %137, %10, %cst_28 {dimension_numbers = #tpu.dot_dimension_numbers<[1], [0], [0], [1], [0, 0, 1, 1], [], []>} : vector<8x128xbf16>, vector<128x384xbf16>, vector<8x384xf32> -> vector<8x384xf32>
    %139 = vector.broadcast %11 : vector<1x384xf32> to vector<8x384xf32>
    %140 = arith.addf %138, %139 : vector<8x384xf32>
    %141 = vector.extract_strided_slice %136 {offsets = [0, 0], sizes = [8, 128], strides = [1, 1]} : vector<8x384xf32> to vector<8x128xf32>
    %142 = vector.extract_strided_slice %140 {offsets = [0, 0], sizes = [8, 128], strides = [1, 1]} : vector<8x384xf32> to vector<8x128xf32>
    %143 = arith.addf %141, %142 : vector<8x128xf32>
    %144 = arith.negf %143 : vector<8x128xf32>
    %145 = math.exp %144 : vector<8x128xf32>
    %cst_29 = arith.constant 1.000000e+00 : f32
    %146 = vector.broadcast %cst_29 : f32 to vector<8x128xf32>
    %147 = arith.addf %146, %145 : vector<8x128xf32>
    %148 = arith.divf %146, %147 : vector<8x128xf32>
    %149 = vector.extract_strided_slice %136 {offsets = [0, 128], sizes = [8, 128], strides = [1, 1]} : vector<8x384xf32> to vector<8x128xf32>
    %150 = vector.extract_strided_slice %140 {offsets = [0, 128], sizes = [8, 128], strides = [1, 1]} : vector<8x384xf32> to vector<8x128xf32>
    %151 = arith.addf %149, %150 : vector<8x128xf32>
    %152 = arith.negf %151 : vector<8x128xf32>
    %153 = math.exp %152 : vector<8x128xf32>
    %cst_30 = arith.constant 1.000000e+00 : f32
    %154 = vector.broadcast %cst_30 : f32 to vector<8x128xf32>
    %155 = arith.addf %154, %153 : vector<8x128xf32>
    %156 = arith.divf %154, %155 : vector<8x128xf32>
    %157 = vector.extract_strided_slice %136 {offsets = [0, 256], sizes = [8, 128], strides = [1, 1]} : vector<8x384xf32> to vector<8x128xf32>
    %158 = vector.extract_strided_slice %140 {offsets = [0, 256], sizes = [8, 128], strides = [1, 1]} : vector<8x384xf32> to vector<8x128xf32>
    %159 = arith.mulf %148, %158 : vector<8x128xf32>
    %160 = arith.addf %157, %159 : vector<8x128xf32>
    %161 = math.tanh %160 : vector<8x128xf32>
    %cst_31 = arith.constant 1.000000e+00 : f32
    %162 = vector.broadcast %cst_31 : f32 to vector<8x128xf32>
    %163 = arith.subf %162, %156 : vector<8x128xf32>
    %164 = arith.mulf %163, %161 : vector<8x128xf32>
    %165 = arith.mulf %156, %135 : vector<8x128xf32>
    %166 = arith.addf %164, %165 : vector<8x128xf32>
    %167 = vector.extract_strided_slice %9 {offsets = [40, 0], sizes = [8, 384], strides = [1, 1]} : vector<64x384xf32> to vector<8x384xf32>
    %168 = arith.truncf %166 : vector<8x128xf32> to vector<8x128xbf16>
    %cst_32 = arith.constant dense<0.000000e+00> : vector<8x384xf32>
    %169 = tpu.matmul %168, %10, %cst_32 {dimension_numbers = #tpu.dot_dimension_numbers<[1], [0], [0], [1], [0, 0, 1, 1], [], []>} : vector<8x128xbf16>, vector<128x384xbf16>, vector<8x384xf32> -> vector<8x384xf32>
    %170 = vector.broadcast %11 : vector<1x384xf32> to vector<8x384xf32>
    %171 = arith.addf %169, %170 : vector<8x384xf32>
    %172 = vector.extract_strided_slice %167 {offsets = [0, 0], sizes = [8, 128], strides = [1, 1]} : vector<8x384xf32> to vector<8x128xf32>
    %173 = vector.extract_strided_slice %171 {offsets = [0, 0], sizes = [8, 128], strides = [1, 1]} : vector<8x384xf32> to vector<8x128xf32>
    %174 = arith.addf %172, %173 : vector<8x128xf32>
    %175 = arith.negf %174 : vector<8x128xf32>
    %176 = math.exp %175 : vector<8x128xf32>
    %cst_33 = arith.constant 1.000000e+00 : f32
    %177 = vector.broadcast %cst_33 : f32 to vector<8x128xf32>
    %178 = arith.addf %177, %176 : vector<8x128xf32>
    %179 = arith.divf %177, %178 : vector<8x128xf32>
    %180 = vector.extract_strided_slice %167 {offsets = [0, 128], sizes = [8, 128], strides = [1, 1]} : vector<8x384xf32> to vector<8x128xf32>
    %181 = vector.extract_strided_slice %171 {offsets = [0, 128], sizes = [8, 128], strides = [1, 1]} : vector<8x384xf32> to vector<8x128xf32>
    %182 = arith.addf %180, %181 : vector<8x128xf32>
    %183 = arith.negf %182 : vector<8x128xf32>
    %184 = math.exp %183 : vector<8x128xf32>
    %cst_34 = arith.constant 1.000000e+00 : f32
    %185 = vector.broadcast %cst_34 : f32 to vector<8x128xf32>
    %186 = arith.addf %185, %184 : vector<8x128xf32>
    %187 = arith.divf %185, %186 : vector<8x128xf32>
    %188 = vector.extract_strided_slice %167 {offsets = [0, 256], sizes = [8, 128], strides = [1, 1]} : vector<8x384xf32> to vector<8x128xf32>
    %189 = vector.extract_strided_slice %171 {offsets = [0, 256], sizes = [8, 128], strides = [1, 1]} : vector<8x384xf32> to vector<8x128xf32>
    %190 = arith.mulf %179, %189 : vector<8x128xf32>
    %191 = arith.addf %188, %190 : vector<8x128xf32>
    %192 = math.tanh %191 : vector<8x128xf32>
    %cst_35 = arith.constant 1.000000e+00 : f32
    %193 = vector.broadcast %cst_35 : f32 to vector<8x128xf32>
    %194 = arith.subf %193, %187 : vector<8x128xf32>
    %195 = arith.mulf %194, %192 : vector<8x128xf32>
    %196 = arith.mulf %187, %166 : vector<8x128xf32>
    %197 = arith.addf %195, %196 : vector<8x128xf32>
    %198 = vector.extract_strided_slice %9 {offsets = [48, 0], sizes = [8, 384], strides = [1, 1]} : vector<64x384xf32> to vector<8x384xf32>
    %199 = arith.truncf %197 : vector<8x128xf32> to vector<8x128xbf16>
    %cst_36 = arith.constant dense<0.000000e+00> : vector<8x384xf32>
    %200 = tpu.matmul %199, %10, %cst_36 {dimension_numbers = #tpu.dot_dimension_numbers<[1], [0], [0], [1], [0, 0, 1, 1], [], []>} : vector<8x128xbf16>, vector<128x384xbf16>, vector<8x384xf32> -> vector<8x384xf32>
    %201 = vector.broadcast %11 : vector<1x384xf32> to vector<8x384xf32>
    %202 = arith.addf %200, %201 : vector<8x384xf32>
    %203 = vector.extract_strided_slice %198 {offsets = [0, 0], sizes = [8, 128], strides = [1, 1]} : vector<8x384xf32> to vector<8x128xf32>
    %204 = vector.extract_strided_slice %202 {offsets = [0, 0], sizes = [8, 128], strides = [1, 1]} : vector<8x384xf32> to vector<8x128xf32>
    %205 = arith.addf %203, %204 : vector<8x128xf32>
    %206 = arith.negf %205 : vector<8x128xf32>
    %207 = math.exp %206 : vector<8x128xf32>
    %cst_37 = arith.constant 1.000000e+00 : f32
    %208 = vector.broadcast %cst_37 : f32 to vector<8x128xf32>
    %209 = arith.addf %208, %207 : vector<8x128xf32>
    %210 = arith.divf %208, %209 : vector<8x128xf32>
    %211 = vector.extract_strided_slice %198 {offsets = [0, 128], sizes = [8, 128], strides = [1, 1]} : vector<8x384xf32> to vector<8x128xf32>
    %212 = vector.extract_strided_slice %202 {offsets = [0, 128], sizes = [8, 128], strides = [1, 1]} : vector<8x384xf32> to vector<8x128xf32>
    %213 = arith.addf %211, %212 : vector<8x128xf32>
    %214 = arith.negf %213 : vector<8x128xf32>
    %215 = math.exp %214 : vector<8x128xf32>
    %cst_38 = arith.constant 1.000000e+00 : f32
    %216 = vector.broadcast %cst_38 : f32 to vector<8x128xf32>
    %217 = arith.addf %216, %215 : vector<8x128xf32>
    %218 = arith.divf %216, %217 : vector<8x128xf32>
    %219 = vector.extract_strided_slice %198 {offsets = [0, 256], sizes = [8, 128], strides = [1, 1]} : vector<8x384xf32> to vector<8x128xf32>
    %220 = vector.extract_strided_slice %202 {offsets = [0, 256], sizes = [8, 128], strides = [1, 1]} : vector<8x384xf32> to vector<8x128xf32>
    %221 = arith.mulf %210, %220 : vector<8x128xf32>
    %222 = arith.addf %219, %221 : vector<8x128xf32>
    %223 = math.tanh %222 : vector<8x128xf32>
    %cst_39 = arith.constant 1.000000e+00 : f32
    %224 = vector.broadcast %cst_39 : f32 to vector<8x128xf32>
    %225 = arith.subf %224, %218 : vector<8x128xf32>
    %226 = arith.mulf %225, %223 : vector<8x128xf32>
    %227 = arith.mulf %218, %197 : vector<8x128xf32>
    %228 = arith.addf %226, %227 : vector<8x128xf32>
    %229 = vector.extract_strided_slice %9 {offsets = [56, 0], sizes = [8, 384], strides = [1, 1]} : vector<64x384xf32> to vector<8x384xf32>
    %230 = arith.truncf %228 : vector<8x128xf32> to vector<8x128xbf16>
    %cst_40 = arith.constant dense<0.000000e+00> : vector<8x384xf32>
    %231 = tpu.matmul %230, %10, %cst_40 {dimension_numbers = #tpu.dot_dimension_numbers<[1], [0], [0], [1], [0, 0, 1, 1], [], []>} : vector<8x128xbf16>, vector<128x384xbf16>, vector<8x384xf32> -> vector<8x384xf32>
    %232 = vector.broadcast %11 : vector<1x384xf32> to vector<8x384xf32>
    %233 = arith.addf %231, %232 : vector<8x384xf32>
    %234 = vector.extract_strided_slice %229 {offsets = [0, 0], sizes = [8, 128], strides = [1, 1]} : vector<8x384xf32> to vector<8x128xf32>
    %235 = vector.extract_strided_slice %233 {offsets = [0, 0], sizes = [8, 128], strides = [1, 1]} : vector<8x384xf32> to vector<8x128xf32>
    %236 = arith.addf %234, %235 : vector<8x128xf32>
    %237 = arith.negf %236 : vector<8x128xf32>
    %238 = math.exp %237 : vector<8x128xf32>
    %cst_41 = arith.constant 1.000000e+00 : f32
    %239 = vector.broadcast %cst_41 : f32 to vector<8x128xf32>
    %240 = arith.addf %239, %238 : vector<8x128xf32>
    %241 = arith.divf %239, %240 : vector<8x128xf32>
    %242 = vector.extract_strided_slice %229 {offsets = [0, 128], sizes = [8, 128], strides = [1, 1]} : vector<8x384xf32> to vector<8x128xf32>
    %243 = vector.extract_strided_slice %233 {offsets = [0, 128], sizes = [8, 128], strides = [1, 1]} : vector<8x384xf32> to vector<8x128xf32>
    %244 = arith.addf %242, %243 : vector<8x128xf32>
    %245 = arith.negf %244 : vector<8x128xf32>
    %246 = math.exp %245 : vector<8x128xf32>
    %cst_42 = arith.constant 1.000000e+00 : f32
    %247 = vector.broadcast %cst_42 : f32 to vector<8x128xf32>
    %248 = arith.addf %247, %246 : vector<8x128xf32>
    %249 = arith.divf %247, %248 : vector<8x128xf32>
    %250 = vector.extract_strided_slice %229 {offsets = [0, 256], sizes = [8, 128], strides = [1, 1]} : vector<8x384xf32> to vector<8x128xf32>
    %251 = vector.extract_strided_slice %233 {offsets = [0, 256], sizes = [8, 128], strides = [1, 1]} : vector<8x384xf32> to vector<8x128xf32>
    %252 = arith.mulf %241, %251 : vector<8x128xf32>
    %253 = arith.addf %250, %252 : vector<8x128xf32>
    %254 = math.tanh %253 : vector<8x128xf32>
    %cst_43 = arith.constant 1.000000e+00 : f32
    %255 = vector.broadcast %cst_43 : f32 to vector<8x128xf32>
    %256 = arith.subf %255, %249 : vector<8x128xf32>
    %257 = arith.mulf %256, %254 : vector<8x128xf32>
    %258 = arith.mulf %249, %228 : vector<8x128xf32>
    %259 = arith.addf %257, %258 : vector<8x128xf32>
    %260 = tpu.concatenate %42, %73, %104, %135, %166, %197, %228, %259 in 0 : vector<8x128xf32>, vector<8x128xf32>, vector<8x128xf32>, vector<8x128xf32>, vector<8x128xf32>, vector<8x128xf32>, vector<8x128xf32>, vector<8x128xf32> -> vector<64x128xf32>
    %c8 = arith.constant 8 : index
    %c0_44 = arith.constant 0 : index
    %261 = vector.load %arg1[%c8, %c0_44] : memref<16x128xf32, #tpu.memory_space<vmem>>, vector<8x128xf32>
    %262 = arith.truncf %260 : vector<64x128xf32> to vector<64x128xbf16>
    %c0_45 = arith.constant 0 : index
    %c0_46 = arith.constant 0 : index
    %263 = vector.load %arg6[%c0_45, %c0_46] : memref<128x384xbf16, #tpu.memory_space<vmem>>, vector<128x384xbf16>
    %cst_47 = arith.constant dense<0.000000e+00> : vector<64x384xf32>
    %264 = tpu.matmul %262, %263, %cst_47 {dimension_numbers = #tpu.dot_dimension_numbers<[1], [0], [0], [1], [0, 0, 1, 1], [], []>} : vector<64x128xbf16>, vector<128x384xbf16>, vector<64x384xf32> -> vector<64x384xf32>
    %c0_48 = arith.constant 0 : index
    %c0_49 = arith.constant 0 : index
    %265 = vector.load %arg8[%c0_48, %c0_49] : memref<1x384xf32, #tpu.memory_space<vmem>>, vector<1x384xf32>
    %266 = vector.broadcast %265 : vector<1x384xf32> to vector<64x384xf32>
    %267 = arith.addf %264, %266 : vector<64x384xf32>
    %c0_50 = arith.constant 0 : index
    %c0_51 = arith.constant 0 : index
    %268 = vector.load %arg7[%c0_50, %c0_51] : memref<128x384xbf16, #tpu.memory_space<vmem>>, vector<128x384xbf16>
    %c0_52 = arith.constant 0 : index
    %c0_53 = arith.constant 0 : index
    %269 = vector.load %arg9[%c0_52, %c0_53] : memref<1x384xf32, #tpu.memory_space<vmem>>, vector<1x384xf32>
    %270 = vector.extract_strided_slice %267 {offsets = [0, 0], sizes = [8, 384], strides = [1, 1]} : vector<64x384xf32> to vector<8x384xf32>
    %271 = arith.truncf %261 : vector<8x128xf32> to vector<8x128xbf16>
    %cst_54 = arith.constant dense<0.000000e+00> : vector<8x384xf32>
    %272 = tpu.matmul %271, %268, %cst_54 {dimension_numbers = #tpu.dot_dimension_numbers<[1], [0], [0], [1], [0, 0, 1, 1], [], []>} : vector<8x128xbf16>, vector<128x384xbf16>, vector<8x384xf32> -> vector<8x384xf32>
    %273 = vector.broadcast %269 : vector<1x384xf32> to vector<8x384xf32>
    %274 = arith.addf %272, %273 : vector<8x384xf32>
    %275 = vector.extract_strided_slice %270 {offsets = [0, 0], sizes = [8, 128], strides = [1, 1]} : vector<8x384xf32> to vector<8x128xf32>
    %276 = vector.extract_strided_slice %274 {offsets = [0, 0], sizes = [8, 128], strides = [1, 1]} : vector<8x384xf32> to vector<8x128xf32>
    %277 = arith.addf %275, %276 : vector<8x128xf32>
    %278 = arith.negf %277 : vector<8x128xf32>
    %279 = math.exp %278 : vector<8x128xf32>
    %cst_55 = arith.constant 1.000000e+00 : f32
    %280 = vector.broadcast %cst_55 : f32 to vector<8x128xf32>
    %281 = arith.addf %280, %279 : vector<8x128xf32>
    %282 = arith.divf %280, %281 : vector<8x128xf32>
    %283 = vector.extract_strided_slice %270 {offsets = [0, 128], sizes = [8, 128], strides = [1, 1]} : vector<8x384xf32> to vector<8x128xf32>
    %284 = vector.extract_strided_slice %274 {offsets = [0, 128], sizes = [8, 128], strides = [1, 1]} : vector<8x384xf32> to vector<8x128xf32>
    %285 = arith.addf %283, %284 : vector<8x128xf32>
    %286 = arith.negf %285 : vector<8x128xf32>
    %287 = math.exp %286 : vector<8x128xf32>
    %cst_56 = arith.constant 1.000000e+00 : f32
    %288 = vector.broadcast %cst_56 : f32 to vector<8x128xf32>
    %289 = arith.addf %288, %287 : vector<8x128xf32>
    %290 = arith.divf %288, %289 : vector<8x128xf32>
    %291 = vector.extract_strided_slice %270 {offsets = [0, 256], sizes = [8, 128], strides = [1, 1]} : vector<8x384xf32> to vector<8x128xf32>
    %292 = vector.extract_strided_slice %274 {offsets = [0, 256], sizes = [8, 128], strides = [1, 1]} : vector<8x384xf32> to vector<8x128xf32>
    %293 = arith.mulf %282, %292 : vector<8x128xf32>
    %294 = arith.addf %291, %293 : vector<8x128xf32>
    %295 = math.tanh %294 : vector<8x128xf32>
    %cst_57 = arith.constant 1.000000e+00 : f32
    %296 = vector.broadcast %cst_57 : f32 to vector<8x128xf32>
    %297 = arith.subf %296, %290 : vector<8x128xf32>
    %298 = arith.mulf %297, %295 : vector<8x128xf32>
    %299 = arith.mulf %290, %261 : vector<8x128xf32>
    %300 = arith.addf %298, %299 : vector<8x128xf32>
    %301 = vector.extract_strided_slice %267 {offsets = [8, 0], sizes = [8, 384], strides = [1, 1]} : vector<64x384xf32> to vector<8x384xf32>
    %302 = arith.truncf %300 : vector<8x128xf32> to vector<8x128xbf16>
    %cst_58 = arith.constant dense<0.000000e+00> : vector<8x384xf32>
    %303 = tpu.matmul %302, %268, %cst_58 {dimension_numbers = #tpu.dot_dimension_numbers<[1], [0], [0], [1], [0, 0, 1, 1], [], []>} : vector<8x128xbf16>, vector<128x384xbf16>, vector<8x384xf32> -> vector<8x384xf32>
    %304 = vector.broadcast %269 : vector<1x384xf32> to vector<8x384xf32>
    %305 = arith.addf %303, %304 : vector<8x384xf32>
    %306 = vector.extract_strided_slice %301 {offsets = [0, 0], sizes = [8, 128], strides = [1, 1]} : vector<8x384xf32> to vector<8x128xf32>
    %307 = vector.extract_strided_slice %305 {offsets = [0, 0], sizes = [8, 128], strides = [1, 1]} : vector<8x384xf32> to vector<8x128xf32>
    %308 = arith.addf %306, %307 : vector<8x128xf32>
    %309 = arith.negf %308 : vector<8x128xf32>
    %310 = math.exp %309 : vector<8x128xf32>
    %cst_59 = arith.constant 1.000000e+00 : f32
    %311 = vector.broadcast %cst_59 : f32 to vector<8x128xf32>
    %312 = arith.addf %311, %310 : vector<8x128xf32>
    %313 = arith.divf %311, %312 : vector<8x128xf32>
    %314 = vector.extract_strided_slice %301 {offsets = [0, 128], sizes = [8, 128], strides = [1, 1]} : vector<8x384xf32> to vector<8x128xf32>
    %315 = vector.extract_strided_slice %305 {offsets = [0, 128], sizes = [8, 128], strides = [1, 1]} : vector<8x384xf32> to vector<8x128xf32>
    %316 = arith.addf %314, %315 : vector<8x128xf32>
    %317 = arith.negf %316 : vector<8x128xf32>
    %318 = math.exp %317 : vector<8x128xf32>
    %cst_60 = arith.constant 1.000000e+00 : f32
    %319 = vector.broadcast %cst_60 : f32 to vector<8x128xf32>
    %320 = arith.addf %319, %318 : vector<8x128xf32>
    %321 = arith.divf %319, %320 : vector<8x128xf32>
    %322 = vector.extract_strided_slice %301 {offsets = [0, 256], sizes = [8, 128], strides = [1, 1]} : vector<8x384xf32> to vector<8x128xf32>
    %323 = vector.extract_strided_slice %305 {offsets = [0, 256], sizes = [8, 128], strides = [1, 1]} : vector<8x384xf32> to vector<8x128xf32>
    %324 = arith.mulf %313, %323 : vector<8x128xf32>
    %325 = arith.addf %322, %324 : vector<8x128xf32>
    %326 = math.tanh %325 : vector<8x128xf32>
    %cst_61 = arith.constant 1.000000e+00 : f32
    %327 = vector.broadcast %cst_61 : f32 to vector<8x128xf32>
    %328 = arith.subf %327, %321 : vector<8x128xf32>
    %329 = arith.mulf %328, %326 : vector<8x128xf32>
    %330 = arith.mulf %321, %300 : vector<8x128xf32>
    %331 = arith.addf %329, %330 : vector<8x128xf32>
    %332 = vector.extract_strided_slice %267 {offsets = [16, 0], sizes = [8, 384], strides = [1, 1]} : vector<64x384xf32> to vector<8x384xf32>
    %333 = arith.truncf %331 : vector<8x128xf32> to vector<8x128xbf16>
    %cst_62 = arith.constant dense<0.000000e+00> : vector<8x384xf32>
    %334 = tpu.matmul %333, %268, %cst_62 {dimension_numbers = #tpu.dot_dimension_numbers<[1], [0], [0], [1], [0, 0, 1, 1], [], []>} : vector<8x128xbf16>, vector<128x384xbf16>, vector<8x384xf32> -> vector<8x384xf32>
    %335 = vector.broadcast %269 : vector<1x384xf32> to vector<8x384xf32>
    %336 = arith.addf %334, %335 : vector<8x384xf32>
    %337 = vector.extract_strided_slice %332 {offsets = [0, 0], sizes = [8, 128], strides = [1, 1]} : vector<8x384xf32> to vector<8x128xf32>
    %338 = vector.extract_strided_slice %336 {offsets = [0, 0], sizes = [8, 128], strides = [1, 1]} : vector<8x384xf32> to vector<8x128xf32>
    %339 = arith.addf %337, %338 : vector<8x128xf32>
    %340 = arith.negf %339 : vector<8x128xf32>
    %341 = math.exp %340 : vector<8x128xf32>
    %cst_63 = arith.constant 1.000000e+00 : f32
    %342 = vector.broadcast %cst_63 : f32 to vector<8x128xf32>
    %343 = arith.addf %342, %341 : vector<8x128xf32>
    %344 = arith.divf %342, %343 : vector<8x128xf32>
    %345 = vector.extract_strided_slice %332 {offsets = [0, 128], sizes = [8, 128], strides = [1, 1]} : vector<8x384xf32> to vector<8x128xf32>
    %346 = vector.extract_strided_slice %336 {offsets = [0, 128], sizes = [8, 128], strides = [1, 1]} : vector<8x384xf32> to vector<8x128xf32>
    %347 = arith.addf %345, %346 : vector<8x128xf32>
    %348 = arith.negf %347 : vector<8x128xf32>
    %349 = math.exp %348 : vector<8x128xf32>
    %cst_64 = arith.constant 1.000000e+00 : f32
    %350 = vector.broadcast %cst_64 : f32 to vector<8x128xf32>
    %351 = arith.addf %350, %349 : vector<8x128xf32>
    %352 = arith.divf %350, %351 : vector<8x128xf32>
    %353 = vector.extract_strided_slice %332 {offsets = [0, 256], sizes = [8, 128], strides = [1, 1]} : vector<8x384xf32> to vector<8x128xf32>
    %354 = vector.extract_strided_slice %336 {offsets = [0, 256], sizes = [8, 128], strides = [1, 1]} : vector<8x384xf32> to vector<8x128xf32>
    %355 = arith.mulf %344, %354 : vector<8x128xf32>
    %356 = arith.addf %353, %355 : vector<8x128xf32>
    %357 = math.tanh %356 : vector<8x128xf32>
    %cst_65 = arith.constant 1.000000e+00 : f32
    %358 = vector.broadcast %cst_65 : f32 to vector<8x128xf32>
    %359 = arith.subf %358, %352 : vector<8x128xf32>
    %360 = arith.mulf %359, %357 : vector<8x128xf32>
    %361 = arith.mulf %352, %331 : vector<8x128xf32>
    %362 = arith.addf %360, %361 : vector<8x128xf32>
    %363 = vector.extract_strided_slice %267 {offsets = [24, 0], sizes = [8, 384], strides = [1, 1]} : vector<64x384xf32> to vector<8x384xf32>
    %364 = arith.truncf %362 : vector<8x128xf32> to vector<8x128xbf16>
    %cst_66 = arith.constant dense<0.000000e+00> : vector<8x384xf32>
    %365 = tpu.matmul %364, %268, %cst_66 {dimension_numbers = #tpu.dot_dimension_numbers<[1], [0], [0], [1], [0, 0, 1, 1], [], []>} : vector<8x128xbf16>, vector<128x384xbf16>, vector<8x384xf32> -> vector<8x384xf32>
    %366 = vector.broadcast %269 : vector<1x384xf32> to vector<8x384xf32>
    %367 = arith.addf %365, %366 : vector<8x384xf32>
    %368 = vector.extract_strided_slice %363 {offsets = [0, 0], sizes = [8, 128], strides = [1, 1]} : vector<8x384xf32> to vector<8x128xf32>
    %369 = vector.extract_strided_slice %367 {offsets = [0, 0], sizes = [8, 128], strides = [1, 1]} : vector<8x384xf32> to vector<8x128xf32>
    %370 = arith.addf %368, %369 : vector<8x128xf32>
    %371 = arith.negf %370 : vector<8x128xf32>
    %372 = math.exp %371 : vector<8x128xf32>
    %cst_67 = arith.constant 1.000000e+00 : f32
    %373 = vector.broadcast %cst_67 : f32 to vector<8x128xf32>
    %374 = arith.addf %373, %372 : vector<8x128xf32>
    %375 = arith.divf %373, %374 : vector<8x128xf32>
    %376 = vector.extract_strided_slice %363 {offsets = [0, 128], sizes = [8, 128], strides = [1, 1]} : vector<8x384xf32> to vector<8x128xf32>
    %377 = vector.extract_strided_slice %367 {offsets = [0, 128], sizes = [8, 128], strides = [1, 1]} : vector<8x384xf32> to vector<8x128xf32>
    %378 = arith.addf %376, %377 : vector<8x128xf32>
    %379 = arith.negf %378 : vector<8x128xf32>
    %380 = math.exp %379 : vector<8x128xf32>
    %cst_68 = arith.constant 1.000000e+00 : f32
    %381 = vector.broadcast %cst_68 : f32 to vector<8x128xf32>
    %382 = arith.addf %381, %380 : vector<8x128xf32>
    %383 = arith.divf %381, %382 : vector<8x128xf32>
    %384 = vector.extract_strided_slice %363 {offsets = [0, 256], sizes = [8, 128], strides = [1, 1]} : vector<8x384xf32> to vector<8x128xf32>
    %385 = vector.extract_strided_slice %367 {offsets = [0, 256], sizes = [8, 128], strides = [1, 1]} : vector<8x384xf32> to vector<8x128xf32>
    %386 = arith.mulf %375, %385 : vector<8x128xf32>
    %387 = arith.addf %384, %386 : vector<8x128xf32>
    %388 = math.tanh %387 : vector<8x128xf32>
    %cst_69 = arith.constant 1.000000e+00 : f32
    %389 = vector.broadcast %cst_69 : f32 to vector<8x128xf32>
    %390 = arith.subf %389, %383 : vector<8x128xf32>
    %391 = arith.mulf %390, %388 : vector<8x128xf32>
    %392 = arith.mulf %383, %362 : vector<8x128xf32>
    %393 = arith.addf %391, %392 : vector<8x128xf32>
    %394 = vector.extract_strided_slice %267 {offsets = [32, 0], sizes = [8, 384], strides = [1, 1]} : vector<64x384xf32> to vector<8x384xf32>
    %395 = arith.truncf %393 : vector<8x128xf32> to vector<8x128xbf16>
    %cst_70 = arith.constant dense<0.000000e+00> : vector<8x384xf32>
    %396 = tpu.matmul %395, %268, %cst_70 {dimension_numbers = #tpu.dot_dimension_numbers<[1], [0], [0], [1], [0, 0, 1, 1], [], []>} : vector<8x128xbf16>, vector<128x384xbf16>, vector<8x384xf32> -> vector<8x384xf32>
    %397 = vector.broadcast %269 : vector<1x384xf32> to vector<8x384xf32>
    %398 = arith.addf %396, %397 : vector<8x384xf32>
    %399 = vector.extract_strided_slice %394 {offsets = [0, 0], sizes = [8, 128], strides = [1, 1]} : vector<8x384xf32> to vector<8x128xf32>
    %400 = vector.extract_strided_slice %398 {offsets = [0, 0], sizes = [8, 128], strides = [1, 1]} : vector<8x384xf32> to vector<8x128xf32>
    %401 = arith.addf %399, %400 : vector<8x128xf32>
    %402 = arith.negf %401 : vector<8x128xf32>
    %403 = math.exp %402 : vector<8x128xf32>
    %cst_71 = arith.constant 1.000000e+00 : f32
    %404 = vector.broadcast %cst_71 : f32 to vector<8x128xf32>
    %405 = arith.addf %404, %403 : vector<8x128xf32>
    %406 = arith.divf %404, %405 : vector<8x128xf32>
    %407 = vector.extract_strided_slice %394 {offsets = [0, 128], sizes = [8, 128], strides = [1, 1]} : vector<8x384xf32> to vector<8x128xf32>
    %408 = vector.extract_strided_slice %398 {offsets = [0, 128], sizes = [8, 128], strides = [1, 1]} : vector<8x384xf32> to vector<8x128xf32>
    %409 = arith.addf %407, %408 : vector<8x128xf32>
    %410 = arith.negf %409 : vector<8x128xf32>
    %411 = math.exp %410 : vector<8x128xf32>
    %cst_72 = arith.constant 1.000000e+00 : f32
    %412 = vector.broadcast %cst_72 : f32 to vector<8x128xf32>
    %413 = arith.addf %412, %411 : vector<8x128xf32>
    %414 = arith.divf %412, %413 : vector<8x128xf32>
    %415 = vector.extract_strided_slice %394 {offsets = [0, 256], sizes = [8, 128], strides = [1, 1]} : vector<8x384xf32> to vector<8x128xf32>
    %416 = vector.extract_strided_slice %398 {offsets = [0, 256], sizes = [8, 128], strides = [1, 1]} : vector<8x384xf32> to vector<8x128xf32>
    %417 = arith.mulf %406, %416 : vector<8x128xf32>
    %418 = arith.addf %415, %417 : vector<8x128xf32>
    %419 = math.tanh %418 : vector<8x128xf32>
    %cst_73 = arith.constant 1.000000e+00 : f32
    %420 = vector.broadcast %cst_73 : f32 to vector<8x128xf32>
    %421 = arith.subf %420, %414 : vector<8x128xf32>
    %422 = arith.mulf %421, %419 : vector<8x128xf32>
    %423 = arith.mulf %414, %393 : vector<8x128xf32>
    %424 = arith.addf %422, %423 : vector<8x128xf32>
    %425 = vector.extract_strided_slice %267 {offsets = [40, 0], sizes = [8, 384], strides = [1, 1]} : vector<64x384xf32> to vector<8x384xf32>
    %426 = arith.truncf %424 : vector<8x128xf32> to vector<8x128xbf16>
    %cst_74 = arith.constant dense<0.000000e+00> : vector<8x384xf32>
    %427 = tpu.matmul %426, %268, %cst_74 {dimension_numbers = #tpu.dot_dimension_numbers<[1], [0], [0], [1], [0, 0, 1, 1], [], []>} : vector<8x128xbf16>, vector<128x384xbf16>, vector<8x384xf32> -> vector<8x384xf32>
    %428 = vector.broadcast %269 : vector<1x384xf32> to vector<8x384xf32>
    %429 = arith.addf %427, %428 : vector<8x384xf32>
    %430 = vector.extract_strided_slice %425 {offsets = [0, 0], sizes = [8, 128], strides = [1, 1]} : vector<8x384xf32> to vector<8x128xf32>
    %431 = vector.extract_strided_slice %429 {offsets = [0, 0], sizes = [8, 128], strides = [1, 1]} : vector<8x384xf32> to vector<8x128xf32>
    %432 = arith.addf %430, %431 : vector<8x128xf32>
    %433 = arith.negf %432 : vector<8x128xf32>
    %434 = math.exp %433 : vector<8x128xf32>
    %cst_75 = arith.constant 1.000000e+00 : f32
    %435 = vector.broadcast %cst_75 : f32 to vector<8x128xf32>
    %436 = arith.addf %435, %434 : vector<8x128xf32>
    %437 = arith.divf %435, %436 : vector<8x128xf32>
    %438 = vector.extract_strided_slice %425 {offsets = [0, 128], sizes = [8, 128], strides = [1, 1]} : vector<8x384xf32> to vector<8x128xf32>
    %439 = vector.extract_strided_slice %429 {offsets = [0, 128], sizes = [8, 128], strides = [1, 1]} : vector<8x384xf32> to vector<8x128xf32>
    %440 = arith.addf %438, %439 : vector<8x128xf32>
    %441 = arith.negf %440 : vector<8x128xf32>
    %442 = math.exp %441 : vector<8x128xf32>
    %cst_76 = arith.constant 1.000000e+00 : f32
    %443 = vector.broadcast %cst_76 : f32 to vector<8x128xf32>
    %444 = arith.addf %443, %442 : vector<8x128xf32>
    %445 = arith.divf %443, %444 : vector<8x128xf32>
    %446 = vector.extract_strided_slice %425 {offsets = [0, 256], sizes = [8, 128], strides = [1, 1]} : vector<8x384xf32> to vector<8x128xf32>
    %447 = vector.extract_strided_slice %429 {offsets = [0, 256], sizes = [8, 128], strides = [1, 1]} : vector<8x384xf32> to vector<8x128xf32>
    %448 = arith.mulf %437, %447 : vector<8x128xf32>
    %449 = arith.addf %446, %448 : vector<8x128xf32>
    %450 = math.tanh %449 : vector<8x128xf32>
    %cst_77 = arith.constant 1.000000e+00 : f32
    %451 = vector.broadcast %cst_77 : f32 to vector<8x128xf32>
    %452 = arith.subf %451, %445 : vector<8x128xf32>
    %453 = arith.mulf %452, %450 : vector<8x128xf32>
    %454 = arith.mulf %445, %424 : vector<8x128xf32>
    %455 = arith.addf %453, %454 : vector<8x128xf32>
    %456 = vector.extract_strided_slice %267 {offsets = [48, 0], sizes = [8, 384], strides = [1, 1]} : vector<64x384xf32> to vector<8x384xf32>
    %457 = arith.truncf %455 : vector<8x128xf32> to vector<8x128xbf16>
    %cst_78 = arith.constant dense<0.000000e+00> : vector<8x384xf32>
    %458 = tpu.matmul %457, %268, %cst_78 {dimension_numbers = #tpu.dot_dimension_numbers<[1], [0], [0], [1], [0, 0, 1, 1], [], []>} : vector<8x128xbf16>, vector<128x384xbf16>, vector<8x384xf32> -> vector<8x384xf32>
    %459 = vector.broadcast %269 : vector<1x384xf32> to vector<8x384xf32>
    %460 = arith.addf %458, %459 : vector<8x384xf32>
    %461 = vector.extract_strided_slice %456 {offsets = [0, 0], sizes = [8, 128], strides = [1, 1]} : vector<8x384xf32> to vector<8x128xf32>
    %462 = vector.extract_strided_slice %460 {offsets = [0, 0], sizes = [8, 128], strides = [1, 1]} : vector<8x384xf32> to vector<8x128xf32>
    %463 = arith.addf %461, %462 : vector<8x128xf32>
    %464 = arith.negf %463 : vector<8x128xf32>
    %465 = math.exp %464 : vector<8x128xf32>
    %cst_79 = arith.constant 1.000000e+00 : f32
    %466 = vector.broadcast %cst_79 : f32 to vector<8x128xf32>
    %467 = arith.addf %466, %465 : vector<8x128xf32>
    %468 = arith.divf %466, %467 : vector<8x128xf32>
    %469 = vector.extract_strided_slice %456 {offsets = [0, 128], sizes = [8, 128], strides = [1, 1]} : vector<8x384xf32> to vector<8x128xf32>
    %470 = vector.extract_strided_slice %460 {offsets = [0, 128], sizes = [8, 128], strides = [1, 1]} : vector<8x384xf32> to vector<8x128xf32>
    %471 = arith.addf %469, %470 : vector<8x128xf32>
    %472 = arith.negf %471 : vector<8x128xf32>
    %473 = math.exp %472 : vector<8x128xf32>
    %cst_80 = arith.constant 1.000000e+00 : f32
    %474 = vector.broadcast %cst_80 : f32 to vector<8x128xf32>
    %475 = arith.addf %474, %473 : vector<8x128xf32>
    %476 = arith.divf %474, %475 : vector<8x128xf32>
    %477 = vector.extract_strided_slice %456 {offsets = [0, 256], sizes = [8, 128], strides = [1, 1]} : vector<8x384xf32> to vector<8x128xf32>
    %478 = vector.extract_strided_slice %460 {offsets = [0, 256], sizes = [8, 128], strides = [1, 1]} : vector<8x384xf32> to vector<8x128xf32>
    %479 = arith.mulf %468, %478 : vector<8x128xf32>
    %480 = arith.addf %477, %479 : vector<8x128xf32>
    %481 = math.tanh %480 : vector<8x128xf32>
    %cst_81 = arith.constant 1.000000e+00 : f32
    %482 = vector.broadcast %cst_81 : f32 to vector<8x128xf32>
    %483 = arith.subf %482, %476 : vector<8x128xf32>
    %484 = arith.mulf %483, %481 : vector<8x128xf32>
    %485 = arith.mulf %476, %455 : vector<8x128xf32>
    %486 = arith.addf %484, %485 : vector<8x128xf32>
    %487 = vector.extract_strided_slice %267 {offsets = [56, 0], sizes = [8, 384], strides = [1, 1]} : vector<64x384xf32> to vector<8x384xf32>
    %488 = arith.truncf %486 : vector<8x128xf32> to vector<8x128xbf16>
    %cst_82 = arith.constant dense<0.000000e+00> : vector<8x384xf32>
    %489 = tpu.matmul %488, %268, %cst_82 {dimension_numbers = #tpu.dot_dimension_numbers<[1], [0], [0], [1], [0, 0, 1, 1], [], []>} : vector<8x128xbf16>, vector<128x384xbf16>, vector<8x384xf32> -> vector<8x384xf32>
    %490 = vector.broadcast %269 : vector<1x384xf32> to vector<8x384xf32>
    %491 = arith.addf %489, %490 : vector<8x384xf32>
    %492 = vector.extract_strided_slice %487 {offsets = [0, 0], sizes = [8, 128], strides = [1, 1]} : vector<8x384xf32> to vector<8x128xf32>
    %493 = vector.extract_strided_slice %491 {offsets = [0, 0], sizes = [8, 128], strides = [1, 1]} : vector<8x384xf32> to vector<8x128xf32>
    %494 = arith.addf %492, %493 : vector<8x128xf32>
    %495 = arith.negf %494 : vector<8x128xf32>
    %496 = math.exp %495 : vector<8x128xf32>
    %cst_83 = arith.constant 1.000000e+00 : f32
    %497 = vector.broadcast %cst_83 : f32 to vector<8x128xf32>
    %498 = arith.addf %497, %496 : vector<8x128xf32>
    %499 = arith.divf %497, %498 : vector<8x128xf32>
    %500 = vector.extract_strided_slice %487 {offsets = [0, 128], sizes = [8, 128], strides = [1, 1]} : vector<8x384xf32> to vector<8x128xf32>
    %501 = vector.extract_strided_slice %491 {offsets = [0, 128], sizes = [8, 128], strides = [1, 1]} : vector<8x384xf32> to vector<8x128xf32>
    %502 = arith.addf %500, %501 : vector<8x128xf32>
    %503 = arith.negf %502 : vector<8x128xf32>
    %504 = math.exp %503 : vector<8x128xf32>
    %cst_84 = arith.constant 1.000000e+00 : f32
    %505 = vector.broadcast %cst_84 : f32 to vector<8x128xf32>
    %506 = arith.addf %505, %504 : vector<8x128xf32>
    %507 = arith.divf %505, %506 : vector<8x128xf32>
    %508 = vector.extract_strided_slice %487 {offsets = [0, 256], sizes = [8, 128], strides = [1, 1]} : vector<8x384xf32> to vector<8x128xf32>
    %509 = vector.extract_strided_slice %491 {offsets = [0, 256], sizes = [8, 128], strides = [1, 1]} : vector<8x384xf32> to vector<8x128xf32>
    %510 = arith.mulf %499, %509 : vector<8x128xf32>
    %511 = arith.addf %508, %510 : vector<8x128xf32>
    %512 = math.tanh %511 : vector<8x128xf32>
    %cst_85 = arith.constant 1.000000e+00 : f32
    %513 = vector.broadcast %cst_85 : f32 to vector<8x128xf32>
    %514 = arith.subf %513, %507 : vector<8x128xf32>
    %515 = arith.mulf %514, %512 : vector<8x128xf32>
    %516 = arith.mulf %507, %486 : vector<8x128xf32>
    %517 = arith.addf %515, %516 : vector<8x128xf32>
    %518 = tpu.concatenate %300, %331, %362, %393, %424, %455, %486, %517 in 0 : vector<8x128xf32>, vector<8x128xf32>, vector<8x128xf32>, vector<8x128xf32>, vector<8x128xf32>, vector<8x128xf32>, vector<8x128xf32>, vector<8x128xf32> -> vector<64x128xf32>
    %519 = arith.truncf %518 : vector<64x128xf32> to vector<64x128xbf16>
    %c0_86 = arith.constant 0 : index
    %c0_87 = arith.constant 0 : index
    %520 = vector.load %arg10[%c0_86, %c0_87] : memref<128x128xbf16, #tpu.memory_space<vmem>>, vector<128x128xbf16>
    %cst_88 = arith.constant dense<0.000000e+00> : vector<64x128xf32>
    %521 = tpu.matmul %519, %520, %cst_88 {dimension_numbers = #tpu.dot_dimension_numbers<[1], [0], [0], [1], [0, 0, 1, 1], [], []>} : vector<64x128xbf16>, vector<128x128xbf16>, vector<64x128xf32> -> vector<64x128xf32>
    %c0_89 = arith.constant 0 : index
    %c0_90 = arith.constant 0 : index
    %522 = vector.load %arg11[%c0_89, %c0_90] : memref<1x128xf32, #tpu.memory_space<vmem>>, vector<1x128xf32>
    %523 = vector.broadcast %522 : vector<1x128xf32> to vector<64x128xf32>
    %524 = arith.addf %521, %523 : vector<64x128xf32>
    %c0_91 = arith.constant 0 : index
    %c0_92 = arith.constant 0 : index
    %525 = vector.load %arg12[%c0_91, %c0_92] : memref<64x128xf32, #tpu.memory_space<vmem>>, vector<64x128xf32>
    tpu.vector_store %arg12[%c0_91, %c0_92], %524 {strides = array<i32>} : memref<64x128xf32, #tpu.memory_space<vmem>>, vector<64x128xf32>,
    return
  }
}

</mosaic_0001>

<bundles_post_ra>
// kernel: model_forward.3
= control target key start
LH: loop header
LB: loop body
LE: loop exit
PB: predicated region body
PF: predicated region fallthrough
CT: control target
= control target key end

     0   :  { %v5274_v1 = vmov 0   ;;  %vm120_vm0 = vcmask 261120   ;;  %v5276_v32 = vmov 0.0   ;;  %vm3744_vm1 = vmmov 0   ;;  %s5261_s2 = inlined_call_operand.vmem [shape: bf16[32,384], index: 2, kind: input, shape index: {}]   ;;  %s5262_s3 = inlined_call_operand.vmem [shape: bf16[128,384], index: 3, kind: input, shape index: {}]   ;;  %s5263_s0 = inlined_call_operand.vmem [shape: f32[64,32], index: 0, kind: input, shape index: {}]   ;;  %s5264_s1 = inlined_call_operand.vmem [shape: f32[16,128], index: 1, kind: input, shape index: {}]   ;;  %s5265_s4 = inlined_call_operand.vmem [shape: f32[1,384], index: 4, kind: input, shape index: {}]   ;;  %s5266_s5 = inlined_call_operand.vmem [shape: f32[1,384], index: 5, kind: input, shape index: {}]   ;;  %s5267_s6 = inlined_call_operand.vmem [shape: bf16[128,384], index: 6, kind: input, shape index: {}]   ;;  %s5268_s7 = inlined_call_operand.vmem [shape: bf16[128,384], index: 7, kind: input, shape index: {}]   ;;  %s5269_s8 = inlined_call_operand.vmem [shape: f32[1,384], index: 8, kind: input, shape index: {}]   ;;  %s5270_s9 = inlined_call_operand.vmem [shape: f32[1,384], index: 9, kind: input, shape index: {}]   ;;  %s5271_s10 = inlined_call_operand.vmem [shape: bf16[128,128], index: 10, kind: input, shape index: {}]   ;;  %s5272_s11 = inlined_call_operand.vmem [shape: f32[1,128], index: 11, kind: input, shape index: {}]   ;;  %s5273_s12 = inlined_call_operand.vmem [shape: f32[64,128], index: 12, kind: output, shape index: {}]  }
   0x1   :  { %v3429_v0 = vld [vmem:[%s5261_s2 + $0x1c] ss:$12 sps:$4 sm:$0xff]   ;;  %165 = vmatprep.mubr.bf16.mxu1 %v5274_v1  ;;  %481 = vmatprep.mubr.bf16.mxu0 %v5274_v1  ;;  %v3818_v2 = vld [vmem:[%s5262_s3 + $0xac] ss:$12 sps:$4 sm:$0xff]   ;;  %v3435_v5 = vld [vmem:[%s5261_s2 + $0x4] ss:$12 sps:$4 sm:$0xff]   ;;  %v73_v54 = vlaneseq }
   0x2   :  { %145 = vmatprep.subr.bf16.mxu1 %v3429_v0  ;;  %v3433_v3 = vld [vmem:[%s5261_s2 + $0x18] ss:$12 sps:$4 sm:$0xff]   ;;  %v3826_v4 = vld [vmem:[%s5262_s3 + $0xa8] ss:$12 sps:$4 sm:$0xff]   ;;  %449 = vmatprep.subr.bf16.mxu0 %v3818_v2  ;;  %v3439_v7 = vld [vmem:[%s5261_s2] ss:$12 sps:$4 sm:$0xff]  }
   0x3   :  { %146 = vmatpush1.bf16.msra.mxu1 %v3433_v3  ;;  %450 = vmatpush1.bf16.msra.mxu0 %v3826_v4  ;;  %v3836_v6 = vld [vmem:[%s5262_s3 + $0x94] ss:$12 sps:$4 sm:$0xff]   ;;  %v3844_v8 = vld [vmem:[%s5262_s3 + $0x90] ss:$12 sps:$4 sm:$0xff]   ;;  %v43_v10 = vld [vmem:[%s5263_s0 + $0x8] sm:$0xff]  ;;  %v74_v55 = vshrl.u32 %v73_v54, 7 }
   0x4   :  { %147 = vmatprep.subr.bf16.mxu1 %v3435_v5  ;;  %v42_v9 = vld [vmem:[%s5263_s0] sm:$0xff]  ;;  %451 = vmatprep.subr.bf16.mxu0 %v3836_v6  ;;  %v51_v12 = vmax.f32 %v43_v10, 0.0  ;;  %v3860_v15 = vld [vmem:[%s5262_s3 + $0x7c] ss:$12 sps:$4 sm:$0xff]   ;;  %v44_v18 = vld [vmem:[%s5263_s0 + $0x10] sm:$0xff] }
   0x5   :  { %v50_v11 = vmax.f32 %v42_v9, 0.0  ;;  %v3441_v13 = vld [vmem:[%s5261_s2 + $0x20] ss:$12 sps:$4 sm:$0xff]   ;;  %v3865_v16 = vld [vmem:[%s5262_s3 + $0x78] ss:$12 sps:$4 sm:$0xff]   ;;  %v52_v20 = vmax.f32 %v44_v18, 0.0 }
   0x6   :  { %v3870_v17 = vld [vmem:[%s5262_s3 + $0x64] ss:$12 sps:$4 sm:$0xff]   ;;  %v45_v19 = vld [vmem:[%s5263_s0 + $0x18] sm:$0xff]  ;;  %v3884_v22 = vld [vmem:[%s5262_s3 + $0x60] ss:$12 sps:$4 sm:$0xff]   ;;  %v4063_v56 = vsub.s32 0, %v74_v55 }
   0x7   :  { %148 = vmatpush1.bf16.msra.mxu1 %v3439_v7  ;;  %452 = vmatpush1.bf16.msra.mxu0 %v3844_v8  ;;  %v59_v14 = vpack.c.bf16 %v51_v12, %v50_v11  ;;  %v53_v21 = vmax.f32 %v45_v19, 0.0  ;;  %v3891_v23 = vld [vmem:[%s5262_s3 + $0x4c] ss:$12 sps:$4 sm:$0xff]   ;;  %v3896_v24 = vld [vmem:[%s5262_s3 + $0x48] ss:$12 sps:$4 sm:$0xff]   ;;  %v46_v27 = vld [vmem:[%s5263_s0 + $0x20] sm:$0xff] }
   0x8   :  { %3046 = vmatprep.subr.bf16.mxu1 %v3441_v13  ;;  %453 = vmatprep.subr.bf16.mxu0 %v3860_v15  ;;  %v3454_v26 = vld [vmem:[%s5261_s2 + $0x8] ss:$12 sps:$4 sm:$0xff]   ;;  %v54_v30 = vmax.f32 %v46_v27, 0.0  ;;  %v3920_v33 = vld [vmem:[%s5262_s3 + $0x30] ss:$12 sps:$4 sm:$0xff]   ;;  %v3958_v43 = vld [vmem:[%s5264_s1] sm:$0xff] }
   0x9   :  { %v60_v25 = vpack.c.bf16 %v53_v21, %v52_v20  ;;  %v47_v28 = vld [vmem:[%s5263_s0 + $0x28] sm:$0xff]  ;;  %v3912_v29 = vld [vmem:[%s5262_s3 + $0x34] ss:$12 sps:$4 sm:$0xff]   ;;  %v3932_v35 = vld [vmem:[%s5262_s3 + $0x18] ss:$12 sps:$4 sm:$0xff]   ;;  %v304_v45 = vpack.c.bf16 %v3958_v43, %v3958_v43  ;;  %5284 = vst [vmem:[#allocation2_spill] sm:$0xff] %v4063_v56 }
   0xa   :  { %2751 = vmatmul.mubr.msk.bf16.vlgmr.msra.gmra.mxu1 %vm120_vm0, %v59_v14  ;;  %v55_v31 = vmax.f32 %v47_v28, 0.0  ;;  %v3927_v34 = vld [vmem:[%s5262_s3 + $0x1c] ss:$12 sps:$4 sm:$0xff]   ;;  %v48_v37 = vld [vmem:[%s5263_s0 + $0x30] sm:$0xff]  ;;  %v3952_v42 = vld [vmem:[%s5262_s3] ss:$12 sps:$4 sm:$0xff]  }
   0xb   :  { %3047 = vmatpush3.bf16.msra.mxu1 %v3441_v13  ;;  %454 = vmatpush1.bf16.msra.mxu0 %v3865_v16  ;;  %v49_v38 = vld [vmem:[%s5263_s0 + $0x38] sm:$0xff]  ;;  %v3945_v39 = vld [vmem:[%s5262_s3 + $0x4] ss:$12 sps:$4 sm:$0xff]   ;;  %v56_v40 = vmax.f32 %v48_v37, 0.0  ;;  %v3992_v48 = vld [vmem:[%s5262_s3 + $0x80] ss:$12 sps:$4 sm:$0xff]  }
   0xc   :  { %455 = vmatprep.subr.bf16.mxu0 %v3870_v17  ;;  %175 = vmatprep.mubr.bf16.mxu1 %v5274_v1  ;;  %v61_v36 = vpack.c.bf16 %v55_v31, %v54_v30  ;;  %v57_v41 = vmax.f32 %v49_v38, 0.0  ;;  %v3973_v46 = vld [vmem:[%s5262_s3 + $0xb0] ss:$12 sps:$4 sm:$0xff]   ;;  %v3982_v47 = vld [vmem:[%s5262_s3 + $0x98] ss:$12 sps:$4 sm:$0xff]   ;;  %v4068_v59 = vsub.s32 1, %v74_v55 }
   0xd   :  { %3048 = vmatprep.subr.bf16.mxu1 %v3454_v26  ;;  %v4002_v49 = vld [vmem:[%s5262_s3 + $0x68] ss:$12 sps:$4 sm:$0xff]   ;;  %v4013_v50 = vld [vmem:[%s5262_s3 + $0x50] ss:$12 sps:$4 sm:$0xff]   ;;  %v4022_v51 = vld [vmem:[%s5262_s3 + $0x38] ss:$12 sps:$4 sm:$0xff]  }
   0xe   :  { %v62_v44 = vpack.c.bf16 %v57_v41, %v56_v40  ;;  %v4031_v52 = vld [vmem:[%s5262_s3 + $0x20] ss:$12 sps:$4 sm:$0xff]   ;;  %v4040_v53 = vld [vmem:[%s5262_s3 + $0x8] ss:$12 sps:$4 sm:$0xff]   ;;  %5285 = vst [vmem:[#allocation3_spill] sm:$0xff] %v4068_v59 }
   0xf   :  { %456 = vmatpush1.bf16.msra.mxu0 %v3884_v22  ;;  %3049 = vmatpush3.bf16.msra.mxu1 %v3454_v26  ;;  %v71_v57 = vld [vmem:[%s5265_s4] sm:$0x7] }
  0x10   :  { %457 = vmatprep.subr.bf16.mxu0 %v3891_v23  ;;  %3058 = vmatprep.subr.bf16.mxu1 %v5276_v32  ;;  %v76_v61 = vrot.slane %v71_v57, %v4063_v56  ;;  %v80_v63 = vrot.slane %v71_v57, %v4068_v59 }
  0x12   :  { %2752 = vmatmul.mubr.msk.bf16.gmra.mxu1 %vm120_vm0, %v60_v25 }
  0x13   :  { %458 = vmatpush1.bf16.msra.mxu0 %v3896_v24  ;;  %185 = vmatprep.mubr.bf16.mxu1 %v5274_v1 }
  0x14   :  { %459 = vmatprep.subr.bf16.mxu0 %v3912_v29 }
  0x17   :  { %460 = vmatpush1.bf16.msra.mxu0 %v3920_v33 }
  0x18   :  { %461 = vmatprep.subr.bf16.mxu0 %v3927_v34 }
  0x1a   :  { %2753 = vmatmul.mubr.msk.bf16.gmra.mxu1 %vm120_vm0, %v61_v36 }
  0x1b   :  { %462 = vmatpush1.bf16.msra.mxu0 %v3932_v35  ;;  %195 = vmatprep.mubr.bf16.mxu1 %v5274_v1 }
  0x1c   :  { %463 = vmatprep.subr.bf16.mxu0 %v3945_v39 }
  0x1f   :  { %464 = vmatpush1.bf16.msra.mxu0 %v3952_v42 }
  0x20   :  { %552 = vmatprep.subr.bf16.mxu0 %v3818_v2 }
  0x22   :  { %2754 = vmatmul.mubr.msk.bf16.gmra.mxu1 %vm120_vm0, %v62_v44  ;;  %482 = vmatmul.mubr.bf16.vlgmr.msra.gmra.mxu0 %v304_v45 }
  0x23   :  { %3050 = vmatprep.mubr.msk.bf16.mxu1 %vm120_vm0, %v59_v14  ;;  %553 = vmatpush1.bf16.msra.mxu0 %v3826_v4 }
  0x24   :  { %554 = vmatprep.subr.bf16.mxu0 %v3836_v6  ;;  %584 = vmatprep.mubr.bf16.mxu0 %v5274_v1 }
  0x27   :  { %555 = vmatpush1.bf16.msra.mxu0 %v3844_v8 }
  0x28   :  { %556 = vmatprep.subr.bf16.mxu0 %v3860_v15 }
  0x2a   :  { %3051 = vmatmul.mubr.msk.bf16.vlgmr.msra.gmra.mxu1 %vm120_vm0, %v60_v25  ;;  %v303_v25 = vld [vmem:[%s5266_s5] sm:$0x7] }
  0x2b   :  { %3059 = vmatpush3.bf16.msra.mxu1 %v3973_v46  ;;  %3054 = vmatprep.mubr.msk.bf16.mxu1 %vm120_vm0, %v61_v36  ;;  %v4094_v30 = vrot.slane %v303_v25, %v4063_v56 }
  0x2c   :  { %3060 = vmatprep.subr.bf16.mxu1 %v5276_v32  ;;  %557 = vmatpush1.bf16.msra.mxu0 %v3865_v16 }
  0x2d   :  { %558 = vmatprep.subr.bf16.mxu0 %v3870_v17 }
  0x2f   :  { %3061 = vmatpush3.bf16.msra.mxu1 %v3982_v47 }
  0x30   :  { %3062 = vmatprep.subr.bf16.mxu1 %v5276_v32  ;;  %559 = vmatpush1.bf16.msra.mxu0 %v3884_v22 }
  0x31   :  { %560 = vmatprep.subr.bf16.mxu0 %v3891_v23 }
  0x32   :  { %3055 = vmatmul.mubr.msk.bf16.gmra.mxu1 %vm120_vm0, %v62_v44 }
  0x33   :  { %3063 = vmatpush3.bf16.msra.mxu1 %v3992_v48  ;;  %3074 = vmatprep.mubr.msk.bf16.mxu1 %vm3744_vm1, %v5276_v32 }
  0x34   :  { %3064 = vmatprep.subr.bf16.mxu1 %v5276_v32  ;;  %561 = vmatpush1.bf16.msra.mxu0 %v3896_v24 }
  0x35   :  { %562 = vmatprep.subr.bf16.mxu0 %v3912_v29 }
  0x37   :  { %3065 = vmatpush3.bf16.msra.mxu1 %v4002_v49 }
  0x38   :  { %3066 = vmatprep.subr.bf16.mxu1 %v5276_v32  ;;  %563 = vmatpush1.bf16.msra.mxu0 %v3920_v33 }
  0x39   :  { %564 = vmatprep.subr.bf16.mxu0 %v3927_v34 }
  0x3b   :  { %3067 = vmatpush3.bf16.msra.mxu1 %v4013_v50 }
  0x3c   :  { %3068 = vmatprep.subr.bf16.mxu1 %v5276_v32  ;;  %565 = vmatpush1.bf16.msra.mxu0 %v3932_v35 }
  0x3d   :  { %566 = vmatprep.subr.bf16.mxu0 %v3945_v39 }
  0x3f   :  { %3069 = vmatpush3.bf16.msra.mxu1 %v4022_v51 }
  0x40   :  { %3070 = vmatprep.subr.bf16.mxu1 %v5276_v32  ;;  %567 = vmatpush1.bf16.msra.mxu0 %v3952_v42 }
  0x41   :  { %655 = vmatprep.subr.bf16.mxu0 %v3818_v2 }
  0x43   :  { %3071 = vmatpush3.bf16.msra.mxu1 %v4031_v52 }
  0x44   :  { %3072 = vmatprep.subr.bf16.mxu1 %v5276_v32 }
  0x47   :  { %3073 = vmatpush3.bf16.msra.mxu1 %v4040_v53 }
  0x48   :  { %3078 = vmatprep.subr.bf16.mxu1 %v5276_v32 }
  0x4a   :  { %3075 = vmatmul.mubr.bf16.vlgmr.msra.gmra.mxu1 %v304_v45  ;;  %v4101_v45 = vsub.s32 2, %v74_v55 }
  0x4b   :  { %3079 = vmatpush3.bf16.msra.mxu1 %v3973_v46  ;;  %3094 = vmatprep.mubr.msk.bf16.mxu1 %vm3744_vm1, %v5276_v32 }
  0x4c   :  { %3080 = vmatprep.subr.bf16.mxu1 %v5276_v32  ;;  %5286 = vst [vmem:[#allocation4_spill] sm:$0xff] %v4101_v45 }
  0x4f   :  { %3081 = vmatpush3.bf16.msra.mxu1 %v3982_v47 }
  0x50   :  { %3082 = vmatprep.subr.bf16.mxu1 %v5276_v32 }
  0x53   :  { %3083 = vmatpush3.bf16.msra.mxu1 %v3992_v48 }
  0x54   :  { %3084 = vmatprep.subr.bf16.mxu1 %v5276_v32 }
  0x57   :  { %3085 = vmatpush3.bf16.msra.mxu1 %v4002_v49 }
  0x58   :  { %3086 = vmatprep.subr.bf16.mxu1 %v5276_v32 }
  0x5b   :  { %3087 = vmatpush3.bf16.msra.mxu1 %v4013_v50 }
  0x5c   :  { %3088 = vmatprep.subr.bf16.mxu1 %v5276_v32 }
  0x5f   :  { %3089 = vmatpush3.bf16.msra.mxu1 %v4022_v51 }
  0x60   :  { %3090 = vmatprep.subr.bf16.mxu1 %v5276_v32 }
  0x63   :  { %3091 = vmatpush3.bf16.msra.mxu1 %v4031_v52 }
  0x64   :  { %3092 = vmatprep.subr.bf16.mxu1 %v5276_v32 }
  0x67   :  { %3093 = vmatpush3.bf16.msra.mxu1 %v4040_v53 }
  0x68   :  { %3098 = vmatprep.subr.bf16.mxu1 %v5276_v32 }
  0xca   :  { %v167_v58 = vpop.f32.mrf.mxu1 }
  0xcb   :  { %v168_v40 = vadd.f32 %v167_v58, %v76_v61 }
  0xcc   :  { %v169_v60 = vpop.f32.mrf.mxu1 }
  0xce   :  { %v171_v62 = vpop.f32.mrf.mxu1 }
  0xcf   :  { %v4072_v0 = vadd.f32 %v171_v62, %v76_v61 }
  0xd0   :  { %v173_v3 = vpop.f32.mrf.mxu1 }
  0xd1   :  { %v4074_v5 = vadd.f32 %v173_v3, %v80_v63 }
  0xd2   :  { %v177_v7 = vpop.f32.mrf.mxu1 }
  0xd3   :  { %v4076_v9 = vadd.f32 %v177_v7, %v76_v61 }
  0xd4   :  { %v179_v10 = vpop.f32.mrf.mxu1 }
  0xd5   :  { %v4078_v11 = vadd.f32 %v179_v10, %v80_v63 }
  0xd6   :  { %v181_v12 = vpop.f32.mrf.mxu1 }
  0xd7   :  { %v4080_v13 = vadd.f32 %v181_v12, %v76_v61 }
  0xd8   :  { %v183_v14 = vpop.f32.mrf.mxu1 }
  0xd9   :  { %v4082_v18 = vadd.f32 %v183_v14, %v80_v63 }
  0xda   :  { %v187_v19 = vpop.f32.mrf.mxu1 }
  0xdb   :  { %v4084_v20 = vadd.f32 %v187_v19, %v76_v61 }
  0xdc   :  { %v189_v21 = vpop.f32.mrf.mxu1 }
  0xdd   :  { %v4089_v26 = vadd.f32 %v189_v21, %v80_v63  ;;  %v84_v21 = vrot.slane %v71_v57, %v4101_v45 }
  0xde   :  { %v191_v27 = vpop.f32.mrf.mxu1 }
  0xdf   :  { %v4091_v28 = vadd.f32 %v191_v27, %v76_v61 }
  0xe0   :  { %v193_v31 = vpop.f32.mrf.mxu1 }
  0xe1   :  { %v4096_v36 = vadd.f32 %v193_v31, %v80_v63  ;;  %v4109_v31 = vrot.slane %v303_v25, %v4068_v59 }
  0xe2   :  { %v197_v37 = vpop.f32.mrf.mxu1  ;;  %v483_v38 = vpop.f32.mrf.mxu0 }
  0xe3   :  { %v4098_v41 = vadd.f32 %v197_v37, %v76_v61  ;;  %v484_v44 = vadd.f32 %v483_v38, %v4094_v30 }
  0xe4   :  { %v199_v54 = vpop.f32.mrf.mxu1  ;;  %v485_v62 = vpop.f32.mrf.mxu0 }
  0xe5   :  { %v530_v3 = vadd.f32 %v484_v44, %v168_v40  ;;  %v4103_v7 = vadd.f32 %v199_v54, %v80_v63  ;;  %v486_v44 = vadd.f32 %v485_v62, %v4109_v31 }
  0xe6   :  { %v201_v10 = vpop.f32.mrf.mxu1  ;;  %v487_v12 = vpop.f32.mrf.mxu0 }
  0xe7   :  { %v2783_v14 = vmul.f32 -1.442695, %v530_v3  ;;  %v4105_v19 = vadd.f32 %v201_v10, %v76_v61  ;;  %v170_v3 = vadd.f32 %v169_v60, %v80_v63 }
  0xe8   :  { %v203_v27 = vpop.f32.mrf.mxu1  ;;  %v488_v58 = vpop.f32.mrf.mxu0 }
  0xe9   :  { %5287 = vst [vmem:[#allocation5_spill] sm:$0xff] %v4105_v19  ;;  %v4111_v37 = vadd.f32 %v203_v27, %v80_v63  ;;  %3541 = vpow2.f32 %v2783_v14  ;;  %v537_v57 = vadd.f32 %v486_v44, %v170_v3 }
  0xea   :  { %v3052_v55 = vpop.f32.mrf.mxu1 }
  0xeb   :  { %5288 = vst [vmem:[#allocation6_spill] sm:$0xff] %v4111_v37  ;;  %v4113_v38 = vadd.f32 %v3052_v55, %v84_v21  ;;  %v2784_v32 = vmul.f32 -1.442695, %v537_v57 }
  0xec   :  { %v240_v40 = vpop.f32.mrf.mxu1 }
  0xed   :  { %3543 = vpow2.f32 %v2784_v32 }
  0xee   :  { %v3053_v54 = vpop.f32.mrf.mxu1 }
  0xef   :  { %v4116_v61 = vadd.f32 %v3053_v54, %v84_v21  ;;  %v4129_v54 = vrot.slane %v303_v25, %v4101_v45 }
  0xf0   :  { %v243_v10 = vpop.f32.mrf.mxu1 }
  0xf1   :  { %v4118_v12 = vadd.f32 %v243_v10, %v84_v21 }
  0xf2   :  { %v3056_v58 = vpop.f32.mrf.mxu1 }
  0xf3   :  { %v4120_v1 = vadd.f32 %v3056_v58, %v84_v21 }
  0xf4   :  { %v256_v27 = vpop.f32.mrf.mxu1 }
  0xf5   :  { %5289 = vst [vmem:[#allocation7_spill] sm:$0xff] %v4120_v1  ;;  %v4122_v59 = vadd.f32 %v256_v27, %v84_v21 }
  0xf6   :  { %v3057_v14 = vpop.f32.mrf.mxu1  ;;  %v3542_v56 = vpop.eup %3541 }
  0xf7   :  { %v4124_v55 = vadd.f32 %v3057_v14, %v84_v21  ;;  %v534_v63 = vadd.f32 1.0, %v3542_v56  ;;  %v241_v14 = vadd.f32 %v240_v40, %v84_v21 }
  0xf8   :  { %v259_v62 = vpop.f32.mrf.mxu1 }
  0xf9   :  { %5290 = vst [vmem:[#allocation8_spill] sm:$0xff] %v4124_v55  ;;  %v4126_v60 = vadd.f32 %v259_v62, %v84_v21  ;;  %3545 = vrcp.f32 %v534_v63  ;;  %v5292_v21 = vmov 0  }
  0xfa   :  { %v3544_v44 = vpop.eup %3543 }
  0xfb   :  { %v541_v3 = vadd.f32 1.0, %v3544_v44 }
  0xfd   :  { %3547 = vrcp.f32 %v541_v3 }
 0x106   :  { %v3546_v58 = vpop.eup %3545 }
 0x10a   :  { %v524_v10 = vpop.f32.mrf.mxu1  ;;  %v3548_v62 = vpop.eup %3547 }
 0x10b   :  { %v525_v57 = vadd.f32 %v524_v10, %v4129_v54  ;;  %v547_v56 = vsub.f32 1.0, %v3548_v62  ;;  %v549_v25 = vmul.f32 %v3548_v62, %v3958_v43 }
 0x10c   :  { %v3076_v27 = vpop.f32.mrf.mxu1 }
 0x10d   :  { %v544_v55 = vmul.f32 %v3546_v58, %v525_v57 }
 0x10e   :  { %v527_v37 = vpop.f32.mrf.mxu1 }
 0x10f   :  { %v545_v19 = vadd.f32 %v544_v55, %v241_v14 }
 0x110   :  { %v3077_v32 = vpop.f32.mrf.mxu1 }
 0x111   :  { %3549 = vtanh.f32 %v545_v19  ;;  %v5291_v19 = vmov 0.0  }
 0x11e   :  { %v3550_v63 = vpop.eup %3549 }
 0x11f   :  { %v548_v1 = vmul.f32 %v3550_v63, %v547_v56 }
 0x121   :  { %v4133_v45 = vadd.f32 %v549_v25, %v548_v1 }
 0x123   :  { %v551_v44 = vpack.c.bf16 %v4133_v45, %v4133_v45 }
 0x125   :  { %585 = vmatmul.mubr.bf16.vlgmr.msra.gmra.mxu0 %v551_v44  ;;  %3095 = vmatmul.mubr.bf16.vlgmr.msra.gmra.mxu1 %v551_v44 }
 0x126   :  { %656 = vmatpush1.bf16.msra.mxu0 %v3826_v4  ;;  %3099 = vmatpush3.bf16.msra.mxu1 %v3973_v46 }
 0x127   :  { %657 = vmatprep.subr.bf16.mxu0 %v3836_v6  ;;  %3100 = vmatprep.subr.bf16.mxu1 %v5291_v19 }
 0x128   :  { %687 = vmatprep.mubr.bf16.mxu0 %v5292_v21  ;;  %3114 = vmatprep.mubr.msk.bf16.mxu1 %vm3744_vm1, %v5291_v19 }
 0x12a   :  { %658 = vmatpush1.bf16.msra.mxu0 %v3844_v8  ;;  %3101 = vmatpush3.bf16.msra.mxu1 %v3982_v47 }
 0x12b   :  { %659 = vmatprep.subr.bf16.mxu0 %v3860_v15  ;;  %3102 = vmatprep.subr.bf16.mxu1 %v5291_v19 }
 0x12e   :  { %660 = vmatpush1.bf16.msra.mxu0 %v3865_v16  ;;  %3103 = vmatpush3.bf16.msra.mxu1 %v3992_v48 }
 0x12f   :  { %661 = vmatprep.subr.bf16.mxu0 %v3870_v17  ;;  %3104 = vmatprep.subr.bf16.mxu1 %v5291_v19 }
 0x132   :  { %662 = vmatpush1.bf16.msra.mxu0 %v3884_v22  ;;  %3105 = vmatpush3.bf16.msra.mxu1 %v4002_v49 }
 0x133   :  { %663 = vmatprep.subr.bf16.mxu0 %v3891_v23  ;;  %3106 = vmatprep.subr.bf16.mxu1 %v5291_v19 }
 0x136   :  { %664 = vmatpush1.bf16.msra.mxu0 %v3896_v24  ;;  %3107 = vmatpush3.bf16.msra.mxu1 %v4013_v50 }
 0x137   :  { %665 = vmatprep.subr.bf16.mxu0 %v3912_v29  ;;  %3108 = vmatprep.subr.bf16.mxu1 %v5291_v19 }
 0x13a   :  { %666 = vmatpush1.bf16.msra.mxu0 %v3920_v33  ;;  %3109 = vmatpush3.bf16.msra.mxu1 %v4022_v51 }
 0x13b   :  { %667 = vmatprep.subr.bf16.mxu0 %v3927_v34  ;;  %3110 = vmatprep.subr.bf16.mxu1 %v5291_v19 }
 0x13e   :  { %668 = vmatpush1.bf16.msra.mxu0 %v3932_v35  ;;  %3111 = vmatpush3.bf16.msra.mxu1 %v4031_v52 }
 0x13f   :  { %669 = vmatprep.subr.bf16.mxu0 %v3945_v39  ;;  %3112 = vmatprep.subr.bf16.mxu1 %v5291_v19 }
 0x142   :  { %670 = vmatpush1.bf16.msra.mxu0 %v3952_v42  ;;  %3113 = vmatpush3.bf16.msra.mxu1 %v4040_v53 }
 0x143   :  { %758 = vmatprep.subr.bf16.mxu0 %v3818_v2  ;;  %3118 = vmatprep.subr.bf16.mxu1 %v5291_v19 }
 0x1e5   :  { %v586_v1 = vpop.f32.mrf.mxu0  ;;  %v627_v43 = vpop.f32.mrf.mxu1 }
 0x1e6   :  { %v587_v37 = vadd.f32 %v586_v1, %v4094_v30 }
 0x1e7   :  { %v588_v40 = vpop.f32.mrf.mxu0  ;;  %v3096_v55 = vpop.f32.mrf.mxu1 }
 0x1e8   :  { %v633_v3 = vadd.f32 %v587_v37, %v4072_v0  ;;  %v589_v27 = vadd.f32 %v588_v40, %v4109_v31  ;;  %v628_v55 = vadd.f32 %v627_v43, %v4129_v54 }
 0x1e9   :  { %v590_v10 = vpop.f32.mrf.mxu0  ;;  %v630_v57 = vpop.f32.mrf.mxu1 }
 0x1ea   :  { %v2785_v58 = vmul.f32 -1.442695, %v633_v3  ;;  %v640_v62 = vadd.f32 %v589_v27, %v4074_v5 }
 0x1eb   :  { %v591_v14 = vpop.f32.mrf.mxu0  ;;  %v3097_v32 = vpop.f32.mrf.mxu1 }
 0x1ec   :  { %3551 = vpow2.f32 %v2785_v58  ;;  %v2786_v56 = vmul.f32 -1.442695, %v640_v62 }
 0x1ee   :  { %3553 = vpow2.f32 %v2786_v56 }
 0x1f9   :  { %v3552_v63 = vpop.eup %3551 }
 0x1fa   :  { %v637_v25 = vadd.f32 1.0, %v3552_v63 }
 0x1fb   :  { %v3554_v44 = vpop.eup %3553 }
 0x1fc   :  { %3555 = vrcp.f32 %v637_v25  ;;  %v644_v1 = vadd.f32 1.0, %v3554_v44 }
 0x1fe   :  { %3557 = vrcp.f32 %v644_v1 }
 0x209   :  { %v3556_v0 = vpop.eup %3555 }
 0x20a   :  { %v647_v37 = vmul.f32 %v3556_v0, %v628_v55 }
 0x20b   :  { %v3558_v40 = vpop.eup %3557 }
 0x20c   :  { %v648_v3 = vadd.f32 %v647_v37, %v4118_v12  ;;  %v650_v10 = vsub.f32 1.0, %v3558_v40  ;;  %v652_v5 = vmul.f32 %v3558_v40, %v4133_v45 }
 0x20e   :  { %3559 = vtanh.f32 %v648_v3 }
 0x21b   :  { %v3560_v57 = vpop.eup %3559 }
 0x21c   :  { %v651_v58 = vmul.f32 %v3560_v57, %v650_v10 }
 0x21e   :  { %v4179_v27 = vadd.f32 %v652_v5, %v651_v58 }
 0x220   :  { %v654_v14 = vpack.c.bf16 %v4179_v27, %v4179_v27 }
 0x222   :  { %688 = vmatmul.mubr.bf16.vlgmr.msra.gmra.mxu0 %v654_v14  ;;  %3115 = vmatmul.mubr.bf16.vlgmr.msra.gmra.mxu1 %v654_v14 }
 0x223   :  { %759 = vmatpush1.bf16.msra.mxu0 %v3826_v4  ;;  %3119 = vmatpush3.bf16.msra.mxu1 %v3973_v46 }
 0x224   :  { %760 = vmatprep.subr.bf16.mxu0 %v3836_v6  ;;  %3120 = vmatprep.subr.bf16.mxu1 %v5291_v19 }
 0x225   :  { %790 = vmatprep.mubr.bf16.mxu0 %v5292_v21  ;;  %3134 = vmatprep.mubr.msk.bf16.mxu1 %vm3744_vm1, %v5291_v19 }
 0x227   :  { %761 = vmatpush1.bf16.msra.mxu0 %v3844_v8  ;;  %3121 = vmatpush3.bf16.msra.mxu1 %v3982_v47 }
 0x228   :  { %762 = vmatprep.subr.bf16.mxu0 %v3860_v15  ;;  %3122 = vmatprep.subr.bf16.mxu1 %v5291_v19 }
 0x22b   :  { %763 = vmatpush1.bf16.msra.mxu0 %v3865_v16  ;;  %3123 = vmatpush3.bf16.msra.mxu1 %v3992_v48 }
 0x22c   :  { %764 = vmatprep.subr.bf16.mxu0 %v3870_v17  ;;  %3124 = vmatprep.subr.bf16.mxu1 %v5291_v19 }
 0x22f   :  { %765 = vmatpush1.bf16.msra.mxu0 %v3884_v22  ;;  %3125 = vmatpush3.bf16.msra.mxu1 %v4002_v49 }
 0x230   :  { %766 = vmatprep.subr.bf16.mxu0 %v3891_v23  ;;  %3126 = vmatprep.subr.bf16.mxu1 %v5291_v19 }
 0x233   :  { %767 = vmatpush1.bf16.msra.mxu0 %v3896_v24  ;;  %3127 = vmatpush3.bf16.msra.mxu1 %v4013_v50 }
 0x234   :  { %768 = vmatprep.subr.bf16.mxu0 %v3912_v29  ;;  %3128 = vmatprep.subr.bf16.mxu1 %v5291_v19 }
 0x237   :  { %769 = vmatpush1.bf16.msra.mxu0 %v3920_v33  ;;  %3129 = vmatpush3.bf16.msra.mxu1 %v4022_v51 }
 0x238   :  { %770 = vmatprep.subr.bf16.mxu0 %v3927_v34  ;;  %3130 = vmatprep.subr.bf16.mxu1 %v5291_v19 }
 0x23b   :  { %771 = vmatpush1.bf16.msra.mxu0 %v3932_v35  ;;  %3131 = vmatpush3.bf16.msra.mxu1 %v4031_v52 }
 0x23c   :  { %772 = vmatprep.subr.bf16.mxu0 %v3945_v39  ;;  %3132 = vmatprep.subr.bf16.mxu1 %v5291_v19 }
 0x23f   :  { %773 = vmatpush1.bf16.msra.mxu0 %v3952_v42  ;;  %3133 = vmatpush3.bf16.msra.mxu1 %v4040_v53 }
 0x240   :  { %861 = vmatprep.subr.bf16.mxu0 %v3818_v2  ;;  %3138 = vmatprep.subr.bf16.mxu1 %v5291_v19 }
 0x2e2   :  { %v689_v12 = vpop.f32.mrf.mxu0  ;;  %v730_v43 = vpop.f32.mrf.mxu1 }
 0x2e3   :  { %v690_v32 = vadd.f32 %v689_v12, %v4094_v30  ;;  %v731_v14 = vadd.f32 %v730_v43, %v4129_v54 }
 0x2e4   :  { %v691_v62 = vpop.f32.mrf.mxu0  ;;  %v3116_v56 = vpop.f32.mrf.mxu1 }
 0x2e5   :  { %v736_v63 = vadd.f32 %v690_v32, %v4076_v9  ;;  %v692_v55 = vadd.f32 %v691_v62, %v4109_v31 }
 0x2e6   :  { %v693_v25 = vpop.f32.mrf.mxu0  ;;  %v733_v44 = vpop.f32.mrf.mxu1 }
 0x2e7   :  { %v2787_v1 = vmul.f32 -1.442695, %v736_v63  ;;  %v743_v3 = vadd.f32 %v692_v55, %v4078_v11 }
 0x2e8   :  { %v694_v0 = vpop.f32.mrf.mxu0  ;;  %v3117_v37 = vpop.f32.mrf.mxu1 }
 0x2e9   :  { %3561 = vpow2.f32 %v2787_v1  ;;  %v2788_v40 = vmul.f32 -1.442695, %v743_v3 }
 0x2eb   :  { %3563 = vpow2.f32 %v2788_v40 }
 0x2f6   :  { %v3562_v10 = vpop.eup %3561 }
 0x2f7   :  { %v740_v57 = vadd.f32 1.0, %v3562_v10 }
 0x2f8   :  { %v3564_v58 = vpop.eup %3563 }
 0x2f9   :  { %3565 = vrcp.f32 %v740_v57  ;;  %v747_v5 = vadd.f32 1.0, %v3564_v58 }
 0x2fb   :  { %3567 = vrcp.f32 %v747_v5 }
 0x306   :  { %v3566_v9 = vpop.eup %3565 }
 0x307   :  { %v750_v12 = vmul.f32 %v3566_v9, %v731_v14 }
 0x308   :  { %v3568_v62 = vpop.eup %3567 }
 0x309   :  { %v751_v32 = vadd.f32 %v750_v12, %v4113_v38  ;;  %v753_v56 = vsub.f32 1.0, %v3568_v62  ;;  %v755_v11 = vmul.f32 %v3568_v62, %v4179_v27 }
 0x30b   :  { %3569 = vtanh.f32 %v751_v32 }
 0x318   :  { %v3570_v63 = vpop.eup %3569 }
 0x319   :  { %v754_v25 = vmul.f32 %v3570_v63, %v753_v56 }
 0x31b   :  { %v4225_v44 = vadd.f32 %v755_v11, %v754_v25 }
 0x31d   :  { %v757_v1 = vpack.c.bf16 %v4225_v44, %v4225_v44 }
 0x31f   :  { %791 = vmatmul.mubr.bf16.vlgmr.msra.gmra.mxu0 %v757_v1  ;;  %3135 = vmatmul.mubr.bf16.vlgmr.msra.gmra.mxu1 %v757_v1 }
 0x320   :  { %862 = vmatpush1.bf16.msra.mxu0 %v3826_v4  ;;  %3139 = vmatpush3.bf16.msra.mxu1 %v3973_v46 }
 0x321   :  { %863 = vmatprep.subr.bf16.mxu0 %v3836_v6  ;;  %3140 = vmatprep.subr.bf16.mxu1 %v5291_v19 }
 0x322   :  { %893 = vmatprep.mubr.bf16.mxu0 %v5292_v21  ;;  %3154 = vmatprep.mubr.msk.bf16.mxu1 %vm3744_vm1, %v5291_v19 }
 0x324   :  { %864 = vmatpush1.bf16.msra.mxu0 %v3844_v8  ;;  %3141 = vmatpush3.bf16.msra.mxu1 %v3982_v47 }
 0x325   :  { %865 = vmatprep.subr.bf16.mxu0 %v3860_v15  ;;  %3142 = vmatprep.subr.bf16.mxu1 %v5291_v19 }
 0x328   :  { %866 = vmatpush1.bf16.msra.mxu0 %v3865_v16  ;;  %3143 = vmatpush3.bf16.msra.mxu1 %v3992_v48 }
 0x329   :  { %867 = vmatprep.subr.bf16.mxu0 %v3870_v17  ;;  %3144 = vmatprep.subr.bf16.mxu1 %v5291_v19 }
 0x32c   :  { %868 = vmatpush1.bf16.msra.mxu0 %v3884_v22  ;;  %3145 = vmatpush3.bf16.msra.mxu1 %v4002_v49 }
 0x32d   :  { %869 = vmatprep.subr.bf16.mxu0 %v3891_v23  ;;  %3146 = vmatprep.subr.bf16.mxu1 %v5291_v19 }
 0x330   :  { %870 = vmatpush1.bf16.msra.mxu0 %v3896_v24  ;;  %3147 = vmatpush3.bf16.msra.mxu1 %v4013_v50 }
 0x331   :  { %871 = vmatprep.subr.bf16.mxu0 %v3912_v29  ;;  %3148 = vmatprep.subr.bf16.mxu1 %v5291_v19 }
 0x334   :  { %872 = vmatpush1.bf16.msra.mxu0 %v3920_v33  ;;  %3149 = vmatpush3.bf16.msra.mxu1 %v4022_v51 }
 0x335   :  { %873 = vmatprep.subr.bf16.mxu0 %v3927_v34  ;;  %3150 = vmatprep.subr.bf16.mxu1 %v5291_v19 }
 0x338   :  { %874 = vmatpush1.bf16.msra.mxu0 %v3932_v35  ;;  %3151 = vmatpush3.bf16.msra.mxu1 %v4031_v52 }
 0x339   :  { %875 = vmatprep.subr.bf16.mxu0 %v3945_v39  ;;  %3152 = vmatprep.subr.bf16.mxu1 %v5291_v19 }
 0x33c   :  { %876 = vmatpush1.bf16.msra.mxu0 %v3952_v42  ;;  %3153 = vmatpush3.bf16.msra.mxu1 %v4040_v53 }
 0x33d   :  { %964 = vmatprep.subr.bf16.mxu0 %v3818_v2  ;;  %3158 = vmatprep.subr.bf16.mxu1 %v5291_v19 }
 0x3df   :  { %v792_v38 = vpop.f32.mrf.mxu0  ;;  %v833_v43 = vpop.f32.mrf.mxu1 }
 0x3e0   :  { %v793_v55 = vadd.f32 %v792_v38, %v4094_v30  ;;  %v834_v63 = vadd.f32 %v833_v43, %v4129_v54 }
 0x3e1   :  { %v794_v0 = vpop.f32.mrf.mxu0  ;;  %v3136_v37 = vpop.f32.mrf.mxu1 }
 0x3e2   :  { %v839_v3 = vadd.f32 %v793_v55, %v4080_v13  ;;  %v795_v58 = vadd.f32 %v794_v0, %v4109_v31 }
 0x3e3   :  { %v796_v40 = vpop.f32.mrf.mxu0  ;;  %v836_v10 = vpop.f32.mrf.mxu1 }
 0x3e4   :  { %v2789_v57 = vmul.f32 -1.442695, %v839_v3  ;;  %v846_v2 = vadd.f32 %v795_v58, %v4082_v18 }
 0x3e5   :  { %v797_v5 = vpop.f32.mrf.mxu0  ;;  %v3137_v14 = vpop.f32.mrf.mxu1 }
 0x3e6   :  { %3571 = vpow2.f32 %v2789_v57  ;;  %v2790_v9 = vmul.f32 -1.442695, %v846_v2 }
 0x3e8   :  { %3573 = vpow2.f32 %v2790_v9 }
 0x3f3   :  { %v3572_v12 = vpop.eup %3571 }
 0x3f4   :  { %v843_v32 = vadd.f32 1.0, %v3572_v12 }
 0x3f5   :  { %v3574_v62 = vpop.eup %3573 }
 0x3f6   :  { %3575 = vrcp.f32 %v843_v32  ;;  %v850_v56 = vadd.f32 1.0, %v3574_v62 }
 0x3f8   :  { %3577 = vrcp.f32 %v850_v56 }
 0x403   :  { %v3576_v13 = vpop.eup %3575 }
 0x404   :  { %v853_v25 = vmul.f32 %v3576_v13, %v834_v63 }
 0x405   :  { %v3578_v1 = vpop.eup %3577 }
 0x406   :  { %v854_v11 = vadd.f32 %v853_v25, %v4116_v61  ;;  %v856_v38 = vsub.f32 1.0, %v3578_v1  ;;  %v858_v18 = vmul.f32 %v3578_v1, %v4225_v44  ;;  %v4329_v1 = vld [vmem:[%s5262_s3 + $0xa8] ss:$12 sps:$4 sm:$0xff]  }
 0x408   :  { %3579 = vtanh.f32 %v854_v11 }
 0x415   :  { %v3580_v55 = vpop.eup %3579 }
 0x416   :  { %v857_v0 = vmul.f32 %v3580_v55, %v856_v38  ;;  %v4346_v38 = vld [vmem:[%s5262_s3 + $0x90] ss:$12 sps:$4 sm:$0xff]  }
 0x417   :  { %v4353_v55 = vld [vmem:[%s5262_s3 + $0x7c] ss:$12 sps:$4 sm:$0xff]  }
 0x418   :  { %v4271_v37 = vadd.f32 %v858_v18, %v857_v0  ;;  %v4360_v0 = vld [vmem:[%s5262_s3 + $0x78] ss:$12 sps:$4 sm:$0xff]   ;;  %v4374_v18 = vld [vmem:[%s5262_s3 + $0x60] ss:$12 sps:$4 sm:$0xff]  }
 0x41a   :  { %v860_v3 = vpack.c.bf16 %v4271_v37, %v4271_v37 }
 0x41c   :  { %894 = vmatmul.mubr.bf16.vlgmr.msra.gmra.mxu0 %v860_v3  ;;  %3155 = vmatmul.mubr.bf16.vlgmr.msra.gmra.mxu1 %v860_v3  ;;  %v4381_v3 = vld [vmem:[%s5262_s3 + $0x4c] ss:$12 sps:$4 sm:$0xff]  }
 0x41d   :  { %965 = vmatpush1.bf16.msra.mxu0 %v3826_v4  ;;  %3159 = vmatpush3.bf16.msra.mxu1 %v3973_v46  ;;  %v4311_v4 = vld [vmem:[%s5262_s3 + $0xac] ss:$12 sps:$4 sm:$0xff]  }
 0x41e   :  { %966 = vmatprep.subr.bf16.mxu0 %v3836_v6  ;;  %3160 = vmatprep.subr.bf16.mxu1 %v5291_v19 }
 0x41f   :  { %996 = vmatprep.mubr.bf16.mxu0 %v5292_v21  ;;  %3174 = vmatprep.mubr.msk.bf16.mxu1 %vm3744_vm1, %v5291_v19 }
 0x421   :  { %967 = vmatpush1.bf16.msra.mxu0 %v3844_v8  ;;  %3161 = vmatpush3.bf16.msra.mxu1 %v3982_v47 }
 0x422   :  { %968 = vmatprep.subr.bf16.mxu0 %v3860_v15  ;;  %3162 = vmatprep.subr.bf16.mxu1 %v5291_v19 }
 0x425   :  { %969 = vmatpush1.bf16.msra.mxu0 %v3865_v16  ;;  %3163 = vmatpush3.bf16.msra.mxu1 %v3992_v48 }
 0x426   :  { %970 = vmatprep.subr.bf16.mxu0 %v3870_v17  ;;  %3164 = vmatprep.subr.bf16.mxu1 %v5291_v19 }
 0x429   :  { %971 = vmatpush1.bf16.msra.mxu0 %v3884_v22  ;;  %3165 = vmatpush3.bf16.msra.mxu1 %v4002_v49 }
 0x42a   :  { %972 = vmatprep.subr.bf16.mxu0 %v3891_v23  ;;  %3166 = vmatprep.subr.bf16.mxu1 %v5291_v19 }
 0x42d   :  { %973 = vmatpush1.bf16.msra.mxu0 %v3896_v24  ;;  %3167 = vmatpush3.bf16.msra.mxu1 %v4013_v50 }
 0x42e   :  { %974 = vmatprep.subr.bf16.mxu0 %v3912_v29  ;;  %3168 = vmatprep.subr.bf16.mxu1 %v5291_v19 }
 0x431   :  { %975 = vmatpush1.bf16.msra.mxu0 %v3920_v33  ;;  %3169 = vmatpush3.bf16.msra.mxu1 %v4022_v51 }
 0x432   :  { %976 = vmatprep.subr.bf16.mxu0 %v3927_v34  ;;  %3170 = vmatprep.subr.bf16.mxu1 %v5291_v19 }
 0x435   :  { %977 = vmatpush1.bf16.msra.mxu0 %v3932_v35  ;;  %3171 = vmatpush3.bf16.msra.mxu1 %v4031_v52 }
 0x436   :  { %978 = vmatprep.subr.bf16.mxu0 %v3945_v39  ;;  %3172 = vmatprep.subr.bf16.mxu1 %v5291_v19 }
 0x439   :  { %979 = vmatpush1.bf16.msra.mxu0 %v3952_v42  ;;  %3173 = vmatpush3.bf16.msra.mxu1 %v4040_v53 }
 0x43a   :  { %1067 = vmatprep.subr.bf16.mxu0 %v4311_v4  ;;  %3178 = vmatprep.subr.bf16.mxu1 %v5291_v19 }
 0x4dc   :  { %v895_v6 = vpop.f32.mrf.mxu0  ;;  %v936_v8 = vpop.f32.mrf.mxu1 }
 0x4dd   :  { %v896_v15 = vadd.f32 %v895_v6, %v4094_v30  ;;  %v937_v9 = vadd.f32 %v936_v8, %v4129_v54  ;;  %v4388_v6 = vld [vmem:[%s5262_s3 + $0x48] ss:$12 sps:$4 sm:$0xff]  }
 0x4de   :  { %v897_v16 = vpop.f32.mrf.mxu0  ;;  %v3156_v17 = vpop.f32.mrf.mxu1  ;;  %v4395_v8 = vld [vmem:[%s5262_s3 + $0x34] ss:$12 sps:$4 sm:$0xff]  }
 0x4df   :  { %v942_v22 = vadd.f32 %v896_v15, %v4084_v20  ;;  %v898_v61 = vadd.f32 %v897_v16, %v4109_v31 }
 0x4e0   :  { %v899_v23 = vpop.f32.mrf.mxu0  ;;  %v939_v24 = vpop.f32.mrf.mxu1 }
 0x4e1   :  { %v2791_v29 = vmul.f32 -1.442695, %v942_v22  ;;  %v949_v10 = vadd.f32 %v898_v61, %v4089_v26 }
 0x4e2   :  { %v900_v43 = vpop.f32.mrf.mxu0  ;;  %v3157_v40 = vpop.f32.mrf.mxu1 }
 0x4e3   :  { %3581 = vpow2.f32 %v2791_v29  ;;  %v2792_v57 = vmul.f32 -1.442695, %v949_v10 }
 0x4e5   :  { %3583 = vpow2.f32 %v2792_v57 }
 0x4f0   :  { %v3582_v58 = vpop.eup %3581 }
 0x4f1   :  { %v946_v5 = vadd.f32 1.0, %v3582_v58 }
 0x4f2   :  { %v3584_v14 = vpop.eup %3583 }
 0x4f3   :  { %3585 = vrcp.f32 %v946_v5  ;;  %v953_v2 = vadd.f32 1.0, %v3584_v14 }
 0x4f5   :  { %3587 = vrcp.f32 %v953_v2 }
 0x500   :  { %v3586_v20 = vpop.eup %3585 }
 0x501   :  { %v956_v12 = vmul.f32 %v3586_v20, %v937_v9 }
 0x502   :  { %v3588_v62 = vpop.eup %3587 }
 0x503   :  { %v957_v32 = vadd.f32 %v956_v12, %v4122_v59  ;;  %v959_v56 = vsub.f32 1.0, %v3588_v62  ;;  %v961_v26 = vmul.f32 %v3588_v62, %v4271_v37  ;;  %v4336_v59 = vld [vmem:[%s5262_s3 + $0x94] ss:$12 sps:$4 sm:$0xff]  }
 0x505   :  { %3589 = vtanh.f32 %v957_v32 }
 0x512   :  { %v3590_v63 = vpop.eup %3589 }
 0x513   :  { %v960_v13 = vmul.f32 %v3590_v63, %v959_v56  ;;  %v3471_v56 = vld [vmem:[%s5267_s6 + $0xac] ss:$12 sps:$4 sm:$0xff]  }
 0x515   :  { %v4322_v25 = vadd.f32 %v961_v26, %v960_v13 }
 0x517   :  { %v963_v11 = vpack.c.bf16 %v4322_v25, %v4322_v25 }
 0x519   :  { %997 = vmatmul.mubr.bf16.vlgmr.msra.gmra.mxu0 %v963_v11  ;;  %3175 = vmatmul.mubr.bf16.vlgmr.msra.gmra.mxu1 %v963_v11 }
 0x51a   :  { %1068 = vmatpush1.bf16.msra.mxu0 %v4329_v1  ;;  %3179 = vmatpush3.bf16.msra.mxu1 %v3973_v46 }
 0x51b   :  { %1069 = vmatprep.subr.bf16.mxu0 %v4336_v59  ;;  %3180 = vmatprep.subr.bf16.mxu1 %v5291_v19 }
 0x51c   :  { %1099 = vmatprep.mubr.bf16.mxu0 %v5292_v21  ;;  %3194 = vmatprep.mubr.msk.bf16.mxu1 %vm3744_vm1, %v5291_v19 }
 0x51e   :  { %1070 = vmatpush1.bf16.msra.mxu0 %v4346_v38  ;;  %3181 = vmatpush3.bf16.msra.mxu1 %v3982_v47  ;;  %v4367_v47 = vld [vmem:[%s5262_s3 + $0x64] ss:$12 sps:$4 sm:$0xff]  }
 0x51f   :  { %1071 = vmatprep.subr.bf16.mxu0 %v4353_v55  ;;  %3182 = vmatprep.subr.bf16.mxu1 %v5291_v19 }
 0x522   :  { %1072 = vmatpush1.bf16.msra.mxu0 %v4360_v0  ;;  %3183 = vmatpush3.bf16.msra.mxu1 %v3992_v48 }
 0x523   :  { %1073 = vmatprep.subr.bf16.mxu0 %v4367_v47  ;;  %3184 = vmatprep.subr.bf16.mxu1 %v5291_v19 }
 0x526   :  { %1074 = vmatpush1.bf16.msra.mxu0 %v4374_v18  ;;  %3185 = vmatpush3.bf16.msra.mxu1 %v4002_v49 }
 0x527   :  { %1075 = vmatprep.subr.bf16.mxu0 %v4381_v3  ;;  %3186 = vmatprep.subr.bf16.mxu1 %v5291_v19 }
 0x52a   :  { %1076 = vmatpush1.bf16.msra.mxu0 %v4388_v6  ;;  %3187 = vmatpush3.bf16.msra.mxu1 %v4013_v50 }
 0x52b   :  { %1077 = vmatprep.subr.bf16.mxu0 %v4395_v8  ;;  %3188 = vmatprep.subr.bf16.mxu1 %v5291_v19 }
 0x52e   :  { %1078 = vmatpush1.bf16.msra.mxu0 %v3920_v33  ;;  %3189 = vmatpush3.bf16.msra.mxu1 %v4022_v51 }
 0x52f   :  { %1079 = vmatprep.subr.bf16.mxu0 %v3927_v34  ;;  %3190 = vmatprep.subr.bf16.mxu1 %v5291_v19 }
 0x532   :  { %1080 = vmatpush1.bf16.msra.mxu0 %v3932_v35  ;;  %3191 = vmatpush3.bf16.msra.mxu1 %v4031_v52 }
 0x533   :  { %1081 = vmatprep.subr.bf16.mxu0 %v3945_v39  ;;  %3192 = vmatprep.subr.bf16.mxu1 %v5291_v19 }
 0x536   :  { %1082 = vmatpush1.bf16.msra.mxu0 %v3952_v42  ;;  %3193 = vmatpush3.bf16.msra.mxu1 %v4040_v53 }
 0x537   :  { %1170 = vmatprep.subr.bf16.mxu0 %v4311_v4  ;;  %3198 = vmatprep.subr.bf16.mxu1 %v5291_v19 }
 0x5d9   :  { %v998_v33 = vpop.f32.mrf.mxu0  ;;  %v1039_v34 = vpop.f32.mrf.mxu1 }
 0x5da   :  { %v999_v15 = vadd.f32 %v998_v33, %v4094_v30  ;;  %v1040_v58 = vadd.f32 %v1039_v34, %v4129_v54 }
 0x5db   :  { %v1000_v16 = vpop.f32.mrf.mxu0  ;;  %v3176_v35 = vpop.f32.mrf.mxu1 }
 0x5dc   :  { %v1045_v17 = vadd.f32 %v999_v15, %v4091_v28  ;;  %v1001_v24 = vadd.f32 %v1000_v16, %v4109_v31 }
 0x5dd   :  { %v1002_v22 = vpop.f32.mrf.mxu0  ;;  %v1042_v39 = vpop.f32.mrf.mxu1 }
 0x5de   :  { %v2793_v23 = vmul.f32 -1.442695, %v1045_v17  ;;  %v1052_v4 = vadd.f32 %v1001_v24, %v4096_v36  ;;  %v5293_v17 = vld [vmem:[#allocation7_spill] sm:$0xff] }
 0x5df   :  { %v1003_v42 = vpop.f32.mrf.mxu0  ;;  %v3177_v29 = vpop.f32.mrf.mxu1 }
 0x5e0   :  { %3591 = vpow2.f32 %v2793_v23  ;;  %v2794_v61 = vmul.f32 -1.442695, %v1052_v4  ;;  %v3469_v4 = vld [vmem:[%s5267_s6 + $0xa8] ss:$12 sps:$4 sm:$0xff]  }
 0x5e2   :  { %3593 = vpow2.f32 %v2794_v61 }
 0x5ed   :  { %v3592_v43 = vpop.eup %3591 }
 0x5ee   :  { %v1049_v40 = vadd.f32 1.0, %v3592_v43  ;;  %v3475_v43 = vld [vmem:[%s5267_s6 + $0x94] ss:$12 sps:$4 sm:$0xff]  }
 0x5ef   :  { %v3594_v10 = vpop.eup %3593 }
 0x5f0   :  { %3595 = vrcp.f32 %v1049_v40  ;;  %v1056_v57 = vadd.f32 1.0, %v3594_v10  ;;  %v3476_v40 = vld [vmem:[%s5267_s6 + $0x98] ss:$12 sps:$4 sm:$0xff]   ;;  %v1273_v10 = vpack.c.bf16 %v4179_v27, %v4133_v45 }
 0x5f1   :  { %v3477_v45 = vld [vmem:[%s5267_s6 + $0x78] ss:$12 sps:$4 sm:$0xff]  }
 0x5f2   :  { %3597 = vrcp.f32 %v1056_v57  ;;  %v3473_v57 = vld [vmem:[%s5267_s6 + $0x90] ss:$12 sps:$4 sm:$0xff]  }
 0x5f3   :  { %v3483_v27 = vld [vmem:[%s5267_s6 + $0x64] ss:$12 sps:$4 sm:$0xff]  }
 0x5fd   :  { %v3596_v28 = vpop.eup %3595 }
 0x5fe   :  { %v1059_v5 = vmul.f32 %v3596_v28, %v1040_v58  ;;  %v3479_v58 = vld [vmem:[%s5267_s6 + $0x7c] ss:$12 sps:$4 sm:$0xff]   ;;  %v3480_v28 = vld [vmem:[%s5267_s6 + $0x80] ss:$12 sps:$4 sm:$0xff]  }
 0x5ff   :  { %v3598_v2 = vpop.eup %3597 }
 0x600   :  { %v1060_v14 = vadd.f32 %v1059_v5, %v4126_v60  ;;  %v1062_v9 = vsub.f32 1.0, %v3598_v2  ;;  %v1064_v36 = vmul.f32 %v3598_v2, %v4322_v25  ;;  %v3712_v60 = vld [vmem:[%s5262_s3 + $0x98] ss:$12 sps:$4 sm:$0xff]   ;;  %v3484_v5 = vld [vmem:[%s5267_s6 + $0x68] ss:$12 sps:$4 sm:$0xff]  }
 0x601   :  { %v3487_v2 = vld [vmem:[%s5267_s6 + $0x4c] ss:$12 sps:$4 sm:$0xff]  }
 0x602   :  { %3599 = vtanh.f32 %v1060_v14  ;;  %v3481_v14 = vld [vmem:[%s5267_s6 + $0x60] ss:$12 sps:$4 sm:$0xff]  }
 0x60f   :  { %v3600_v20 = vpop.eup %3599 }
 0x610   :  { %v1063_v12 = vmul.f32 %v3600_v20, %v1062_v9  ;;  %v3488_v9 = vld [vmem:[%s5267_s6 + $0x50] ss:$12 sps:$4 sm:$0xff]   ;;  %v3485_v20 = vld [vmem:[%s5267_s6 + $0x48] ss:$12 sps:$4 sm:$0xff]  }
 0x612   :  { %v4418_v32 = vadd.f32 %v1064_v36, %v1063_v12  ;;  %v3491_v12 = vld [vmem:[%s5267_s6 + $0x34] ss:$12 sps:$4 sm:$0xff]   ;;  %v3492_v36 = vld [vmem:[%s5267_s6 + $0x38] ss:$12 sps:$4 sm:$0xff]  }
 0x614   :  { %v1066_v62 = vpack.c.bf16 %v4418_v32, %v4418_v32 }
 0x616   :  { %1100 = vmatmul.mubr.bf16.vlgmr.msra.gmra.mxu0 %v1066_v62  ;;  %3195 = vmatmul.mubr.bf16.vlgmr.msra.gmra.mxu1 %v1066_v62  ;;  %v3489_v62 = vld [vmem:[%s5267_s6 + $0x30] ss:$12 sps:$4 sm:$0xff]  }
 0x617   :  { %1171 = vmatpush1.bf16.msra.mxu0 %v4329_v1  ;;  %3199 = vmatpush3.bf16.msra.mxu1 %v3973_v46  ;;  %v3713_v46 = vld [vmem:[%s5262_s3 + $0x30] ss:$12 sps:$4 sm:$0xff]  }
 0x618   :  { %1172 = vmatprep.subr.bf16.mxu0 %v4336_v59  ;;  %3200 = vmatprep.subr.bf16.mxu1 %v5291_v19 }
 0x619   :  { %1202 = vmatprep.mubr.bf16.mxu0 %v5292_v21  ;;  %3214 = vmatprep.mubr.msk.bf16.mxu1 %vm3744_vm1, %v5291_v19 }
 0x61b   :  { %1173 = vmatpush1.bf16.msra.mxu0 %v4346_v38  ;;  %3201 = vmatpush3.bf16.msra.mxu1 %v3712_v60  ;;  %v3495_v60 = vld [vmem:[%s5267_s6 + $0x1c] ss:$12 sps:$4 sm:$0xff]  }
 0x61c   :  { %1174 = vmatprep.subr.bf16.mxu0 %v4353_v55  ;;  %3202 = vmatprep.subr.bf16.mxu1 %v5291_v19 }
 0x61f   :  { %1175 = vmatpush1.bf16.msra.mxu0 %v4360_v0  ;;  %3203 = vmatpush3.bf16.msra.mxu1 %v3992_v48  ;;  %v3714_v48 = vld [vmem:[%s5262_s3 + $0x1c] ss:$12 sps:$4 sm:$0xff]  }
 0x620   :  { %1176 = vmatprep.subr.bf16.mxu0 %v4367_v47  ;;  %3204 = vmatprep.subr.bf16.mxu1 %v5291_v19 }
 0x623   :  { %1177 = vmatpush1.bf16.msra.mxu0 %v4374_v18  ;;  %3205 = vmatpush3.bf16.msra.mxu1 %v4002_v49  ;;  %v3715_v49 = vld [vmem:[%s5262_s3 + $0x18] ss:$12 sps:$4 sm:$0xff]  }
 0x624   :  { %1178 = vmatprep.subr.bf16.mxu0 %v4381_v3  ;;  %3206 = vmatprep.subr.bf16.mxu1 %v5291_v19 }
 0x627   :  { %1179 = vmatpush1.bf16.msra.mxu0 %v4388_v6  ;;  %3207 = vmatpush3.bf16.msra.mxu1 %v4013_v50  ;;  %v3716_v50 = vld [vmem:[%s5262_s3 + $0x4] ss:$12 sps:$4 sm:$0xff]  }
 0x628   :  { %1180 = vmatprep.subr.bf16.mxu0 %v4395_v8  ;;  %3208 = vmatprep.subr.bf16.mxu1 %v5291_v19 }
 0x62b   :  { %1181 = vmatpush1.bf16.msra.mxu0 %v3713_v46  ;;  %3209 = vmatpush3.bf16.msra.mxu1 %v4022_v51  ;;  %v3717_v51 = vld [vmem:[%s5262_s3] ss:$12 sps:$4 sm:$0xff]  }
 0x62c   :  { %1182 = vmatprep.subr.bf16.mxu0 %v3714_v48  ;;  %3210 = vmatprep.subr.bf16.mxu1 %v5291_v19  ;;  %v3496_v46 = vld [vmem:[%s5267_s6 + $0x20] ss:$12 sps:$4 sm:$0xff]   ;;  %v3493_v48 = vld [vmem:[%s5267_s6 + $0x18] ss:$12 sps:$4 sm:$0xff]  }
 0x62f   :  { %1183 = vmatpush1.bf16.msra.mxu0 %v3715_v49  ;;  %3211 = vmatpush3.bf16.msra.mxu1 %v4031_v52  ;;  %v3472_v52 = vld [vmem:[%s5267_s6 + $0xb0] ss:$12 sps:$4 sm:$0xff]  }
 0x630   :  { %1184 = vmatprep.subr.bf16.mxu0 %v3716_v50  ;;  %3212 = vmatprep.subr.bf16.mxu1 %v5291_v19  ;;  %v3499_v49 = vld [vmem:[%s5267_s6 + $0x4] ss:$12 sps:$4 sm:$0xff]   ;;  %v3500_v50 = vld [vmem:[%s5267_s6 + $0x8] ss:$12 sps:$4 sm:$0xff]  }
 0x633   :  { %1185 = vmatpush1.bf16.msra.mxu0 %v3717_v51  ;;  %3213 = vmatpush3.bf16.msra.mxu1 %v4040_v53  ;;  %v3497_v51 = vld [vmem:[%s5267_s6] ss:$12 sps:$4 sm:$0xff]  }
 0x634   :  { %1454 = vmatprep.subr.bf16.mxu0 %v3471_v56  ;;  %3218 = vmatprep.subr.bf16.mxu1 %v3472_v52  ;;  %v1274_v56 = vpack.c.bf16 %v4271_v37, %v4225_v44  ;;  %v4564_v44 = vld [vmem:[%s5268_s7 + $0xac] ss:$12 sps:$4 sm:$0xff]   ;;  %v4569_v37 = vld [vmem:[%s5268_s7 + $0xa8] ss:$12 sps:$4 sm:$0xff]  }
 0x6d6   :  { %v1101_v63 = vpop.f32.mrf.mxu0  ;;  %v1142_v13 = vpop.f32.mrf.mxu1 }
 0x6d7   :  { %v1102_v26 = vadd.f32 %v1101_v63, %v4094_v30  ;;  %v1143_v16 = vadd.f32 %v1142_v13, %v4129_v54  ;;  %v4588_v63 = vld [vmem:[%s5268_s7 + $0x7c] ss:$12 sps:$4 sm:$0xff]   ;;  %v4593_v13 = vld [vmem:[%s5268_s7 + $0x78] ss:$12 sps:$4 sm:$0xff]  }
 0x6d8   :  { %v1103_v11 = vpop.f32.mrf.mxu0  ;;  %v3196_v1 = vpop.f32.mrf.mxu1 }
 0x6d9   :  { %v1148_v59 = vadd.f32 %v1102_v26, %v4098_v41  ;;  %v1104_v0 = vadd.f32 %v1103_v11, %v4109_v31  ;;  %v4600_v26 = vld [vmem:[%s5268_s7 + $0x64] ss:$12 sps:$4 sm:$0xff]   ;;  %v4605_v11 = vld [vmem:[%s5268_s7 + $0x60] ss:$12 sps:$4 sm:$0xff]  }
 0x6da   :  { %v1105_v38 = vpop.f32.mrf.mxu0  ;;  %v1145_v53 = vpop.f32.mrf.mxu1  ;;  %v4612_v1 = vld [vmem:[%s5268_s7 + $0x4c] ss:$12 sps:$4 sm:$0xff]  }
 0x6db   :  { %v2795_v55 = vmul.f32 -1.442695, %v1148_v59  ;;  %v1155_v3 = vadd.f32 %v1104_v0, %v4103_v7  ;;  %v4617_v59 = vld [vmem:[%s5268_s7 + $0x48] ss:$12 sps:$4 sm:$0xff]   ;;  %v4629_v53 = vld [vmem:[%s5268_s7 + $0x30] ss:$12 sps:$4 sm:$0xff]  }
 0x6dc   :  { %v1106_v47 = vpop.f32.mrf.mxu0  ;;  %v3197_v18 = vpop.f32.mrf.mxu1  ;;  %v4624_v38 = vld [vmem:[%s5268_s7 + $0x34] ss:$12 sps:$4 sm:$0xff]   ;;  %v4641_v0 = vld [vmem:[%s5268_s7 + $0x18] ss:$12 sps:$4 sm:$0xff]  }
 0x6dd   :  { %3601 = vpow2.f32 %v2795_v55  ;;  %v2796_v6 = vmul.f32 -1.442695, %v1155_v3  ;;  %v4636_v55 = vld [vmem:[%s5268_s7 + $0x1c] ss:$12 sps:$4 sm:$0xff]   ;;  %v4646_v47 = vld [vmem:[%s5268_s7 + $0x4] ss:$12 sps:$4 sm:$0xff]  }
 0x6de   :  { %v4652_v18 = vld [vmem:[%s5268_s7 + $0xb0] ss:$12 sps:$4 sm:$0xff]   ;;  %v4658_v3 = vld [vmem:[%s5268_s7] ss:$12 sps:$4 sm:$0xff]  }
 0x6df   :  { %3603 = vpow2.f32 %v2796_v6  ;;  %v4668_v6 = vld [vmem:[%s5268_s7 + $0x98] ss:$12 sps:$4 sm:$0xff]  }
 0x6ea   :  { %v3602_v8 = vpop.eup %3601 }
 0x6eb   :  { %v1152_v33 = vadd.f32 1.0, %v3602_v8  ;;  %v4674_v8 = vld [vmem:[%s5268_s7 + $0x80] ss:$12 sps:$4 sm:$0xff]  }
 0x6ec   :  { %v3604_v34 = vpop.eup %3603 }
 0x6ed   :  { %3605 = vrcp.f32 %v1152_v33  ;;  %v1159_v15 = vadd.f32 1.0, %v3604_v34  ;;  %v4681_v33 = vld [vmem:[%s5268_s7 + $0x68] ss:$12 sps:$4 sm:$0xff]   ;;  %v4688_v34 = vld [vmem:[%s5268_s7 + $0x50] ss:$12 sps:$4 sm:$0xff]  }
 0x6ef   :  { %3607 = vrcp.f32 %v1159_v15  ;;  %v4695_v15 = vld [vmem:[%s5268_s7 + $0x38] ss:$12 sps:$4 sm:$0xff]  }
 0x6fa   :  { %v3606_v41 = vpop.eup %3605 }
 0x6fb   :  { %v1162_v35 = vmul.f32 %v3606_v41, %v1143_v16  ;;  %v4702_v16 = vld [vmem:[%s5268_s7 + $0x20] ss:$12 sps:$4 sm:$0xff]   ;;  %v4709_v41 = vld [vmem:[%s5268_s7 + $0x8] ss:$12 sps:$4 sm:$0xff]  }
 0x6fc   :  { %v3608_v39 = vpop.eup %3607 }
 0x6fd   :  { %v1163_v22 = vadd.f32 %v1162_v35, %v5293_v17  ;;  %v1165_v23 = vsub.f32 1.0, %v3608_v39  ;;  %v1167_v7 = vmul.f32 %v3608_v39, %v4418_v32 }
 0x6ff   :  { %3609 = vtanh.f32 %v1163_v22 }
 0x70c   :  { %v3610_v24 = vpop.eup %3609 }
 0x70d   :  { %v1166_v42 = vmul.f32 %v3610_v24, %v1165_v23  ;;  %v5294_v24 = vld [vmem:[#allocation5_spill] sm:$0xff] }
 0x70f   :  { %v4480_v29 = vadd.f32 %v1167_v7, %v1166_v42 }
 0x711   :  { %v1169_v61 = vpack.c.bf16 %v4480_v29, %v4480_v29 }
 0x713   :  { %1203 = vmatmul.mubr.bf16.vlgmr.msra.gmra.mxu0 %v1169_v61  ;;  %3215 = vmatmul.mubr.bf16.vlgmr.msra.gmra.mxu1 %v1169_v61 }
 0x714   :  { %1455 = vmatpush1.bf16.msra.mxu0 %v3469_v4  ;;  %3219 = vmatpush3.bf16.msra.mxu1 %v3472_v52  ;;  %v1275_v52 = vpack.c.bf16 %v4418_v32, %v4322_v25  ;;  %v4576_v25 = vld [vmem:[%s5268_s7 + $0x94] ss:$12 sps:$4 sm:$0xff]   ;;  %v4581_v32 = vld [vmem:[%s5268_s7 + $0x90] ss:$12 sps:$4 sm:$0xff]  }
 0x715   :  { %3234 = vmatprep.mubr.bf16.mxu1 %v1273_v10  ;;  %1456 = vmatprep.subr.bf16.mxu0 %v3475_v43 }
 0x716   :  { %3220 = vmatprep.subr.bf16.mxu1 %v3476_v40  ;;  %1486 = vmatprep.mubr.bf16.mxu0 %v5292_v21 }
 0x718   :  { %1457 = vmatpush1.bf16.msra.mxu0 %v3473_v57  ;;  %3221 = vmatpush3.bf16.msra.mxu1 %v3476_v40  ;;  %v5295_v57 = vld [vmem:[#allocation6_spill] sm:$0xff] }
 0x719   :  { %1458 = vmatprep.subr.bf16.mxu0 %v3479_v58  ;;  %3222 = vmatprep.subr.bf16.mxu1 %v3480_v28 }
 0x71c   :  { %1459 = vmatpush1.bf16.msra.mxu0 %v3477_v45  ;;  %3223 = vmatpush3.bf16.msra.mxu1 %v3480_v28 }
 0x71d   :  { %1460 = vmatprep.subr.bf16.mxu0 %v3483_v27  ;;  %3224 = vmatprep.subr.bf16.mxu1 %v3484_v5 }
 0x720   :  { %1461 = vmatpush1.bf16.msra.mxu0 %v3481_v14  ;;  %3225 = vmatpush3.bf16.msra.mxu1 %v3484_v5 }
 0x721   :  { %1462 = vmatprep.subr.bf16.mxu0 %v3487_v2  ;;  %3226 = vmatprep.subr.bf16.mxu1 %v3488_v9 }
 0x724   :  { %1463 = vmatpush1.bf16.msra.mxu0 %v3485_v20  ;;  %3227 = vmatpush3.bf16.msra.mxu1 %v3488_v9  ;;  %v5296_v20 = vld [vmem:[#allocation8_spill] sm:$0xff] }
 0x725   :  { %1464 = vmatprep.subr.bf16.mxu0 %v3491_v12  ;;  %3228 = vmatprep.subr.bf16.mxu1 %v3492_v36 }
 0x728   :  { %1465 = vmatpush1.bf16.msra.mxu0 %v3489_v62  ;;  %3229 = vmatpush3.bf16.msra.mxu1 %v3492_v36 }
 0x729   :  { %1466 = vmatprep.subr.bf16.mxu0 %v3495_v60  ;;  %3230 = vmatprep.subr.bf16.mxu1 %v3496_v46 }
 0x72c   :  { %1467 = vmatpush1.bf16.msra.mxu0 %v3493_v48  ;;  %3231 = vmatpush3.bf16.msra.mxu1 %v3496_v46 }
 0x72d   :  { %1468 = vmatprep.subr.bf16.mxu0 %v3499_v49  ;;  %3232 = vmatprep.subr.bf16.mxu1 %v3500_v50 }
 0x730   :  { %1469 = vmatpush1.bf16.msra.mxu0 %v3497_v51  ;;  %3233 = vmatpush3.bf16.msra.mxu1 %v3500_v50 }
 0x731   :  { %3242 = vmatprep.subr.bf16.mxu1 %v5291_v19  ;;  %1770 = vmatprep.subr.bf16.mxu0 %v4564_v44 }
 0x733   :  { %1487 = vmatmul.mubr.bf16.vlgmr.msra.gmra.mxu0 %v1273_v10  ;;  %3235 = vmatmul.mubr.bf16.vlgmr.msra.gmra.mxu1 %v1274_v56 }
 0x734   :  { %3238 = vmatprep.mubr.bf16.mxu1 %v1275_v52  ;;  %1496 = vmatprep.mubr.bf16.mxu0 %v5292_v21 }
 0x735   :  { %1771 = vmatpush1.bf16.msra.mxu0 %v4569_v37  ;;  %3243 = vmatpush3.bf16.msra.mxu1 %v4652_v18 }
 0x736   :  { %1772 = vmatprep.subr.bf16.mxu0 %v4576_v25  ;;  %3244 = vmatprep.subr.bf16.mxu1 %v5291_v19 }
 0x739   :  { %1773 = vmatpush1.bf16.msra.mxu0 %v4581_v32  ;;  %3245 = vmatpush3.bf16.msra.mxu1 %v4668_v6 }
 0x73a   :  { %1774 = vmatprep.subr.bf16.mxu0 %v4588_v63  ;;  %3246 = vmatprep.subr.bf16.mxu1 %v5291_v19 }
 0x73b   :  { %1497 = vmatmul.mubr.bf16.gmra.mxu0 %v1274_v56 }
 0x73c   :  { %1506 = vmatprep.mubr.bf16.mxu0 %v5292_v21 }
 0x73d   :  { %1775 = vmatpush1.bf16.msra.mxu0 %v4593_v13  ;;  %3247 = vmatpush3.bf16.msra.mxu1 %v4674_v8 }
 0x73e   :  { %1776 = vmatprep.subr.bf16.mxu0 %v4600_v26  ;;  %3248 = vmatprep.subr.bf16.mxu1 %v5291_v19 }
 0x741   :  { %1777 = vmatpush1.bf16.msra.mxu0 %v4605_v11  ;;  %3249 = vmatpush3.bf16.msra.mxu1 %v4681_v33 }
 0x742   :  { %1778 = vmatprep.subr.bf16.mxu0 %v4612_v1  ;;  %3250 = vmatprep.subr.bf16.mxu1 %v5291_v19 }
 0x743   :  { %1507 = vmatmul.mubr.bf16.gmra.mxu0 %v1275_v52 }
 0x744   :  { %1516 = vmatprep.mubr.bf16.mxu0 %v5292_v21 }
 0x745   :  { %1779 = vmatpush1.bf16.msra.mxu0 %v4617_v59  ;;  %3251 = vmatpush3.bf16.msra.mxu1 %v4688_v34 }
 0x746   :  { %1780 = vmatprep.subr.bf16.mxu0 %v4624_v38  ;;  %3252 = vmatprep.subr.bf16.mxu1 %v5291_v19 }
 0x749   :  { %1781 = vmatpush1.bf16.msra.mxu0 %v4629_v53  ;;  %3253 = vmatpush3.bf16.msra.mxu1 %v4695_v15 }
 0x74a   :  { %1782 = vmatprep.subr.bf16.mxu0 %v4636_v55  ;;  %3254 = vmatprep.subr.bf16.mxu1 %v5291_v19 }
 0x74d   :  { %1783 = vmatpush1.bf16.msra.mxu0 %v4641_v0  ;;  %3255 = vmatpush3.bf16.msra.mxu1 %v4702_v16 }
 0x74e   :  { %1784 = vmatprep.subr.bf16.mxu0 %v4646_v47  ;;  %3256 = vmatprep.subr.bf16.mxu1 %v5291_v19 }
 0x751   :  { %1785 = vmatpush1.bf16.msra.mxu0 %v4658_v3  ;;  %3257 = vmatpush3.bf16.msra.mxu1 %v4709_v41 }
 0x752   :  { %1873 = vmatprep.subr.bf16.mxu0 %v4564_v44  ;;  %3262 = vmatprep.subr.bf16.mxu1 %v5291_v19 }
 0x7d3   :  { %v1204_v35 = vpop.f32.mrf.mxu0  ;;  %v1245_v17 = vpop.f32.mrf.mxu1 }
 0x7d4   :  { %v1205_v22 = vadd.f32 %v1204_v35, %v4094_v30  ;;  %v1246_v14 = vadd.f32 %v1245_v17, %v4129_v54  ;;  %v4725_v54 = vld [vmem:[%s5264_s1 + $0x8] sm:$0xff] }
 0x7d5   :  { %v1206_v39 = vpop.f32.mrf.mxu0  ;;  %v3216_v23 = vpop.f32.mrf.mxu1  ;;  %v1625_v50 = vpack.c.bf16 %v4725_v54, %v4725_v54 }
 0x7d6   :  { %v1251_v42 = vadd.f32 %v1205_v22, %v5294_v24  ;;  %v1207_v43 = vadd.f32 %v1206_v39, %v4109_v31 }
 0x7d7   :  { %v1208_v7 = vpop.f32.mrf.mxu0  ;;  %v1248_v4 = vpop.f32.mrf.mxu1 }
 0x7d8   :  { %v2797_v61 = vmul.f32 -1.442695, %v1251_v42  ;;  %v1258_v58 = vadd.f32 %v1207_v43, %v5295_v57 }
 0x7d9   :  { %v1209_v40 = vpop.f32.mrf.mxu0  ;;  %v3217_v10 = vpop.f32.mrf.mxu1 }
 0x7da   :  { %3611 = vpow2.f32 %v2797_v61  ;;  %v2798_v28 = vmul.f32 -1.442695, %v1258_v58  ;;  %v1309_v58 = vld [vmem:[%s5269_s8] sm:$0x7] }
 0x7dc   :  { %3613 = vpow2.f32 %v2798_v28 }
 0x7e7   :  { %v3612_v45 = vpop.eup %3611 }
 0x7e8   :  { %v1255_v27 = vadd.f32 1.0, %v3612_v45 }
 0x7e9   :  { %v3614_v30 = vpop.eup %3613 }
 0x7ea   :  { %3615 = vrcp.f32 %v1255_v27  ;;  %v1262_v5 = vadd.f32 1.0, %v3614_v30  ;;  %v1624_v27 = vld [vmem:[%s5270_s9] sm:$0x7] }
 0x7ec   :  { %3617 = vrcp.f32 %v1262_v5 }
 0x7f3   :  { %v4779_v23 = vpop.f32.mrf.mxu1 }
 0x7f5   :  { %v1561_v42 = vpop.f32.mrf.mxu1 }
 0x7f7   :  { %v3616_v2 = vpop.eup %3615  ;;  %v4785_v4 = vpop.f32.mrf.mxu1 }
 0x7f8   :  { %v1265_v9 = vmul.f32 %v3616_v2, %v1246_v14  ;;  %v5305_v14 = vld [vmem:[#allocation2_spill] sm:$0xff] }
 0x7f9   :  { %v3618_v31 = vpop.eup %3617  ;;  %v4789_v43 = vpop.f32.mrf.mxu1  ;;  %v4812_v2 = vrot.slane %v1309_v58, %v5305_v14 }
 0x7fa   :  { %v1266_v12 = vadd.f32 %v1265_v9, %v5296_v20  ;;  %v1268_v36 = vsub.f32 1.0, %v3618_v31  ;;  %v1270_v46 = vmul.f32 %v3618_v31, %v4480_v29  ;;  %v4815_v9 = vrot.slane %v1624_v27, %v5305_v14 }
 0x7fc   :  { %3619 = vtanh.f32 %v1266_v12 }
 0x809   :  { %v3620_v62 = vpop.eup %3619 }
 0x80a   :  { %v1269_v60 = vmul.f32 %v3620_v62, %v1268_v36 }
 0x80c   :  { %v1271_v48 = vadd.f32 %v1270_v46, %v1269_v60  ;;  %v5308_v46 = vld [vmem:[#allocation3_spill] sm:$0xff] }
 0x80e   :  { %v1276_v49 = vpack.c.bf16 %v1271_v48, %v4480_v29  ;;  %v1488_v29 = vpop.f32.mrf.mxu0  ;;  %v4824_v48 = vrot.slane %v1624_v27, %v5308_v46 }
 0x80f   :  { %v1489_v62 = vadd.f32 %v1488_v29, %v4812_v2 }
 0x810   :  { %1517 = vmatmul.mubr.bf16.gmra.mxu0 %v1276_v49  ;;  %3239 = vmatmul.mubr.bf16.gmra.mxu1 %v1276_v49  ;;  %v1490_v51 = vpop.f32.mrf.mxu0 }
 0x811   :  { %1802 = vmatprep.mubr.bf16.mxu0 %v5292_v21  ;;  %3258 = vmatprep.mubr.msk.bf16.mxu1 %vm3744_vm1, %v5291_v19 }
 0x812   :  { %v4767_v56 = vpop.f32.mrf.mxu0 }
 0x814   :  { %v4769_v52 = vpop.f32.mrf.mxu0 }
 0x816   :  { %v4771_v35 = vpop.f32.mrf.mxu0 }
 0x818   :  { %1803 = vmatmul.mubr.bf16.vlgmr.msra.gmra.mxu0 %v1625_v50  ;;  %3259 = vmatmul.mubr.bf16.vlgmr.msra.gmra.mxu1 %v1625_v50  ;;  %v4773_v17 = vpop.f32.mrf.mxu0 }
 0x819   :  { %1874 = vmatpush1.bf16.msra.mxu0 %v4569_v37  ;;  %3263 = vmatpush3.bf16.msra.mxu1 %v4652_v18 }
 0x81a   :  { %1875 = vmatprep.subr.bf16.mxu0 %v4576_v25  ;;  %3264 = vmatprep.subr.bf16.mxu1 %v5291_v19  ;;  %v4775_v22 = vpop.f32.mrf.mxu0 }
 0x81b   :  { %1905 = vmatprep.mubr.bf16.mxu0 %v5292_v21  ;;  %3278 = vmatprep.mubr.msk.bf16.mxu1 %vm3744_vm1, %v5291_v19 }
 0x81c   :  { %v4777_v39 = vpop.f32.mrf.mxu0 }
 0x81d   :  { %1876 = vmatpush1.bf16.msra.mxu0 %v4581_v32  ;;  %3265 = vmatpush3.bf16.msra.mxu1 %v4668_v6 }
 0x81e   :  { %1877 = vmatprep.subr.bf16.mxu0 %v4588_v63  ;;  %3266 = vmatprep.subr.bf16.mxu1 %v5291_v19  ;;  %v4781_v24 = vpop.f32.mrf.mxu0 }
 0x820   :  { %v4783_v7 = vpop.f32.mrf.mxu0 }
 0x821   :  { %1878 = vmatpush1.bf16.msra.mxu0 %v4593_v13  ;;  %3267 = vmatpush3.bf16.msra.mxu1 %v4674_v8 }
 0x822   :  { %1879 = vmatprep.subr.bf16.mxu0 %v4600_v26  ;;  %3268 = vmatprep.subr.bf16.mxu1 %v5291_v19  ;;  %v4787_v61 = vpop.f32.mrf.mxu0 }
 0x823   :  { %5297 = vst [vmem:[#allocation7_spill] sm:$0xff] %v4787_v61 }
 0x824   :  { %v4791_v40 = vpop.f32.mrf.mxu0 }
 0x825   :  { %1880 = vmatpush1.bf16.msra.mxu0 %v4605_v11  ;;  %3269 = vmatpush3.bf16.msra.mxu1 %v4681_v33  ;;  %5298 = vst [vmem:[#allocation5_spill] sm:$0xff] %v4791_v40 }
 0x826   :  { %1881 = vmatprep.subr.bf16.mxu0 %v4612_v1  ;;  %3270 = vmatprep.subr.bf16.mxu1 %v5291_v19 }
 0x829   :  { %1882 = vmatpush1.bf16.msra.mxu0 %v4617_v59  ;;  %3271 = vmatpush3.bf16.msra.mxu1 %v4688_v34 }
 0x82a   :  { %1883 = vmatprep.subr.bf16.mxu0 %v4624_v38  ;;  %3272 = vmatprep.subr.bf16.mxu1 %v5291_v19 }
 0x82d   :  { %1884 = vmatpush1.bf16.msra.mxu0 %v4629_v53  ;;  %3273 = vmatpush3.bf16.msra.mxu1 %v4695_v15 }
 0x82e   :  { %1885 = vmatprep.subr.bf16.mxu0 %v4636_v55  ;;  %3274 = vmatprep.subr.bf16.mxu1 %v5291_v19 }
 0x831   :  { %1886 = vmatpush1.bf16.msra.mxu0 %v4641_v0  ;;  %3275 = vmatpush3.bf16.msra.mxu1 %v4702_v16 }
 0x832   :  { %1887 = vmatprep.subr.bf16.mxu0 %v4646_v47  ;;  %3276 = vmatprep.subr.bf16.mxu1 %v5291_v19 }
 0x835   :  { %1888 = vmatpush1.bf16.msra.mxu0 %v4658_v3  ;;  %3277 = vmatpush3.bf16.msra.mxu1 %v4709_v41 }
 0x836   :  { %1976 = vmatprep.subr.bf16.mxu0 %v4564_v44  ;;  %3282 = vmatprep.subr.bf16.mxu1 %v5291_v19 }
 0x8d0   :  { %v4793_v10 = vpop.f32.mrf.mxu0  ;;  %v4795_v57 = vpop.f32.mrf.mxu1 }
 0x8d1   :  { %5299 = vst [vmem:[#allocation6_spill] sm:$0xff] %v4793_v10  ;;  %5300 = vst [vmem:[#allocation8_spill] sm:$0xff] %v4795_v57 }
 0x8d2   :  { %v4800_v28 = vpop.f32.mrf.mxu0  ;;  %v4802_v45 = vpop.f32.mrf.mxu1 }
 0x8d3   :  { %5301 = vst [vmem:[#allocation9_spill] sm:$0xff] %v4800_v28  ;;  %5302 = vst [vmem:[#allocation10_spill] sm:$0xff] %v4802_v45 }
 0x8d4   :  { %v4807_v30 = vpop.f32.mrf.mxu0  ;;  %v4809_v5 = vpop.f32.mrf.mxu1 }
 0x8d5   :  { %5303 = vst [vmem:[#allocation11_spill] sm:$0xff] %v4807_v30  ;;  %5304 = vst [vmem:[#allocation12_spill] sm:$0xff] %v4809_v5  ;;  %v4827_v5 = vrot.slane %v1309_v58, %v5308_v46 }
 0x8d6   :  { %v4817_v20 = vpop.f32.mrf.mxu0  ;;  %v4819_v12 = vpop.f32.mrf.mxu1 }
 0x8d7   :  { %5306 = vst [vmem:[#allocation2_spill] sm:$0xff] %v4817_v20  ;;  %5307 = vst [vmem:[#allocation13_spill] sm:$0xff] %v4819_v12  ;;  %v1491_v29 = vadd.f32 %v1490_v51, %v4827_v5 }
 0x8d8   :  { %v1804_v31 = vpop.f32.mrf.mxu0  ;;  %v1845_v36 = vpop.f32.mrf.mxu1 }
 0x8d9   :  { %v1805_v60 = vadd.f32 %v1804_v31, %v4815_v9 }
 0x8da   :  { %v1806_v49 = vpop.f32.mrf.mxu0  ;;  %v3260_v50 = vpop.f32.mrf.mxu1 }
 0x8db   :  { %v1851_v14 = vadd.f32 %v1805_v60, %v1489_v62  ;;  %v1807_v28 = vadd.f32 %v1806_v49, %v4824_v48  ;;  %v5309_v50 = vld [vmem:[#allocation4_spill] sm:$0xff] }
 0x8dc   :  { %v1808_v30 = vpop.f32.mrf.mxu0  ;;  %v1848_v57 = vpop.f32.mrf.mxu1  ;;  %v4832_v46 = vrot.slane %v1624_v27, %v5309_v50  ;;  %v4836_v60 = vrot.slane %v1309_v58, %v5309_v50  ;;  %v1493_v58 = vadd.f32 %v4767_v56, %v4812_v2 }
 0x8dd   :  { %v2847_v20 = vmul.f32 -1.442695, %v1851_v14  ;;  %v1858_v31 = vadd.f32 %v1807_v28, %v1491_v29 }
 0x8de   :  { %v1809_v10 = vpop.f32.mrf.mxu0  ;;  %v3261_v12 = vpop.f32.mrf.mxu1  ;;  %v1846_v57 = vadd.f32 %v1845_v36, %v4832_v46  ;;  %v1562_v51 = vadd.f32 %v1561_v42, %v4836_v60 }
 0x8df   :  { %3621 = vpow2.f32 %v2847_v20  ;;  %v2848_v40 = vmul.f32 -1.442695, %v1858_v31 }
 0x8e1   :  { %3623 = vpow2.f32 %v2848_v40 }
 0x8ec   :  { %v3622_v61 = vpop.eup %3621 }
 0x8ed   :  { %v1855_v45 = vadd.f32 1.0, %v3622_v61 }
 0x8ee   :  { %v3624_v62 = vpop.eup %3623 }
 0x8ef   :  { %3625 = vrcp.f32 %v1855_v45  ;;  %v1862_v30 = vadd.f32 1.0, %v3624_v62 }
 0x8f1   :  { %3627 = vrcp.f32 %v1862_v30 }
 0x8fc   :  { %v3626_v10 = vpop.eup %3625 }
 0x8fd   :  { %v1865_v28 = vmul.f32 %v3626_v10, %v1846_v57 }
 0x8fe   :  { %v3628_v40 = vpop.eup %3627 }
 0x8ff   :  { %v1866_v20 = vadd.f32 %v1865_v28, %v1562_v51  ;;  %v1868_v61 = vsub.f32 1.0, %v3628_v40  ;;  %v1870_v27 = vmul.f32 %v3628_v40, %v4725_v54 }
 0x901   :  { %3629 = vtanh.f32 %v1866_v20  ;;  %v1495_v20 = vadd.f32 %v4769_v52, %v4827_v5 }
 0x90e   :  { %v3630_v45 = vpop.eup %3629 }
 0x90f   :  { %v1869_v12 = vmul.f32 %v3630_v45, %v1868_v61 }
 0x911   :  { %v4840_v49 = vadd.f32 %v1870_v27, %v1869_v12 }
 0x913   :  { %v1872_v36 = vpack.c.bf16 %v4840_v49, %v4840_v49 }
 0x915   :  { %1906 = vmatmul.mubr.bf16.vlgmr.msra.gmra.mxu0 %v1872_v36  ;;  %3279 = vmatmul.mubr.bf16.vlgmr.msra.gmra.mxu1 %v1872_v36 }
 0x916   :  { %1977 = vmatpush1.bf16.msra.mxu0 %v4569_v37  ;;  %3283 = vmatpush3.bf16.msra.mxu1 %v4652_v18 }
 0x917   :  { %1978 = vmatprep.subr.bf16.mxu0 %v4576_v25  ;;  %3284 = vmatprep.subr.bf16.mxu1 %v5291_v19 }
 0x918   :  { %2008 = vmatprep.mubr.bf16.mxu0 %v5292_v21  ;;  %3298 = vmatprep.mubr.msk.bf16.mxu1 %vm3744_vm1, %v5291_v19 }
 0x91a   :  { %1979 = vmatpush1.bf16.msra.mxu0 %v4581_v32  ;;  %3285 = vmatpush3.bf16.msra.mxu1 %v4668_v6 }
 0x91b   :  { %1980 = vmatprep.subr.bf16.mxu0 %v4588_v63  ;;  %3286 = vmatprep.subr.bf16.mxu1 %v5291_v19 }
 0x91e   :  { %1981 = vmatpush1.bf16.msra.mxu0 %v4593_v13  ;;  %3287 = vmatpush3.bf16.msra.mxu1 %v4674_v8 }
 0x91f   :  { %1982 = vmatprep.subr.bf16.mxu0 %v4600_v26  ;;  %3288 = vmatprep.subr.bf16.mxu1 %v5291_v19 }
 0x922   :  { %1983 = vmatpush1.bf16.msra.mxu0 %v4605_v11  ;;  %3289 = vmatpush3.bf16.msra.mxu1 %v4681_v33 }
 0x923   :  { %1984 = vmatprep.subr.bf16.mxu0 %v4612_v1  ;;  %3290 = vmatprep.subr.bf16.mxu1 %v5291_v19 }
 0x926   :  { %1985 = vmatpush1.bf16.msra.mxu0 %v4617_v59  ;;  %3291 = vmatpush3.bf16.msra.mxu1 %v4688_v34 }
 0x927   :  { %1986 = vmatprep.subr.bf16.mxu0 %v4624_v38  ;;  %3292 = vmatprep.subr.bf16.mxu1 %v5291_v19 }
 0x92a   :  { %1987 = vmatpush1.bf16.msra.mxu0 %v4629_v53  ;;  %3293 = vmatpush3.bf16.msra.mxu1 %v4695_v15 }
 0x92b   :  { %1988 = vmatprep.subr.bf16.mxu0 %v4636_v55  ;;  %3294 = vmatprep.subr.bf16.mxu1 %v5291_v19 }
 0x92e   :  { %1989 = vmatpush1.bf16.msra.mxu0 %v4641_v0  ;;  %3295 = vmatpush3.bf16.msra.mxu1 %v4702_v16 }
 0x92f   :  { %1990 = vmatprep.subr.bf16.mxu0 %v4646_v47  ;;  %3296 = vmatprep.subr.bf16.mxu1 %v5291_v19 }
 0x932   :  { %1991 = vmatpush1.bf16.msra.mxu0 %v4658_v3  ;;  %3297 = vmatpush3.bf16.msra.mxu1 %v4709_v41 }
 0x933   :  { %2079 = vmatprep.subr.bf16.mxu0 %v4564_v44  ;;  %3302 = vmatprep.subr.bf16.mxu1 %v5291_v19 }
 0x9d5   :  { %v1907_v54 = vpop.f32.mrf.mxu0  ;;  %v1948_v42 = vpop.f32.mrf.mxu1 }
 0x9d6   :  { %v1908_v14 = vadd.f32 %v1907_v54, %v4815_v9  ;;  %v1949_v36 = vadd.f32 %v1948_v42, %v4832_v46 }
 0x9d7   :  { %v1909_v29 = vpop.f32.mrf.mxu0  ;;  %v3280_v31 = vpop.f32.mrf.mxu1 }
 0x9d8   :  { %v1954_v50 = vadd.f32 %v1908_v14, %v1493_v58  ;;  %v1910_v10 = vadd.f32 %v1909_v29, %v4824_v48  ;;  %v1565_v58 = vadd.f32 %v4789_v43, %v4836_v60 }
 0x9d9   :  { %v1911_v62 = vpop.f32.mrf.mxu0  ;;  %v1951_v30 = vpop.f32.mrf.mxu1 }
 0x9da   :  { %v2849_v57 = vmul.f32 -1.442695, %v1954_v50  ;;  %v1961_v40 = vadd.f32 %v1910_v10, %v1495_v20 }
 0x9db   :  { %v1912_v51 = vpop.f32.mrf.mxu0  ;;  %v3281_v28 = vpop.f32.mrf.mxu1 }
 0x9dc   :  { %3631 = vpow2.f32 %v2849_v57  ;;  %v2850_v61 = vmul.f32 -1.442695, %v1961_v40  ;;  %v1499_v51 = vadd.f32 %v4771_v35, %v4812_v2 }
 0x9de   :  { %3633 = vpow2.f32 %v2850_v61 }
 0x9e9   :  { %v3632_v56 = vpop.eup %3631 }
 0x9ea   :  { %v1958_v45 = vadd.f32 1.0, %v3632_v56 }
 0x9eb   :  { %v3634_v12 = vpop.eup %3633 }
 0x9ec   :  { %3635 = vrcp.f32 %v1958_v45  ;;  %v1965_v27 = vadd.f32 1.0, %v3634_v12 }
 0x9ee   :  { %3637 = vrcp.f32 %v1965_v27 }
 0x9f9   :  { %v3636_v54 = vpop.eup %3635 }
 0x9fa   :  { %v1968_v14 = vmul.f32 %v3636_v54, %v1949_v36 }
 0x9fb   :  { %v3638_v52 = vpop.eup %3637 }
 0x9fc   :  { %v1969_v29 = vadd.f32 %v1968_v14, %v1565_v58  ;;  %v1971_v31 = vsub.f32 1.0, %v3638_v52  ;;  %v1973_v30 = vmul.f32 %v3638_v52, %v4840_v49  ;;  %v1501_v58 = vadd.f32 %v4773_v17, %v4827_v5 }
 0x9fe   :  { %3639 = vtanh.f32 %v1969_v29 }
 0xa0b   :  { %v3640_v50 = vpop.eup %3639 }
 0xa0c   :  { %v1972_v62 = vmul.f32 %v3640_v50, %v1971_v31 }
 0xa0e   :  { %v4889_v57 = vadd.f32 %v1973_v30, %v1972_v62 }
 0xa10   :  { %v1975_v10 = vpack.c.bf16 %v4889_v57, %v4889_v57 }
 0xa12   :  { %2009 = vmatmul.mubr.bf16.vlgmr.msra.gmra.mxu0 %v1975_v10  ;;  %3299 = vmatmul.mubr.bf16.vlgmr.msra.gmra.mxu1 %v1975_v10  ;;  %v1570_v10 = vadd.f32 %v4779_v23, %v4836_v60 }
 0xa13   :  { %2080 = vmatpush1.bf16.msra.mxu0 %v4569_v37  ;;  %3303 = vmatpush3.bf16.msra.mxu1 %v4652_v18 }
 0xa14   :  { %2081 = vmatprep.subr.bf16.mxu0 %v4576_v25  ;;  %3304 = vmatprep.subr.bf16.mxu1 %v5291_v19 }
 0xa15   :  { %2111 = vmatprep.mubr.bf16.mxu0 %v5292_v21  ;;  %3318 = vmatprep.mubr.msk.bf16.mxu1 %vm3744_vm1, %v5291_v19 }
 0xa17   :  { %2082 = vmatpush1.bf16.msra.mxu0 %v4581_v32  ;;  %3305 = vmatpush3.bf16.msra.mxu1 %v4668_v6 }
 0xa18   :  { %2083 = vmatprep.subr.bf16.mxu0 %v4588_v63  ;;  %3306 = vmatprep.subr.bf16.mxu1 %v5291_v19 }
 0xa1b   :  { %2084 = vmatpush1.bf16.msra.mxu0 %v4593_v13  ;;  %3307 = vmatpush3.bf16.msra.mxu1 %v4674_v8 }
 0xa1c   :  { %2085 = vmatprep.subr.bf16.mxu0 %v4600_v26  ;;  %3308 = vmatprep.subr.bf16.mxu1 %v5291_v19 }
 0xa1f   :  { %2086 = vmatpush1.bf16.msra.mxu0 %v4605_v11  ;;  %3309 = vmatpush3.bf16.msra.mxu1 %v4681_v33 }
 0xa20   :  { %2087 = vmatprep.subr.bf16.mxu0 %v4612_v1  ;;  %3310 = vmatprep.subr.bf16.mxu1 %v5291_v19 }
 0xa23   :  { %2088 = vmatpush1.bf16.msra.mxu0 %v4617_v59  ;;  %3311 = vmatpush3.bf16.msra.mxu1 %v4688_v34 }
 0xa24   :  { %2089 = vmatprep.subr.bf16.mxu0 %v4624_v38  ;;  %3312 = vmatprep.subr.bf16.mxu1 %v5291_v19 }
 0xa27   :  { %2090 = vmatpush1.bf16.msra.mxu0 %v4629_v53  ;;  %3313 = vmatpush3.bf16.msra.mxu1 %v4695_v15 }
 0xa28   :  { %2091 = vmatprep.subr.bf16.mxu0 %v4636_v55  ;;  %3314 = vmatprep.subr.bf16.mxu1 %v5291_v19 }
 0xa2b   :  { %2092 = vmatpush1.bf16.msra.mxu0 %v4641_v0  ;;  %3315 = vmatpush3.bf16.msra.mxu1 %v4702_v16 }
 0xa2c   :  { %2093 = vmatprep.subr.bf16.mxu0 %v4646_v47  ;;  %3316 = vmatprep.subr.bf16.mxu1 %v5291_v19 }
 0xa2f   :  { %2094 = vmatpush1.bf16.msra.mxu0 %v4658_v3  ;;  %3317 = vmatpush3.bf16.msra.mxu1 %v4709_v41 }
 0xa30   :  { %2182 = vmatprep.subr.bf16.mxu0 %v4564_v44  ;;  %3322 = vmatprep.subr.bf16.mxu1 %v5291_v19 }
 0xad2   :  { %v2010_v43 = vpop.f32.mrf.mxu0  ;;  %v2051_v42 = vpop.f32.mrf.mxu1 }
 0xad3   :  { %v2011_v28 = vadd.f32 %v2010_v43, %v4815_v9  ;;  %v2052_v62 = vadd.f32 %v2051_v42, %v4832_v46 }
 0xad4   :  { %v2012_v20 = vpop.f32.mrf.mxu0  ;;  %v3300_v40 = vpop.f32.mrf.mxu1 }
 0xad5   :  { %v2057_v61 = vadd.f32 %v2011_v28, %v1499_v51  ;;  %v2013_v27 = vadd.f32 %v2012_v20, %v4824_v48 }
 0xad6   :  { %v2014_v56 = vpop.f32.mrf.mxu0  ;;  %v2054_v45 = vpop.f32.mrf.mxu1 }
 0xad7   :  { %v2851_v12 = vmul.f32 -1.442695, %v2057_v61  ;;  %v2064_v14 = vadd.f32 %v2013_v27, %v1501_v58 }
 0xad8   :  { %v2015_v36 = vpop.f32.mrf.mxu0  ;;  %v3301_v54 = vpop.f32.mrf.mxu1 }
 0xad9   :  { %3641 = vpow2.f32 %v2851_v12  ;;  %v2852_v29 = vmul.f32 -1.442695, %v2064_v14  ;;  %v1503_v12 = vadd.f32 %v4775_v22, %v4812_v2 }
 0xadb   :  { %3643 = vpow2.f32 %v2852_v29 }
 0xae6   :  { %v3642_v35 = vpop.eup %3641 }
 0xae7   :  { %v2061_v52 = vadd.f32 1.0, %v3642_v35 }
 0xae8   :  { %v3644_v31 = vpop.eup %3643 }
 0xae9   :  { %3645 = vrcp.f32 %v2061_v52  ;;  %v2068_v50 = vadd.f32 1.0, %v3644_v31 }
 0xaeb   :  { %3647 = vrcp.f32 %v2068_v50 }
 0xaf6   :  { %v3646_v30 = vpop.eup %3645 }
 0xaf7   :  { %v2071_v43 = vmul.f32 %v3646_v30, %v2052_v62  ;;  %v1505_v62 = vadd.f32 %v4777_v39, %v4827_v5 }
 0xaf8   :  { %v3648_v17 = vpop.eup %3647 }
 0xaf9   :  { %v2072_v51 = vadd.f32 %v2071_v43, %v1570_v10  ;;  %v2074_v28 = vsub.f32 1.0, %v3648_v17  ;;  %v2076_v61 = vmul.f32 %v3648_v17, %v4889_v57 }
 0xafb   :  { %3649 = vtanh.f32 %v2072_v51 }
 0xb08   :  { %v3650_v20 = vpop.eup %3649 }
 0xb09   :  { %v2075_v40 = vmul.f32 %v3650_v20, %v2074_v28 }
 0xb0b   :  { %v4938_v56 = vadd.f32 %v2076_v61, %v2075_v40  ;;  %v1573_v40 = vadd.f32 %v4785_v4, %v4836_v60 }
 0xb0d   :  { %v2078_v45 = vpack.c.bf16 %v4938_v56, %v4938_v56 }
 0xb0f   :  { %2112 = vmatmul.mubr.bf16.vlgmr.msra.gmra.mxu0 %v2078_v45  ;;  %3319 = vmatmul.mubr.bf16.vlgmr.msra.gmra.mxu1 %v2078_v45 }
 0xb10   :  { %2183 = vmatpush1.bf16.msra.mxu0 %v4569_v37  ;;  %3323 = vmatpush3.bf16.msra.mxu1 %v4652_v18 }
 0xb11   :  { %2184 = vmatprep.subr.bf16.mxu0 %v4576_v25  ;;  %3324 = vmatprep.subr.bf16.mxu1 %v5291_v19 }
 0xb12   :  { %2214 = vmatprep.mubr.bf16.mxu0 %v5292_v21  ;;  %3338 = vmatprep.mubr.msk.bf16.mxu1 %vm3744_vm1, %v5291_v19 }
 0xb14   :  { %2185 = vmatpush1.bf16.msra.mxu0 %v4581_v32  ;;  %3325 = vmatpush3.bf16.msra.mxu1 %v4668_v6 }
 0xb15   :  { %2186 = vmatprep.subr.bf16.mxu0 %v4588_v63  ;;  %3326 = vmatprep.subr.bf16.mxu1 %v5291_v19 }
 0xb18   :  { %2187 = vmatpush1.bf16.msra.mxu0 %v4593_v13  ;;  %3327 = vmatpush3.bf16.msra.mxu1 %v4674_v8 }
 0xb19   :  { %2188 = vmatprep.subr.bf16.mxu0 %v4600_v26  ;;  %3328 = vmatprep.subr.bf16.mxu1 %v5291_v19 }
 0xb1c   :  { %2189 = vmatpush1.bf16.msra.mxu0 %v4605_v11  ;;  %3329 = vmatpush3.bf16.msra.mxu1 %v4681_v33 }
 0xb1d   :  { %2190 = vmatprep.subr.bf16.mxu0 %v4612_v1  ;;  %3330 = vmatprep.subr.bf16.mxu1 %v5291_v19 }
 0xb20   :  { %2191 = vmatpush1.bf16.msra.mxu0 %v4617_v59  ;;  %3331 = vmatpush3.bf16.msra.mxu1 %v4688_v34 }
 0xb21   :  { %2192 = vmatprep.subr.bf16.mxu0 %v4624_v38  ;;  %3332 = vmatprep.subr.bf16.mxu1 %v5291_v19 }
 0xb24   :  { %2193 = vmatpush1.bf16.msra.mxu0 %v4629_v53  ;;  %3333 = vmatpush3.bf16.msra.mxu1 %v4695_v15 }
 0xb25   :  { %2194 = vmatprep.subr.bf16.mxu0 %v4636_v55  ;;  %3334 = vmatprep.subr.bf16.mxu1 %v5291_v19 }
 0xb28   :  { %2195 = vmatpush1.bf16.msra.mxu0 %v4641_v0  ;;  %3335 = vmatpush3.bf16.msra.mxu1 %v4702_v16 }
 0xb29   :  { %2196 = vmatprep.subr.bf16.mxu0 %v4646_v47  ;;  %3336 = vmatprep.subr.bf16.mxu1 %v5291_v19 }
 0xb2c   :  { %2197 = vmatpush1.bf16.msra.mxu0 %v4658_v3  ;;  %3337 = vmatpush3.bf16.msra.mxu1 %v4709_v41 }
 0xb2d   :  { %2285 = vmatprep.subr.bf16.mxu0 %v4564_v44  ;;  %3342 = vmatprep.subr.bf16.mxu1 %v5291_v19 }
 0xbcf   :  { %v2113_v23 = vpop.f32.mrf.mxu0  ;;  %v2154_v42 = vpop.f32.mrf.mxu1 }
 0xbd0   :  { %v2114_v27 = vadd.f32 %v2113_v23, %v4815_v9  ;;  %v2155_v28 = vadd.f32 %v2154_v42, %v4832_v46 }
 0xbd1   :  { %v2115_v36 = vpop.f32.mrf.mxu0  ;;  %v3320_v54 = vpop.f32.mrf.mxu1 }
 0xbd2   :  { %v2160_v58 = vadd.f32 %v2114_v27, %v1503_v12  ;;  %v2116_v52 = vadd.f32 %v2115_v36, %v4824_v48 }
 0xbd3   :  { %v2117_v14 = vpop.f32.mrf.mxu0  ;;  %v2157_v29 = vpop.f32.mrf.mxu1 }
 0xbd4   :  { %v2853_v35 = vmul.f32 -1.442695, %v2160_v58  ;;  %v2167_v30 = vadd.f32 %v2116_v52, %v1505_v62 }
 0xbd5   :  { %v2118_v31 = vpop.f32.mrf.mxu0  ;;  %v3321_v50 = vpop.f32.mrf.mxu1 }
 0xbd6   :  { %3651 = vpow2.f32 %v2853_v35  ;;  %v2854_v10 = vmul.f32 -1.442695, %v2167_v30 }
 0xbd8   :  { %3653 = vpow2.f32 %v2854_v10 }
 0xbe3   :  { %v3652_v22 = vpop.eup %3651 }
 0xbe4   :  { %v2164_v43 = vadd.f32 1.0, %v3652_v22 }
 0xbe5   :  { %v3654_v51 = vpop.eup %3653 }
 0xbe6   :  { %3655 = vrcp.f32 %v2164_v43  ;;  %v2171_v17 = vadd.f32 1.0, %v3654_v51 }
 0xbe8   :  { %3657 = vrcp.f32 %v2171_v17 }
 0xbf3   :  { %v3656_v20 = vpop.eup %3655 }
 0xbf4   :  { %v2174_v61 = vmul.f32 %v3656_v20, %v2155_v28 }
 0xbf5   :  { %v3658_v39 = vpop.eup %3657 }
 0xbf6   :  { %v2175_v45 = vadd.f32 %v2174_v61, %v1573_v40  ;;  %v2177_v23 = vsub.f32 1.0, %v3658_v39  ;;  %v2179_v36 = vmul.f32 %v3658_v39, %v4938_v56  ;;  %v5310_v40 = vld [vmem:[#allocation10_spill] sm:$0xff] }
 0xbf7   :  { %v1578_v61 = vadd.f32 %v5310_v40, %v4836_v60  ;;  %v3724_v40 = vld [vmem:[%s5268_s7 + $0x7c] ss:$12 sps:$4 sm:$0xff]  }
 0xbf8   :  { %3659 = vtanh.f32 %v2175_v45 }
 0xc05   :  { %v3660_v12 = vpop.eup %3659 }
 0xc06   :  { %v2178_v27 = vmul.f32 %v3660_v12, %v2177_v23 }
 0xc08   :  { %v4987_v54 = vadd.f32 %v2179_v36, %v2178_v27 }
 0xc0a   :  { %v2181_v58 = vpack.c.bf16 %v4987_v54, %v4987_v54 }
 0xc0c   :  { %2215 = vmatmul.mubr.bf16.vlgmr.msra.gmra.mxu0 %v2181_v58  ;;  %3339 = vmatmul.mubr.bf16.vlgmr.msra.gmra.mxu1 %v2181_v58 }
 0xc0d   :  { %2286 = vmatpush1.bf16.msra.mxu0 %v4569_v37  ;;  %3343 = vmatpush3.bf16.msra.mxu1 %v4652_v18 }
 0xc0e   :  { %2287 = vmatprep.subr.bf16.mxu0 %v4576_v25  ;;  %3344 = vmatprep.subr.bf16.mxu1 %v5291_v19 }
 0xc0f   :  { %2317 = vmatprep.mubr.bf16.mxu0 %v5292_v21  ;;  %3358 = vmatprep.mubr.msk.bf16.mxu1 %vm3744_vm1, %v5291_v19 }
 0xc11   :  { %2288 = vmatpush1.bf16.msra.mxu0 %v4581_v32  ;;  %3345 = vmatpush3.bf16.msra.mxu1 %v4668_v6  ;;  %v1509_v32 = vadd.f32 %v4781_v24, %v4812_v2 }
 0xc12   :  { %2289 = vmatprep.subr.bf16.mxu0 %v4588_v63  ;;  %3346 = vmatprep.subr.bf16.mxu1 %v5291_v19 }
 0xc15   :  { %2290 = vmatpush1.bf16.msra.mxu0 %v4593_v13  ;;  %3347 = vmatpush3.bf16.msra.mxu1 %v4674_v8 }
 0xc16   :  { %2291 = vmatprep.subr.bf16.mxu0 %v4600_v26  ;;  %3348 = vmatprep.subr.bf16.mxu1 %v5291_v19 }
 0xc19   :  { %2292 = vmatpush1.bf16.msra.mxu0 %v4605_v11  ;;  %3349 = vmatpush3.bf16.msra.mxu1 %v4681_v33 }
 0xc1a   :  { %2293 = vmatprep.subr.bf16.mxu0 %v4612_v1  ;;  %3350 = vmatprep.subr.bf16.mxu1 %v5291_v19 }
 0xc1d   :  { %2294 = vmatpush1.bf16.msra.mxu0 %v4617_v59  ;;  %3351 = vmatpush3.bf16.msra.mxu1 %v4688_v34 }
 0xc1e   :  { %2295 = vmatprep.subr.bf16.mxu0 %v4624_v38  ;;  %3352 = vmatprep.subr.bf16.mxu1 %v5291_v19 }
 0xc21   :  { %2296 = vmatpush1.bf16.msra.mxu0 %v4629_v53  ;;  %3353 = vmatpush3.bf16.msra.mxu1 %v4695_v15 }
 0xc22   :  { %2297 = vmatprep.subr.bf16.mxu0 %v4636_v55  ;;  %3354 = vmatprep.subr.bf16.mxu1 %v5291_v19 }
 0xc25   :  { %2298 = vmatpush1.bf16.msra.mxu0 %v4641_v0  ;;  %3355 = vmatpush3.bf16.msra.mxu1 %v4702_v16 }
 0xc26   :  { %2299 = vmatprep.subr.bf16.mxu0 %v4646_v47  ;;  %3356 = vmatprep.subr.bf16.mxu1 %v5291_v19 }
 0xc29   :  { %2300 = vmatpush1.bf16.msra.mxu0 %v4658_v3  ;;  %3357 = vmatpush3.bf16.msra.mxu1 %v4709_v41 }
 0xc2a   :  { %2388 = vmatprep.subr.bf16.mxu0 %v4564_v44  ;;  %3362 = vmatprep.subr.bf16.mxu1 %v5291_v19  ;;  %v1511_v44 = vadd.f32 %v4783_v7, %v4827_v5 }
 0xccc   :  { %v2216_v37 = vpop.f32.mrf.mxu0  ;;  %v2257_v25 = vpop.f32.mrf.mxu1 }
 0xccd   :  { %v2217_v4 = vadd.f32 %v2216_v37, %v4815_v9  ;;  %v2258_v28 = vadd.f32 %v2257_v25, %v4832_v46  ;;  %v5043_v25 = vld [vmem:[%s5268_s7 + $0xa8] ss:$12 sps:$4 sm:$0xff]  }
 0xcce   :  { %v2218_v42 = vpop.f32.mrf.mxu0  ;;  %v3340_v14 = vpop.f32.mrf.mxu1 }
 0xccf   :  { %v2263_v29 = vadd.f32 %v2217_v4, %v1509_v32  ;;  %v2219_v50 = vadd.f32 %v2218_v42, %v4824_v48  ;;  %v5050_v32 = vld [vmem:[%s5268_s7 + $0x94] ss:$12 sps:$4 sm:$0xff]   ;;  %v5060_v4 = vld [vmem:[%s5268_s7 + $0x90] ss:$12 sps:$4 sm:$0xff]  }
 0xcd0   :  { %v2220_v35 = vpop.f32.mrf.mxu0  ;;  %v2260_v52 = vpop.f32.mrf.mxu1 }
 0xcd1   :  { %v2855_v31 = vmul.f32 -1.442695, %v2263_v29  ;;  %v2270_v10 = vadd.f32 %v2219_v50, %v1511_v44 }
 0xcd2   :  { %v2221_v62 = vpop.f32.mrf.mxu0  ;;  %v3341_v30 = vpop.f32.mrf.mxu1 }
 0xcd3   :  { %3661 = vpow2.f32 %v2855_v31  ;;  %v2856_v22 = vmul.f32 -1.442695, %v2270_v10  ;;  %v5313_v31 = vld [vmem:[#allocation13_spill] sm:$0xff] }
 0xcd4   :  { %v1581_v50 = vadd.f32 %v5313_v31, %v4836_v60 }
 0xcd5   :  { %3663 = vpow2.f32 %v2856_v22 }
 0xce0   :  { %v3662_v24 = vpop.eup %3661 }
 0xce1   :  { %v2267_v43 = vadd.f32 1.0, %v3662_v24 }
 0xce2   :  { %v3664_v51 = vpop.eup %3663 }
 0xce3   :  { %3665 = vrcp.f32 %v2267_v43  ;;  %v2274_v17 = vadd.f32 1.0, %v3664_v51 }
 0xce5   :  { %3667 = vrcp.f32 %v2274_v17 }
 0xcf0   :  { %v3666_v20 = vpop.eup %3665 }
 0xcf1   :  { %v2277_v45 = vmul.f32 %v3666_v20, %v2258_v28  ;;  %v3722_v28 = vld [vmem:[%s5268_s7 + $0xb0] ss:$12 sps:$4 sm:$0xff]   ;;  %v3723_v20 = vld [vmem:[%s5268_s7 + $0x98] ss:$12 sps:$4 sm:$0xff]  }
 0xcf2   :  { %v3668_v7 = vpop.eup %3667 }
 0xcf3   :  { %v2278_v39 = vadd.f32 %v2277_v45, %v1578_v61  ;;  %v2280_v23 = vsub.f32 1.0, %v3668_v7  ;;  %v2282_v36 = vmul.f32 %v3668_v7, %v4987_v54  ;;  %v3726_v61 = vld [vmem:[%s5268_s7 + $0x80] ss:$12 sps:$4 sm:$0xff]   ;;  %v3727_v45 = vld [vmem:[%s5268_s7 + $0x64] ss:$12 sps:$4 sm:$0xff]  }
 0xcf4   :  { %v3729_v7 = vld [vmem:[%s5268_s7 + $0x68] ss:$12 sps:$4 sm:$0xff]  }
 0xcf5   :  { %3669 = vtanh.f32 %v2278_v39  ;;  %v3728_v39 = vld [vmem:[%s5268_s7 + $0x60] ss:$12 sps:$4 sm:$0xff]  }
 0xd02   :  { %v3670_v12 = vpop.eup %3669 }
 0xd03   :  { %v2281_v27 = vmul.f32 %v3670_v12, %v2280_v23  ;;  %v3730_v23 = vld [vmem:[%s5268_s7 + $0x4c] ss:$12 sps:$4 sm:$0xff]   ;;  %v3731_v12 = vld [vmem:[%s5268_s7 + $0x48] ss:$12 sps:$4 sm:$0xff]  }
 0xd05   :  { %v5036_v58 = vadd.f32 %v2282_v36, %v2281_v27  ;;  %v3732_v27 = vld [vmem:[%s5268_s7 + $0x50] ss:$12 sps:$4 sm:$0xff]   ;;  %v3733_v36 = vld [vmem:[%s5268_s7 + $0x34] ss:$12 sps:$4 sm:$0xff]  }
 0xd07   :  { %v2284_v37 = vpack.c.bf16 %v5036_v58, %v5036_v58 }
 0xd09   :  { %2318 = vmatmul.mubr.bf16.vlgmr.msra.gmra.mxu0 %v2284_v37  ;;  %3359 = vmatmul.mubr.bf16.vlgmr.msra.gmra.mxu1 %v2284_v37  ;;  %v3734_v37 = vld [vmem:[%s5268_s7 + $0x30] ss:$12 sps:$4 sm:$0xff]  }
 0xd0a   :  { %2389 = vmatpush1.bf16.msra.mxu0 %v5043_v25  ;;  %3363 = vmatpush3.bf16.msra.mxu1 %v4652_v18 }
 0xd0b   :  { %2390 = vmatprep.subr.bf16.mxu0 %v5050_v32  ;;  %3364 = vmatprep.subr.bf16.mxu1 %v5291_v19 }
 0xd0c   :  { %2420 = vmatprep.mubr.bf16.mxu0 %v5292_v21  ;;  %3378 = vmatprep.mubr.msk.bf16.mxu1 %vm3744_vm1, %v5291_v19 }
 0xd0e   :  { %2391 = vmatpush1.bf16.msra.mxu0 %v5060_v4  ;;  %3365 = vmatpush3.bf16.msra.mxu1 %v4668_v6 }
 0xd0f   :  { %2392 = vmatprep.subr.bf16.mxu0 %v4588_v63  ;;  %3366 = vmatprep.subr.bf16.mxu1 %v5291_v19  ;;  %v3721_v63 = vld [vmem:[%s5268_s7 + $0xac] ss:$12 sps:$4 sm:$0xff]  }
 0xd12   :  { %2393 = vmatpush1.bf16.msra.mxu0 %v4593_v13  ;;  %3367 = vmatpush3.bf16.msra.mxu1 %v4674_v8 }
 0xd13   :  { %2394 = vmatprep.subr.bf16.mxu0 %v4600_v26  ;;  %3368 = vmatprep.subr.bf16.mxu1 %v5291_v19 }
 0xd16   :  { %2395 = vmatpush1.bf16.msra.mxu0 %v4605_v11  ;;  %3369 = vmatpush3.bf16.msra.mxu1 %v4681_v33  ;;  %v5311_v11 = vld [vmem:[#allocation7_spill] sm:$0xff]  ;;  %v5312_v33 = vld [vmem:[#allocation5_spill] sm:$0xff] }
 0xd17   :  { %2396 = vmatprep.subr.bf16.mxu0 %v4612_v1  ;;  %3370 = vmatprep.subr.bf16.mxu1 %v5291_v19  ;;  %v1513_v1 = vadd.f32 %v5311_v11, %v4812_v2  ;;  %v3741_v11 = vld [vmem:[%s5268_s7 + $0x8] ss:$12 sps:$4 sm:$0xff]  }
 0xd1a   :  { %2397 = vmatpush1.bf16.msra.mxu0 %v4617_v59  ;;  %3371 = vmatpush3.bf16.msra.mxu1 %v4688_v34  ;;  %v1515_v34 = vadd.f32 %v5312_v33, %v4827_v5 }
 0xd1b   :  { %2398 = vmatprep.subr.bf16.mxu0 %v4624_v38  ;;  %3372 = vmatprep.subr.bf16.mxu1 %v5291_v19 }
 0xd1e   :  { %2399 = vmatpush1.bf16.msra.mxu0 %v4629_v53  ;;  %3373 = vmatpush3.bf16.msra.mxu1 %v4695_v15 }
 0xd1f   :  { %2400 = vmatprep.subr.bf16.mxu0 %v4636_v55  ;;  %3374 = vmatprep.subr.bf16.mxu1 %v5291_v19 }
 0xd22   :  { %2401 = vmatpush1.bf16.msra.mxu0 %v4641_v0  ;;  %3375 = vmatpush3.bf16.msra.mxu1 %v4702_v16 }
 0xd23   :  { %2402 = vmatprep.subr.bf16.mxu0 %v4646_v47  ;;  %3376 = vmatprep.subr.bf16.mxu1 %v5291_v19 }
 0xd26   :  { %2403 = vmatpush1.bf16.msra.mxu0 %v4658_v3  ;;  %3377 = vmatpush3.bf16.msra.mxu1 %v4709_v41 }
 0xd27   :  { %2491 = vmatprep.subr.bf16.mxu0 %v3721_v63  ;;  %3382 = vmatprep.subr.bf16.mxu1 %v5291_v19  ;;  %v3738_v63 = vld [vmem:[%s5268_s7 + $0x20] ss:$12 sps:$4 sm:$0xff]  }
 0xdc9   :  { %v2319_v13 = vpop.f32.mrf.mxu0  ;;  %v2360_v26 = vpop.f32.mrf.mxu1 }
 0xdca   :  { %v2320_v59 = vadd.f32 %v2319_v13, %v4815_v9  ;;  %v2361_v35 = vadd.f32 %v2360_v26, %v4832_v46  ;;  %v3739_v13 = vld [vmem:[%s5268_s7 + $0x4] ss:$12 sps:$4 sm:$0xff]   ;;  %v3740_v26 = vld [vmem:[%s5268_s7] ss:$12 sps:$4 sm:$0xff]  }
 0xdcb   :  { %v2321_v38 = vpop.f32.mrf.mxu0  ;;  %v3360_v53 = vpop.f32.mrf.mxu1 }
 0xdcc   :  { %v2366_v55 = vadd.f32 %v2320_v59, %v1513_v1  ;;  %v2322_v3 = vadd.f32 %v2321_v38, %v4824_v48  ;;  %v3533_v1 = vld [vmem:[%s5271_s10 + $0x38] sm:$0xff]   ;;  %v5314_v53 = vld [vmem:[#allocation6_spill] sm:$0xff] }
 0xdcd   :  { %v2323_v0 = vpop.f32.mrf.mxu0  ;;  %v2363_v47 = vpop.f32.mrf.mxu1 }
 0xdce   :  { %v2857_v18 = vmul.f32 -1.442695, %v2366_v55  ;;  %v2373_v15 = vadd.f32 %v2322_v3, %v1515_v34 }
 0xdcf   :  { %v2324_v6 = vpop.f32.mrf.mxu0  ;;  %v3361_v8 = vpop.f32.mrf.mxu1 }
 0xdd0   :  { %3671 = vpow2.f32 %v2857_v18  ;;  %v2858_v16 = vmul.f32 -1.442695, %v2373_v15 }
 0xdd2   :  { %3673 = vpow2.f32 %v2858_v16  ;;  %v5315_v16 = vld [vmem:[#allocation9_spill] sm:$0xff] }
 0xddd   :  { %v3672_v41 = vpop.eup %3671 }
 0xdde   :  { %v2370_v42 = vadd.f32 1.0, %v3672_v41  ;;  %v1521_v41 = vadd.f32 %v5315_v16, %v4827_v5 }
 0xddf   :  { %v3674_v14 = vpop.eup %3673 }
 0xde0   :  { %3675 = vrcp.f32 %v2370_v42  ;;  %v2377_v29 = vadd.f32 1.0, %v3674_v14 }
 0xde2   :  { %3677 = vrcp.f32 %v2377_v29 }
 0xded   :  { %v3676_v52 = vpop.eup %3675 }
 0xdee   :  { %v2380_v62 = vmul.f32 %v3676_v52, %v2361_v35 }
 0xdef   :  { %v3678_v44 = vpop.eup %3677 }
 0xdf0   :  { %v2381_v30 = vadd.f32 %v2380_v62, %v1581_v50  ;;  %v2383_v10 = vsub.f32 1.0, %v3678_v44  ;;  %v2385_v43 = vmul.f32 %v3678_v44, %v5036_v58 }
 0xdf2   :  { %3679 = vtanh.f32 %v2381_v30  ;;  %v5316_v30 = vld [vmem:[#allocation8_spill] sm:$0xff] }
 0xdf3   :  { %v1586_v44 = vadd.f32 %v5316_v30, %v4836_v60 }
 0xdff   :  { %v3680_v22 = vpop.eup %3679 }
 0xe00   :  { %v2384_v24 = vmul.f32 %v3680_v22, %v2383_v10 }
 0xe02   :  { %v5102_v51 = vadd.f32 %v2385_v43, %v2384_v24 }
 0xe04   :  { %v2387_v17 = vpack.c.bf16 %v5102_v51, %v5102_v51 }
 0xe06   :  { %2421 = vmatmul.mubr.bf16.vlgmr.msra.gmra.mxu0 %v2387_v17  ;;  %3379 = vmatmul.mubr.bf16.vlgmr.msra.gmra.mxu1 %v2387_v17 }
 0xe07   :  { %2492 = vmatpush1.bf16.msra.mxu0 %v5043_v25  ;;  %3383 = vmatpush3.bf16.msra.mxu1 %v3722_v28  ;;  %v3735_v25 = vld [vmem:[%s5268_s7 + $0x38] ss:$12 sps:$4 sm:$0xff]  }
 0xe08   :  { %2493 = vmatprep.subr.bf16.mxu0 %v5050_v32  ;;  %3384 = vmatprep.subr.bf16.mxu1 %v5291_v19  ;;  %v3736_v32 = vld [vmem:[%s5268_s7 + $0x1c] ss:$12 sps:$4 sm:$0xff]  }
 0xe09   :  { %2523 = vmatprep.mubr.bf16.mxu0 %v5292_v21  ;;  %3398 = vmatprep.mubr.msk.bf16.mxu1 %vm3744_vm1, %v5291_v19  ;;  %v3725_v21 = vld [vmem:[%s5268_s7 + $0x78] ss:$12 sps:$4 sm:$0xff]  }
 0xe0b   :  { %2494 = vmatpush1.bf16.msra.mxu0 %v5060_v4  ;;  %3385 = vmatpush3.bf16.msra.mxu1 %v3723_v20  ;;  %v3737_v4 = vld [vmem:[%s5268_s7 + $0x18] ss:$12 sps:$4 sm:$0xff]  }
 0xe0c   :  { %2495 = vmatprep.subr.bf16.mxu0 %v3724_v40  ;;  %3386 = vmatprep.subr.bf16.mxu1 %v5291_v19 }
 0xe0f   :  { %2496 = vmatpush1.bf16.msra.mxu0 %v3725_v21  ;;  %3387 = vmatpush3.bf16.msra.mxu1 %v3726_v61  ;;  %v3534_v61 = vld [vmem:[%s5271_s10 + $0x30] sm:$0xff]  }
 0xe10   :  { %2497 = vmatprep.subr.bf16.mxu0 %v3727_v45  ;;  %3388 = vmatprep.subr.bf16.mxu1 %v5291_v19  ;;  %v2593_v45 = vpack.c.bf16 %v4889_v57, %v4840_v49  ;;  %v3537_v49 = vld [vmem:[%s5271_s10 + $0x18] sm:$0xff]   ;;  %v3538_v57 = vld [vmem:[%s5271_s10 + $0x10] sm:$0xff]  }
 0xe13   :  { %2498 = vmatpush1.bf16.msra.mxu0 %v3728_v39  ;;  %3389 = vmatpush3.bf16.msra.mxu1 %v3729_v7  ;;  %v3535_v39 = vld [vmem:[%s5271_s10 + $0x28] sm:$0xff]   ;;  %v3536_v7 = vld [vmem:[%s5271_s10 + $0x20] sm:$0xff]  }
 0xe14   :  { %2499 = vmatprep.subr.bf16.mxu0 %v3730_v23  ;;  %3390 = vmatprep.subr.bf16.mxu1 %v5291_v19  ;;  %v3539_v23 = vld [vmem:[%s5271_s10 + $0x8] sm:$0xff]  }
 0xe17   :  { %2500 = vmatpush1.bf16.msra.mxu0 %v3731_v12  ;;  %3391 = vmatpush3.bf16.msra.mxu1 %v3732_v27  ;;  %v3540_v12 = vld [vmem:[%s5271_s10] sm:$0xff]   ;;  %v2594_v27 = vpack.c.bf16 %v4987_v54, %v4938_v56 }
 0xe18   :  { %2501 = vmatprep.subr.bf16.mxu0 %v3733_v36  ;;  %3392 = vmatprep.subr.bf16.mxu1 %v5291_v19  ;;  %v2595_v36 = vpack.c.bf16 %v5102_v51, %v5036_v58  ;;  %v5318_v58 = vld [vmem:[#allocation2_spill] sm:$0xff] }
 0xe1b   :  { %2502 = vmatpush1.bf16.msra.mxu0 %v3734_v37  ;;  %3393 = vmatpush3.bf16.msra.mxu1 %v3735_v25 }
 0xe1c   :  { %2503 = vmatprep.subr.bf16.mxu0 %v3736_v32  ;;  %3394 = vmatprep.subr.bf16.mxu1 %v5291_v19  ;;  %v5317_v32 = vld [vmem:[#allocation11_spill] sm:$0xff] }
 0xe1f   :  { %2504 = vmatpush1.bf16.msra.mxu0 %v3737_v4  ;;  %3395 = vmatpush3.bf16.msra.mxu1 %v3738_v63  ;;  %v1523_v4 = vadd.f32 %v5317_v32, %v4812_v2 }
 0xe20   :  { %2505 = vmatprep.subr.bf16.mxu0 %v3739_v13  ;;  %3396 = vmatprep.subr.bf16.mxu1 %v5291_v19  ;;  %v1519_v19 = vadd.f32 %v5314_v53, %v4812_v2 }
 0xe23   :  { %2506 = vmatpush1.bf16.msra.mxu0 %v3740_v26  ;;  %3397 = vmatpush3.bf16.msra.mxu1 %v3741_v11 }
 0xe24   :  { %3402 = vmatprep.subr.bf16.mxu0 %v3533_v1 }
 0xec6   :  { %v2422_v59 = vpop.f32.mrf.mxu0  ;;  %v2463_v38 = vpop.f32.mrf.mxu1 }
 0xec7   :  { %v2423_v55 = vadd.f32 %v2422_v59, %v4815_v9  ;;  %v2464_v50 = vadd.f32 %v2463_v38, %v4832_v46 }
 0xec8   :  { %v2424_v0 = vpop.f32.mrf.mxu0  ;;  %v3380_v47 = vpop.f32.mrf.mxu1 }
 0xec9   :  { %v2469_v18 = vadd.f32 %v2423_v55, %v1519_v19  ;;  %v2425_v33 = vadd.f32 %v2424_v0, %v4824_v48  ;;  %v2863_v47 = vld [vmem:[%s5272_s11] ss:$0 sm:$0xff] }
 0xeca   :  { %v2426_v3 = vpop.f32.mrf.mxu0  ;;  %v2466_v6 = vpop.f32.mrf.mxu1 }
 0xecb   :  { %v2859_v8 = vmul.f32 -1.442695, %v2469_v18  ;;  %v2476_v42 = vadd.f32 %v2425_v33, %v1521_v41 }
 0xecc   :  { %v2427_v34 = vpop.f32.mrf.mxu0  ;;  %v3381_v15 = vpop.f32.mrf.mxu1 }
 0xecd   :  { %3681 = vpow2.f32 %v2859_v8  ;;  %v2860_v14 = vmul.f32 -1.442695, %v2476_v42  ;;  %v5319_v15 = vld [vmem:[#allocation12_spill] sm:$0xff] }
 0xece   :  { %v1589_v16 = vadd.f32 %v5319_v15, %v4836_v60 }
 0xecf   :  { %3683 = vpow2.f32 %v2860_v14 }
 0xeda   :  { %v3682_v29 = vpop.eup %3681 }
 0xedb   :  { %v2473_v35 = vadd.f32 1.0, %v3682_v29 }
 0xedc   :  { %v3684_v52 = vpop.eup %3683 }
 0xedd   :  { %3685 = vrcp.f32 %v2473_v35  ;;  %v2480_v31 = vadd.f32 1.0, %v3684_v52 }
 0xedf   :  { %3687 = vrcp.f32 %v2480_v31 }
 0xeea   :  { %v3686_v62 = vpop.eup %3685 }
 0xeeb   :  { %v2483_v10 = vmul.f32 %v3686_v62, %v2464_v50 }
 0xeec   :  { %v3688_v24 = vpop.eup %3687 }
 0xeed   :  { %v2484_v22 = vadd.f32 %v2483_v10, %v1586_v44  ;;  %v2486_v43 = vsub.f32 1.0, %v3688_v24  ;;  %v2488_v20 = vmul.f32 %v3688_v24, %v5102_v51  ;;  %v1525_v51 = vadd.f32 %v5318_v58, %v4827_v5 }
 0xeef   :  { %3689 = vtanh.f32 %v2484_v22 }
 0xefc   :  { %v3690_v17 = vpop.eup %3689 }
 0xefd   :  { %v2487_v28 = vmul.f32 %v3690_v17, %v2486_v43 }
 0xeff   :  { %v5192_v40 = vadd.f32 %v2488_v20, %v2487_v28 }
 0xf01   :  { %v2490_v21 = vpack.c.bf16 %v5192_v40, %v5192_v40 }
 0xf03   :  { %2524 = vmatmul.mubr.bf16.vlgmr.msra.gmra.mxu0 %v2490_v21  ;;  %3399 = vmatmul.mubr.bf16.vlgmr.msra.gmra.mxu1 %v2490_v21 }
 0xf04   :  { %3403 = vmatpush3.bf16.msra.mxu0 %v3533_v1  ;;  %3418 = vmatprep.mubr.bf16.mxu0 %v2593_v45 }
 0xf05   :  { %3404 = vmatprep.subr.bf16.mxu0 %v3534_v61 }
 0xf08   :  { %3405 = vmatpush3.bf16.msra.mxu0 %v3534_v61 }
 0xf09   :  { %3406 = vmatprep.subr.bf16.mxu0 %v3535_v39 }
 0xf0c   :  { %3407 = vmatpush3.bf16.msra.mxu0 %v3535_v39 }
 0xf0d   :  { %3408 = vmatprep.subr.bf16.mxu0 %v3536_v7 }
 0xf10   :  { %3409 = vmatpush3.bf16.msra.mxu0 %v3536_v7 }
 0xf11   :  { %3410 = vmatprep.subr.bf16.mxu0 %v3537_v49 }
 0xf14   :  { %3411 = vmatpush3.bf16.msra.mxu0 %v3537_v49 }
 0xf15   :  { %3412 = vmatprep.subr.bf16.mxu0 %v3538_v57 }
 0xf18   :  { %3413 = vmatpush3.bf16.msra.mxu0 %v3538_v57 }
 0xf19   :  { %3414 = vmatprep.subr.bf16.mxu0 %v3539_v23 }
 0xf1c   :  { %3415 = vmatpush3.bf16.msra.mxu0 %v3539_v23 }
 0xf1d   :  { %3416 = vmatprep.subr.bf16.mxu0 %v3540_v12 }
 0xf20   :  { %3417 = vmatpush3.bf16.msra.mxu0 %v3540_v12 }
 0xf23   :  { %3419 = vmatmul.mubr.bf16.vlgmr.msra.gmra.mxu0 %v2594_v27 }
 0xf24   :  { %3422 = vmatprep.mubr.bf16.mxu0 %v2595_v36 }
 0xfc3   :  { %v2525_v37 = vpop.f32.mrf.mxu0  ;;  %v2566_v25 = vpop.f32.mrf.mxu1 }
 0xfc4   :  { %v2526_v63 = vadd.f32 %v2525_v37, %v4815_v9  ;;  %v2567_v8 = vadd.f32 %v2566_v25, %v4832_v46 }
 0xfc5   :  { %v2527_v13 = vpop.f32.mrf.mxu0  ;;  %v3400_v26 = vpop.f32.mrf.mxu1 }
 0xfc6   :  { %v2572_v11 = vadd.f32 %v2526_v63, %v1523_v4  ;;  %v2528_v56 = vadd.f32 %v2527_v13, %v4824_v48 }
 0xfc7   :  { %v2529_v1 = vpop.f32.mrf.mxu0  ;;  %v2569_v59 = vpop.f32.mrf.mxu1 }
 0xfc8   :  { %v2861_v38 = vmul.f32 -1.442695, %v2572_v11  ;;  %v2579_v19 = vadd.f32 %v2528_v56, %v1525_v51 }
 0xfc9   :  { %v2530_v54 = vpop.f32.mrf.mxu0  ;;  %v3401_v53 = vpop.f32.mrf.mxu1 }
 0xfca   :  { %3691 = vpow2.f32 %v2861_v38  ;;  %v2862_v55 = vmul.f32 -1.442695, %v2579_v19 }
 0xfcc   :  { %3693 = vpow2.f32 %v2862_v55 }
 0xfd7   :  { %v3692_v2 = vpop.eup %3691 }
 0xfd8   :  { %v2576_v0 = vadd.f32 1.0, %v3692_v2 }
 0xfd9   :  { %v3694_v9 = vpop.eup %3693 }
 0xfda   :  { %3695 = vrcp.f32 %v2576_v0  ;;  %v2583_v3 = vadd.f32 1.0, %v3694_v9 }
 0xfdc   :  { %3697 = vrcp.f32 %v2583_v3 }
 0xfe3   :  { %v3420_v18 = vpop.f32.mrf.mxu0 }
 0xfe4   :  { %v2711_v48 = vadd.f32 %v3420_v18, %v2863_v47 }
 0xfe5   :  { %v2702_v6 = vpop.f32.mrf.mxu0 }
 0xfe6   :  { %2735 = vst [vmem:[%s5273_s12 + $0x10] sm:$0xff] %v2711_v48  ;;  %v2703_v5 = vadd.f32 %v2863_v47, %v2702_v6 }
 0xfe7   :  { %v3696_v33 = vpop.eup %3695  ;;  %v3421_v34 = vpop.f32.mrf.mxu0 }
 0xfe8   :  { %v2586_v41 = vmul.f32 %v3696_v33, %v2567_v8  ;;  %2733 = vst [vmem:[%s5273_s12] sm:$0xff] %v2703_v5  ;;  %v2714_v42 = vadd.f32 %v3421_v34, %v2863_v47 }
 0xfe9   :  { %v2705_v14 = vpop.f32.mrf.mxu0  ;;  %v3698_v60 = vpop.eup %3697 }
 0xfea   :  { %v2587_v29 = vadd.f32 %v2586_v41, %v1589_v16  ;;  %2736 = vst [vmem:[%s5273_s12 + $0x18] sm:$0xff] %v2714_v42  ;;  %v2706_v46 = vadd.f32 %v2863_v47, %v2705_v14  ;;  %v2589_v35 = vsub.f32 1.0, %v3698_v60  ;;  %v2591_v50 = vmul.f32 %v3698_v60, %v5192_v40 }
 0xfec   :  { %3699 = vtanh.f32 %v2587_v29  ;;  %2734 = vst [vmem:[%s5273_s12 + $0x8] sm:$0xff] %v2706_v46 }
 0xff9   :  { %v3700_v52 = vpop.eup %3699 }
 0xffa   :  { %v2590_v31 = vmul.f32 %v3700_v52, %v2589_v35 }
 0xffc   :  { %v2592_v62 = vadd.f32 %v2591_v50, %v2590_v31 }
 0xffe   :  { %v2596_v30 = vpack.c.bf16 %v2592_v62, %v5192_v40 }
0x1000   :  { %3423 = vmatmul.mubr.bf16.gmra.mxu0 %v2596_v30 }
0x10c0   :  { %v3424_v44 = vpop.f32.mrf.mxu0 }
0x10c1   :  { %v2727_v10 = vadd.f32 %v3424_v44, %v2863_v47 }
0x10c2   :  { %v2718_v22 = vpop.f32.mrf.mxu0 }
0x10c3   :  { %2739 = vst [vmem:[%s5273_s12 + $0x30] sm:$0xff] %v2727_v10  ;;  %v2719_v24 = vadd.f32 %v2863_v47, %v2718_v22 }
0x10c4   :  { %v3425_v43 = vpop.f32.mrf.mxu0 }
0x10c5   :  { %2737 = vst [vmem:[%s5273_s12 + $0x20] sm:$0xff] %v2719_v24  ;;  %v2730_v17 = vadd.f32 %v3425_v43, %v2863_v47 }
0x10c6   :  { %v2721_v28 = vpop.f32.mrf.mxu0 }
0x10c7   :  { %2740 = vst [vmem:[%s5273_s12 + $0x38] sm:$0xff] %v2730_v17  ;;  %v2722_v20 = vadd.f32 %v2863_v47, %v2721_v28 }
0x10c9   :  { %2738 = vst [vmem:[%s5273_s12 + $0x28] sm:$0xff] %v2722_v20 }

// kernel: model_forward.2
= control target key start
LH: loop header
LB: loop body
LE: loop exit
PB: predicated region body
PF: predicated region fallthrough
CT: control target
= control target key end

     0   :  { %vm113_vm0 = vcmask 130048   ;;  %vm522_vm1 = vcmask 261120   ;;  %vm8301_vm2 = vmmov 0   ;;  %s11507_s1 = inlined_call_operand.vmem [shape: bf16[16,32], index: 1, kind: input, shape index: {}]   ;;  %s11508_s0 = inlined_call_operand.vmem [shape: f32[128,16], index: 0, kind: input, shape index: {}]   ;;  %s11509_s2 = inlined_call_operand.vmem [shape: bf16[16,32], index: 2, kind: input, shape index: {}]   ;;  %s11510_s3 = inlined_call_operand.vmem [shape: bf16[16,32], index: 3, kind: input, shape index: {}]   ;;  %s11511_s5 = inlined_call_operand.vmem [shape: bf16[32,32], index: 5, kind: input, shape index: {}]   ;;  %s11512_s7 = inlined_call_operand.vmem [shape: bf16[32,32], index: 7, kind: input, shape index: {}]   ;;  %s11513_s6 = inlined_call_operand.vmem [shape: bf16[32,32], index: 6, kind: input, shape index: {}]   ;;  %s11514_s4 = inlined_call_operand.vmem [shape: f32[1,32], index: 4, kind: input, shape index: {}]   ;;  %s11515_s9 = inlined_call_operand.vmem [shape: bf16[32,32], index: 9, kind: input, shape index: {}]   ;;  %s11516_s11 = inlined_call_operand.vmem [shape: bf16[32,32], index: 11, kind: input, shape index: {}]   ;;  %s11517_s10 = inlined_call_operand.vmem [shape: bf16[32,32], index: 10, kind: input, shape index: {}]   ;;  %s11518_s8 = inlined_call_operand.vmem [shape: f32[1,32], index: 8, kind: input, shape index: {}]   ;;  %s11519_s13 = inlined_call_operand.vmem [shape: bf16[32,32], index: 13, kind: input, shape index: {}]   ;;  %s11520_s15 = inlined_call_operand.vmem [shape: bf16[32,32], index: 15, kind: input, shape index: {}]   ;;  %s11521_s14 = inlined_call_operand.vmem [shape: bf16[32,32], index: 14, kind: input, shape index: {}]   ;;  %s11522_s12 = inlined_call_operand.vmem [shape: f32[1,32], index: 12, kind: input, shape index: {}]   ;;  %s11523_s17 = inlined_call_operand.vmem [shape: bf16[32,384], index: 17, kind: input, shape index: {}]   ;;  %s11524_s18 = inlined_call_operand.vmem [shape: bf16[128,384], index: 18, kind: input, shape index: {}]   ;;  %s11525_s16 = inlined_call_operand.vmem [shape: f32[1,32], index: 16, kind: input, shape index: {}]   ;;  %s11526_s19 = inlined_call_operand.vmem [shape: f32[1,384], index: 19, kind: input, shape index: {}]   ;;  %s11527_s20 = inlined_call_operand.vmem [shape: f32[1,384], index: 20, kind: input, shape index: {}]   ;;  %s11528_s21 = inlined_call_operand.vmem [shape: bf16[128,384], index: 21, kind: input, shape index: {}]   ;;  %s11529_s22 = inlined_call_operand.vmem [shape: bf16[128,384], index: 22, kind: input, shape index: {}]   ;;  %s11530_s25 = inlined_call_operand.vmem [shape: f32[16,128], index: 25, kind: output, shape index: {}]   ;;  %s11531_s23 = inlined_call_operand.vmem [shape: f32[1,384], index: 23, kind: input, shape index: {}]   ;;  %s11532_s24 = inlined_call_operand.vmem [shape: f32[1,384], index: 24, kind: input, shape index: {}]  }
   0x1   :  { %11549 = sst [smem:[#allocation37_spill]] %s11507_s1 }
   0x2   :  { %11550 = sst [smem:[#allocation38_spill]] %s11508_s0 }
   0x3   :  { %11551 = sst [smem:[#allocation39_spill]] %s11509_s2 }
   0x4   :  { %11552 = sst [smem:[#allocation40_spill]] %s11510_s3 }
   0x5   :  { %11553 = sst [smem:[#allocation41_spill]] %s11511_s5 }
   0x6   :  { %11554 = sst [smem:[#allocation42_spill]] %s11512_s7 }
   0x7   :  { %11555 = sst [smem:[#allocation43_spill]] %s11513_s6 }
   0x8   :  { %11556 = sst [smem:[#allocation44_spill]] %s11514_s4 }
   0x9   :  { %11557 = sst [smem:[#allocation45_spill]] %s11515_s9 }
   0xa   :  { %11558 = sst [smem:[#allocation46_spill]] %s11516_s11 }
   0xb   :  { %11559 = sst [smem:[#allocation47_spill]] %s11527_s20 }
   0xc   :  { %s11560_s6 = sld [smem:[#allocation37_spill]] }
   0xd   :  { %s11561_s20 = sld [smem:[#allocation38_spill]] }
   0xe   :  { %s11562_s7 = sld [smem:[#allocation39_spill]] }
   0xf   :  { %s11563_s3 = sld [smem:[#allocation40_spill]] }
  0x10   :  { %s11564_s11 = sld [smem:[#allocation41_spill]] }
  0x11   :  { %s11566_s0 = sld [smem:[#allocation43_spill]] }
  0x12   :  { %v7758_v0 = vld [vmem:[%s11560_s6] sm:$0xff]   ;;  %s11565_s6 = sld [smem:[#allocation42_spill]] }
  0x13   :  { %v81_v1 = vld [vmem:[%s11561_s20] sm:$0xff]  ;;  %v82_v2 = vld [vmem:[%s11561_s20 + $0x8] sm:$0xff]  ;;  %v83_v3 = vld [vmem:[%s11561_s20 + $0x10] sm:$0xff]  ;;  %6829 = vmatprep.subr.bf16.mxu0 %v7758_v0  ;;  %s11567_s5 = sld [smem:[#allocation44_spill]] }
  0x14   :  { %v97_v4 = vpack.c.bf16 %v82_v2, %v81_v1  ;;  %v84_v5 = vld [vmem:[%s11561_s20 + $0x18] sm:$0xff]  ;;  %6830 = vmatpush3.bf16.msra.mxu0 %v7758_v0  ;;  %v7759_v7 = vld [vmem:[%s11562_s7] sm:$0xff]   ;;  %v86_v9 = vld [vmem:[%s11561_s20 + $0x28] sm:$0xff]  ;;  %s11568_s1 = sld [smem:[#allocation45_spill]] }
  0x15   :  { %v98_v6 = vpack.c.bf16 %v84_v5, %v83_v3  ;;  %v85_v8 = vld [vmem:[%s11561_s20 + $0x20] sm:$0xff]  ;;  %6865 = vmatprep.subr.bf16.mxu0 %v7759_v7  ;;  %v87_v12 = vld [vmem:[%s11561_s20 + $0x30] sm:$0xff]  ;;  %v88_v13 = vld [vmem:[%s11561_s20 + $0x38] sm:$0xff]  ;;  %s11569_s4 = sld [smem:[#allocation46_spill]] }
  0x16   :  { %6831 = vmatprep.mubr.msk.bf16.mxu0 %vm113_vm0, %v97_v4  ;;  %v99_v10 = vpack.c.bf16 %v86_v9, %v85_v8  ;;  %6849 = vmatprep.mubr.msk.bf16.mxu1 %vm113_vm0, %v97_v4  ;;  %v7760_v11 = vld [vmem:[%s11563_s3] sm:$0xff]   ;;  %v90_v15 = vld [vmem:[%s11561_s20 + $0x48] sm:$0xff]  ;;  %v100_v16 = vpack.c.bf16 %v88_v13, %v87_v12  ;;  %v91_v18 = vld [vmem:[%s11561_s20 + $0x50] sm:$0xff] }
  0x17   :  { %6832 = vmatmul.mubr.msk.bf16.vlgmr.msra.gmra.mxu0 %vm113_vm0, %v98_v6  ;;  %v89_v14 = vld [vmem:[%s11561_s20 + $0x40] sm:$0xff]  ;;  %6847 = vmatprep.subr.bf16.mxu1 %v7760_v11  ;;  %v92_v19 = vld [vmem:[%s11561_s20 + $0x58] sm:$0xff]  ;;  %v94_v21 = vld [vmem:[%s11561_s20 + $0x68] sm:$0xff] }
  0x18   :  { %6866 = vmatpush3.bf16.msra.mxu0 %v7759_v7  ;;  %6835 = vmatprep.mubr.msk.bf16.mxu0 %vm113_vm0, %v99_v10  ;;  %v101_v17 = vpack.c.bf16 %v90_v15, %v89_v14  ;;  %v93_v20 = vld [vmem:[%s11561_s20 + $0x60] sm:$0xff]  ;;  %v102_v22 = vpack.c.bf16 %v92_v19, %v91_v18  ;;  %v95_v24 = vld [vmem:[%s11561_s20 + $0x70] sm:$0xff]  ;;  %v96_v25 = vld [vmem:[%s11561_s20 + $0x78] sm:$0xff] }
  0x19   :  { %6848 = vmatpush3.bf16.msra.mxu1 %v7760_v11  ;;  %v103_v23 = vpack.c.bf16 %v94_v21, %v93_v20  ;;  %v104_v26 = vpack.c.bf16 %v96_v25, %v95_v24  ;;  %v7761_v27 = vld [vmem:[%s11564_s11 + $0x8] sm:$0xff]   ;;  %v7762_v28 = vld [vmem:[%s11564_s11] sm:$0xff]  }
  0x1a   :  { %6883 = vmatprep.subr.bf16.mxu1 %v7761_v27  ;;  %v7763_v29 = vld [vmem:[%s11565_s6 + $0x8] sm:$0xff]   ;;  %v7764_v30 = vld [vmem:[%s11565_s6] sm:$0xff]   ;;  %s11582_s6 = sld [smem:[#allocation47_spill]] }
  0x1b   :  { %6903 = vmatprep.subr.bf16.mxu0 %v7763_v29  ;;  %v8528_v31 = vld [vmem:[%s11566_s0 + $0x8] sm:$0xff]   ;;  %v8550_v1 = vld [vmem:[%s11567_s5] ss:$0 sm:$0xff] }
  0x1c   :  { %6850 = vmatmul.mubr.msk.bf16.vlgmr.msra.gmra.mxu1 %vm113_vm0, %v98_v6 }
  0x1d   :  { %6853 = vmatprep.mubr.msk.bf16.mxu1 %vm113_vm0, %v99_v10  ;;  %6884 = vmatpush3.bf16.msra.mxu1 %v7761_v27 }
  0x1e   :  { %6885 = vmatprep.subr.bf16.mxu1 %v7762_v28 }
  0x1f   :  { %6836 = vmatmul.mubr.msk.bf16.gmra.mxu0 %vm113_vm0, %v100_v16 }
  0x20   :  { %6839 = vmatprep.mubr.msk.bf16.mxu0 %vm113_vm0, %v101_v17 }
  0x21   :  { %6886 = vmatpush3.bf16.msra.mxu1 %v7762_v28 }
  0x22   :  { %6923 = vmatprep.subr.bf16.mxu1 %v8528_v31 }
  0x24   :  { %6854 = vmatmul.mubr.msk.bf16.gmra.mxu1 %vm113_vm0, %v100_v16 }
  0x25   :  { %6857 = vmatprep.mubr.msk.bf16.mxu1 %vm113_vm0, %v101_v17 }
  0x27   :  { %6840 = vmatmul.mubr.msk.bf16.gmra.mxu0 %vm113_vm0, %v102_v22 }
  0x28   :  { %6843 = vmatprep.mubr.msk.bf16.mxu0 %vm113_vm0, %v103_v23 }
  0x2c   :  { %6858 = vmatmul.mubr.msk.bf16.gmra.mxu1 %vm113_vm0, %v102_v22 }
  0x2d   :  { %6861 = vmatprep.mubr.msk.bf16.mxu1 %vm113_vm0, %v103_v23 }
  0x2f   :  { %6844 = vmatmul.mubr.msk.bf16.gmra.mxu0 %vm113_vm0, %v104_v26 }
  0x30   :  { %6867 = vmatprep.mubr.msk.bf16.mxu0 %vm113_vm0, %v97_v4 }
  0x34   :  { %6862 = vmatmul.mubr.msk.bf16.gmra.mxu1 %vm113_vm0, %v104_v26 }
  0x37   :  { %6868 = vmatmul.mubr.msk.bf16.vlgmr.msra.gmra.mxu0 %vm113_vm0, %v98_v6 }
  0x38   :  { %6871 = vmatprep.mubr.msk.bf16.mxu0 %vm113_vm0, %v99_v10  ;;  %6904 = vmatpush3.bf16.msra.mxu0 %v7763_v29 }
  0x39   :  { %6905 = vmatprep.subr.bf16.mxu0 %v7764_v30 }
  0x3c   :  { %6906 = vmatpush3.bf16.msra.mxu0 %v7764_v30 }
  0x3f   :  { %6872 = vmatmul.mubr.msk.bf16.gmra.mxu0 %vm113_vm0, %v100_v16 }
  0x40   :  { %6875 = vmatprep.mubr.msk.bf16.mxu0 %vm113_vm0, %v101_v17 }
  0x47   :  { %6876 = vmatmul.mubr.msk.bf16.gmra.mxu0 %vm113_vm0, %v102_v22 }
  0x48   :  { %6879 = vmatprep.mubr.msk.bf16.mxu0 %vm113_vm0, %v103_v23 }
  0x4f   :  { %6880 = vmatmul.mubr.msk.bf16.gmra.mxu0 %vm113_vm0, %v104_v26 }
  0xd7   :  { %v6833_v32 = vpop.f32.mrf.mxu0 }
  0xd9   :  { %v172_v33 = vpop.f32.mrf.mxu0 }
  0xdb   :  { %v6834_v34 = vpop.f32.mrf.mxu0 }
  0xdc   :  { %v6851_v36 = vpop.f32.mrf.mxu1 }
  0xdd   :  { %v175_v35 = vpop.f32.mrf.mxu0 }
  0xde   :  { %v278_v38 = vpop.f32.mrf.mxu1 }
  0xdf   :  { %v6837_v37 = vpop.f32.mrf.mxu0 }
  0xe0   :  { %v6852_v40 = vpop.f32.mrf.mxu1 }
  0xe1   :  { %v188_v39 = vpop.f32.mrf.mxu0 }
  0xe2   :  { %v280_v42 = vpop.f32.mrf.mxu1 }
  0xe3   :  { %v8531_v41 = vpop.f32.mrf.mxu0 }
  0xe4   :  { %v6855_v45 = vpop.f32.mrf.mxu1 }
  0xe5   :  { %v191_v43 = vpop.f32.mrf.mxu0 }
  0xe6   :  { %v293_v48 = vpop.f32.mrf.mxu1 }
  0xe7   :  { %v8533_v44 = vpop.f32.mrf.mxu0 }
  0xe8   :  { %v6856_v51 = vpop.f32.mrf.mxu1 }
  0xe9   :  { %v8535_v46 = vpop.f32.mrf.mxu0 }
  0xea   :  { %v296_v54 = vpop.f32.mrf.mxu1 }
  0xeb   :  { %v8537_v47 = vpop.f32.mrf.mxu0 }
  0xec   :  { %v8545_v57 = vpop.f32.mrf.mxu1 }
  0xed   :  { %v207_v49 = vpop.f32.mrf.mxu0 }
  0xee   :  { %v309_v61 = vpop.f32.mrf.mxu1 }
  0xef   :  { %v8539_v50 = vpop.f32.mrf.mxu0 }
  0xf0   :  { %v6860_v6 = vpop.f32.mrf.mxu1 }
  0xf1   :  { %v8541_v52 = vpop.f32.mrf.mxu0 }
  0xf2   :  { %v312_v17 = vpop.f32.mrf.mxu1 }
  0xf3   :  { %v6846_v53 = vpop.f32.mrf.mxu0 }
  0xf4   :  { %v6863_v30 = vpop.f32.mrf.mxu1 }
  0xf5   :  { %v8543_v55 = vpop.f32.mrf.mxu0 }
  0xf7   :  { %v6869_v56 = vpop.f32.mrf.mxu0 }
  0xf8   :  { %v389_v58 = vadd.f32 %v6869_v56, %v175_v35 }
  0xf9   :  { %v380_v59 = vpop.f32.mrf.mxu0 }
  0xfa   :  { %v443_v62 = vadd.f32 %v380_v59, %v280_v42  ;;  %v445_v0 = vadd.f32 %v6852_v40, %v389_v58  ;;  %v325_v42 = vpop.f32.mrf.mxu1 }
  0xfb   :  { %v6870_v60 = vpop.f32.mrf.mxu0 }
  0xfc   :  { %v392_v63 = vadd.f32 %v6870_v60, %v6833_v32  ;;  %v466_v7 = vadd.f32 %v8550_v1, %v443_v62  ;;  %v468_v10 = vadd.f32 %v8550_v1, %v445_v0  ;;  %v7766_v32 = vld [vmem:[%s11566_s0] sm:$0xff]  }
  0xfd   :  { %v383_v2 = vpop.f32.mrf.mxu0 }
  0xfe   :  { %v446_v3 = vadd.f32 %v392_v63, %v293_v48  ;;  %v384_v4 = vadd.f32 %v383_v2, %v172_v33  ;;  %v482_v18 = vmax.f32 %v466_v7, 0.0  ;;  %v484_v20 = vmax.f32 %v468_v10, 0.0 }
  0xff   :  { %v6873_v5 = vpop.f32.mrf.mxu0 }
 0x100   :  { %v469_v8 = vadd.f32 %v8550_v1, %v446_v3  ;;  %v444_v9 = vadd.f32 %v6851_v36, %v384_v4  ;;  %v405_v13 = vadd.f32 %v6873_v5, %v191_v43 }
 0x101   :  { %v396_v11 = vpop.f32.mrf.mxu0 }
 0x102   :  { %v467_v12 = vadd.f32 %v8550_v1, %v444_v9  ;;  %v397_v14 = vadd.f32 %v6834_v34, %v396_v11  ;;  %v485_v15 = vmax.f32 %v469_v8, 0.0  ;;  %v449_v24 = vadd.f32 %v6856_v51, %v405_v13 }
 0x103   :  { %v6874_v16 = vpop.f32.mrf.mxu0 }
 0x104   :  { %v483_v19 = vmax.f32 %v467_v12, 0.0  ;;  %v447_v21 = vadd.f32 %v397_v14, %v296_v54  ;;  %v408_v22 = vadd.f32 %v6874_v16, %v6837_v37  ;;  %v8558_v27 = vpack.c.bf16 %v485_v15, %v484_v20 }
 0x105   :  { %v399_v23 = vpop.f32.mrf.mxu0  ;;  %v472_v38 = vadd.f32 %v8550_v1, %v449_v24 }
 0x106   :  { %v400_v25 = vadd.f32 %v399_v23, %v188_v39  ;;  %v8556_v26 = vpack.c.bf16 %v483_v19, %v482_v18  ;;  %v450_v28 = vadd.f32 %v408_v22, %v309_v61  ;;  %v470_v34 = vadd.f32 %v8550_v1, %v447_v21  ;;  %v6864_v61 = vpop.f32.mrf.mxu1 }
 0x107   :  { %v6877_v29 = vpop.f32.mrf.mxu0  ;;  %v488_v58 = vmax.f32 %v472_v38, 0.0 }
 0x108   :  { %v448_v33 = vadd.f32 %v6855_v45, %v400_v25  ;;  %6887 = vmatprep.mubr.msk.bf16.mxu1 %vm522_vm1, %v8556_v26  ;;  %6907 = vmatprep.mubr.msk.bf16.mxu0 %vm522_vm1, %v8556_v26  ;;  %v473_v35 = vadd.f32 %v8550_v1, %v450_v28  ;;  %v421_v36 = vadd.f32 %v6877_v29, %v207_v49  ;;  %v486_v53 = vmax.f32 %v470_v34, 0.0  ;;  %v328_v7 = vpop.f32.mrf.mxu1  ;;  %v7768_v25 = vld [vmem:[%s11568_s1] sm:$0xff]   ;;  %v8629_v28 = vld [vmem:[%s11517_s10 + $0x8] sm:$0xff]  }
 0x109   :  { %v412_v37 = vpop.f32.mrf.mxu0  ;;  %6888 = vmatmul.mubr.msk.bf16.vlgmr.msra.gmra.mxu1 %vm522_vm1, %v8558_v27  ;;  %6908 = vmatmul.mubr.msk.bf16.vlgmr.msra.gmra.mxu0 %vm522_vm1, %v8558_v27 }
 0x10a   :  { %v471_v39 = vadd.f32 %v8550_v1, %v448_v33  ;;  %v413_v40 = vadd.f32 %v8531_v41, %v412_v37  ;;  %6924 = vmatpush3.bf16.msra.mxu1 %v8528_v31  ;;  %v489_v45 = vmax.f32 %v473_v35, 0.0  ;;  %v453_v54 = vadd.f32 %v6860_v6, %v421_v36 }
 0x10b   :  { %v6878_v43 = vpop.f32.mrf.mxu0  ;;  %6925 = vmatprep.subr.bf16.mxu1 %v7766_v32 }
 0x10c   :  { %v487_v48 = vmax.f32 %v471_v39, 0.0  ;;  %v451_v49 = vadd.f32 %v413_v40, %v312_v17  ;;  %v424_v51 = vadd.f32 %v6878_v43, %v8533_v44  ;;  %v501_v31 = vpack.c.bf16 %v489_v45, %v488_v58 }
 0x10d   :  { %v415_v56 = vpop.f32.mrf.mxu0  ;;  %v476_v44 = vadd.f32 %v8550_v1, %v453_v54 }
 0x10e   :  { %v454_v59 = vadd.f32 %v424_v51, %v325_v42  ;;  %v416_v60 = vadd.f32 %v415_v56, %v8535_v46  ;;  %6926 = vmatpush3.bf16.msra.mxu1 %v7766_v32  ;;  %v500_v62 = vpack.c.bf16 %v487_v48, %v486_v53  ;;  %v474_v63 = vadd.f32 %v8550_v1, %v451_v49 }
 0x10f   :  { %v6881_v41 = vpop.f32.mrf.mxu0  ;;  %v492_v11 = vmax.f32 %v476_v44, 0.0 }
 0x110   :  { %v477_v0 = vadd.f32 %v8550_v1, %v454_v59  ;;  %v452_v2 = vadd.f32 %v8545_v57, %v416_v60  ;;  %6891 = vmatprep.mubr.msk.bf16.mxu1 %vm522_vm1, %v500_v62  ;;  %6911 = vmatprep.mubr.msk.bf16.mxu0 %vm522_vm1, %v500_v62  ;;  %v437_v4 = vadd.f32 %v6881_v41, %v8543_v55  ;;  %v490_v8 = vmax.f32 %v474_v63, 0.0 }
 0x111   :  { %v428_v3 = vpop.f32.mrf.mxu0  ;;  %6892 = vmatmul.mubr.msk.bf16.gmra.mxu1 %vm522_vm1, %v501_v31  ;;  %6912 = vmatmul.mubr.msk.bf16.gmra.mxu0 %vm522_vm1, %v501_v31 }
 0x112   :  { %v475_v46 = vadd.f32 %v8550_v1, %v452_v2  ;;  %v429_v5 = vadd.f32 %v8537_v47, %v428_v3  ;;  %v493_v6 = vmax.f32 %v477_v0, 0.0  ;;  %v457_v14 = vadd.f32 %v6864_v61, %v437_v4  ;;  %v8651_v4 = vld [vmem:[%s11518_s8] ss:$0 sm:$0xff] }
 0x113   :  { %v6882_v57 = vpop.f32.mrf.mxu0 }
 0x114   :  { %v491_v9 = vmax.f32 %v475_v46, 0.0  ;;  %v455_v10 = vadd.f32 %v429_v5, %v328_v7  ;;  %v440_v12 = vadd.f32 %v6882_v57, %v8539_v50  ;;  %v503_v16 = vpack.c.bf16 %v493_v6, %v492_v11 }
 0x115   :  { %v431_v13 = vpop.f32.mrf.mxu0  ;;  %v480_v19 = vadd.f32 %v8550_v1, %v457_v14 }
 0x116   :  { %v432_v15 = vadd.f32 %v431_v13, %v8541_v52  ;;  %v502_v55 = vpack.c.bf16 %v491_v9, %v490_v8  ;;  %v478_v47 = vadd.f32 %v8550_v1, %v455_v10  ;;  %v481_v17 = vadd.f32 %v8550_v1, %v440_v12 }
 0x117   :  { %v496_v22 = vmax.f32 %v480_v19, 0.0 }
 0x118   :  { %v456_v18 = vadd.f32 %v6863_v30, %v432_v15  ;;  %6895 = vmatprep.mubr.msk.bf16.mxu1 %vm522_vm1, %v502_v55  ;;  %6915 = vmatprep.mubr.msk.bf16.mxu0 %vm522_vm1, %v502_v55  ;;  %v494_v50 = vmax.f32 %v478_v47, 0.0  ;;  %v497_v52 = vmax.f32 %v481_v17, 0.0 }
 0x119   :  { %6896 = vmatmul.mubr.msk.bf16.gmra.mxu1 %vm522_vm1, %v503_v16  ;;  %6916 = vmatmul.mubr.msk.bf16.gmra.mxu0 %vm522_vm1, %v503_v16 }
 0x11a   :  { %v479_v20 = vadd.f32 %v8550_v1, %v456_v18  ;;  %v505_v24 = vpack.c.bf16 %v497_v52, %v496_v22  ;;  %v7767_v1 = vld [vmem:[%s11568_s1 + $0x8] sm:$0xff]  }
 0x11b   :  { %6943 = vmatprep.subr.bf16.mxu0 %v7767_v1 }
 0x11c   :  { %v495_v21 = vmax.f32 %v479_v20, 0.0  ;;  %6944 = vmatpush3.bf16.msra.mxu0 %v7767_v1 }
 0x11d   :  { %6945 = vmatprep.subr.bf16.mxu0 %v7768_v25 }
 0x11e   :  { %v504_v23 = vpack.c.bf16 %v495_v21, %v494_v50 }
 0x120   :  { %6899 = vmatprep.mubr.msk.bf16.mxu1 %vm522_vm1, %v504_v23  ;;  %6919 = vmatprep.mubr.msk.bf16.mxu0 %vm522_vm1, %v504_v23 }
 0x121   :  { %6900 = vmatmul.mubr.msk.bf16.gmra.mxu1 %vm522_vm1, %v505_v24  ;;  %6920 = vmatmul.mubr.msk.bf16.gmra.mxu0 %vm522_vm1, %v505_v24 }
 0x122   :  { %6927 = vmatprep.mubr.msk.bf16.mxu1 %vm522_vm1, %v8556_v26  ;;  %v7769_v26 = vld [vmem:[%s11569_s4 + $0x8] sm:$0xff]   ;;  %6946 = vmatpush3.bf16.msra.mxu0 %v7768_v25 }
 0x123   :  { %6963 = vmatprep.subr.bf16.mxu1 %v7769_v26  ;;  %6983 = vmatprep.subr.bf16.mxu0 %v8629_v28 }
 0x129   :  { %6928 = vmatmul.mubr.msk.bf16.vlgmr.msra.gmra.mxu1 %vm522_vm1, %v8558_v27  ;;  %v7770_v27 = vld [vmem:[%s11569_s4] sm:$0xff]  }
 0x12a   :  { %6931 = vmatprep.mubr.msk.bf16.mxu1 %vm522_vm1, %v500_v62  ;;  %6964 = vmatpush3.bf16.msra.mxu1 %v7769_v26 }
 0x12b   :  { %6965 = vmatprep.subr.bf16.mxu1 %v7770_v27 }
 0x12e   :  { %6966 = vmatpush3.bf16.msra.mxu1 %v7770_v27 }
 0x131   :  { %6932 = vmatmul.mubr.msk.bf16.gmra.mxu1 %vm522_vm1, %v501_v31 }
 0x132   :  { %6935 = vmatprep.mubr.msk.bf16.mxu1 %vm522_vm1, %v502_v55 }
 0x139   :  { %6936 = vmatmul.mubr.msk.bf16.gmra.mxu1 %vm522_vm1, %v503_v16 }
 0x13a   :  { %6939 = vmatprep.mubr.msk.bf16.mxu1 %vm522_vm1, %v504_v23 }
 0x141   :  { %6940 = vmatmul.mubr.msk.bf16.gmra.mxu1 %vm522_vm1, %v505_v24 }
 0x1c9   :  { %v6889_v29 = vpop.f32.mrf.mxu1  ;;  %v6909_v30 = vpop.f32.mrf.mxu0 }
 0x1cb   :  { %v581_v32 = vpop.f32.mrf.mxu1  ;;  %v697_v33 = vpop.f32.mrf.mxu0 }
 0x1cd   :  { %v6890_v34 = vpop.f32.mrf.mxu1  ;;  %v6910_v36 = vpop.f32.mrf.mxu0 }
 0x1cf   :  { %v584_v35 = vpop.f32.mrf.mxu1  ;;  %v699_v39 = vpop.f32.mrf.mxu0 }
 0x1d1   :  { %v6893_v37 = vpop.f32.mrf.mxu1  ;;  %v6913_v43 = vpop.f32.mrf.mxu0 }
 0x1d3   :  { %v597_v38 = vpop.f32.mrf.mxu1  ;;  %v712_v49 = vpop.f32.mrf.mxu0 }
 0x1d5   :  { %v8632_v40 = vpop.f32.mrf.mxu1  ;;  %v6914_v54 = vpop.f32.mrf.mxu0 }
 0x1d7   :  { %v600_v42 = vpop.f32.mrf.mxu1  ;;  %v715_v59 = vpop.f32.mrf.mxu0 }
 0x1d9   :  { %v8634_v45 = vpop.f32.mrf.mxu1  ;;  %v8646_v41 = vpop.f32.mrf.mxu0 }
 0x1db   :  { %v8636_v48 = vpop.f32.mrf.mxu1  ;;  %v728_v0 = vpop.f32.mrf.mxu0 }
 0x1dd   :  { %v8638_v51 = vpop.f32.mrf.mxu1  ;;  %v6918_v57 = vpop.f32.mrf.mxu0 }
 0x1df   :  { %v616_v53 = vpop.f32.mrf.mxu1  ;;  %v731_v16 = vpop.f32.mrf.mxu0 }
 0x1e1   :  { %v8640_v56 = vpop.f32.mrf.mxu1  ;;  %v8659_v1 = vpop.f32.mrf.mxu0 }
 0x1e3   :  { %v8642_v58 = vpop.f32.mrf.mxu1 }
 0x1e5   :  { %v6902_v60 = vpop.f32.mrf.mxu1 }
 0x1e7   :  { %v8644_v61 = vpop.f32.mrf.mxu1 }
 0x1e9   :  { %v6929_v62 = vpop.f32.mrf.mxu1 }
 0x1ea   :  { %v814_v31 = vadd.f32 %v6929_v62, %v584_v35 }
 0x1eb   :  { %v805_v63 = vpop.f32.mrf.mxu1 }
 0x1ec   :  { %v868_v44 = vadd.f32 %v805_v63, %v699_v39  ;;  %v870_v46 = vadd.f32 %v6910_v36, %v814_v31  ;;  %v744_v39 = vpop.f32.mrf.mxu0 }
 0x1ed   :  { %v6930_v2 = vpop.f32.mrf.mxu1 }
 0x1ee   :  { %v817_v3 = vadd.f32 %v6930_v2, %v6889_v29  ;;  %v891_v9 = vadd.f32 %v8651_v4, %v868_v44  ;;  %v893_v12 = vadd.f32 %v8651_v4, %v870_v46  ;;  %v7772_v29 = vld [vmem:[%s11517_s10] sm:$0xff]   ;;  %v6922_v2 = vpop.f32.mrf.mxu0 }
 0x1ef   :  { %v808_v5 = vpop.f32.mrf.mxu1 }
 0x1f0   :  { %v871_v6 = vadd.f32 %v817_v3, %v712_v49  ;;  %v809_v7 = vadd.f32 %v808_v5, %v581_v32  ;;  %v907_v18 = vmax.f32 %v891_v9, 0.0  ;;  %v909_v20 = vmax.f32 %v893_v12, 0.0 }
 0x1f1   :  { %v6933_v8 = vpop.f32.mrf.mxu1 }
 0x1f2   :  { %v894_v10 = vadd.f32 %v8651_v4, %v871_v6  ;;  %v869_v11 = vadd.f32 %v6909_v30, %v809_v7  ;;  %v830_v15 = vadd.f32 %v6933_v8, %v600_v42  ;;  %v747_v8 = vpop.f32.mrf.mxu0 }
 0x1f3   :  { %v821_v13 = vpop.f32.mrf.mxu1 }
 0x1f4   :  { %v892_v14 = vadd.f32 %v8651_v4, %v869_v11  ;;  %v822_v55 = vadd.f32 %v6890_v34, %v821_v13  ;;  %v910_v47 = vmax.f32 %v894_v10, 0.0  ;;  %v874_v22 = vadd.f32 %v6914_v54, %v830_v15 }
 0x1f5   :  { %v6934_v17 = vpop.f32.mrf.mxu1 }
 0x1f6   :  { %v908_v19 = vmax.f32 %v892_v14, 0.0  ;;  %v872_v50 = vadd.f32 %v822_v55, %v715_v59  ;;  %v833_v52 = vadd.f32 %v6934_v17, %v6893_v37  ;;  %v8661_v25 = vpack.c.bf16 %v910_v47, %v909_v20 }
 0x1f7   :  { %v824_v21 = vpop.f32.mrf.mxu1  ;;  %v897_v36 = vadd.f32 %v8651_v4, %v874_v22 }
 0x1f8   :  { %v825_v23 = vadd.f32 %v824_v21, %v597_v38  ;;  %v8657_v24 = vpack.c.bf16 %v908_v19, %v907_v18  ;;  %v875_v26 = vadd.f32 %v833_v52, %v728_v0  ;;  %v895_v32 = vadd.f32 %v8651_v4, %v872_v50 }
 0x1f9   :  { %v6937_v27 = vpop.f32.mrf.mxu1  ;;  %v913_v31 = vmax.f32 %v897_v36, 0.0 }
 0x1fa   :  { %v873_v30 = vadd.f32 %v6913_v43, %v825_v23  ;;  %6947 = vmatprep.mubr.msk.bf16.mxu0 %vm522_vm1, %v8657_v24  ;;  %6967 = vmatprep.mubr.msk.bf16.mxu1 %vm522_vm1, %v8657_v24  ;;  %v898_v33 = vadd.f32 %v8651_v4, %v875_v26  ;;  %v846_v34 = vadd.f32 %v6937_v27, %v616_v53  ;;  %v911_v59 = vmax.f32 %v895_v32, 0.0  ;;  %v7774_v23 = vld [vmem:[%s11519_s13] sm:$0xff]  }
 0x1fb   :  { %v837_v35 = vpop.f32.mrf.mxu1  ;;  %6948 = vmatmul.mubr.msk.bf16.vlgmr.msra.gmra.mxu0 %vm522_vm1, %v8661_v25  ;;  %6968 = vmatmul.mubr.msk.bf16.vlgmr.msra.gmra.mxu1 %vm522_vm1, %v8661_v25 }
 0x1fc   :  { %v896_v37 = vadd.f32 %v8651_v4, %v873_v30  ;;  %v838_v38 = vadd.f32 %v8632_v40, %v837_v35  ;;  %6984 = vmatpush3.bf16.msra.mxu0 %v8629_v28  ;;  %v914_v43 = vmax.f32 %v898_v33, 0.0  ;;  %v878_v60 = vadd.f32 %v6918_v57, %v846_v34 }
 0x1fd   :  { %v6938_v42 = vpop.f32.mrf.mxu1  ;;  %6985 = vmatprep.subr.bf16.mxu0 %v7772_v29 }
 0x1fe   :  { %v912_v49 = vmax.f32 %v896_v37, 0.0  ;;  %v876_v53 = vadd.f32 %v838_v38, %v731_v16  ;;  %v849_v54 = vadd.f32 %v6938_v42, %v8634_v45  ;;  %v926_v28 = vpack.c.bf16 %v914_v43, %v913_v31 }
 0x1ff   :  { %v840_v62 = vpop.f32.mrf.mxu1  ;;  %v901_v45 = vadd.f32 %v8651_v4, %v878_v60 }
 0x200   :  { %v879_v63 = vadd.f32 %v849_v54, %v744_v39  ;;  %v841_v0 = vadd.f32 %v840_v62, %v8636_v48  ;;  %6986 = vmatpush3.bf16.msra.mxu0 %v7772_v29  ;;  %v925_v44 = vpack.c.bf16 %v912_v49, %v911_v59  ;;  %v899_v3 = vadd.f32 %v8651_v4, %v876_v53 }
 0x201   :  { %v6941_v40 = vpop.f32.mrf.mxu1  ;;  %v917_v13 = vmax.f32 %v901_v45, 0.0 }
 0x202   :  { %v902_v46 = vadd.f32 %v8651_v4, %v879_v63  ;;  %v877_v5 = vadd.f32 %v8646_v41, %v841_v0  ;;  %6951 = vmatprep.mubr.msk.bf16.mxu0 %vm522_vm1, %v925_v44  ;;  %6971 = vmatprep.mubr.msk.bf16.mxu1 %vm522_vm1, %v925_v44  ;;  %v862_v7 = vadd.f32 %v6941_v40, %v8644_v61  ;;  %v915_v10 = vmax.f32 %v899_v3, 0.0 }
 0x203   :  { %v853_v6 = vpop.f32.mrf.mxu1  ;;  %6952 = vmatmul.mubr.msk.bf16.gmra.mxu0 %vm522_vm1, %v926_v28  ;;  %6972 = vmatmul.mubr.msk.bf16.gmra.mxu1 %vm522_vm1, %v926_v28 }
 0x204   :  { %v900_v48 = vadd.f32 %v8651_v4, %v877_v5  ;;  %v854_v57 = vadd.f32 %v8638_v51, %v853_v6  ;;  %v918_v9 = vmax.f32 %v902_v46, 0.0  ;;  %v882_v55 = vadd.f32 %v6922_v2, %v862_v7  ;;  %v8755_v7 = vld [vmem:[%s11522_s12] ss:$0 sm:$0xff] }
 0x205   :  { %v6942_v41 = vpop.f32.mrf.mxu1 }
 0x206   :  { %v916_v11 = vmax.f32 %v900_v48, 0.0  ;;  %v880_v12 = vadd.f32 %v854_v57, %v747_v8  ;;  %v865_v14 = vadd.f32 %v6942_v41, %v8640_v56  ;;  %v928_v47 = vpack.c.bf16 %v918_v9, %v917_v13 }
 0x207   :  { %v856_v15 = vpop.f32.mrf.mxu1  ;;  %v905_v19 = vadd.f32 %v8651_v4, %v882_v55 }
 0x208   :  { %v857_v16 = vadd.f32 %v856_v15, %v8642_v58  ;;  %v927_v61 = vpack.c.bf16 %v916_v11, %v915_v10  ;;  %v903_v51 = vadd.f32 %v8651_v4, %v880_v12  ;;  %v906_v17 = vadd.f32 %v8651_v4, %v865_v14 }
 0x209   :  { %v921_v52 = vmax.f32 %v905_v19, 0.0 }
 0x20a   :  { %v881_v18 = vadd.f32 %v8659_v1, %v857_v16  ;;  %6955 = vmatprep.mubr.msk.bf16.mxu0 %vm522_vm1, %v927_v61  ;;  %6975 = vmatprep.mubr.msk.bf16.mxu1 %vm522_vm1, %v927_v61  ;;  %v919_v58 = vmax.f32 %v903_v51, 0.0  ;;  %v922_v20 = vmax.f32 %v906_v17, 0.0  ;;  %v7776_v1 = vld [vmem:[%s11520_s15] sm:$0xff]  }
 0x20b   :  { %6956 = vmatmul.mubr.msk.bf16.gmra.mxu0 %vm522_vm1, %v928_v47  ;;  %6976 = vmatmul.mubr.msk.bf16.gmra.mxu1 %vm522_vm1, %v928_v47 }
 0x20c   :  { %v904_v56 = vadd.f32 %v8651_v4, %v881_v18  ;;  %v930_v22 = vpack.c.bf16 %v922_v20, %v921_v52  ;;  %v7773_v4 = vld [vmem:[%s11519_s13 + $0x8] sm:$0xff]  }
 0x20d   :  { %7003 = vmatprep.subr.bf16.mxu1 %v7773_v4 }
 0x20e   :  { %v920_v50 = vmax.f32 %v904_v56, 0.0  ;;  %7004 = vmatpush3.bf16.msra.mxu1 %v7773_v4 }
 0x20f   :  { %7005 = vmatprep.subr.bf16.mxu1 %v7774_v23 }
 0x210   :  { %v929_v21 = vpack.c.bf16 %v920_v50, %v919_v58 }
 0x212   :  { %6959 = vmatprep.mubr.msk.bf16.mxu0 %vm522_vm1, %v929_v21  ;;  %6979 = vmatprep.mubr.msk.bf16.mxu1 %vm522_vm1, %v929_v21 }
 0x213   :  { %6960 = vmatmul.mubr.msk.bf16.gmra.mxu0 %vm522_vm1, %v930_v22  ;;  %6980 = vmatmul.mubr.msk.bf16.gmra.mxu1 %vm522_vm1, %v930_v22 }
 0x214   :  { %6987 = vmatprep.mubr.msk.bf16.mxu0 %vm522_vm1, %v8657_v24  ;;  %v7775_v24 = vld [vmem:[%s11520_s15 + $0x8] sm:$0xff]   ;;  %7006 = vmatpush3.bf16.msra.mxu1 %v7774_v23 }
 0x215   :  { %7023 = vmatprep.subr.bf16.mxu0 %v7775_v24 }
 0x21b   :  { %6988 = vmatmul.mubr.msk.bf16.vlgmr.msra.gmra.mxu0 %vm522_vm1, %v8661_v25  ;;  %v8733_v25 = vld [vmem:[%s11521_s14 + $0x8] sm:$0xff]  }
 0x21c   :  { %6991 = vmatprep.mubr.msk.bf16.mxu0 %vm522_vm1, %v925_v44  ;;  %7024 = vmatpush3.bf16.msra.mxu0 %v7775_v24 }
 0x21d   :  { %7025 = vmatprep.subr.bf16.mxu0 %v7776_v1  ;;  %7043 = vmatprep.subr.bf16.mxu1 %v8733_v25 }
 0x220   :  { %7026 = vmatpush3.bf16.msra.mxu0 %v7776_v1 }
 0x223   :  { %6992 = vmatmul.mubr.msk.bf16.gmra.mxu0 %vm522_vm1, %v926_v28 }
 0x224   :  { %6995 = vmatprep.mubr.msk.bf16.mxu0 %vm522_vm1, %v927_v61 }
 0x22b   :  { %6996 = vmatmul.mubr.msk.bf16.gmra.mxu0 %vm522_vm1, %v928_v47 }
 0x22c   :  { %6999 = vmatprep.mubr.msk.bf16.mxu0 %vm522_vm1, %v929_v21 }
 0x233   :  { %7000 = vmatmul.mubr.msk.bf16.gmra.mxu0 %vm522_vm1, %v930_v22 }
 0x2bb   :  { %v6949_v26 = vpop.f32.mrf.mxu0  ;;  %v6969_v27 = vpop.f32.mrf.mxu1 }
 0x2bd   :  { %v1005_v29 = vpop.f32.mrf.mxu0  ;;  %v1121_v30 = vpop.f32.mrf.mxu1 }
 0x2bf   :  { %v6950_v32 = vpop.f32.mrf.mxu0  ;;  %v6970_v34 = vpop.f32.mrf.mxu1 }
 0x2c1   :  { %v1008_v33 = vpop.f32.mrf.mxu0  ;;  %v1123_v37 = vpop.f32.mrf.mxu1 }
 0x2c3   :  { %v6953_v35 = vpop.f32.mrf.mxu0  ;;  %v6973_v42 = vpop.f32.mrf.mxu1 }
 0x2c5   :  { %v1021_v36 = vpop.f32.mrf.mxu0  ;;  %v1136_v53 = vpop.f32.mrf.mxu1 }
 0x2c7   :  { %v8736_v38 = vpop.f32.mrf.mxu0  ;;  %v6974_v60 = vpop.f32.mrf.mxu1 }
 0x2c9   :  { %v1024_v39 = vpop.f32.mrf.mxu0  ;;  %v1139_v63 = vpop.f32.mrf.mxu1 }
 0x2cb   :  { %v8738_v43 = vpop.f32.mrf.mxu0  ;;  %v8750_v40 = vpop.f32.mrf.mxu1 }
 0x2cd   :  { %v8740_v49 = vpop.f32.mrf.mxu0  ;;  %v1152_v46 = vpop.f32.mrf.mxu1 }
 0x2cf   :  { %v8742_v54 = vpop.f32.mrf.mxu0  ;;  %v6978_v41 = vpop.f32.mrf.mxu1 }
 0x2d1   :  { %v1040_v59 = vpop.f32.mrf.mxu0  ;;  %v1155_v47 = vpop.f32.mrf.mxu1 }
 0x2d3   :  { %v8744_v62 = vpop.f32.mrf.mxu0  ;;  %v8763_v4 = vpop.f32.mrf.mxu1 }
 0x2d5   :  { %v8746_v31 = vpop.f32.mrf.mxu0 }
 0x2d7   :  { %v6962_v0 = vpop.f32.mrf.mxu0 }
 0x2d9   :  { %v8748_v2 = vpop.f32.mrf.mxu0 }
 0x2db   :  { %v6989_v44 = vpop.f32.mrf.mxu0 }
 0x2dc   :  { %v1238_v28 = vadd.f32 %v6989_v44, %v1008_v33 }
 0x2dd   :  { %v1229_v3 = vpop.f32.mrf.mxu0 }
 0x2de   :  { %v1292_v45 = vadd.f32 %v1229_v3, %v1123_v37  ;;  %v1294_v48 = vadd.f32 %v6970_v34, %v1238_v28  ;;  %v1168_v37 = vpop.f32.mrf.mxu1 }
 0x2df   :  { %v6990_v5 = vpop.f32.mrf.mxu0 }
 0x2e0   :  { %v1241_v6 = vadd.f32 %v6990_v5, %v6949_v26  ;;  %v1315_v11 = vadd.f32 %v8755_v7, %v1292_v45  ;;  %v1317_v14 = vadd.f32 %v8755_v7, %v1294_v48  ;;  %v7778_v26 = vld [vmem:[%s11521_s14] sm:$0xff]   ;;  %v6982_v5 = vpop.f32.mrf.mxu1 }
 0x2e1   :  { %v1232_v57 = vpop.f32.mrf.mxu0 }
 0x2e2   :  { %v1295_v8 = vadd.f32 %v1241_v6, %v1136_v53  ;;  %v1233_v9 = vadd.f32 %v1232_v57, %v1005_v29  ;;  %v1331_v18 = vmax.f32 %v1315_v11, 0.0  ;;  %v1333_v56 = vmax.f32 %v1317_v14, 0.0 }
 0x2e3   :  { %v6993_v10 = vpop.f32.mrf.mxu0 }
 0x2e4   :  { %v1318_v12 = vadd.f32 %v8755_v7, %v1295_v8  ;;  %v1293_v13 = vadd.f32 %v6969_v27, %v1233_v9  ;;  %v1254_v16 = vadd.f32 %v6993_v10, %v1024_v39  ;;  %v1171_v10 = vpop.f32.mrf.mxu1 }
 0x2e5   :  { %v1245_v15 = vpop.f32.mrf.mxu0 }
 0x2e6   :  { %v1316_v55 = vadd.f32 %v8755_v7, %v1293_v13  ;;  %v1246_v61 = vadd.f32 %v6950_v32, %v1245_v15  ;;  %v1334_v51 = vmax.f32 %v1318_v12, 0.0  ;;  %v1298_v52 = vadd.f32 %v6974_v60, %v1254_v16 }
 0x2e7   :  { %v6994_v17 = vpop.f32.mrf.mxu0 }
 0x2e8   :  { %v1332_v19 = vmax.f32 %v1316_v55, 0.0  ;;  %v1296_v58 = vadd.f32 %v1246_v61, %v1139_v63  ;;  %v1257_v20 = vadd.f32 %v6994_v17, %v6953_v35  ;;  %v8765_v23 = vpack.c.bf16 %v1334_v51, %v1333_v56 }
 0x2e9   :  { %v1248_v50 = vpop.f32.mrf.mxu0  ;;  %v1321_v34 = vadd.f32 %v8755_v7, %v1298_v52 }
 0x2ea   :  { %v1249_v21 = vadd.f32 %v1248_v50, %v1021_v36  ;;  %v8761_v22 = vpack.c.bf16 %v1332_v19, %v1331_v18  ;;  %v1299_v24 = vadd.f32 %v1257_v20, %v1152_v46  ;;  %v1319_v29 = vadd.f32 %v8755_v7, %v1296_v58 }
 0x2eb   :  { %v6997_v1 = vpop.f32.mrf.mxu0  ;;  %v1337_v28 = vmax.f32 %v1321_v34, 0.0 }
 0x2ec   :  { %v1297_v27 = vadd.f32 %v6973_v42, %v1249_v21  ;;  %7007 = vmatprep.mubr.msk.bf16.mxu1 %vm522_vm1, %v8761_v22  ;;  %7027 = vmatprep.mubr.msk.bf16.mxu0 %vm522_vm1, %v8761_v22  ;;  %v1322_v30 = vadd.f32 %v8755_v7, %v1299_v24  ;;  %v1270_v32 = vadd.f32 %v6997_v1, %v1040_v59  ;;  %v1335_v63 = vmax.f32 %v1319_v29, 0.0  ;;  %v7780_v21 = vld [vmem:[%s11523_s17 + $0x18] ss:$12 sps:$4 sm:$0xff]   ;;  %v7784_v24 = vld [vmem:[%s11523_s17] ss:$12 sps:$4 sm:$0xff]  }
 0x2ed   :  { %v1261_v33 = vpop.f32.mrf.mxu0  ;;  %7008 = vmatmul.mubr.msk.bf16.vlgmr.msra.gmra.mxu1 %vm522_vm1, %v8765_v23  ;;  %7028 = vmatmul.mubr.msk.bf16.vlgmr.msra.gmra.mxu0 %vm522_vm1, %v8765_v23  ;;  %v11539_v1 = vmov 0  }
 0x2ee   :  { %v1320_v35 = vadd.f32 %v8755_v7, %v1297_v27  ;;  %v1262_v36 = vadd.f32 %v8736_v38, %v1261_v33  ;;  %7044 = vmatpush3.bf16.msra.mxu1 %v8733_v25  ;;  %v1338_v42 = vmax.f32 %v1322_v30, 0.0  ;;  %v1302_v0 = vadd.f32 %v6978_v41, %v1270_v32 }
 0x2ef   :  { %v6998_v39 = vpop.f32.mrf.mxu0  ;;  %7045 = vmatprep.subr.bf16.mxu1 %v7778_v26  ;;  %v11541_v27 = vmov 0.0  }
 0x2f0   :  { %v1336_v53 = vmax.f32 %v1320_v35, 0.0  ;;  %v1300_v59 = vadd.f32 %v1262_v36, %v1155_v47  ;;  %v1273_v60 = vadd.f32 %v6998_v39, %v8738_v43  ;;  %v1350_v25 = vpack.c.bf16 %v1338_v42, %v1337_v28 }
 0x2f1   :  { %v1264_v44 = vpop.f32.mrf.mxu0  ;;  %v1325_v43 = vadd.f32 %v8755_v7, %v1302_v0 }
 0x2f2   :  { %v1303_v3 = vadd.f32 %v1273_v60, %v1168_v37  ;;  %v1265_v46 = vadd.f32 %v1264_v44, %v8740_v49  ;;  %7046 = vmatpush3.bf16.msra.mxu1 %v7778_v26  ;;  %v1349_v45 = vpack.c.bf16 %v1336_v53, %v1335_v63  ;;  %v1323_v6 = vadd.f32 %v8755_v7, %v1300_v59  ;;  %v8844_v26 = vld [vmem:[%s11524_s18 + $0xac] ss:$12 sps:$4 sm:$0xff]  }
 0x2f3   :  { %v7001_v38 = vpop.f32.mrf.mxu0  ;;  %v1341_v15 = vmax.f32 %v1325_v43, 0.0 }
 0x2f4   :  { %v1326_v48 = vadd.f32 %v8755_v7, %v1303_v3  ;;  %v1301_v57 = vadd.f32 %v8750_v40, %v1265_v46  ;;  %7011 = vmatprep.mubr.msk.bf16.mxu1 %vm522_vm1, %v1349_v45  ;;  %7031 = vmatprep.mubr.msk.bf16.mxu0 %vm522_vm1, %v1349_v45  ;;  %v1286_v9 = vadd.f32 %v7001_v38, %v8748_v2  ;;  %v1339_v12 = vmax.f32 %v1323_v6, 0.0 }
 0x2f5   :  { %v1277_v8 = vpop.f32.mrf.mxu0  ;;  %7012 = vmatmul.mubr.msk.bf16.gmra.mxu1 %vm522_vm1, %v1350_v25  ;;  %7032 = vmatmul.mubr.msk.bf16.gmra.mxu0 %vm522_vm1, %v1350_v25 }
 0x2f6   :  { %v1324_v49 = vadd.f32 %v8755_v7, %v1301_v57  ;;  %v1278_v41 = vadd.f32 %v8742_v54, %v1277_v8  ;;  %v1342_v11 = vmax.f32 %v1326_v48, 0.0  ;;  %v1306_v61 = vadd.f32 %v6982_v5, %v1286_v9 }
 0x2f7   :  { %v7002_v40 = vpop.f32.mrf.mxu0 }
 0x2f8   :  { %v1340_v13 = vmax.f32 %v1324_v49, 0.0  ;;  %v1304_v14 = vadd.f32 %v1278_v41, %v1171_v10  ;;  %v1289_v55 = vadd.f32 %v7002_v40, %v8744_v62  ;;  %v1352_v51 = vpack.c.bf16 %v1342_v11, %v1341_v15  ;;  %v8867_v40 = vld [vmem:[%s11525_s16] ss:$0 sm:$0xff] }
 0x2f9   :  { %v1280_v16 = vpop.f32.mrf.mxu0  ;;  %v1329_v19 = vadd.f32 %v8755_v7, %v1306_v61 }
 0x2fa   :  { %v1281_v47 = vadd.f32 %v1280_v16, %v8746_v31  ;;  %v1351_v2 = vpack.c.bf16 %v1340_v13, %v1339_v12  ;;  %v1327_v54 = vadd.f32 %v8755_v7, %v1304_v14  ;;  %v1330_v17 = vadd.f32 %v8755_v7, %v1289_v55 }
 0x2fb   :  { %v1345_v20 = vmax.f32 %v1329_v19, 0.0 }
 0x2fc   :  { %v1305_v18 = vadd.f32 %v8763_v4, %v1281_v47  ;;  %7015 = vmatprep.mubr.msk.bf16.mxu1 %vm522_vm1, %v1351_v2  ;;  %7035 = vmatprep.mubr.msk.bf16.mxu0 %vm522_vm1, %v1351_v2  ;;  %v1343_v31 = vmax.f32 %v1327_v54, 0.0  ;;  %v1346_v56 = vmax.f32 %v1330_v17, 0.0  ;;  %v7783_v4 = vld [vmem:[%s11523_s17 + $0x8] ss:$12 sps:$4 sm:$0xff]  }
 0x2fd   :  { %7016 = vmatmul.mubr.msk.bf16.gmra.mxu1 %vm522_vm1, %v1352_v51  ;;  %7036 = vmatmul.mubr.msk.bf16.gmra.mxu0 %vm522_vm1, %v1352_v51 }
 0x2fe   :  { %v1328_v62 = vadd.f32 %v8755_v7, %v1305_v18  ;;  %v1354_v52 = vpack.c.bf16 %v1346_v56, %v1345_v20  ;;  %v7779_v7 = vld [vmem:[%s11523_s17 + $0x20] ss:$12 sps:$4 sm:$0xff]  }
 0x2ff   :  { %7063 = vmatprep.subr.bf16.mxu1 %v7779_v7 }
 0x300   :  { %v1344_v58 = vmax.f32 %v1328_v62, 0.0 }
 0x302   :  { %v1353_v50 = vpack.c.bf16 %v1344_v58, %v1343_v31 }
 0x304   :  { %7019 = vmatprep.mubr.msk.bf16.mxu1 %vm522_vm1, %v1353_v50  ;;  %7039 = vmatprep.mubr.msk.bf16.mxu0 %vm522_vm1, %v1353_v50 }
 0x305   :  { %7020 = vmatmul.mubr.msk.bf16.gmra.mxu1 %vm522_vm1, %v1354_v52  ;;  %7040 = vmatmul.mubr.msk.bf16.gmra.mxu0 %vm522_vm1, %v1354_v52 }
 0x306   :  { %7047 = vmatprep.mubr.msk.bf16.mxu1 %vm522_vm1, %v8761_v22  ;;  %v7782_v22 = vld [vmem:[%s11523_s17 + $0x1c] ss:$12 sps:$4 sm:$0xff]   ;;  %1892 = vmatprep.mubr.bf16.mxu0 %v11539_v1 }
 0x307   :  { %1872 = vmatprep.subr.bf16.mxu0 %v7782_v22 }
 0x308   :  { %1873 = vmatpush1.bf16.msra.mxu0 %v7780_v21  ;;  %v8876_v21 = vld [vmem:[%s11524_s18 + $0xb0] ss:$12 sps:$4 sm:$0xff]  }
 0x30d   :  { %7048 = vmatmul.mubr.msk.bf16.vlgmr.msra.gmra.mxu1 %vm522_vm1, %v8765_v23  ;;  %v7786_v23 = vld [vmem:[%s11523_s17 + $0x4] ss:$12 sps:$4 sm:$0xff]  }
 0x30e   :  { %7051 = vmatprep.mubr.msk.bf16.mxu1 %vm522_vm1, %v1349_v45  ;;  %7064 = vmatpush3.bf16.msra.mxu1 %v7779_v7 }
 0x30f   :  { %7065 = vmatprep.subr.bf16.mxu1 %v7783_v4  ;;  %1874 = vmatprep.subr.bf16.mxu0 %v7786_v23 }
 0x310   :  { %1875 = vmatpush1.bf16.msra.mxu0 %v7784_v24  ;;  %v8881_v24 = vld [vmem:[%s11524_s18 + $0xa8] ss:$12 sps:$4 sm:$0xff]  }
 0x311   :  { %7083 = vmatprep.subr.bf16.mxu0 %v11541_v27 }
 0x312   :  { %7066 = vmatpush3.bf16.msra.mxu1 %v7783_v4 }
 0x313   :  { %2247 = vmatprep.subr.bf16.mxu1 %v8844_v26 }
 0x315   :  { %7052 = vmatmul.mubr.msk.bf16.gmra.mxu1 %vm522_vm1, %v1350_v25 }
 0x316   :  { %7055 = vmatprep.mubr.msk.bf16.mxu1 %vm522_vm1, %v1351_v2 }
 0x31d   :  { %7056 = vmatmul.mubr.msk.bf16.gmra.mxu1 %vm522_vm1, %v1352_v51 }
 0x31e   :  { %7059 = vmatprep.mubr.msk.bf16.mxu1 %vm522_vm1, %v1353_v50 }
 0x325   :  { %7060 = vmatmul.mubr.msk.bf16.gmra.mxu1 %vm522_vm1, %v1354_v52 }
 0x3ad   :  { %v7009_v29 = vpop.f32.mrf.mxu1  ;;  %v7029_v30 = vpop.f32.mrf.mxu0 }
 0x3af   :  { %v1429_v32 = vpop.f32.mrf.mxu1  ;;  %v1545_v33 = vpop.f32.mrf.mxu0 }
 0x3b1   :  { %v7010_v34 = vpop.f32.mrf.mxu1  ;;  %v7030_v36 = vpop.f32.mrf.mxu0 }
 0x3b3   :  { %v1432_v35 = vpop.f32.mrf.mxu1  ;;  %v1547_v42 = vpop.f32.mrf.mxu0 }
 0x3b5   :  { %v7013_v37 = vpop.f32.mrf.mxu1  ;;  %v7033_v60 = vpop.f32.mrf.mxu0 }
 0x3b7   :  { %v1445_v39 = vpop.f32.mrf.mxu1  ;;  %v1560_v44 = vpop.f32.mrf.mxu0 }
 0x3b9   :  { %v8848_v53 = vpop.f32.mrf.mxu1  ;;  %v7034_v46 = vpop.f32.mrf.mxu0 }
 0x3bb   :  { %v1448_v59 = vpop.f32.mrf.mxu1  ;;  %v1563_v45 = vpop.f32.mrf.mxu0 }
 0x3bd   :  { %v8850_v63 = vpop.f32.mrf.mxu1  ;;  %v8862_v48 = vpop.f32.mrf.mxu0 }
 0x3bf   :  { %v8852_v0 = vpop.f32.mrf.mxu1  ;;  %v1576_v49 = vpop.f32.mrf.mxu0 }
 0x3c1   :  { %v8854_v28 = vpop.f32.mrf.mxu1  ;;  %v7038_v15 = vpop.f32.mrf.mxu0 }
 0x3c3   :  { %v1464_v3 = vpop.f32.mrf.mxu1  ;;  %v1579_v19 = vpop.f32.mrf.mxu0 }
 0x3c5   :  { %v8856_v5 = vpop.f32.mrf.mxu1 }
 0x3c7   :  { %v8858_v38 = vpop.f32.mrf.mxu1 }
 0x3c9   :  { %v7022_v25 = vpop.f32.mrf.mxu1 }
 0x3cb   :  { %v8860_v6 = vpop.f32.mrf.mxu1 }
 0x3cd   :  { %v7049_v57 = vpop.f32.mrf.mxu1 }
 0x3ce   :  { %v1662_v43 = vadd.f32 %v7049_v57, %v1432_v35  ;;  %v8915_v57 = vld [vmem:[%s11524_s18 + $0x7c] ss:$12 sps:$4 sm:$0xff]  }
 0x3cf   :  { %v1653_v8 = vpop.f32.mrf.mxu1 }
 0x3d0   :  { %v1716_v41 = vadd.f32 %v1653_v8, %v1547_v42  ;;  %v1718_v11 = vadd.f32 %v7030_v36, %v1662_v43 }
 0x3d1   :  { %v7050_v9 = vpop.f32.mrf.mxu1 }
 0x3d2   :  { %v1665_v10 = vadd.f32 %v7050_v9, %v7009_v29  ;;  %v1739_v16 = vadd.f32 %v8867_v40, %v1716_v41  ;;  %v1741_v2 = vadd.f32 %v8867_v40, %v1718_v11  ;;  %v8883_v29 = vpop.f32.mrf.mxu0 }
 0x3d3   :  { %v1656_v12 = vpop.f32.mrf.mxu1 }
 0x3d4   :  { %v1719_v13 = vadd.f32 %v1665_v10, %v1560_v44  ;;  %v1657_v14 = vadd.f32 %v1656_v12, %v1429_v32  ;;  %v1755_v56 = vmax.f32 %v1739_v16, 0.0  ;;  %v1757_v20 = vmax.f32 %v1741_v2, 0.0 }
 0x3d5   :  { %v7053_v55 = vpop.f32.mrf.mxu1 }
 0x3d6   :  { %v1742_v61 = vadd.f32 %v8867_v40, %v1719_v13  ;;  %v1717_v47 = vadd.f32 %v7029_v30, %v1657_v14  ;;  %v1678_v17 = vadd.f32 %v7053_v55, %v1448_v59  ;;  %v8899_v59 = vld [vmem:[%s11524_s18 + $0x98] ss:$12 sps:$4 sm:$0xff]   ;;  %v8926_v14 = vld [vmem:[%s11524_s18 + $0x80] ss:$12 sps:$4 sm:$0xff]  }
 0x3d7   :  { %v1669_v51 = vpop.f32.mrf.mxu1 }
 0x3d8   :  { %v1740_v54 = vadd.f32 %v8867_v40, %v1717_v47  ;;  %v1670_v18 = vadd.f32 %v7010_v34, %v1669_v51  ;;  %v1758_v62 = vmax.f32 %v1742_v61, 0.0  ;;  %v1722_v4 = vadd.f32 %v7034_v46, %v1678_v17  ;;  %v8888_v34 = vld [vmem:[%s11524_s18 + $0x94] ss:$12 sps:$4 sm:$0xff]   ;;  %v8943_v51 = vld [vmem:[%s11524_s18 + $0x64] ss:$12 sps:$4 sm:$0xff]  }
 0x3d9   :  { %v7054_v31 = vpop.f32.mrf.mxu1 }
 0x3da   :  { %v1756_v58 = vmax.f32 %v1740_v54, 0.0  ;;  %v1720_v50 = vadd.f32 %v1670_v18, %v1563_v45  ;;  %v1681_v52 = vadd.f32 %v7054_v31, %v7013_v37  ;;  %v1772_v30 = vpack.c.bf16 %v1758_v62, %v1757_v20  ;;  %v1592_v45 = vpop.f32.mrf.mxu0  ;;  %v8957_v62 = vld [vmem:[%s11524_s18 + $0x68] ss:$12 sps:$4 sm:$0xff]  }
 0x3db   :  { %v1672_v7 = vpop.f32.mrf.mxu1 }
 0x3dc   :  { %v1771_v22 = vpack.c.bf16 %v1756_v58, %v1755_v56  ;;  %v1673_v23 = vadd.f32 %v1672_v7, %v1445_v39  ;;  %v1723_v32 = vadd.f32 %v1681_v52, %v1576_v49  ;;  %v1743_v36 = vadd.f32 %v8867_v40, %v1720_v50  ;;  %v7042_v55 = vpop.f32.mrf.mxu0 }
 0x3dd   :  { %v7057_v33 = vpop.f32.mrf.mxu1 }
 0x3de   :  { %v1721_v35 = vadd.f32 %v7033_v60, %v1673_v23  ;;  %6246 = vmatmul.mubr.msk.bf16.vlgmr.msra.gmra.mxu0 %vm522_vm1, %v1771_v22  ;;  %7067 = vmatprep.mubr.msk.bf16.mxu1 %vm522_vm1, %v1771_v22  ;;  %v1746_v37 = vadd.f32 %v8867_v40, %v1723_v32  ;;  %v1694_v39 = vadd.f32 %v7057_v33, %v1464_v3  ;;  %v8908_v3 = vld [vmem:[%s11524_s18 + $0x90] ss:$12 sps:$4 sm:$0xff]   ;;  %v1759_v9 = vmax.f32 %v1743_v36, 0.0  ;;  %v1595_v31 = vpop.f32.mrf.mxu0 }
 0x3df   :  { %v1685_v42 = vpop.f32.mrf.mxu1  ;;  %7068 = vmatmul.mubr.msk.bf16.vlgmr.msra.gmra.mxu1 %vm522_vm1, %v1772_v30  ;;  %7084 = vmatpush3.bf16.msra.mxu0 %v8876_v21  ;;  %v1745_v60 = vadd.f32 %v8867_v40, %v1722_v4  ;;  %v8971_v4 = vld [vmem:[%s11524_s18 + $0x4c] ss:$12 sps:$4 sm:$0xff]   ;;  %v8978_v33 = vld [vmem:[%s11524_s18 + $0x50] ss:$12 sps:$4 sm:$0xff]  }
 0x3e0   :  { %v1744_v44 = vadd.f32 %v8867_v40, %v1721_v35  ;;  %v1686_v46 = vadd.f32 %v8848_v53, %v1685_v42  ;;  %2248 = vmatpush1.bf16.msra.mxu1 %v8881_v24  ;;  %1902 = vmatprep.mubr.bf16.mxu0 %v11539_v1  ;;  %v1762_v53 = vmax.f32 %v1746_v37, 0.0  ;;  %v1726_v41 = vadd.f32 %v7038_v15, %v1694_v39  ;;  %v8932_v15 = vld [vmem:[%s11524_s18 + $0x78] ss:$12 sps:$4 sm:$0xff]   ;;  %v8995_v39 = vld [vmem:[%s11524_s18 + $0x34] ss:$12 sps:$4 sm:$0xff]  }
 0x3e1   :  { %v7058_v25 = vpop.f32.mrf.mxu1  ;;  %2249 = vmatprep.subr.bf16.mxu1 %v8888_v34  ;;  %7085 = vmatprep.subr.bf16.mxu0 %v11541_v27  ;;  %v1761_v11 = vmax.f32 %v1745_v60, 0.0 }
 0x3e2   :  { %v1760_v43 = vmax.f32 %v1744_v44, 0.0  ;;  %v1724_v8 = vadd.f32 %v1686_v46, %v1579_v19  ;;  %v1697_v49 = vadd.f32 %v7058_v25, %v8850_v63  ;;  %v1749_v54 = vadd.f32 %v8867_v40, %v1726_v41  ;;  %v9012_v44 = vld [vmem:[%s11524_s18 + $0x30] ss:$12 sps:$4 sm:$0xff]  }
 0x3e3   :  { %v1688_v10 = vpop.f32.mrf.mxu1  ;;  %7086 = vmatpush3.bf16.msra.mxu0 %v8899_v59  ;;  %v9019_v25 = vld [vmem:[%s11524_s18 + $0x1c] ss:$12 sps:$4 sm:$0xff]   ;;  %v9040_v41 = vld [vmem:[%s11524_s18 + $0x4] ss:$12 sps:$4 sm:$0xff]  }
 0x3e4   :  { %v1727_v12 = vadd.f32 %v1697_v49, %v1592_v45  ;;  %v1689_v13 = vadd.f32 %v1688_v10, %v8852_v0  ;;  %2250 = vmatpush1.bf16.msra.mxu1 %v8908_v3  ;;  %7087 = vmatprep.subr.bf16.mxu0 %v11541_v27  ;;  %v1773_v16 = vpack.c.bf16 %v1760_v43, %v1759_v9  ;;  %v1765_v52 = vmax.f32 %v1749_v54, 0.0  ;;  %v9031_v49 = vld [vmem:[%s11524_s18 + $0x18] ss:$12 sps:$4 sm:$0xff]   ;;  %v9049_v10 = vld [vmem:[%s11524_s18 + $0x8] ss:$12 sps:$4 sm:$0xff]  }
 0x3e5   :  { %v7061_v63 = vpop.f32.mrf.mxu1  ;;  %2251 = vmatprep.subr.bf16.mxu1 %v8915_v57  ;;  %v8934_v0 = vpack.c.bf16 %v1762_v53, %v1761_v11  ;;  %v1747_v61 = vadd.f32 %v8867_v40, %v1724_v8  ;;  %v9025_v8 = vld [vmem:[%s11524_s18 + $0x20] ss:$12 sps:$4 sm:$0xff]  }
 0x3e6   :  { %v1750_v47 = vadd.f32 %v8867_v40, %v1727_v12  ;;  %v1725_v2 = vadd.f32 %v8862_v48, %v1689_v13  ;;  %6247 = vmatmul.mubr.msk.bf16.gmra.mxu0 %vm522_vm1, %v1772_v30  ;;  %7071 = vmatprep.mubr.msk.bf16.mxu1 %vm522_vm1, %v1773_v16  ;;  %v1710_v19 = vadd.f32 %v7061_v63, %v8860_v6  ;;  %v8963_v6 = vld [vmem:[%s11524_s18 + $0x60] ss:$12 sps:$4 sm:$0xff]   ;;  %v1789_v12 = vlaneseq }
 0x3e7   :  { %v1701_v17 = vpop.f32.mrf.mxu1  ;;  %1912 = vmatprep.mubr.bf16.mxu0 %v11539_v1  ;;  %7072 = vmatmul.mubr.msk.bf16.gmra.mxu1 %vm522_vm1, %v8934_v0  ;;  %v9055_v11 = vld [vmem:[%s11524_s18] ss:$12 sps:$4 sm:$0xff]  }
 0x3e8   :  { %v1748_v18 = vadd.f32 %v8867_v40, %v1725_v2  ;;  %v1702_v48 = vadd.f32 %v8854_v28, %v1701_v17  ;;  %7088 = vmatpush3.bf16.msra.mxu0 %v8926_v14  ;;  %v1766_v56 = vmax.f32 %v1750_v47, 0.0  ;;  %2252 = vmatpush1.bf16.msra.mxu1 %v8932_v15  ;;  %v1763_v28 = vmax.f32 %v1747_v61, 0.0  ;;  %v1787_v63 = vld [vmem:[%s11526_s19] sm:$0x7] }
 0x3e9   :  { %v7062_v58 = vpop.f32.mrf.mxu1  ;;  %7089 = vmatprep.subr.bf16.mxu0 %v11541_v27  ;;  %2253 = vmatprep.subr.bf16.mxu1 %v8943_v51  ;;  %v1730_v23 = vadd.f32 %v7042_v55, %v1710_v19  ;;  %v1790_v13 = vshrl.u32 %v1789_v12, 7 }
 0x3ea   :  { %v1764_v20 = vmax.f32 %v1748_v18, 0.0  ;;  %v1728_v50 = vadd.f32 %v1702_v48, %v1595_v31  ;;  %v1713_v7 = vadd.f32 %v7062_v58, %v8856_v5  ;;  %v1776_v35 = vpack.c.bf16 %v1766_v56, %v1765_v52  ;;  %v8984_v5 = vld [vmem:[%s11524_s18 + $0x48] ss:$12 sps:$4 sm:$0xff]  }
 0x3eb   :  { %v1704_v22 = vpop.f32.mrf.mxu1  ;;  %v1753_v42 = vadd.f32 %v8867_v40, %v1730_v23  ;;  %v9110_v55 = vsub.s32 2, %v1790_v13  ;;  %v9132_v48 = vsub.s32 1, %v1790_v13 }
 0x3ec   :  { %v1705_v30 = vadd.f32 %v1704_v22, %v8858_v38  ;;  %v1775_v32 = vpack.c.bf16 %v1764_v20, %v1763_v28  ;;  %7090 = vmatpush3.bf16.msra.mxu0 %v8957_v62  ;;  %2254 = vmatpush1.bf16.msra.mxu1 %v8963_v6  ;;  %v1751_v38 = vadd.f32 %v8867_v40, %v1728_v50 }
 0x3ed   :  { %7091 = vmatprep.subr.bf16.mxu0 %v11541_v27  ;;  %v1754_v36 = vadd.f32 %v8867_v40, %v1713_v7  ;;  %2255 = vmatprep.subr.bf16.mxu1 %v8971_v4  ;;  %v1769_v53 = vmax.f32 %v1753_v42, 0.0  ;;  %11570 = vst [vmem:[#allocation2_spill] sm:$0xff] %v9110_v55  ;;  %11572 = vst [vmem:[#allocation4_spill] sm:$0xff] %v9132_v48  ;;  %v9145_v52 = vrot.slane %v1787_v63, %v9132_v48 }
 0x3ee   :  { %v1729_v37 = vadd.f32 %v8883_v29, %v1705_v30  ;;  %6248 = vmatmul.mubr.msk.bf16.gmra.mxu0 %vm522_vm1, %v1773_v16  ;;  %7075 = vmatprep.mubr.msk.bf16.mxu1 %vm522_vm1, %v1775_v32  ;;  %v9006_v29 = vld [vmem:[%s11524_s18 + $0x38] ss:$12 sps:$4 sm:$0xff]   ;;  %v1767_v46 = vmax.f32 %v1751_v38, 0.0  ;;  %v9116_v16 = vrot.slane %v1787_v63, %v9110_v55 }
 0x3ef   :  { %1922 = vmatprep.mubr.bf16.mxu0 %v11539_v1  ;;  %7076 = vmatmul.mubr.msk.bf16.gmra.mxu1 %vm522_vm1, %v1776_v35 }
 0x3f0   :  { %v1752_v60 = vadd.f32 %v8867_v40, %v1729_v37  ;;  %7092 = vmatpush3.bf16.msra.mxu0 %v8978_v33  ;;  %2256 = vmatpush1.bf16.msra.mxu1 %v8984_v5  ;;  %v1770_v40 = vmax.f32 %v1754_v36, 0.0 }
 0x3f1   :  { %7093 = vmatprep.subr.bf16.mxu0 %v11541_v27  ;;  %2257 = vmatprep.subr.bf16.mxu1 %v8995_v39 }
 0x3f2   :  { %v1768_v45 = vmax.f32 %v1752_v60, 0.0  ;;  %v1778_v9 = vpack.c.bf16 %v1770_v40, %v1769_v53 }
 0x3f4   :  { %v1777_v43 = vpack.c.bf16 %v1768_v45, %v1767_v46  ;;  %7094 = vmatpush3.bf16.msra.mxu0 %v9006_v29  ;;  %2258 = vmatpush1.bf16.msra.mxu1 %v9012_v44 }
 0x3f5   :  { %7095 = vmatprep.subr.bf16.mxu0 %v11541_v27  ;;  %2259 = vmatprep.subr.bf16.mxu1 %v9019_v25 }
 0x3f6   :  { %6249 = vmatmul.mubr.msk.bf16.gmra.mxu0 %vm522_vm1, %v8934_v0  ;;  %7079 = vmatprep.mubr.msk.bf16.mxu1 %vm522_vm1, %v1777_v43  ;;  %v9118_v0 = vsub.s32 0, %v1790_v13 }
 0x3f7   :  { %1932 = vmatprep.mubr.bf16.mxu0 %v11539_v1  ;;  %7080 = vmatmul.mubr.msk.bf16.gmra.mxu1 %vm522_vm1, %v1778_v9 }
 0x3f8   :  { %7096 = vmatpush3.bf16.msra.mxu0 %v9025_v8  ;;  %2260 = vmatpush1.bf16.msra.mxu1 %v9031_v49  ;;  %11571 = vst [vmem:[#allocation3_spill] sm:$0xff] %v9118_v0  ;;  %v9128_v17 = vrot.slane %v1787_v63, %v9118_v0 }
 0x3f9   :  { %2279 = vmatprep.mubr.bf16.mxu1 %v11539_v1  ;;  %2261 = vmatprep.subr.bf16.mxu1 %v9040_v41 }
 0x3fa   :  { %7097 = vmatprep.subr.bf16.mxu0 %v11541_v27 }
 0x3fc   :  { %7098 = vmatpush3.bf16.msra.mxu0 %v9049_v10  ;;  %2262 = vmatpush1.bf16.msra.mxu1 %v9055_v11 }
 0x3fd   :  { %7103 = vmatprep.subr.bf16.mxu0 %v11541_v27  ;;  %2350 = vmatprep.subr.bf16.mxu1 %v8844_v26 }
 0x3fe   :  { %6250 = vmatmul.mubr.msk.bf16.gmra.mxu0 %vm522_vm1, %v1775_v32 }
 0x3ff   :  { %1942 = vmatprep.mubr.bf16.mxu0 %v11539_v1  ;;  %2280 = vmatmul.mubr.bf16.vlgmr.msra.gmra.mxu1 %v11539_v1 }
 0x400   :  { %2351 = vmatpush1.bf16.msra.mxu1 %v8881_v24  ;;  %2382 = vmatprep.mubr.bf16.mxu1 %v11539_v1 }
 0x401   :  { %2352 = vmatprep.subr.bf16.mxu1 %v8888_v34 }
 0x404   :  { %2353 = vmatpush1.bf16.msra.mxu1 %v8908_v3 }
 0x405   :  { %2354 = vmatprep.subr.bf16.mxu1 %v8915_v57 }
 0x406   :  { %6251 = vmatmul.mubr.msk.bf16.gmra.mxu0 %vm522_vm1, %v1776_v35 }
 0x407   :  { %1952 = vmatprep.mubr.bf16.mxu0 %v11539_v1 }
 0x408   :  { %2355 = vmatpush1.bf16.msra.mxu1 %v8932_v15 }
 0x409   :  { %2356 = vmatprep.subr.bf16.mxu1 %v8943_v51 }
 0x40c   :  { %2357 = vmatpush1.bf16.msra.mxu1 %v8963_v6 }
 0x40d   :  { %2358 = vmatprep.subr.bf16.mxu1 %v8971_v4 }
 0x40e   :  { %6252 = vmatmul.mubr.msk.bf16.gmra.mxu0 %vm522_vm1, %v1777_v43 }
 0x40f   :  { %1962 = vmatprep.mubr.bf16.mxu0 %v11539_v1 }
 0x410   :  { %2359 = vmatpush1.bf16.msra.mxu1 %v8984_v5 }
 0x411   :  { %2360 = vmatprep.subr.bf16.mxu1 %v8995_v39 }
 0x414   :  { %2361 = vmatpush1.bf16.msra.mxu1 %v9012_v44 }
 0x415   :  { %2362 = vmatprep.subr.bf16.mxu1 %v9019_v25 }
 0x416   :  { %6253 = vmatmul.mubr.msk.bf16.gmra.mxu0 %vm522_vm1, %v1778_v9 }
 0x417   :  { %7099 = vmatprep.mubr.msk.bf16.mxu0 %vm8301_vm2, %v11541_v27 }
 0x418   :  { %2363 = vmatpush1.bf16.msra.mxu1 %v9031_v49 }
 0x419   :  { %2364 = vmatprep.subr.bf16.mxu1 %v9040_v41 }
 0x41c   :  { %2365 = vmatpush1.bf16.msra.mxu1 %v9055_v11 }
 0x41d   :  { %2453 = vmatprep.subr.bf16.mxu1 %v8844_v26 }
 0x41e   :  { %7100 = vmatmul.mubr.bf16.vlgmr.msra.gmra.mxu0 %v11539_v1 }
 0x41f   :  { %7104 = vmatpush3.bf16.msra.mxu0 %v8876_v21  ;;  %7119 = vmatprep.mubr.msk.bf16.mxu0 %vm8301_vm2, %v11541_v27 }
 0x420   :  { %7105 = vmatprep.subr.bf16.mxu0 %v11541_v27 }
 0x423   :  { %7106 = vmatpush3.bf16.msra.mxu0 %v8899_v59 }
 0x424   :  { %7107 = vmatprep.subr.bf16.mxu0 %v11541_v27 }
 0x427   :  { %7108 = vmatpush3.bf16.msra.mxu0 %v8926_v14 }
 0x428   :  { %7109 = vmatprep.subr.bf16.mxu0 %v11541_v27 }
 0x42b   :  { %7110 = vmatpush3.bf16.msra.mxu0 %v8957_v62 }
 0x42c   :  { %7111 = vmatprep.subr.bf16.mxu0 %v11541_v27 }
 0x42f   :  { %7112 = vmatpush3.bf16.msra.mxu0 %v8978_v33 }
 0x430   :  { %7113 = vmatprep.subr.bf16.mxu0 %v11541_v27 }
 0x433   :  { %7114 = vmatpush3.bf16.msra.mxu0 %v9006_v29 }
 0x434   :  { %7115 = vmatprep.subr.bf16.mxu0 %v11541_v27 }
 0x437   :  { %7116 = vmatpush3.bf16.msra.mxu0 %v9025_v8 }
 0x438   :  { %7117 = vmatprep.subr.bf16.mxu0 %v11541_v27 }
 0x43b   :  { %7118 = vmatpush3.bf16.msra.mxu0 %v9049_v10 }
 0x43c   :  { %7123 = vmatprep.subr.bf16.mxu0 %v11541_v27 }
 0x49e   :  { %v9120_v61 = vpop.f32.mrf.mxu0 }
 0x49f   :  { %v7069_v47 = vpop.f32.mrf.mxu1 }
 0x4a0   :  { %v9123_v2 = vadd.f32 %v7069_v47, %v9116_v16  ;;  %v9125_v54 = vpop.f32.mrf.mxu0 }
 0x4a1   :  { %v9130_v18 = vpop.f32.mrf.mxu1 }
 0x4a2   :  { %v1898_v19 = vpop.f32.mrf.mxu0 }
 0x4a3   :  { %v9135_v31 = vadd.f32 %v1898_v19, %v9128_v17  ;;  %v7070_v56 = vpop.f32.mrf.mxu1 }
 0x4a4   :  { %v9138_v58 = vadd.f32 %v7070_v56, %v9116_v16  ;;  %v9140_v28 = vpop.f32.mrf.mxu0 }
 0x4a5   :  { %v9142_v20 = vpop.f32.mrf.mxu1 }
 0x4a6   :  { %v1904_v50 = vpop.f32.mrf.mxu0 }
 0x4a7   :  { %v9148_v7 = vadd.f32 %v1904_v50, %v9128_v17  ;;  %v7073_v22 = vpop.f32.mrf.mxu1 }
 0x4a8   :  { %v1906_v23 = vpop.f32.mrf.mxu0  ;;  %v9151_v30 = vadd.f32 %v7073_v22, %v9116_v16 }
 0x4a9   :  { %v9154_v32 = vadd.f32 %v1906_v23, %v9145_v52  ;;  %v2023_v35 = vpop.f32.mrf.mxu1 }
 0x4aa   :  { %11573 = vst [vmem:[#allocation5_spill] sm:$0xff] %v9151_v30  ;;  %v1908_v38 = vpop.f32.mrf.mxu0  ;;  %v9157_v36 = vadd.f32 %v2023_v35, %v9116_v16 }
 0x4ab   :  { %v9160_v37 = vadd.f32 %v1908_v38, %v9128_v17  ;;  %v7074_v42 = vpop.f32.mrf.mxu1 }
 0x4ac   :  { %v9162_v60 = vpop.f32.mrf.mxu0  ;;  %v9165_v46 = vadd.f32 %v7074_v42, %v9116_v16 }
 0x4ad   :  { %v9167_v40 = vpop.f32.mrf.mxu1 }
 0x4ae   :  { %11574 = vst [vmem:[#allocation6_spill] sm:$0xff] %v9165_v46  ;;  %v1914_v45 = vpop.f32.mrf.mxu0 }
 0x4af   :  { %v9170_v53 = vadd.f32 %v1914_v45, %v9128_v17  ;;  %v7077_v43 = vpop.f32.mrf.mxu1 }
 0x4b0   :  { %v1916_v9 = vpop.f32.mrf.mxu0  ;;  %v9173_v12 = vadd.f32 %v7077_v43, %v9116_v16 }
 0x4b1   :  { %v9176_v13 = vadd.f32 %v1916_v9, %v9145_v52  ;;  %v2039_v63 = vpop.f32.mrf.mxu1 }
 0x4b2   :  { %11575 = vst [vmem:[#allocation7_spill] sm:$0xff] %v9173_v12  ;;  %v1918_v47 = vpop.f32.mrf.mxu0  ;;  %v9179_v19 = vadd.f32 %v2039_v63, %v9116_v16 }
 0x4b3   :  { %v9182_v56 = vadd.f32 %v1918_v47, %v9128_v17  ;;  %v7078_v50 = vpop.f32.mrf.mxu1 }
 0x4b4   :  { %11576 = vst [vmem:[#allocation8_spill] sm:$0xff] %v9179_v19  ;;  %v9184_v22 = vpop.f32.mrf.mxu0  ;;  %v9187_v23 = vadd.f32 %v7078_v50, %v9116_v16  ;;  %v2102_v50 = vld [vmem:[%s11582_s6] sm:$0x7] }
 0x4b5   :  { %v9189_v35 = vpop.f32.mrf.mxu1 }
 0x4b6   :  { %11577 = vst [vmem:[#allocation9_spill] sm:$0xff] %v9187_v23  ;;  %11578 = vst [vmem:[#allocation10_spill] sm:$0xff] %v9189_v35  ;;  %v1924_v38 = vpop.f32.mrf.mxu0 }
 0x4b7   :  { %v9192_v42 = vadd.f32 %v1924_v38, %v9128_v17  ;;  %v7081_v45 = vpop.f32.mrf.mxu1 }
 0x4b8   :  { %v1926_v43 = vpop.f32.mrf.mxu0  ;;  %v9195_v9 = vadd.f32 %v7081_v45, %v9116_v16 }
 0x4b9   :  { %11579 = vst [vmem:[#allocation11_spill] sm:$0xff] %v9192_v42  ;;  %v9198_v63 = vadd.f32 %v1926_v43, %v9145_v52  ;;  %v2055_v47 = vpop.f32.mrf.mxu1  ;;  %v9215_v43 = vrot.slane %v2102_v50, %v9118_v0 }
 0x4ba   :  { %11580 = vst [vmem:[#allocation12_spill] sm:$0xff] %v9195_v9  ;;  %v1928_v1 = vpop.f32.mrf.mxu0  ;;  %v9204_v27 = vadd.f32 %v2055_v47, %v9116_v16 }
 0x4bb   :  { %11581 = vst [vmem:[#allocation13_spill] sm:$0xff] %v9198_v63  ;;  %v9207_v38 = vadd.f32 %v1928_v1, %v9128_v17  ;;  %v7082_v23 = vpop.f32.mrf.mxu1  ;;  %v1895_v1 = vadd.f32 %v9120_v61, %v9128_v17 }
 0x4bc   :  { %11583 = vst [vmem:[#allocation14_spill] sm:$0xff] %v9204_v27  ;;  %v9209_v12 = vpop.f32.mrf.mxu0  ;;  %v9212_v45 = vadd.f32 %v7082_v23, %v9116_v16  ;;  %v9229_v23 = vrot.slane %v2102_v50, %v9132_v48 }
 0x4bd   :  { %11584 = vst [vmem:[#allocation15_spill] sm:$0xff] %v9207_v38  ;;  %11585 = vst [vmem:[#allocation16_spill] sm:$0xff] %v9209_v12  ;;  %v9217_v9 = vpop.f32.mrf.mxu1 }
 0x4be   :  { %11586 = vst [vmem:[#allocation17_spill] sm:$0xff] %v9212_v45  ;;  %11587 = vst [vmem:[#allocation18_spill] sm:$0xff] %v9217_v9  ;;  %v1934_v35 = vpop.f32.mrf.mxu0 }
 0x4bf   :  { %v9220_v19 = vadd.f32 %v1934_v35, %v9128_v17  ;;  %v2281_v47 = vpop.f32.mrf.mxu1 }
 0x4c0   :  { %v1936_v27 = vpop.f32.mrf.mxu0  ;;  %v2282_v46 = vadd.f32 %v2281_v47, %v9215_v43 }
 0x4c1   :  { %11588 = vst [vmem:[#allocation19_spill] sm:$0xff] %v9220_v19  ;;  %v9226_v12 = vadd.f32 %v1936_v27, %v9145_v52  ;;  %v2283_v0 = vpop.f32.mrf.mxu1  ;;  %v1897_v27 = vadd.f32 %v9125_v54, %v9145_v52 }
 0x4c2   :  { %v1938_v45 = vpop.f32.mrf.mxu0  ;;  %v2328_v9 = vadd.f32 %v2282_v46, %v1895_v1  ;;  %v2284_v61 = vadd.f32 %v2283_v0, %v9229_v23 }
 0x4c3   :  { %11589 = vst [vmem:[#allocation20_spill] sm:$0xff] %v9226_v12  ;;  %v9232_v38 = vadd.f32 %v1938_v45, %v9128_v17  ;;  %v2285_v35 = vpop.f32.mrf.mxu1 }
 0x4c4   :  { %v9234_v19 = vpop.f32.mrf.mxu0  ;;  %v6286_v30 = vmul.f32 -1.442695, %v2328_v9  ;;  %v2335_v46 = vadd.f32 %v2284_v61, %v1897_v27 }
 0x4c5   :  { %11590 = vst [vmem:[#allocation21_spill] sm:$0xff] %v9232_v38  ;;  %11591 = vst [vmem:[#allocation22_spill] sm:$0xff] %v9234_v19  ;;  %v2286_v63 = vpop.f32.mrf.mxu1 }
 0x4c6   :  { %v1944_v47 = vpop.f32.mrf.mxu0  ;;  %7883 = vpow2.f32 %v6286_v30  ;;  %v6287_v0 = vmul.f32 -1.442695, %v2335_v46 }
 0x4c7   :  { %v9240_v48 = vadd.f32 %v1944_v47, %v9128_v17 }
 0x4c8   :  { %v1946_v12 = vpop.f32.mrf.mxu0  ;;  %7885 = vpow2.f32 %v6287_v0 }
 0x4c9   :  { %11592 = vst [vmem:[#allocation23_spill] sm:$0xff] %v9240_v48  ;;  %v9243_v45 = vadd.f32 %v1946_v12, %v9145_v52 }
 0x4ca   :  { %v1948_v1 = vpop.f32.mrf.mxu0 }
 0x4cb   :  { %11593 = vst [vmem:[#allocation24_spill] sm:$0xff] %v9243_v45  ;;  %v9246_v35 = vadd.f32 %v1948_v1, %v9128_v17 }
 0x4cc   :  { %v9248_v9 = vpop.f32.mrf.mxu0 }
 0x4cd   :  { %11594 = vst [vmem:[#allocation25_spill] sm:$0xff] %v9246_v35  ;;  %11595 = vst [vmem:[#allocation26_spill] sm:$0xff] %v9248_v9 }
 0x4ce   :  { %v1954_v63 = vpop.f32.mrf.mxu0 }
 0x4cf   :  { %v9251_v19 = vadd.f32 %v1954_v63, %v9128_v17 }
 0x4d0   :  { %v1956_v54 = vpop.f32.mrf.mxu0 }
 0x4d1   :  { %11596 = vst [vmem:[#allocation27_spill] sm:$0xff] %v9251_v19  ;;  %v9254_v30 = vadd.f32 %v1956_v54, %v9145_v52 }
 0x4d2   :  { %v1958_v61 = vpop.f32.mrf.mxu0 }
 0x4d3   :  { %11597 = vst [vmem:[#allocation28_spill] sm:$0xff] %v9254_v30  ;;  %v9257_v12 = vadd.f32 %v1958_v61, %v9128_v17  ;;  %v7884_v47 = vpop.eup %7883  ;;  %v9273_v61 = vrot.slane %v2102_v50, %v9110_v55 }
 0x4d4   :  { %v9259_v27 = vpop.f32.mrf.mxu0  ;;  %v2332_v1 = vadd.f32 1.0, %v7884_v47 }
 0x4d5   :  { %11598 = vst [vmem:[#allocation29_spill] sm:$0xff] %v9257_v12  ;;  %11599 = vst [vmem:[#allocation30_spill] sm:$0xff] %v9259_v27  ;;  %v7886_v27 = vpop.eup %7885 }
 0x4d6   :  { %v1964_v35 = vpop.f32.mrf.mxu0  ;;  %7887 = vrcp.f32 %v2332_v1  ;;  %v2339_v1 = vadd.f32 1.0, %v7886_v27 }
 0x4d7   :  { %v9262_v46 = vadd.f32 %v1964_v35, %v9128_v17 }
 0x4d8   :  { %v1966_v63 = vpop.f32.mrf.mxu0  ;;  %7889 = vrcp.f32 %v2339_v1 }
 0x4d9   :  { %11600 = vst [vmem:[#allocation31_spill] sm:$0xff] %v9262_v46  ;;  %v9265_v19 = vadd.f32 %v1966_v63, %v9145_v52  ;;  %v2008_v63 = vadd.f32 %v9130_v18, %v9116_v16  ;;  %v11604_v18 = vmov 0.0  }
 0x4da   :  { %v1968_v0 = vpop.f32.mrf.mxu0 }
 0x4db   :  { %11601 = vst [vmem:[#allocation32_spill] sm:$0xff] %v9265_v19  ;;  %v9268_v54 = vadd.f32 %v1968_v0, %v9128_v17 }
 0x4dc   :  { %v9270_v30 = vpop.f32.mrf.mxu0 }
 0x4dd   :  { %11602 = vst [vmem:[#allocation33_spill] sm:$0xff] %v9268_v54  ;;  %11603 = vst [vmem:[#allocation34_spill] sm:$0xff] %v9270_v30 }
 0x4de   :  { %v2322_v47 = vpop.f32.mrf.mxu0 }
 0x4df   :  { %v2323_v35 = vadd.f32 %v2322_v47, %v9273_v61 }
 0x4e0   :  { %v7101_v12 = vpop.f32.mrf.mxu0 }
 0x4e2   :  { %v2325_v46 = vpop.f32.mrf.mxu0 }
 0x4e3   :  { %v7888_v9 = vpop.eup %7887 }
 0x4e4   :  { %v7102_v45 = vpop.f32.mrf.mxu0  ;;  %v2342_v17 = vmul.f32 %v7888_v9, %v2323_v35 }
 0x4e5   :  { %v7890_v30 = vpop.eup %7889  ;;  %v11605_v45 = vmov 0  }
 0x4e6   :  { %v2343_v0 = vadd.f32 %v2342_v17, %v2008_v63  ;;  %v2345_v54 = vsub.f32 1.0, %v7890_v30  ;;  %v2347_v19 = vmul.f32 0.0, %v7890_v30 }
 0x4e8   :  { %7891 = vtanh.f32 %v2343_v0  ;;  %v1901_v0 = vadd.f32 %v9140_v28, %v9145_v52 }
 0x4f5   :  { %v7892_v50 = vpop.eup %7891 }
 0x4f6   :  { %v2346_v55 = vmul.f32 %v7892_v50, %v2345_v54 }
 0x4f8   :  { %v9278_v48 = vadd.f32 %v2347_v19, %v2346_v55 }
 0x4fa   :  { %v2349_v12 = vpack.c.bf16 %v9278_v48, %v9278_v48 }
 0x4fc   :  { %2383 = vmatmul.mubr.bf16.vlgmr.msra.gmra.mxu1 %v2349_v12  ;;  %7120 = vmatmul.mubr.bf16.vlgmr.msra.gmra.mxu0 %v2349_v12 }
 0x4fd   :  { %2454 = vmatpush1.bf16.msra.mxu1 %v8881_v24  ;;  %7124 = vmatpush3.bf16.msra.mxu0 %v8876_v21 }
 0x4fe   :  { %2455 = vmatprep.subr.bf16.mxu1 %v8888_v34  ;;  %7125 = vmatprep.subr.bf16.mxu0 %v11604_v18 }
 0x4ff   :  { %2485 = vmatprep.mubr.bf16.mxu1 %v11605_v45  ;;  %7139 = vmatprep.mubr.msk.bf16.mxu0 %vm8301_vm2, %v11604_v18 }
 0x501   :  { %2456 = vmatpush1.bf16.msra.mxu1 %v8908_v3  ;;  %7126 = vmatpush3.bf16.msra.mxu0 %v8899_v59 }
 0x502   :  { %2457 = vmatprep.subr.bf16.mxu1 %v8915_v57  ;;  %7127 = vmatprep.subr.bf16.mxu0 %v11604_v18 }
 0x505   :  { %2458 = vmatpush1.bf16.msra.mxu1 %v8932_v15  ;;  %7128 = vmatpush3.bf16.msra.mxu0 %v8926_v14 }
 0x506   :  { %2459 = vmatprep.subr.bf16.mxu1 %v8943_v51  ;;  %7129 = vmatprep.subr.bf16.mxu0 %v11604_v18 }
 0x509   :  { %2460 = vmatpush1.bf16.msra.mxu1 %v8963_v6  ;;  %7130 = vmatpush3.bf16.msra.mxu0 %v8957_v62 }
 0x50a   :  { %2461 = vmatprep.subr.bf16.mxu1 %v8971_v4  ;;  %7131 = vmatprep.subr.bf16.mxu0 %v11604_v18 }
 0x50d   :  { %2462 = vmatpush1.bf16.msra.mxu1 %v8984_v5  ;;  %7132 = vmatpush3.bf16.msra.mxu0 %v8978_v33 }
 0x50e   :  { %2463 = vmatprep.subr.bf16.mxu1 %v8995_v39  ;;  %7133 = vmatprep.subr.bf16.mxu0 %v11604_v18 }
 0x511   :  { %2464 = vmatpush1.bf16.msra.mxu1 %v9012_v44  ;;  %7134 = vmatpush3.bf16.msra.mxu0 %v9006_v29 }
 0x512   :  { %2465 = vmatprep.subr.bf16.mxu1 %v9019_v25  ;;  %7135 = vmatprep.subr.bf16.mxu0 %v11604_v18 }
 0x515   :  { %2466 = vmatpush1.bf16.msra.mxu1 %v9031_v49  ;;  %7136 = vmatpush3.bf16.msra.mxu0 %v9025_v8 }
 0x516   :  { %2467 = vmatprep.subr.bf16.mxu1 %v9040_v41  ;;  %7137 = vmatprep.subr.bf16.mxu0 %v11604_v18 }
 0x519   :  { %2468 = vmatpush1.bf16.msra.mxu1 %v9055_v11  ;;  %7138 = vmatpush3.bf16.msra.mxu0 %v9049_v10 }
 0x51a   :  { %2556 = vmatprep.subr.bf16.mxu1 %v8844_v26  ;;  %7143 = vmatprep.subr.bf16.mxu0 %v11604_v18 }
 0x5bc   :  { %v2384_v55 = vpop.f32.mrf.mxu1  ;;  %v2425_v19 = vpop.f32.mrf.mxu0 }
 0x5bd   :  { %v2385_v9 = vadd.f32 %v2384_v55, %v9215_v43 }
 0x5be   :  { %v2386_v30 = vpop.f32.mrf.mxu1  ;;  %v7121_v27 = vpop.f32.mrf.mxu0 }
 0x5bf   :  { %v2431_v46 = vadd.f32 %v2385_v9, %v9135_v31  ;;  %v2387_v35 = vadd.f32 %v2386_v30, %v9229_v23  ;;  %v2426_v31 = vadd.f32 %v2425_v19, %v9273_v61  ;;  %v2011_v30 = vadd.f32 %v9142_v20, %v9116_v16 }
 0x5c0   :  { %v2388_v54 = vpop.f32.mrf.mxu1  ;;  %v2428_v47 = vpop.f32.mrf.mxu0 }
 0x5c1   :  { %v6288_v1 = vmul.f32 -1.442695, %v2431_v46  ;;  %v2438_v50 = vadd.f32 %v2387_v35, %v1901_v0 }
 0x5c2   :  { %v2389_v63 = vpop.f32.mrf.mxu1  ;;  %v7122_v17 = vpop.f32.mrf.mxu0 }
 0x5c3   :  { %7893 = vpow2.f32 %v6288_v1  ;;  %v6289_v12 = vmul.f32 -1.442695, %v2438_v50 }
 0x5c5   :  { %7895 = vpow2.f32 %v6289_v12 }
 0x5d0   :  { %v7894_v38 = vpop.eup %7893 }
 0x5d1   :  { %v2435_v55 = vadd.f32 1.0, %v7894_v38 }
 0x5d2   :  { %v7896_v27 = vpop.eup %7895 }
 0x5d3   :  { %7897 = vrcp.f32 %v2435_v55  ;;  %v2442_v42 = vadd.f32 1.0, %v7896_v27 }
 0x5d5   :  { %7899 = vrcp.f32 %v2442_v42 }
 0x5e0   :  { %v7898_v9 = vpop.eup %7897 }
 0x5e1   :  { %v2445_v46 = vmul.f32 %v7898_v9, %v2426_v31 }
 0x5e2   :  { %v7900_v28 = vpop.eup %7899 }
 0x5e3   :  { %v2446_v54 = vadd.f32 %v2445_v46, %v2011_v30  ;;  %v2448_v47 = vsub.f32 1.0, %v7900_v28  ;;  %v2450_v63 = vmul.f32 %v7900_v28, %v9278_v48 }
 0x5e5   :  { %7901 = vtanh.f32 %v2446_v54 }
 0x5f2   :  { %v7902_v1 = vpop.eup %7901 }
 0x5f3   :  { %v2449_v35 = vmul.f32 %v7902_v1, %v2448_v47 }
 0x5f5   :  { %v9326_v38 = vadd.f32 %v2450_v63, %v2449_v35 }
 0x5f7   :  { %v2452_v17 = vpack.c.bf16 %v9326_v38, %v9326_v38 }
 0x5f9   :  { %2486 = vmatmul.mubr.bf16.vlgmr.msra.gmra.mxu1 %v2452_v17  ;;  %7140 = vmatmul.mubr.bf16.vlgmr.msra.gmra.mxu0 %v2452_v17 }
 0x5fa   :  { %2557 = vmatpush1.bf16.msra.mxu1 %v8881_v24  ;;  %7144 = vmatpush3.bf16.msra.mxu0 %v8876_v21 }
 0x5fb   :  { %2558 = vmatprep.subr.bf16.mxu1 %v8888_v34  ;;  %7145 = vmatprep.subr.bf16.mxu0 %v11604_v18 }
 0x5fc   :  { %2588 = vmatprep.mubr.bf16.mxu1 %v11605_v45  ;;  %7159 = vmatprep.mubr.msk.bf16.mxu0 %vm8301_vm2, %v11604_v18 }
 0x5fe   :  { %2559 = vmatpush1.bf16.msra.mxu1 %v8908_v3  ;;  %7146 = vmatpush3.bf16.msra.mxu0 %v8899_v59 }
 0x5ff   :  { %2560 = vmatprep.subr.bf16.mxu1 %v8915_v57  ;;  %7147 = vmatprep.subr.bf16.mxu0 %v11604_v18 }
 0x602   :  { %2561 = vmatpush1.bf16.msra.mxu1 %v8932_v15  ;;  %7148 = vmatpush3.bf16.msra.mxu0 %v8926_v14 }
 0x603   :  { %2562 = vmatprep.subr.bf16.mxu1 %v8943_v51  ;;  %7149 = vmatprep.subr.bf16.mxu0 %v11604_v18 }
 0x606   :  { %2563 = vmatpush1.bf16.msra.mxu1 %v8963_v6  ;;  %7150 = vmatpush3.bf16.msra.mxu0 %v8957_v62 }
 0x607   :  { %2564 = vmatprep.subr.bf16.mxu1 %v8971_v4  ;;  %7151 = vmatprep.subr.bf16.mxu0 %v11604_v18 }
 0x60a   :  { %2565 = vmatpush1.bf16.msra.mxu1 %v8984_v5  ;;  %7152 = vmatpush3.bf16.msra.mxu0 %v8978_v33 }
 0x60b   :  { %2566 = vmatprep.subr.bf16.mxu1 %v8995_v39  ;;  %7153 = vmatprep.subr.bf16.mxu0 %v11604_v18 }
 0x60e   :  { %2567 = vmatpush1.bf16.msra.mxu1 %v9012_v44  ;;  %7154 = vmatpush3.bf16.msra.mxu0 %v9006_v29 }
 0x60f   :  { %2568 = vmatprep.subr.bf16.mxu1 %v9019_v25  ;;  %7155 = vmatprep.subr.bf16.mxu0 %v11604_v18 }
 0x612   :  { %2569 = vmatpush1.bf16.msra.mxu1 %v9031_v49  ;;  %7156 = vmatpush3.bf16.msra.mxu0 %v9025_v8 }
 0x613   :  { %2570 = vmatprep.subr.bf16.mxu1 %v9040_v41  ;;  %7157 = vmatprep.subr.bf16.mxu0 %v11604_v18 }
 0x616   :  { %2571 = vmatpush1.bf16.msra.mxu1 %v9055_v11  ;;  %7158 = vmatpush3.bf16.msra.mxu0 %v9049_v10 }
 0x617   :  { %2659 = vmatprep.subr.bf16.mxu1 %v8844_v26  ;;  %7163 = vmatprep.subr.bf16.mxu0 %v11604_v18 }
 0x6b9   :  { %v2487_v20 = vpop.f32.mrf.mxu1  ;;  %v2528_v42 = vpop.f32.mrf.mxu0 }
 0x6ba   :  { %v2488_v19 = vadd.f32 %v2487_v20, %v9215_v43  ;;  %v2529_v63 = vadd.f32 %v2528_v42, %v9273_v61 }
 0x6bb   :  { %v2489_v0 = vpop.f32.mrf.mxu1  ;;  %v7141_v50 = vpop.f32.mrf.mxu0 }
 0x6bc   :  { %v2534_v12 = vadd.f32 %v2488_v19, %v9148_v7  ;;  %v2490_v9 = vadd.f32 %v2489_v0, %v9229_v23 }
 0x6bd   :  { %v2491_v55 = vpop.f32.mrf.mxu1  ;;  %v2531_v27 = vpop.f32.mrf.mxu0 }
 0x6be   :  { %v6290_v31 = vmul.f32 -1.442695, %v2534_v12  ;;  %v2541_v26 = vadd.f32 %v2490_v9, %v9154_v32 }
 0x6bf   :  { %v2492_v30 = vpop.f32.mrf.mxu1  ;;  %v7142_v46 = vpop.f32.mrf.mxu0 }
 0x6c0   :  { %7903 = vpow2.f32 %v6290_v31  ;;  %v6291_v54 = vmul.f32 -1.442695, %v2541_v26 }
 0x6c2   :  { %7905 = vpow2.f32 %v6291_v54 }
 0x6cd   :  { %v7904_v28 = vpop.eup %7903 }
 0x6ce   :  { %v2538_v47 = vadd.f32 1.0, %v7904_v28 }
 0x6cf   :  { %v7906_v1 = vpop.eup %7905 }
 0x6d0   :  { %7907 = vrcp.f32 %v2538_v47  ;;  %v2545_v35 = vadd.f32 1.0, %v7906_v1  ;;  %v1911_v47 = vadd.f32 %v9162_v60, %v9145_v52 }
 0x6d2   :  { %7909 = vrcp.f32 %v2545_v35 }
 0x6dd   :  { %v7908_v7 = vpop.eup %7907 }
 0x6de   :  { %v2548_v17 = vmul.f32 %v7908_v7, %v2529_v63 }
 0x6df   :  { %v7910_v19 = vpop.eup %7909 }
 0x6e0   :  { %v2549_v20 = vadd.f32 %v2548_v17, %v9123_v2  ;;  %v2551_v0 = vsub.f32 1.0, %v7910_v19  ;;  %v2553_v32 = vmul.f32 %v7910_v19, %v9326_v38 }
 0x6e2   :  { %7911 = vtanh.f32 %v2549_v20 }
 0x6ef   :  { %v7912_v50 = vpop.eup %7911 }
 0x6f0   :  { %v2552_v12 = vmul.f32 %v7912_v50, %v2551_v0 }
 0x6f2   :  { %v9372_v55 = vadd.f32 %v2553_v32, %v2552_v12 }
 0x6f4   :  { %v2555_v27 = vpack.c.bf16 %v9372_v55, %v9372_v55 }
 0x6f6   :  { %2589 = vmatmul.mubr.bf16.vlgmr.msra.gmra.mxu1 %v2555_v27  ;;  %7160 = vmatmul.mubr.bf16.vlgmr.msra.gmra.mxu0 %v2555_v27 }
 0x6f7   :  { %2660 = vmatpush1.bf16.msra.mxu1 %v8881_v24  ;;  %7164 = vmatpush3.bf16.msra.mxu0 %v8876_v21  ;;  %v9412_v21 = vld [vmem:[%s11524_s18 + $0xac] ss:$12 sps:$4 sm:$0xff]  }
 0x6f8   :  { %2661 = vmatprep.subr.bf16.mxu1 %v8888_v34  ;;  %7165 = vmatprep.subr.bf16.mxu0 %v11604_v18 }
 0x6f9   :  { %2691 = vmatprep.mubr.bf16.mxu1 %v11605_v45  ;;  %7179 = vmatprep.mubr.msk.bf16.mxu0 %vm8301_vm2, %v11604_v18 }
 0x6fb   :  { %2662 = vmatpush1.bf16.msra.mxu1 %v8908_v3  ;;  %7166 = vmatpush3.bf16.msra.mxu0 %v8899_v59 }
 0x6fc   :  { %2663 = vmatprep.subr.bf16.mxu1 %v8915_v57  ;;  %7167 = vmatprep.subr.bf16.mxu0 %v11604_v18 }
 0x6ff   :  { %2664 = vmatpush1.bf16.msra.mxu1 %v8932_v15  ;;  %7168 = vmatpush3.bf16.msra.mxu0 %v8926_v14 }
 0x700   :  { %2665 = vmatprep.subr.bf16.mxu1 %v8943_v51  ;;  %7169 = vmatprep.subr.bf16.mxu0 %v11604_v18 }
 0x703   :  { %2666 = vmatpush1.bf16.msra.mxu1 %v8963_v6  ;;  %7170 = vmatpush3.bf16.msra.mxu0 %v8957_v62 }
 0x704   :  { %2667 = vmatprep.subr.bf16.mxu1 %v8971_v4  ;;  %7171 = vmatprep.subr.bf16.mxu0 %v11604_v18 }
 0x707   :  { %2668 = vmatpush1.bf16.msra.mxu1 %v8984_v5  ;;  %7172 = vmatpush3.bf16.msra.mxu0 %v8978_v33 }
 0x708   :  { %2669 = vmatprep.subr.bf16.mxu1 %v8995_v39  ;;  %7173 = vmatprep.subr.bf16.mxu0 %v11604_v18 }
 0x70b   :  { %2670 = vmatpush1.bf16.msra.mxu1 %v9012_v44  ;;  %7174 = vmatpush3.bf16.msra.mxu0 %v9006_v29 }
 0x70c   :  { %2671 = vmatprep.subr.bf16.mxu1 %v9019_v25  ;;  %7175 = vmatprep.subr.bf16.mxu0 %v11604_v18 }
 0x70f   :  { %2672 = vmatpush1.bf16.msra.mxu1 %v9031_v49  ;;  %7176 = vmatpush3.bf16.msra.mxu0 %v9025_v8 }
 0x710   :  { %2673 = vmatprep.subr.bf16.mxu1 %v9040_v41  ;;  %7177 = vmatprep.subr.bf16.mxu0 %v11604_v18 }
 0x713   :  { %2674 = vmatpush1.bf16.msra.mxu1 %v9055_v11  ;;  %7178 = vmatpush3.bf16.msra.mxu0 %v9049_v10 }
 0x714   :  { %2762 = vmatprep.subr.bf16.mxu1 %v9412_v21  ;;  %7183 = vmatprep.subr.bf16.mxu0 %v11604_v18 }
 0x7b6   :  { %v2590_v24 = vpop.f32.mrf.mxu1  ;;  %v2631_v34 = vpop.f32.mrf.mxu0 }
 0x7b7   :  { %v2591_v59 = vadd.f32 %v2590_v24, %v9215_v43 }
 0x7b8   :  { %v2592_v2 = vpop.f32.mrf.mxu1  ;;  %v7161_v42 = vpop.f32.mrf.mxu0 }
 0x7b9   :  { %v2637_v31 = vadd.f32 %v2591_v59, %v9160_v37  ;;  %v2593_v26 = vadd.f32 %v2592_v2, %v9229_v23  ;;  %v2632_v37 = vadd.f32 %v2631_v34, %v9273_v61  ;;  %v9431_v34 = vld [vmem:[%s11524_s18 + $0xa8] ss:$12 sps:$4 sm:$0xff]  }
 0x7ba   :  { %v2594_v9 = vpop.f32.mrf.mxu1  ;;  %v2634_v30 = vpop.f32.mrf.mxu0  ;;  %v9443_v42 = vld [vmem:[%s11524_s18 + $0x94] ss:$12 sps:$4 sm:$0xff]  }
 0x7bb   :  { %v6292_v46 = vmul.f32 -1.442695, %v2637_v31  ;;  %v2644_v1 = vadd.f32 %v2593_v26, %v1911_v47  ;;  %v9454_v31 = vld [vmem:[%s11524_s18 + $0x98] ss:$12 sps:$4 sm:$0xff]  }
 0x7bc   :  { %v2595_v54 = vpop.f32.mrf.mxu1  ;;  %v7162_v28 = vpop.f32.mrf.mxu0 }
 0x7bd   :  { %7913 = vpow2.f32 %v6292_v46  ;;  %v6293_v35 = vmul.f32 -1.442695, %v2644_v1 }
 0x7bf   :  { %7915 = vpow2.f32 %v6293_v35 }
 0x7ca   :  { %v7914_v63 = vpop.eup %7913 }
 0x7cb   :  { %v2641_v7 = vadd.f32 1.0, %v7914_v63 }
 0x7cc   :  { %v7916_v17 = vpop.eup %7915 }
 0x7cd   :  { %7917 = vrcp.f32 %v2641_v7  ;;  %v2648_v20 = vadd.f32 1.0, %v7916_v17 }
 0x7cf   :  { %7919 = vrcp.f32 %v2648_v20  ;;  %v9511_v20 = vld [vmem:[%s11524_s18 + $0x7c] ss:$12 sps:$4 sm:$0xff]  }
 0x7da   :  { %v7918_v19 = vpop.eup %7917 }
 0x7db   :  { %v2651_v0 = vmul.f32 %v7918_v19, %v2632_v37  ;;  %v9518_v37 = vld [vmem:[%s11524_s18 + $0x78] ss:$12 sps:$4 sm:$0xff]   ;;  %v9524_v19 = vld [vmem:[%s11524_s18 + $0x80] ss:$12 sps:$4 sm:$0xff]  }
 0x7dc   :  { %v7920_v12 = vpop.eup %7919 }
 0x7dd   :  { %v2652_v50 = vadd.f32 %v2651_v0, %v9138_v58  ;;  %v2654_v32 = vsub.f32 1.0, %v7920_v12  ;;  %v2656_v24 = vmul.f32 %v7920_v12, %v9372_v55  ;;  %v9437_v58 = vld [vmem:[%s11524_s18 + $0xb0] ss:$12 sps:$4 sm:$0xff]   ;;  %v9543_v12 = vld [vmem:[%s11524_s18 + $0x68] ss:$12 sps:$4 sm:$0xff]  }
 0x7de   :  { %v9530_v0 = vld [vmem:[%s11524_s18 + $0x64] ss:$12 sps:$4 sm:$0xff]  }
 0x7df   :  { %7921 = vtanh.f32 %v2652_v50  ;;  %v9537_v50 = vld [vmem:[%s11524_s18 + $0x60] ss:$12 sps:$4 sm:$0xff]  }
 0x7ec   :  { %v7922_v60 = vpop.eup %7921 }
 0x7ed   :  { %v2655_v27 = vmul.f32 %v7922_v60, %v2654_v32  ;;  %v9549_v32 = vld [vmem:[%s11524_s18 + $0x4c] ss:$12 sps:$4 sm:$0xff]   ;;  %v9556_v60 = vld [vmem:[%s11524_s18 + $0x48] ss:$12 sps:$4 sm:$0xff]  }
 0x7ef   :  { %v9424_v59 = vadd.f32 %v2656_v24, %v2655_v27  ;;  %v9562_v27 = vld [vmem:[%s11524_s18 + $0x50] ss:$12 sps:$4 sm:$0xff]   ;;  %v9568_v24 = vld [vmem:[%s11524_s18 + $0x34] ss:$12 sps:$4 sm:$0xff]  }
 0x7f1   :  { %v2658_v2 = vpack.c.bf16 %v9424_v59, %v9424_v59 }
 0x7f3   :  { %2692 = vmatmul.mubr.bf16.vlgmr.msra.gmra.mxu1 %v2658_v2  ;;  %7180 = vmatmul.mubr.bf16.vlgmr.msra.gmra.mxu0 %v2658_v2  ;;  %v9575_v2 = vld [vmem:[%s11524_s18 + $0x30] ss:$12 sps:$4 sm:$0xff]  }
 0x7f4   :  { %2763 = vmatpush1.bf16.msra.mxu1 %v9431_v34  ;;  %7184 = vmatpush3.bf16.msra.mxu0 %v9437_v58 }
 0x7f5   :  { %2764 = vmatprep.subr.bf16.mxu1 %v9443_v42  ;;  %7185 = vmatprep.subr.bf16.mxu0 %v11604_v18 }
 0x7f6   :  { %2794 = vmatprep.mubr.bf16.mxu1 %v11605_v45  ;;  %7199 = vmatprep.mubr.msk.bf16.mxu0 %vm8301_vm2, %v11604_v18 }
 0x7f8   :  { %2765 = vmatpush1.bf16.msra.mxu1 %v8908_v3  ;;  %7186 = vmatpush3.bf16.msra.mxu0 %v9454_v31 }
 0x7f9   :  { %2766 = vmatprep.subr.bf16.mxu1 %v8915_v57  ;;  %7187 = vmatprep.subr.bf16.mxu0 %v11604_v18 }
 0x7fc   :  { %2767 = vmatpush1.bf16.msra.mxu1 %v8932_v15  ;;  %7188 = vmatpush3.bf16.msra.mxu0 %v8926_v14 }
 0x7fd   :  { %2768 = vmatprep.subr.bf16.mxu1 %v8943_v51  ;;  %7189 = vmatprep.subr.bf16.mxu0 %v11604_v18 }
 0x800   :  { %2769 = vmatpush1.bf16.msra.mxu1 %v8963_v6  ;;  %7190 = vmatpush3.bf16.msra.mxu0 %v8957_v62 }
 0x801   :  { %2770 = vmatprep.subr.bf16.mxu1 %v8971_v4  ;;  %7191 = vmatprep.subr.bf16.mxu0 %v11604_v18 }
 0x804   :  { %2771 = vmatpush1.bf16.msra.mxu1 %v8984_v5  ;;  %7192 = vmatpush3.bf16.msra.mxu0 %v8978_v33 }
 0x805   :  { %2772 = vmatprep.subr.bf16.mxu1 %v8995_v39  ;;  %7193 = vmatprep.subr.bf16.mxu0 %v11604_v18 }
 0x808   :  { %2773 = vmatpush1.bf16.msra.mxu1 %v9012_v44  ;;  %7194 = vmatpush3.bf16.msra.mxu0 %v9006_v29 }
 0x809   :  { %2774 = vmatprep.subr.bf16.mxu1 %v9019_v25  ;;  %7195 = vmatprep.subr.bf16.mxu0 %v11604_v18 }
 0x80c   :  { %2775 = vmatpush1.bf16.msra.mxu1 %v9031_v49  ;;  %7196 = vmatpush3.bf16.msra.mxu0 %v9025_v8 }
 0x80d   :  { %2776 = vmatprep.subr.bf16.mxu1 %v9040_v41  ;;  %7197 = vmatprep.subr.bf16.mxu0 %v11604_v18 }
 0x810   :  { %2777 = vmatpush1.bf16.msra.mxu1 %v9055_v11  ;;  %7198 = vmatpush3.bf16.msra.mxu0 %v9049_v10 }
 0x811   :  { %2865 = vmatprep.subr.bf16.mxu1 %v9412_v21  ;;  %7203 = vmatprep.subr.bf16.mxu0 %v11604_v18 }
 0x8b3   :  { %v2693_v3 = vpop.f32.mrf.mxu1  ;;  %v2734_v57 = vpop.f32.mrf.mxu0 }
 0x8b4   :  { %v2694_v14 = vadd.f32 %v2693_v3, %v9215_v43  ;;  %v2735_v26 = vadd.f32 %v2734_v57, %v9273_v61  ;;  %v9581_v3 = vld [vmem:[%s11524_s18 + $0x38] ss:$12 sps:$4 sm:$0xff]   ;;  %v9587_v57 = vld [vmem:[%s11524_s18 + $0x1c] ss:$12 sps:$4 sm:$0xff]  }
 0x8b5   :  { %v2695_v15 = vpop.f32.mrf.mxu1  ;;  %v7181_v51 = vpop.f32.mrf.mxu0 }
 0x8b6   :  { %v2740_v62 = vadd.f32 %v2694_v14, %v9170_v53  ;;  %v2696_v5 = vadd.f32 %v2695_v15, %v9229_v23  ;;  %v9595_v14 = vld [vmem:[%s11524_s18 + $0x20] ss:$12 sps:$4 sm:$0xff]  }
 0x8b7   :  { %v2697_v6 = vpop.f32.mrf.mxu1  ;;  %v2737_v4 = vpop.f32.mrf.mxu0 }
 0x8b8   :  { %v6294_v33 = vmul.f32 -1.442695, %v2740_v62  ;;  %v2747_v44 = vadd.f32 %v2696_v5, %v9176_v13 }
 0x8b9   :  { %v2698_v39 = vpop.f32.mrf.mxu1  ;;  %v7182_v29 = vpop.f32.mrf.mxu0 }
 0x8ba   :  { %7923 = vpow2.f32 %v6294_v33  ;;  %v6295_v25 = vmul.f32 -1.442695, %v2747_v44 }
 0x8bc   :  { %7925 = vpow2.f32 %v6295_v25 }
 0x8c7   :  { %v7924_v8 = vpop.eup %7923 }
 0x8c8   :  { %v2744_v9 = vadd.f32 1.0, %v7924_v8 }
 0x8c9   :  { %v7926_v30 = vpop.eup %7925 }
 0x8ca   :  { %7927 = vrcp.f32 %v2744_v9  ;;  %v2751_v46 = vadd.f32 1.0, %v7926_v30 }
 0x8cc   :  { %7929 = vrcp.f32 %v2751_v46 }
 0x8d7   :  { %v7928_v53 = vpop.eup %7927 }
 0x8d8   :  { %v2754_v54 = vmul.f32 %v7928_v53, %v2735_v26  ;;  %v2027_v53 = vadd.f32 %v9167_v40, %v9116_v16  ;;  %v9647_v40 = vld [vmem:[%s11524_s18 + $0x18] ss:$12 sps:$4 sm:$0xff]  }
 0x8d9   :  { %v7930_v47 = vpop.eup %7929 }
 0x8da   :  { %v2755_v28 = vadd.f32 %v2754_v54, %v9157_v36  ;;  %v2757_v1 = vsub.f32 1.0, %v7930_v47  ;;  %v2759_v13 = vmul.f32 %v7930_v47, %v9424_v59  ;;  %v9504_v36 = vld [vmem:[%s11524_s18 + $0x90] ss:$12 sps:$4 sm:$0xff]  }
 0x8dc   :  { %7931 = vtanh.f32 %v2755_v28 }
 0x8e9   :  { %v7932_v35 = vpop.eup %7931 }
 0x8ea   :  { %v2758_v63 = vmul.f32 %v7932_v35, %v2757_v1 }
 0x8ec   :  { %v9490_v7 = vadd.f32 %v2759_v13, %v2758_v63 }
 0x8ee   :  { %v2761_v17 = vpack.c.bf16 %v9490_v7, %v9490_v7 }
 0x8f0   :  { %2795 = vmatmul.mubr.bf16.vlgmr.msra.gmra.mxu1 %v2761_v17  ;;  %7200 = vmatmul.mubr.bf16.vlgmr.msra.gmra.mxu0 %v2761_v17 }
 0x8f1   :  { %2866 = vmatpush1.bf16.msra.mxu1 %v9431_v34  ;;  %7204 = vmatpush3.bf16.msra.mxu0 %v9437_v58 }
 0x8f2   :  { %2867 = vmatprep.subr.bf16.mxu1 %v9443_v42  ;;  %7205 = vmatprep.subr.bf16.mxu0 %v11604_v18 }
 0x8f3   :  { %2897 = vmatprep.mubr.bf16.mxu1 %v11605_v45  ;;  %7219 = vmatprep.mubr.msk.bf16.mxu0 %vm8301_vm2, %v11604_v18 }
 0x8f5   :  { %2868 = vmatpush1.bf16.msra.mxu1 %v9504_v36  ;;  %7206 = vmatpush3.bf16.msra.mxu0 %v9454_v31 }
 0x8f6   :  { %2869 = vmatprep.subr.bf16.mxu1 %v9511_v20  ;;  %7207 = vmatprep.subr.bf16.mxu0 %v11604_v18 }
 0x8f9   :  { %2870 = vmatpush1.bf16.msra.mxu1 %v9518_v37  ;;  %7208 = vmatpush3.bf16.msra.mxu0 %v9524_v19 }
 0x8fa   :  { %2871 = vmatprep.subr.bf16.mxu1 %v9530_v0  ;;  %7209 = vmatprep.subr.bf16.mxu0 %v11604_v18 }
 0x8fd   :  { %2872 = vmatpush1.bf16.msra.mxu1 %v9537_v50  ;;  %7210 = vmatpush3.bf16.msra.mxu0 %v9543_v12 }
 0x8fe   :  { %2873 = vmatprep.subr.bf16.mxu1 %v9549_v32  ;;  %7211 = vmatprep.subr.bf16.mxu0 %v11604_v18 }
 0x901   :  { %2874 = vmatpush1.bf16.msra.mxu1 %v9556_v60  ;;  %7212 = vmatpush3.bf16.msra.mxu0 %v9562_v27 }
 0x902   :  { %2875 = vmatprep.subr.bf16.mxu1 %v9568_v24  ;;  %7213 = vmatprep.subr.bf16.mxu0 %v11604_v18 }
 0x905   :  { %2876 = vmatpush1.bf16.msra.mxu1 %v9575_v2  ;;  %7214 = vmatpush3.bf16.msra.mxu0 %v9581_v3 }
 0x906   :  { %2877 = vmatprep.subr.bf16.mxu1 %v9587_v57  ;;  %7215 = vmatprep.subr.bf16.mxu0 %v11604_v18 }
 0x909   :  { %2878 = vmatpush1.bf16.msra.mxu1 %v9031_v49  ;;  %7216 = vmatpush3.bf16.msra.mxu0 %v9595_v14 }
 0x90a   :  { %2879 = vmatprep.subr.bf16.mxu1 %v9040_v41  ;;  %7217 = vmatprep.subr.bf16.mxu0 %v11604_v18 }
 0x90d   :  { %2880 = vmatpush1.bf16.msra.mxu1 %v9055_v11  ;;  %7218 = vmatpush3.bf16.msra.mxu0 %v9049_v10  ;;  %v1921_v10 = vadd.f32 %v9184_v22, %v9145_v52 }
 0x90e   :  { %2968 = vmatprep.subr.bf16.mxu1 %v9412_v21  ;;  %7223 = vmatprep.subr.bf16.mxu0 %v11604_v18 }
 0x9b0   :  { %v2796_v49 = vpop.f32.mrf.mxu1  ;;  %v2837_v15 = vpop.f32.mrf.mxu0 }
 0x9b1   :  { %v2797_v51 = vadd.f32 %v2796_v49, %v9215_v43  ;;  %v9654_v49 = vld [vmem:[%s11524_s18 + $0x4] ss:$12 sps:$4 sm:$0xff]  }
 0x9b2   :  { %v2798_v62 = vpop.f32.mrf.mxu1  ;;  %v7201_v6 = vpop.f32.mrf.mxu0 }
 0x9b3   :  { %v2843_v4 = vadd.f32 %v2797_v51, %v9182_v56  ;;  %v2799_v39 = vadd.f32 %v2798_v62, %v9229_v23  ;;  %v2838_v56 = vadd.f32 %v2837_v15, %v9273_v61  ;;  %v9661_v15 = vld [vmem:[%s11524_s18] ss:$12 sps:$4 sm:$0xff]   ;;  %v9667_v51 = vld [vmem:[%s11524_s18 + $0x8] ss:$12 sps:$4 sm:$0xff]  }
 0x9b4   :  { %v2800_v33 = vpop.f32.mrf.mxu1  ;;  %v2840_v41 = vpop.f32.mrf.mxu0 }
 0x9b5   :  { %v6296_v5 = vmul.f32 -1.442695, %v2843_v4  ;;  %v2850_v44 = vadd.f32 %v2799_v39, %v1921_v10 }
 0x9b6   :  { %v2801_v11 = vpop.f32.mrf.mxu1  ;;  %v7202_v29 = vpop.f32.mrf.mxu0 }
 0x9b7   :  { %7933 = vpow2.f32 %v6296_v5  ;;  %v6297_v25 = vmul.f32 -1.442695, %v2850_v44  ;;  %v11606_v5 = vld [vmem:[#allocation11_spill] sm:$0xff] }
 0x9b9   :  { %7935 = vpow2.f32 %v6297_v25 }
 0x9c4   :  { %v7934_v8 = vpop.eup %7933 }
 0x9c5   :  { %v2847_v9 = vadd.f32 1.0, %v7934_v8 }
 0x9c6   :  { %v7936_v30 = vpop.eup %7935 }
 0x9c7   :  { %7937 = vrcp.f32 %v2847_v9  ;;  %v2854_v46 = vadd.f32 1.0, %v7936_v30  ;;  %v11607_v9 = vld [vmem:[#allocation13_spill] sm:$0xff] }
 0x9c9   :  { %7939 = vrcp.f32 %v2854_v46 }
 0x9d4   :  { %v7938_v26 = vpop.eup %7937 }
 0x9d5   :  { %v2857_v54 = vmul.f32 %v7938_v26, %v2838_v56 }
 0x9d6   :  { %v7940_v22 = vpop.eup %7939 }
 0x9d7   :  { %v2858_v28 = vadd.f32 %v2857_v54, %v2027_v53  ;;  %v2860_v47 = vsub.f32 1.0, %v7940_v22  ;;  %v2862_v63 = vmul.f32 %v7940_v22, %v9490_v7 }
 0x9d9   :  { %7941 = vtanh.f32 %v2858_v28 }
 0x9e6   :  { %v7942_v1 = vpop.eup %7941 }
 0x9e7   :  { %v2861_v35 = vmul.f32 %v7942_v1, %v2860_v47  ;;  %v11608_v1 = vld [vmem:[#allocation5_spill] sm:$0xff] }
 0x9e9   :  { %v9613_v13 = vadd.f32 %v2862_v63, %v2861_v35 }
 0x9eb   :  { %v2864_v17 = vpack.c.bf16 %v9613_v13, %v9613_v13 }
 0x9ed   :  { %2898 = vmatmul.mubr.bf16.vlgmr.msra.gmra.mxu1 %v2864_v17  ;;  %7220 = vmatmul.mubr.bf16.vlgmr.msra.gmra.mxu0 %v2864_v17 }
 0x9ee   :  { %2969 = vmatpush1.bf16.msra.mxu1 %v9431_v34  ;;  %7224 = vmatpush3.bf16.msra.mxu0 %v9437_v58 }
 0x9ef   :  { %2970 = vmatprep.subr.bf16.mxu1 %v9443_v42  ;;  %7225 = vmatprep.subr.bf16.mxu0 %v11604_v18 }
 0x9f0   :  { %3000 = vmatprep.mubr.bf16.mxu1 %v11605_v45  ;;  %7239 = vmatprep.mubr.msk.bf16.mxu0 %vm8301_vm2, %v11604_v18 }
 0x9f2   :  { %2971 = vmatpush1.bf16.msra.mxu1 %v9504_v36  ;;  %7226 = vmatpush3.bf16.msra.mxu0 %v9454_v31 }
 0x9f3   :  { %2972 = vmatprep.subr.bf16.mxu1 %v9511_v20  ;;  %7227 = vmatprep.subr.bf16.mxu0 %v11604_v18 }
 0x9f6   :  { %2973 = vmatpush1.bf16.msra.mxu1 %v9518_v37  ;;  %7228 = vmatpush3.bf16.msra.mxu0 %v9524_v19 }
 0x9f7   :  { %2974 = vmatprep.subr.bf16.mxu1 %v9530_v0  ;;  %7229 = vmatprep.subr.bf16.mxu0 %v11604_v18 }
 0x9fa   :  { %2975 = vmatpush1.bf16.msra.mxu1 %v9537_v50  ;;  %7230 = vmatpush3.bf16.msra.mxu0 %v9543_v12 }
 0x9fb   :  { %2976 = vmatprep.subr.bf16.mxu1 %v9549_v32  ;;  %7231 = vmatprep.subr.bf16.mxu0 %v11604_v18 }
 0x9fe   :  { %2977 = vmatpush1.bf16.msra.mxu1 %v9556_v60  ;;  %7232 = vmatpush3.bf16.msra.mxu0 %v9562_v27 }
 0x9ff   :  { %2978 = vmatprep.subr.bf16.mxu1 %v9568_v24  ;;  %7233 = vmatprep.subr.bf16.mxu0 %v11604_v18 }
 0xa02   :  { %2979 = vmatpush1.bf16.msra.mxu1 %v9575_v2  ;;  %7234 = vmatpush3.bf16.msra.mxu0 %v9581_v3 }
 0xa03   :  { %2980 = vmatprep.subr.bf16.mxu1 %v9587_v57  ;;  %7235 = vmatprep.subr.bf16.mxu0 %v11604_v18 }
 0xa06   :  { %2981 = vmatpush1.bf16.msra.mxu1 %v9647_v40  ;;  %7236 = vmatpush3.bf16.msra.mxu0 %v9595_v14 }
 0xa07   :  { %2982 = vmatprep.subr.bf16.mxu1 %v9654_v49  ;;  %7237 = vmatprep.subr.bf16.mxu0 %v11604_v18 }
 0xa0a   :  { %2983 = vmatpush1.bf16.msra.mxu1 %v9661_v15  ;;  %7238 = vmatpush3.bf16.msra.mxu0 %v9667_v51 }
 0xa0b   :  { %3071 = vmatprep.subr.bf16.mxu1 %v9412_v21  ;;  %7243 = vmatprep.subr.bf16.mxu0 %v11604_v18 }
 0xaad   :  { %v2899_v62 = vpop.f32.mrf.mxu1  ;;  %v2940_v6 = vpop.f32.mrf.mxu0 }
 0xaae   :  { %v2900_v4 = vadd.f32 %v2899_v62, %v9215_v43  ;;  %v2941_v28 = vadd.f32 %v2940_v6, %v9273_v61 }
 0xaaf   :  { %v2901_v33 = vpop.f32.mrf.mxu1  ;;  %v7221_v41 = vpop.f32.mrf.mxu0 }
 0xab0   :  { %v2946_v39 = vadd.f32 %v2900_v4, %v11606_v5  ;;  %v2902_v44 = vadd.f32 %v2901_v33, %v9229_v23 }
 0xab1   :  { %v2903_v11 = vpop.f32.mrf.mxu1  ;;  %v2943_v29 = vpop.f32.mrf.mxu0 }
 0xab2   :  { %v6298_v10 = vmul.f32 -1.442695, %v2946_v39  ;;  %v2953_v30 = vadd.f32 %v2902_v44, %v11607_v9  ;;  %v11609_v44 = vld [vmem:[#allocation15_spill] sm:$0xff] }
 0xab3   :  { %v2904_v25 = vpop.f32.mrf.mxu1  ;;  %v7222_v8 = vpop.f32.mrf.mxu0 }
 0xab4   :  { %7943 = vpow2.f32 %v6298_v10  ;;  %v6299_v46 = vmul.f32 -1.442695, %v2953_v30 }
 0xab6   :  { %7945 = vpow2.f32 %v6299_v46 }
 0xac1   :  { %v7944_v56 = vpop.eup %7943 }
 0xac2   :  { %v2950_v26 = vadd.f32 1.0, %v7944_v56 }
 0xac3   :  { %v7946_v53 = vpop.eup %7945 }
 0xac4   :  { %7947 = vrcp.f32 %v2950_v26  ;;  %v2957_v54 = vadd.f32 1.0, %v7946_v53  ;;  %v11610_v53 = vld [vmem:[#allocation16_spill] sm:$0xff] }
 0xac6   :  { %7949 = vrcp.f32 %v2957_v54  ;;  %v1931_v54 = vadd.f32 %v11610_v53, %v9145_v52 }
 0xad1   :  { %v7948_v22 = vpop.eup %7947 }
 0xad2   :  { %v2960_v47 = vmul.f32 %v7948_v22, %v2941_v28 }
 0xad3   :  { %v7950_v63 = vpop.eup %7949 }
 0xad4   :  { %v2961_v35 = vadd.f32 %v2960_v47, %v11608_v1  ;;  %v2963_v17 = vsub.f32 1.0, %v7950_v63  ;;  %v2965_v33 = vmul.f32 %v7950_v63, %v9613_v13 }
 0xad6   :  { %7951 = vtanh.f32 %v2961_v35 }
 0xae3   :  { %v7952_v62 = vpop.eup %7951 }
 0xae4   :  { %v2964_v4 = vmul.f32 %v7952_v62, %v2963_v17 }
 0xae6   :  { %v9679_v41 = vadd.f32 %v2965_v33, %v2964_v4  ;;  %v11611_v33 = vld [vmem:[#allocation6_spill] sm:$0xff] }
 0xae8   :  { %v2967_v5 = vpack.c.bf16 %v9679_v41, %v9679_v41 }
 0xaea   :  { %3001 = vmatmul.mubr.bf16.vlgmr.msra.gmra.mxu1 %v2967_v5  ;;  %7240 = vmatmul.mubr.bf16.vlgmr.msra.gmra.mxu0 %v2967_v5 }
 0xaeb   :  { %3072 = vmatpush1.bf16.msra.mxu1 %v9431_v34  ;;  %7244 = vmatpush3.bf16.msra.mxu0 %v9437_v58 }
 0xaec   :  { %3073 = vmatprep.subr.bf16.mxu1 %v9443_v42  ;;  %7245 = vmatprep.subr.bf16.mxu0 %v11604_v18 }
 0xaed   :  { %3103 = vmatprep.mubr.bf16.mxu1 %v11605_v45  ;;  %7259 = vmatprep.mubr.msk.bf16.mxu0 %vm8301_vm2, %v11604_v18 }
 0xaef   :  { %3074 = vmatpush1.bf16.msra.mxu1 %v9504_v36  ;;  %7246 = vmatpush3.bf16.msra.mxu0 %v9454_v31 }
 0xaf0   :  { %3075 = vmatprep.subr.bf16.mxu1 %v9511_v20  ;;  %7247 = vmatprep.subr.bf16.mxu0 %v11604_v18 }
 0xaf3   :  { %3076 = vmatpush1.bf16.msra.mxu1 %v9518_v37  ;;  %7248 = vmatpush3.bf16.msra.mxu0 %v9524_v19 }
 0xaf4   :  { %3077 = vmatprep.subr.bf16.mxu1 %v9530_v0  ;;  %7249 = vmatprep.subr.bf16.mxu0 %v11604_v18 }
 0xaf7   :  { %3078 = vmatpush1.bf16.msra.mxu1 %v9537_v50  ;;  %7250 = vmatpush3.bf16.msra.mxu0 %v9543_v12 }
 0xaf8   :  { %3079 = vmatprep.subr.bf16.mxu1 %v9549_v32  ;;  %7251 = vmatprep.subr.bf16.mxu0 %v11604_v18 }
 0xafb   :  { %3080 = vmatpush1.bf16.msra.mxu1 %v9556_v60  ;;  %7252 = vmatpush3.bf16.msra.mxu0 %v9562_v27 }
 0xafc   :  { %3081 = vmatprep.subr.bf16.mxu1 %v9568_v24  ;;  %7253 = vmatprep.subr.bf16.mxu0 %v11604_v18 }
 0xaff   :  { %3082 = vmatpush1.bf16.msra.mxu1 %v9575_v2  ;;  %7254 = vmatpush3.bf16.msra.mxu0 %v9581_v3 }
 0xb00   :  { %3083 = vmatprep.subr.bf16.mxu1 %v9587_v57  ;;  %7255 = vmatprep.subr.bf16.mxu0 %v11604_v18 }
 0xb03   :  { %3084 = vmatpush1.bf16.msra.mxu1 %v9647_v40  ;;  %7256 = vmatpush3.bf16.msra.mxu0 %v9595_v14 }
 0xb04   :  { %3085 = vmatprep.subr.bf16.mxu1 %v9654_v49  ;;  %7257 = vmatprep.subr.bf16.mxu0 %v11604_v18 }
 0xb07   :  { %3086 = vmatpush1.bf16.msra.mxu1 %v9661_v15  ;;  %7258 = vmatpush3.bf16.msra.mxu0 %v9667_v51 }
 0xb08   :  { %3174 = vmatprep.subr.bf16.mxu1 %v9412_v21  ;;  %7263 = vmatprep.subr.bf16.mxu0 %v11604_v18 }
 0xbaa   :  { %v3002_v6 = vpop.f32.mrf.mxu1  ;;  %v3043_v39 = vpop.f32.mrf.mxu0 }
 0xbab   :  { %v3003_v11 = vadd.f32 %v3002_v6, %v9215_v43  ;;  %v3044_v17 = vadd.f32 %v3043_v39, %v9273_v61 }
 0xbac   :  { %v3004_v29 = vpop.f32.mrf.mxu1  ;;  %v7241_v10 = vpop.f32.mrf.mxu0 }
 0xbad   :  { %v3049_v25 = vadd.f32 %v3003_v11, %v11609_v44  ;;  %v3005_v46 = vadd.f32 %v3004_v29, %v9229_v23 }
 0xbae   :  { %v3006_v8 = vpop.f32.mrf.mxu1  ;;  %v3046_v9 = vpop.f32.mrf.mxu0 }
 0xbaf   :  { %v6300_v30 = vmul.f32 -1.442695, %v3049_v25  ;;  %v3056_v28 = vadd.f32 %v3005_v46, %v1931_v54 }
 0xbb0   :  { %v3007_v56 = vpop.f32.mrf.mxu1  ;;  %v7242_v26 = vpop.f32.mrf.mxu0 }
 0xbb1   :  { %7953 = vpow2.f32 %v6300_v30  ;;  %v6301_v22 = vmul.f32 -1.442695, %v3056_v28  ;;  %v11612_v26 = vld [vmem:[#allocation19_spill] sm:$0xff] }
 0xbb3   :  { %7955 = vpow2.f32 %v6301_v22 }
 0xbbe   :  { %v7954_v47 = vpop.eup %7953 }
 0xbbf   :  { %v3053_v1 = vadd.f32 1.0, %v7954_v47 }
 0xbc0   :  { %v7956_v35 = vpop.eup %7955 }
 0xbc1   :  { %7957 = vrcp.f32 %v3053_v1  ;;  %v3060_v63 = vadd.f32 1.0, %v7956_v35 }
 0xbc3   :  { %7959 = vrcp.f32 %v3060_v63  ;;  %v11613_v63 = vld [vmem:[#allocation20_spill] sm:$0xff] }
 0xbce   :  { %v7958_v62 = vpop.eup %7957 }
 0xbcf   :  { %v3063_v4 = vmul.f32 %v7958_v62, %v3044_v17 }
 0xbd0   :  { %v7960_v6 = vpop.eup %7959 }
 0xbd1   :  { %v3064_v5 = vadd.f32 %v3063_v4, %v11611_v33  ;;  %v3066_v11 = vsub.f32 1.0, %v7960_v6  ;;  %v3068_v44 = vmul.f32 %v7960_v6, %v9679_v41 }
 0xbd3   :  { %7961 = vtanh.f32 %v3064_v5 }
 0xbe0   :  { %v7962_v29 = vpop.eup %7961 }
 0xbe1   :  { %v3067_v10 = vmul.f32 %v7962_v29, %v3066_v11 }
 0xbe3   :  { %v9726_v25 = vadd.f32 %v3068_v44, %v3067_v10  ;;  %v11614_v44 = vld [vmem:[#allocation8_spill] sm:$0xff] }
 0xbe5   :  { %v3070_v8 = vpack.c.bf16 %v9726_v25, %v9726_v25 }
 0xbe7   :  { %3104 = vmatmul.mubr.bf16.vlgmr.msra.gmra.mxu1 %v3070_v8  ;;  %7260 = vmatmul.mubr.bf16.vlgmr.msra.gmra.mxu0 %v3070_v8 }
 0xbe8   :  { %3175 = vmatpush1.bf16.msra.mxu1 %v9431_v34  ;;  %7264 = vmatpush3.bf16.msra.mxu0 %v9437_v58 }
 0xbe9   :  { %3176 = vmatprep.subr.bf16.mxu1 %v9443_v42  ;;  %7265 = vmatprep.subr.bf16.mxu0 %v11604_v18 }
 0xbea   :  { %3206 = vmatprep.mubr.bf16.mxu1 %v11605_v45  ;;  %7279 = vmatprep.mubr.msk.bf16.mxu0 %vm8301_vm2, %v11604_v18 }
 0xbec   :  { %3177 = vmatpush1.bf16.msra.mxu1 %v9504_v36  ;;  %7266 = vmatpush3.bf16.msra.mxu0 %v9454_v31 }
 0xbed   :  { %3178 = vmatprep.subr.bf16.mxu1 %v9511_v20  ;;  %7267 = vmatprep.subr.bf16.mxu0 %v11604_v18 }
 0xbf0   :  { %3179 = vmatpush1.bf16.msra.mxu1 %v9518_v37  ;;  %7268 = vmatpush3.bf16.msra.mxu0 %v9524_v19 }
 0xbf1   :  { %3180 = vmatprep.subr.bf16.mxu1 %v9530_v0  ;;  %7269 = vmatprep.subr.bf16.mxu0 %v11604_v18 }
 0xbf4   :  { %3181 = vmatpush1.bf16.msra.mxu1 %v9537_v50  ;;  %7270 = vmatpush3.bf16.msra.mxu0 %v9543_v12 }
 0xbf5   :  { %3182 = vmatprep.subr.bf16.mxu1 %v9549_v32  ;;  %7271 = vmatprep.subr.bf16.mxu0 %v11604_v18 }
 0xbf8   :  { %3183 = vmatpush1.bf16.msra.mxu1 %v9556_v60  ;;  %7272 = vmatpush3.bf16.msra.mxu0 %v9562_v27 }
 0xbf9   :  { %3184 = vmatprep.subr.bf16.mxu1 %v9568_v24  ;;  %7273 = vmatprep.subr.bf16.mxu0 %v11604_v18 }
 0xbfc   :  { %3185 = vmatpush1.bf16.msra.mxu1 %v9575_v2  ;;  %7274 = vmatpush3.bf16.msra.mxu0 %v9581_v3 }
 0xbfd   :  { %3186 = vmatprep.subr.bf16.mxu1 %v9587_v57  ;;  %7275 = vmatprep.subr.bf16.mxu0 %v11604_v18 }
 0xc00   :  { %3187 = vmatpush1.bf16.msra.mxu1 %v9647_v40  ;;  %7276 = vmatpush3.bf16.msra.mxu0 %v9595_v14 }
 0xc01   :  { %3188 = vmatprep.subr.bf16.mxu1 %v9654_v49  ;;  %7277 = vmatprep.subr.bf16.mxu0 %v11604_v18 }
 0xc04   :  { %3189 = vmatpush1.bf16.msra.mxu1 %v9661_v15  ;;  %7278 = vmatpush3.bf16.msra.mxu0 %v9667_v51 }
 0xc05   :  { %3277 = vmatprep.subr.bf16.mxu1 %v9412_v21  ;;  %7283 = vmatprep.subr.bf16.mxu0 %v11604_v18 }
 0xca7   :  { %v3105_v39 = vpop.f32.mrf.mxu1  ;;  %v3146_v9 = vpop.f32.mrf.mxu0 }
 0xca8   :  { %v3106_v30 = vadd.f32 %v3105_v39, %v9215_v43  ;;  %v3147_v11 = vadd.f32 %v3146_v9, %v9273_v61 }
 0xca9   :  { %v3107_v46 = vpop.f32.mrf.mxu1  ;;  %v7261_v56 = vpop.f32.mrf.mxu0 }
 0xcaa   :  { %v3152_v53 = vadd.f32 %v3106_v30, %v11612_v26  ;;  %v3108_v47 = vadd.f32 %v3107_v46, %v9229_v23 }
 0xcab   :  { %v3109_v54 = vpop.f32.mrf.mxu1  ;;  %v3149_v28 = vpop.f32.mrf.mxu0 }
 0xcac   :  { %v6302_v22 = vmul.f32 -1.442695, %v3152_v53  ;;  %v3159_v17 = vadd.f32 %v3108_v47, %v11613_v63 }
 0xcad   :  { %v3110_v1 = vpop.f32.mrf.mxu1  ;;  %v7262_v35 = vpop.f32.mrf.mxu0 }
 0xcae   :  { %7963 = vpow2.f32 %v6302_v22  ;;  %v6303_v62 = vmul.f32 -1.442695, %v3159_v17  ;;  %v11615_v35 = vld [vmem:[#allocation21_spill] sm:$0xff] }
 0xcb0   :  { %7965 = vpow2.f32 %v6303_v62 }
 0xcbb   :  { %v7964_v4 = vpop.eup %7963 }
 0xcbc   :  { %v3156_v33 = vadd.f32 1.0, %v7964_v4 }
 0xcbd   :  { %v7966_v5 = vpop.eup %7965 }
 0xcbe   :  { %7967 = vrcp.f32 %v3156_v33  ;;  %v3163_v6 = vadd.f32 1.0, %v7966_v5 }
 0xcc0   :  { %7969 = vrcp.f32 %v3163_v6 }
 0xccb   :  { %v7968_v29 = vpop.eup %7967 }
 0xccc   :  { %v3166_v10 = vmul.f32 %v7968_v29, %v3147_v11  ;;  %v11616_v11 = vld [vmem:[#allocation22_spill] sm:$0xff] }
 0xccd   :  { %v7970_v39 = vpop.eup %7969  ;;  %v1941_v29 = vadd.f32 %v11616_v11, %v9145_v52 }
 0xcce   :  { %v3167_v8 = vadd.f32 %v3166_v10, %v11614_v44  ;;  %v3169_v30 = vsub.f32 1.0, %v7970_v39  ;;  %v3171_v26 = vmul.f32 %v7970_v39, %v9726_v25 }
 0xcd0   :  { %7971 = vtanh.f32 %v3167_v8 }
 0xcdd   :  { %v7972_v46 = vpop.eup %7971 }
 0xcde   :  { %v3170_v56 = vmul.f32 %v7972_v46, %v3169_v30 }
 0xce0   :  { %v9772_v53 = vadd.f32 %v3171_v26, %v3170_v56 }
 0xce2   :  { %v3173_v54 = vpack.c.bf16 %v9772_v53, %v9772_v53 }
 0xce4   :  { %3207 = vmatmul.mubr.bf16.vlgmr.msra.gmra.mxu1 %v3173_v54  ;;  %7280 = vmatmul.mubr.bf16.vlgmr.msra.gmra.mxu0 %v3173_v54  ;;  %v11617_v54 = vld [vmem:[#allocation10_spill] sm:$0xff] }
 0xce5   :  { %3278 = vmatpush1.bf16.msra.mxu1 %v9431_v34  ;;  %7284 = vmatpush3.bf16.msra.mxu0 %v9437_v58 }
 0xce6   :  { %3279 = vmatprep.subr.bf16.mxu1 %v9443_v42  ;;  %7285 = vmatprep.subr.bf16.mxu0 %v11604_v18 }
 0xce7   :  { %3309 = vmatprep.mubr.bf16.mxu1 %v11605_v45  ;;  %7299 = vmatprep.mubr.msk.bf16.mxu0 %vm8301_vm2, %v11604_v18 }
 0xce9   :  { %3280 = vmatpush1.bf16.msra.mxu1 %v9504_v36  ;;  %7286 = vmatpush3.bf16.msra.mxu0 %v9454_v31 }
 0xcea   :  { %3281 = vmatprep.subr.bf16.mxu1 %v9511_v20  ;;  %7287 = vmatprep.subr.bf16.mxu0 %v11604_v18 }
 0xced   :  { %3282 = vmatpush1.bf16.msra.mxu1 %v9518_v37  ;;  %7288 = vmatpush3.bf16.msra.mxu0 %v9524_v19 }
 0xcee   :  { %3283 = vmatprep.subr.bf16.mxu1 %v9530_v0  ;;  %7289 = vmatprep.subr.bf16.mxu0 %v11604_v18 }
 0xcf1   :  { %3284 = vmatpush1.bf16.msra.mxu1 %v9537_v50  ;;  %7290 = vmatpush3.bf16.msra.mxu0 %v9543_v12 }
 0xcf2   :  { %3285 = vmatprep.subr.bf16.mxu1 %v9549_v32  ;;  %7291 = vmatprep.subr.bf16.mxu0 %v11604_v18 }
 0xcf5   :  { %3286 = vmatpush1.bf16.msra.mxu1 %v9556_v60  ;;  %7292 = vmatpush3.bf16.msra.mxu0 %v9562_v27 }
 0xcf6   :  { %3287 = vmatprep.subr.bf16.mxu1 %v9568_v24  ;;  %7293 = vmatprep.subr.bf16.mxu0 %v11604_v18 }
 0xcf9   :  { %3288 = vmatpush1.bf16.msra.mxu1 %v9575_v2  ;;  %7294 = vmatpush3.bf16.msra.mxu0 %v9581_v3 }
 0xcfa   :  { %3289 = vmatprep.subr.bf16.mxu1 %v9587_v57  ;;  %7295 = vmatprep.subr.bf16.mxu0 %v11604_v18 }
 0xcfd   :  { %3290 = vmatpush1.bf16.msra.mxu1 %v9647_v40  ;;  %7296 = vmatpush3.bf16.msra.mxu0 %v9595_v14 }
 0xcfe   :  { %3291 = vmatprep.subr.bf16.mxu1 %v9654_v49  ;;  %7297 = vmatprep.subr.bf16.mxu0 %v11604_v18 }
 0xd01   :  { %3292 = vmatpush1.bf16.msra.mxu1 %v9661_v15  ;;  %7298 = vmatpush3.bf16.msra.mxu0 %v9667_v51 }
 0xd02   :  { %3380 = vmatprep.subr.bf16.mxu1 %v9412_v21  ;;  %7303 = vmatprep.subr.bf16.mxu0 %v11604_v18 }
 0xda4   :  { %v3208_v9 = vpop.f32.mrf.mxu1  ;;  %v3249_v28 = vpop.f32.mrf.mxu0 }
 0xda5   :  { %v3209_v22 = vadd.f32 %v3208_v9, %v9215_v43  ;;  %v3250_v56 = vadd.f32 %v3249_v28, %v9273_v61  ;;  %v2043_v9 = vadd.f32 %v11617_v54, %v9116_v16  ;;  %v11619_v54 = vld [vmem:[#allocation24_spill] sm:$0xff] }
 0xda6   :  { %v3210_v47 = vpop.f32.mrf.mxu1  ;;  %v7281_v1 = vpop.f32.mrf.mxu0 }
 0xda7   :  { %v3255_v63 = vadd.f32 %v3209_v22, %v11615_v35  ;;  %v3211_v33 = vadd.f32 %v3210_v47, %v9229_v23 }
 0xda8   :  { %v3212_v17 = vpop.f32.mrf.mxu1  ;;  %v3252_v62 = vpop.f32.mrf.mxu0 }
 0xda9   :  { %v6304_v4 = vmul.f32 -1.442695, %v3255_v63  ;;  %v3262_v10 = vadd.f32 %v3211_v33, %v1941_v29 }
 0xdaa   :  { %v3213_v5 = vpop.f32.mrf.mxu1  ;;  %v7282_v6 = vpop.f32.mrf.mxu0 }
 0xdab   :  { %7973 = vpow2.f32 %v6304_v4  ;;  %v6305_v44 = vmul.f32 -1.442695, %v3262_v10  ;;  %v11618_v10 = vld [vmem:[#allocation23_spill] sm:$0xff] }
 0xdad   :  { %7975 = vpow2.f32 %v6305_v44 }
 0xdb8   :  { %v7974_v8 = vpop.eup %7973 }
 0xdb9   :  { %v3259_v39 = vadd.f32 1.0, %v7974_v8 }
 0xdba   :  { %v7976_v30 = vpop.eup %7975 }
 0xdbb   :  { %7977 = vrcp.f32 %v3259_v39  ;;  %v3266_v46 = vadd.f32 1.0, %v7976_v30 }
 0xdbd   :  { %7979 = vrcp.f32 %v3266_v46 }
 0xdc8   :  { %v7978_v26 = vpop.eup %7977 }
 0xdc9   :  { %v3269_v22 = vmul.f32 %v7978_v26, %v3250_v56 }
 0xdca   :  { %v7980_v1 = vpop.eup %7979 }
 0xdcb   :  { %v3270_v47 = vadd.f32 %v3269_v22, %v2043_v9  ;;  %v3272_v35 = vsub.f32 1.0, %v7980_v1  ;;  %v3274_v62 = vmul.f32 %v7980_v1, %v9772_v53 }
 0xdcd   :  { %7981 = vtanh.f32 %v3270_v47 }
 0xdda   :  { %v7982_v63 = vpop.eup %7981 }
 0xddb   :  { %v3273_v17 = vmul.f32 %v7982_v63, %v3272_v35 }
 0xddd   :  { %v9820_v4 = vadd.f32 %v3274_v62, %v3273_v17 }
 0xddf   :  { %v3276_v33 = vpack.c.bf16 %v9820_v4, %v9820_v4 }
 0xde1   :  { %3310 = vmatmul.mubr.bf16.vlgmr.msra.gmra.mxu1 %v3276_v33  ;;  %7300 = vmatmul.mubr.bf16.vlgmr.msra.gmra.mxu0 %v3276_v33  ;;  %v11620_v33 = vld [vmem:[#allocation7_spill] sm:$0xff] }
 0xde2   :  { %3381 = vmatpush1.bf16.msra.mxu1 %v9431_v34  ;;  %7304 = vmatpush3.bf16.msra.mxu0 %v9437_v58 }
 0xde3   :  { %3382 = vmatprep.subr.bf16.mxu1 %v9443_v42  ;;  %7305 = vmatprep.subr.bf16.mxu0 %v11604_v18 }
 0xde4   :  { %3412 = vmatprep.mubr.bf16.mxu1 %v11605_v45  ;;  %7319 = vmatprep.mubr.msk.bf16.mxu0 %vm8301_vm2, %v11604_v18 }
 0xde6   :  { %3383 = vmatpush1.bf16.msra.mxu1 %v9504_v36  ;;  %7306 = vmatpush3.bf16.msra.mxu0 %v9454_v31 }
 0xde7   :  { %3384 = vmatprep.subr.bf16.mxu1 %v9511_v20  ;;  %7307 = vmatprep.subr.bf16.mxu0 %v11604_v18 }
 0xdea   :  { %3385 = vmatpush1.bf16.msra.mxu1 %v9518_v37  ;;  %7308 = vmatpush3.bf16.msra.mxu0 %v9524_v19 }
 0xdeb   :  { %3386 = vmatprep.subr.bf16.mxu1 %v9530_v0  ;;  %7309 = vmatprep.subr.bf16.mxu0 %v11604_v18 }
 0xdee   :  { %3387 = vmatpush1.bf16.msra.mxu1 %v9537_v50  ;;  %7310 = vmatpush3.bf16.msra.mxu0 %v9543_v12 }
 0xdef   :  { %3388 = vmatprep.subr.bf16.mxu1 %v9549_v32  ;;  %7311 = vmatprep.subr.bf16.mxu0 %v11604_v18 }
 0xdf2   :  { %3389 = vmatpush1.bf16.msra.mxu1 %v9556_v60  ;;  %7312 = vmatpush3.bf16.msra.mxu0 %v9562_v27 }
 0xdf3   :  { %3390 = vmatprep.subr.bf16.mxu1 %v9568_v24  ;;  %7313 = vmatprep.subr.bf16.mxu0 %v11604_v18 }
 0xdf6   :  { %3391 = vmatpush1.bf16.msra.mxu1 %v9575_v2  ;;  %7314 = vmatpush3.bf16.msra.mxu0 %v9581_v3 }
 0xdf7   :  { %3392 = vmatprep.subr.bf16.mxu1 %v9587_v57  ;;  %7315 = vmatprep.subr.bf16.mxu0 %v11604_v18 }
 0xdfa   :  { %3393 = vmatpush1.bf16.msra.mxu1 %v9647_v40  ;;  %7316 = vmatpush3.bf16.msra.mxu0 %v9595_v14 }
 0xdfb   :  { %3394 = vmatprep.subr.bf16.mxu1 %v9654_v49  ;;  %7317 = vmatprep.subr.bf16.mxu0 %v11604_v18 }
 0xdfe   :  { %3395 = vmatpush1.bf16.msra.mxu1 %v9661_v15  ;;  %7318 = vmatpush3.bf16.msra.mxu0 %v9667_v51 }
 0xdff   :  { %3483 = vmatprep.subr.bf16.mxu1 %v9412_v21  ;;  %7323 = vmatprep.subr.bf16.mxu0 %v11604_v18 }
 0xea1   :  { %v3311_v28 = vpop.f32.mrf.mxu1  ;;  %v3352_v5 = vpop.f32.mrf.mxu0 }
 0xea2   :  { %v3312_v6 = vadd.f32 %v3311_v28, %v9215_v43  ;;  %v3353_v63 = vadd.f32 %v3352_v5, %v9273_v61 }
 0xea3   :  { %v3313_v11 = vpop.f32.mrf.mxu1  ;;  %v7301_v29 = vpop.f32.mrf.mxu0 }
 0xea4   :  { %v3358_v44 = vadd.f32 %v3312_v6, %v11618_v10  ;;  %v3314_v46 = vadd.f32 %v3313_v11, %v9229_v23 }
 0xea5   :  { %v3315_v8 = vpop.f32.mrf.mxu1  ;;  %v3355_v39 = vpop.f32.mrf.mxu0 }
 0xea6   :  { %v6306_v30 = vmul.f32 -1.442695, %v3358_v44  ;;  %v3365_v21 = vadd.f32 %v3314_v46, %v11619_v54  ;;  %v11621_v46 = vld [vmem:[#allocation25_spill] sm:$0xff] }
 0xea7   :  { %v3316_v56 = vpop.f32.mrf.mxu1  ;;  %v7302_v26 = vpop.f32.mrf.mxu0 }
 0xea8   :  { %7983 = vpow2.f32 %v6306_v30  ;;  %v6307_v9 = vmul.f32 -1.442695, %v3365_v21 }
 0xeaa   :  { %7985 = vpow2.f32 %v6307_v9 }
 0xeb5   :  { %v7984_v22 = vpop.eup %7983 }
 0xeb6   :  { %v3362_v47 = vadd.f32 1.0, %v7984_v22 }
 0xeb7   :  { %v7986_v1 = vpop.eup %7985 }
 0xeb8   :  { %7987 = vrcp.f32 %v3362_v47  ;;  %v3369_v35 = vadd.f32 1.0, %v7986_v1  ;;  %v11622_v1 = vld [vmem:[#allocation26_spill] sm:$0xff] }
 0xeba   :  { %7989 = vrcp.f32 %v3369_v35  ;;  %v1951_v35 = vadd.f32 %v11622_v1, %v9145_v52 }
 0xec5   :  { %v7988_v17 = vpop.eup %7987 }
 0xec6   :  { %v3372_v62 = vmul.f32 %v7988_v17, %v3353_v63 }
 0xec7   :  { %v7990_v6 = vpop.eup %7989 }
 0xec8   :  { %v3373_v28 = vadd.f32 %v3372_v62, %v11620_v33  ;;  %v3375_v11 = vsub.f32 1.0, %v7990_v6  ;;  %v3377_v44 = vmul.f32 %v7990_v6, %v9820_v4 }
 0xeca   :  { %7991 = vtanh.f32 %v3373_v28 }
 0xed7   :  { %v7992_v29 = vpop.eup %7991 }
 0xed8   :  { %v3376_v10 = vmul.f32 %v7992_v29, %v3375_v11 }
 0xeda   :  { %v9866_v8 = vadd.f32 %v3377_v44, %v3376_v10  ;;  %v11623_v44 = vld [vmem:[#allocation9_spill] sm:$0xff] }
 0xedc   :  { %v3379_v39 = vpack.c.bf16 %v9866_v8, %v9866_v8 }
 0xede   :  { %3413 = vmatmul.mubr.bf16.vlgmr.msra.gmra.mxu1 %v3379_v39  ;;  %7320 = vmatmul.mubr.bf16.vlgmr.msra.gmra.mxu0 %v3379_v39 }
 0xedf   :  { %3484 = vmatpush1.bf16.msra.mxu1 %v9431_v34  ;;  %7324 = vmatpush3.bf16.msra.mxu0 %v9437_v58  ;;  %v9906_v34 = vld [vmem:[%s11524_s18 + $0xac] ss:$12 sps:$4 sm:$0xff]  }
 0xee0   :  { %3485 = vmatprep.subr.bf16.mxu1 %v9443_v42  ;;  %7325 = vmatprep.subr.bf16.mxu0 %v11604_v18 }
 0xee1   :  { %3515 = vmatprep.mubr.bf16.mxu1 %v11605_v45  ;;  %7339 = vmatprep.mubr.msk.bf16.mxu0 %vm8301_vm2, %v11604_v18 }
 0xee3   :  { %3486 = vmatpush1.bf16.msra.mxu1 %v9504_v36  ;;  %7326 = vmatpush3.bf16.msra.mxu0 %v9454_v31 }
 0xee4   :  { %3487 = vmatprep.subr.bf16.mxu1 %v9511_v20  ;;  %7327 = vmatprep.subr.bf16.mxu0 %v11604_v18 }
 0xee7   :  { %3488 = vmatpush1.bf16.msra.mxu1 %v9518_v37  ;;  %7328 = vmatpush3.bf16.msra.mxu0 %v9524_v19 }
 0xee8   :  { %3489 = vmatprep.subr.bf16.mxu1 %v9530_v0  ;;  %7329 = vmatprep.subr.bf16.mxu0 %v11604_v18 }
 0xeeb   :  { %3490 = vmatpush1.bf16.msra.mxu1 %v9537_v50  ;;  %7330 = vmatpush3.bf16.msra.mxu0 %v9543_v12 }
 0xeec   :  { %3491 = vmatprep.subr.bf16.mxu1 %v9549_v32  ;;  %7331 = vmatprep.subr.bf16.mxu0 %v11604_v18 }
 0xeef   :  { %3492 = vmatpush1.bf16.msra.mxu1 %v9556_v60  ;;  %7332 = vmatpush3.bf16.msra.mxu0 %v9562_v27 }
 0xef0   :  { %3493 = vmatprep.subr.bf16.mxu1 %v9568_v24  ;;  %7333 = vmatprep.subr.bf16.mxu0 %v11604_v18 }
 0xef3   :  { %3494 = vmatpush1.bf16.msra.mxu1 %v9575_v2  ;;  %7334 = vmatpush3.bf16.msra.mxu0 %v9581_v3 }
 0xef4   :  { %3495 = vmatprep.subr.bf16.mxu1 %v9587_v57  ;;  %7335 = vmatprep.subr.bf16.mxu0 %v11604_v18 }
 0xef7   :  { %3496 = vmatpush1.bf16.msra.mxu1 %v9647_v40  ;;  %7336 = vmatpush3.bf16.msra.mxu0 %v9595_v14 }
 0xef8   :  { %3497 = vmatprep.subr.bf16.mxu1 %v9654_v49  ;;  %7337 = vmatprep.subr.bf16.mxu0 %v11604_v18 }
 0xefb   :  { %3498 = vmatpush1.bf16.msra.mxu1 %v9661_v15  ;;  %7338 = vmatpush3.bf16.msra.mxu0 %v9667_v51 }
 0xefc   :  { %3586 = vmatprep.subr.bf16.mxu1 %v9906_v34  ;;  %7343 = vmatprep.subr.bf16.mxu0 %v11604_v18 }
 0xf9e   :  { %v3414_v58 = vpop.f32.mrf.mxu1  ;;  %v3455_v42 = vpop.f32.mrf.mxu0 }
 0xf9f   :  { %v3415_v31 = vadd.f32 %v3414_v58, %v9215_v43  ;;  %v3456_v11 = vadd.f32 %v3455_v42, %v9273_v61  ;;  %v9925_v42 = vld [vmem:[%s11524_s18 + $0xa8] ss:$12 sps:$4 sm:$0xff]  }
 0xfa0   :  { %v3416_v5 = vpop.f32.mrf.mxu1  ;;  %v7321_v30 = vpop.f32.mrf.mxu0 }
 0xfa1   :  { %v3461_v56 = vadd.f32 %v3415_v31, %v11621_v46  ;;  %v3417_v9 = vadd.f32 %v3416_v5, %v9229_v23 }
 0xfa2   :  { %v3418_v26 = vpop.f32.mrf.mxu1  ;;  %v3458_v54 = vpop.f32.mrf.mxu0 }
 0xfa3   :  { %v6308_v21 = vmul.f32 -1.442695, %v3461_v56  ;;  %v3468_v63 = vadd.f32 %v3417_v9, %v1951_v35  ;;  %v9931_v54 = vld [vmem:[%s11524_s18 + $0xb0] ss:$12 sps:$4 sm:$0xff]   ;;  %v9948_v9 = vld [vmem:[%s11524_s18 + $0x98] ss:$12 sps:$4 sm:$0xff]  }
 0xfa4   :  { %v3419_v22 = vpop.f32.mrf.mxu1  ;;  %v7322_v47 = vpop.f32.mrf.mxu0 }
 0xfa5   :  { %7993 = vpow2.f32 %v6308_v21  ;;  %v6309_v17 = vmul.f32 -1.442695, %v3468_v63  ;;  %v9937_v21 = vld [vmem:[%s11524_s18 + $0x94] ss:$12 sps:$4 sm:$0xff]  }
 0xfa7   :  { %7995 = vpow2.f32 %v6309_v17 }
 0xfb2   :  { %v7994_v62 = vpop.eup %7993 }
 0xfb3   :  { %v3465_v33 = vadd.f32 1.0, %v7994_v62 }
 0xfb4   :  { %v7996_v28 = vpop.eup %7995 }
 0xfb5   :  { %7997 = vrcp.f32 %v3465_v33  ;;  %v3472_v6 = vadd.f32 1.0, %v7996_v28  ;;  %v11626_v28 = vld [vmem:[#allocation14_spill] sm:$0xff] }
 0xfb7   :  { %7999 = vrcp.f32 %v3472_v6 }
 0xfc2   :  { %v7998_v29 = vpop.eup %7997 }
 0xfc3   :  { %v3475_v10 = vmul.f32 %v7998_v29, %v3456_v11 }
 0xfc4   :  { %v8000_v58 = vpop.eup %7999 }
 0xfc5   :  { %v3476_v39 = vadd.f32 %v3475_v10, %v11623_v44  ;;  %v3478_v31 = vsub.f32 1.0, %v8000_v58  ;;  %v3480_v46 = vmul.f32 %v8000_v58, %v9866_v8 }
 0xfc7   :  { %8001 = vtanh.f32 %v3476_v39 }
 0xfd4   :  { %v8002_v5 = vpop.eup %8001 }
 0xfd5   :  { %v3479_v30 = vmul.f32 %v8002_v5, %v3478_v31  ;;  %v9998_v5 = vld [vmem:[%s11524_s18 + $0x90] ss:$12 sps:$4 sm:$0xff]  }
 0xfd7   :  { %v9918_v56 = vadd.f32 %v3480_v46, %v3479_v30  ;;  %v10005_v30 = vld [vmem:[%s11524_s18 + $0x7c] ss:$12 sps:$4 sm:$0xff]   ;;  %v10012_v46 = vld [vmem:[%s11524_s18 + $0x78] ss:$12 sps:$4 sm:$0xff]  }
 0xfd9   :  { %v3482_v26 = vpack.c.bf16 %v9918_v56, %v9918_v56 }
 0xfdb   :  { %3516 = vmatmul.mubr.bf16.vlgmr.msra.gmra.mxu1 %v3482_v26  ;;  %7340 = vmatmul.mubr.bf16.vlgmr.msra.gmra.mxu0 %v3482_v26  ;;  %v10018_v26 = vld [vmem:[%s11524_s18 + $0x80] ss:$12 sps:$4 sm:$0xff]  }
 0xfdc   :  { %3587 = vmatpush1.bf16.msra.mxu1 %v9925_v42  ;;  %7344 = vmatpush3.bf16.msra.mxu0 %v9931_v54 }
 0xfdd   :  { %3588 = vmatprep.subr.bf16.mxu1 %v9937_v21  ;;  %7345 = vmatprep.subr.bf16.mxu0 %v11604_v18 }
 0xfde   :  { %3618 = vmatprep.mubr.bf16.mxu1 %v11605_v45  ;;  %7359 = vmatprep.mubr.msk.bf16.mxu0 %vm8301_vm2, %v11604_v18 }
 0xfe0   :  { %3589 = vmatpush1.bf16.msra.mxu1 %v9504_v36  ;;  %7346 = vmatpush3.bf16.msra.mxu0 %v9948_v9 }
 0xfe1   :  { %3590 = vmatprep.subr.bf16.mxu1 %v9511_v20  ;;  %7347 = vmatprep.subr.bf16.mxu0 %v11604_v18 }
 0xfe4   :  { %3591 = vmatpush1.bf16.msra.mxu1 %v9518_v37  ;;  %7348 = vmatpush3.bf16.msra.mxu0 %v9524_v19 }
 0xfe5   :  { %3592 = vmatprep.subr.bf16.mxu1 %v9530_v0  ;;  %7349 = vmatprep.subr.bf16.mxu0 %v11604_v18 }
 0xfe8   :  { %3593 = vmatpush1.bf16.msra.mxu1 %v9537_v50  ;;  %7350 = vmatpush3.bf16.msra.mxu0 %v9543_v12  ;;  %v11624_v50 = vld [vmem:[#allocation27_spill] sm:$0xff] }
 0xfe9   :  { %3594 = vmatprep.subr.bf16.mxu1 %v9549_v32  ;;  %7351 = vmatprep.subr.bf16.mxu0 %v11604_v18 }
 0xfec   :  { %3595 = vmatpush1.bf16.msra.mxu1 %v9556_v60  ;;  %7352 = vmatpush3.bf16.msra.mxu0 %v9562_v27 }
 0xfed   :  { %3596 = vmatprep.subr.bf16.mxu1 %v9568_v24  ;;  %7353 = vmatprep.subr.bf16.mxu0 %v11604_v18 }
 0xff0   :  { %3597 = vmatpush1.bf16.msra.mxu1 %v9575_v2  ;;  %7354 = vmatpush3.bf16.msra.mxu0 %v9581_v3 }
 0xff1   :  { %3598 = vmatprep.subr.bf16.mxu1 %v9587_v57  ;;  %7355 = vmatprep.subr.bf16.mxu0 %v11604_v18  ;;  %v11625_v57 = vld [vmem:[#allocation28_spill] sm:$0xff] }
 0xff4   :  { %3599 = vmatpush1.bf16.msra.mxu1 %v9647_v40  ;;  %7356 = vmatpush3.bf16.msra.mxu0 %v9595_v14 }
 0xff5   :  { %3600 = vmatprep.subr.bf16.mxu1 %v9654_v49  ;;  %7357 = vmatprep.subr.bf16.mxu0 %v11604_v18 }
 0xff8   :  { %3601 = vmatpush1.bf16.msra.mxu1 %v9661_v15  ;;  %7358 = vmatpush3.bf16.msra.mxu0 %v9667_v51 }
 0xff9   :  { %3689 = vmatprep.subr.bf16.mxu1 %v9906_v34  ;;  %7363 = vmatprep.subr.bf16.mxu0 %v11604_v18 }
0x109b   :  { %v3517_v36 = vpop.f32.mrf.mxu1  ;;  %v3558_v20 = vpop.f32.mrf.mxu0 }
0x109c   :  { %v3518_v37 = vadd.f32 %v3517_v36, %v9215_v43  ;;  %v3559_v17 = vadd.f32 %v3558_v20, %v9273_v61  ;;  %v10024_v36 = vld [vmem:[%s11524_s18 + $0x64] ss:$12 sps:$4 sm:$0xff]   ;;  %v10031_v20 = vld [vmem:[%s11524_s18 + $0x60] ss:$12 sps:$4 sm:$0xff]  }
0x109d   :  { %v3519_v19 = vpop.f32.mrf.mxu1  ;;  %v7341_v0 = vpop.f32.mrf.mxu0 }
0x109e   :  { %v3564_v12 = vadd.f32 %v3518_v37, %v11624_v50  ;;  %v3520_v24 = vadd.f32 %v3519_v19, %v9229_v23  ;;  %v10037_v37 = vld [vmem:[%s11524_s18 + $0x68] ss:$12 sps:$4 sm:$0xff]   ;;  %v10043_v19 = vld [vmem:[%s11524_s18 + $0x4c] ss:$12 sps:$4 sm:$0xff]   ;;  %v10056_v50 = vld [vmem:[%s11524_s18 + $0x50] ss:$12 sps:$4 sm:$0xff]  }
0x109f   :  { %v3521_v32 = vpop.f32.mrf.mxu1  ;;  %v3561_v60 = vpop.f32.mrf.mxu0  ;;  %v10050_v0 = vld [vmem:[%s11524_s18 + $0x48] ss:$12 sps:$4 sm:$0xff]  }
0x10a0   :  { %v6310_v27 = vmul.f32 -1.442695, %v3564_v12  ;;  %v3571_v14 = vadd.f32 %v3520_v24, %v11625_v57  ;;  %v10062_v12 = vld [vmem:[%s11524_s18 + $0x34] ss:$12 sps:$4 sm:$0xff]   ;;  %v10069_v32 = vld [vmem:[%s11524_s18 + $0x30] ss:$12 sps:$4 sm:$0xff]  }
0x10a1   :  { %v3522_v2 = vpop.f32.mrf.mxu1  ;;  %v7342_v3 = vpop.f32.mrf.mxu0  ;;  %v10075_v60 = vld [vmem:[%s11524_s18 + $0x38] ss:$12 sps:$4 sm:$0xff]   ;;  %v10089_v24 = vld [vmem:[%s11524_s18 + $0x20] ss:$12 sps:$4 sm:$0xff]  }
0x10a2   :  { %8003 = vpow2.f32 %v6310_v27  ;;  %v6311_v22 = vmul.f32 -1.442695, %v3571_v14  ;;  %v10081_v27 = vld [vmem:[%s11524_s18 + $0x1c] ss:$12 sps:$4 sm:$0xff]  }
0x10a4   :  { %8005 = vpow2.f32 %v6311_v22  ;;  %v11627_v22 = vld [vmem:[#allocation29_spill] sm:$0xff] }
0x10af   :  { %v8004_v47 = vpop.eup %8003 }
0x10b0   :  { %v3568_v1 = vadd.f32 1.0, %v8004_v47 }
0x10b1   :  { %v8006_v35 = vpop.eup %8005 }
0x10b2   :  { %8007 = vrcp.f32 %v3568_v1  ;;  %v3575_v63 = vadd.f32 1.0, %v8006_v35 }
0x10b4   :  { %8009 = vrcp.f32 %v3575_v63 }
0x10bf   :  { %v8008_v62 = vpop.eup %8007 }
0x10c0   :  { %v3578_v33 = vmul.f32 %v8008_v62, %v3559_v17 }
0x10c1   :  { %v8010_v11 = vpop.eup %8009 }
0x10c2   :  { %v3579_v6 = vadd.f32 %v3578_v33, %v11626_v28  ;;  %v3581_v29 = vsub.f32 1.0, %v8010_v11  ;;  %v3583_v39 = vmul.f32 %v8010_v11, %v9918_v56 }
0x10c4   :  { %8011 = vtanh.f32 %v3579_v6 }
0x10d1   :  { %v8012_v10 = vpop.eup %8011 }
0x10d2   :  { %v3582_v44 = vmul.f32 %v8012_v10, %v3581_v29 }
0x10d4   :  { %v9984_v58 = vadd.f32 %v3583_v39, %v3582_v44  ;;  %v11629_v39 = vld [vmem:[#allocation18_spill] sm:$0xff] }
0x10d6   :  { %v3585_v31 = vpack.c.bf16 %v9984_v58, %v9984_v58 }
0x10d8   :  { %3619 = vmatmul.mubr.bf16.vlgmr.msra.gmra.mxu1 %v3585_v31  ;;  %7360 = vmatmul.mubr.bf16.vlgmr.msra.gmra.mxu0 %v3585_v31  ;;  %v2059_v31 = vadd.f32 %v11629_v39, %v9116_v16  ;;  %v8247_v16 = vld [vmem:[%s11524_s18 + $0x18] ss:$12 sps:$4 sm:$0xff]  }
0x10d9   :  { %3690 = vmatpush1.bf16.msra.mxu1 %v9925_v42  ;;  %7364 = vmatpush3.bf16.msra.mxu0 %v9931_v54 }
0x10da   :  { %3691 = vmatprep.subr.bf16.mxu1 %v9937_v21  ;;  %7365 = vmatprep.subr.bf16.mxu0 %v11604_v18 }
0x10db   :  { %3721 = vmatprep.mubr.bf16.mxu1 %v11605_v45  ;;  %7379 = vmatprep.mubr.msk.bf16.mxu0 %vm8301_vm2, %v11604_v18 }
0x10dd   :  { %3692 = vmatpush1.bf16.msra.mxu1 %v9998_v5  ;;  %7366 = vmatpush3.bf16.msra.mxu0 %v9948_v9 }
0x10de   :  { %3693 = vmatprep.subr.bf16.mxu1 %v10005_v30  ;;  %7367 = vmatprep.subr.bf16.mxu0 %v11604_v18 }
0x10e1   :  { %3694 = vmatpush1.bf16.msra.mxu1 %v10012_v46  ;;  %7368 = vmatpush3.bf16.msra.mxu0 %v10018_v26 }
0x10e2   :  { %3695 = vmatprep.subr.bf16.mxu1 %v10024_v36  ;;  %7369 = vmatprep.subr.bf16.mxu0 %v11604_v18 }
0x10e5   :  { %3696 = vmatpush1.bf16.msra.mxu1 %v10031_v20  ;;  %7370 = vmatpush3.bf16.msra.mxu0 %v10037_v37 }
0x10e6   :  { %3697 = vmatprep.subr.bf16.mxu1 %v10043_v19  ;;  %7371 = vmatprep.subr.bf16.mxu0 %v11604_v18 }
0x10e9   :  { %3698 = vmatpush1.bf16.msra.mxu1 %v10050_v0  ;;  %7372 = vmatpush3.bf16.msra.mxu0 %v10056_v50 }
0x10ea   :  { %3699 = vmatprep.subr.bf16.mxu1 %v10062_v12  ;;  %7373 = vmatprep.subr.bf16.mxu0 %v11604_v18 }
0x10ed   :  { %3700 = vmatpush1.bf16.msra.mxu1 %v10069_v32  ;;  %7374 = vmatpush3.bf16.msra.mxu0 %v10075_v60 }
0x10ee   :  { %3701 = vmatprep.subr.bf16.mxu1 %v10081_v27  ;;  %7375 = vmatprep.subr.bf16.mxu0 %v11604_v18 }
0x10f1   :  { %3702 = vmatpush1.bf16.msra.mxu1 %v9647_v40  ;;  %7376 = vmatpush3.bf16.msra.mxu0 %v10089_v24 }
0x10f2   :  { %3703 = vmatprep.subr.bf16.mxu1 %v9654_v49  ;;  %7377 = vmatprep.subr.bf16.mxu0 %v11604_v18 }
0x10f5   :  { %3704 = vmatpush1.bf16.msra.mxu1 %v9661_v15  ;;  %7378 = vmatpush3.bf16.msra.mxu0 %v9667_v51  ;;  %v11628_v51 = vld [vmem:[#allocation30_spill] sm:$0xff] }
0x10f6   :  { %3792 = vmatprep.subr.bf16.mxu1 %v9906_v34  ;;  %7383 = vmatprep.subr.bf16.mxu0 %v11604_v18  ;;  %v1961_v34 = vadd.f32 %v11628_v51, %v9145_v52 }
0x1198   :  { %v3620_v40 = vpop.f32.mrf.mxu1  ;;  %v3661_v2 = vpop.f32.mrf.mxu0 }
0x1199   :  { %v3621_v3 = vadd.f32 %v3620_v40, %v9215_v43  ;;  %v3662_v10 = vadd.f32 %v3661_v2, %v9273_v61 }
0x119a   :  { %v3622_v57 = vpop.f32.mrf.mxu1  ;;  %v7361_v14 = vpop.f32.mrf.mxu0 }
0x119b   :  { %v3667_v47 = vadd.f32 %v3621_v3, %v11627_v22  ;;  %v3623_v63 = vadd.f32 %v3622_v57, %v9229_v23 }
0x119c   :  { %v3624_v1 = vpop.f32.mrf.mxu1  ;;  %v3664_v49 = vpop.f32.mrf.mxu0 }
0x119d   :  { %v6312_v35 = vmul.f32 -1.442695, %v3667_v47  ;;  %v3674_v62 = vadd.f32 %v3623_v63, %v1961_v34 }
0x119e   :  { %v3625_v15 = vpop.f32.mrf.mxu1  ;;  %v7362_v17 = vpop.f32.mrf.mxu0 }
0x119f   :  { %8013 = vpow2.f32 %v6312_v35  ;;  %v6313_v33 = vmul.f32 -1.442695, %v3674_v62 }
0x11a1   :  { %8015 = vpow2.f32 %v6313_v33 }
0x11ac   :  { %v8014_v28 = vpop.eup %8013 }
0x11ad   :  { %v3671_v6 = vadd.f32 1.0, %v8014_v28 }
0x11ae   :  { %v8016_v11 = vpop.eup %8015 }
0x11af   :  { %8017 = vrcp.f32 %v3671_v6  ;;  %v3678_v29 = vadd.f32 1.0, %v8016_v11  ;;  %v11632_v6 = vld [vmem:[#allocation12_spill] sm:$0xff] }
0x11b1   :  { %8019 = vrcp.f32 %v3678_v29 }
0x11bc   :  { %v8018_v44 = vpop.eup %8017 }
0x11bd   :  { %v3681_v40 = vmul.f32 %v8018_v44, %v3662_v10 }
0x11be   :  { %v8020_v57 = vpop.eup %8019 }
0x11bf   :  { %v3682_v3 = vadd.f32 %v3681_v40, %v2059_v31  ;;  %v3684_v14 = vsub.f32 1.0, %v8020_v57  ;;  %v3686_v1 = vmul.f32 %v8020_v57, %v9984_v58 }
0x11c1   :  { %8021 = vtanh.f32 %v3682_v3  ;;  %v7819_v3 = vld [vmem:[%s11528_s21 + $0xa8] ss:$12 sps:$4 sm:$0xff]  }
0x11ce   :  { %v8022_v22 = vpop.eup %8021 }
0x11cf   :  { %v3685_v47 = vmul.f32 %v8022_v22, %v3684_v14  ;;  %v7825_v14 = vld [vmem:[%s11528_s21 + $0x94] ss:$12 sps:$4 sm:$0xff]   ;;  %v7826_v22 = vld [vmem:[%s11528_s21 + $0x98] ss:$12 sps:$4 sm:$0xff]  }
0x11d1   :  { %v10107_v49 = vadd.f32 %v3686_v1, %v3685_v47  ;;  %v3895_v47 = vpack.c.bf16 %v9326_v38, %v9278_v48  ;;  %v7823_v1 = vld [vmem:[%s11528_s21 + $0x90] ss:$12 sps:$4 sm:$0xff]   ;;  %v7827_v48 = vld [vmem:[%s11528_s21 + $0x78] ss:$12 sps:$4 sm:$0xff]  }
0x11d2   :  { %v7833_v38 = vld [vmem:[%s11528_s21 + $0x64] ss:$12 sps:$4 sm:$0xff]  }
0x11d3   :  { %v3688_v35 = vpack.c.bf16 %v10107_v49, %v10107_v49 }
0x11d5   :  { %3722 = vmatmul.mubr.bf16.vlgmr.msra.gmra.mxu1 %v3688_v35  ;;  %7380 = vmatmul.mubr.bf16.vlgmr.msra.gmra.mxu0 %v3688_v35  ;;  %v7829_v35 = vld [vmem:[%s11528_s21 + $0x7c] ss:$12 sps:$4 sm:$0xff]  }
0x11d6   :  { %3793 = vmatpush1.bf16.msra.mxu1 %v9925_v42  ;;  %7384 = vmatpush3.bf16.msra.mxu0 %v9931_v54  ;;  %v8248_v42 = vld [vmem:[%s11524_s18 + $0x4] ss:$12 sps:$4 sm:$0xff]   ;;  %v8249_v54 = vld [vmem:[%s11524_s18] ss:$12 sps:$4 sm:$0xff]  }
0x11d7   :  { %3794 = vmatprep.subr.bf16.mxu1 %v9937_v21  ;;  %7385 = vmatprep.subr.bf16.mxu0 %v11604_v18  ;;  %v8250_v21 = vld [vmem:[%s11524_s18 + $0x8] ss:$12 sps:$4 sm:$0xff]  }
0x11d8   :  { %3824 = vmatprep.mubr.bf16.mxu1 %v11605_v45  ;;  %7399 = vmatprep.mubr.msk.bf16.mxu0 %vm8301_vm2, %v11604_v18 }
0x11da   :  { %3795 = vmatpush1.bf16.msra.mxu1 %v9998_v5  ;;  %7386 = vmatpush3.bf16.msra.mxu0 %v9948_v9  ;;  %v7821_v9 = vld [vmem:[%s11528_s21 + $0xac] ss:$12 sps:$4 sm:$0xff]   ;;  %v7822_v5 = vld [vmem:[%s11528_s21 + $0xb0] ss:$12 sps:$4 sm:$0xff]  }
0x11db   :  { %3796 = vmatprep.subr.bf16.mxu1 %v10005_v30  ;;  %7387 = vmatprep.subr.bf16.mxu0 %v11604_v18 }
0x11de   :  { %3797 = vmatpush1.bf16.msra.mxu1 %v10012_v46  ;;  %7388 = vmatpush3.bf16.msra.mxu0 %v10018_v26 }
0x11df   :  { %3798 = vmatprep.subr.bf16.mxu1 %v10024_v36  ;;  %7389 = vmatprep.subr.bf16.mxu0 %v11604_v18 }
0x11e2   :  { %3799 = vmatpush1.bf16.msra.mxu1 %v10031_v20  ;;  %7390 = vmatpush3.bf16.msra.mxu0 %v10037_v37  ;;  %v11630_v37 = vld [vmem:[#allocation31_spill] sm:$0xff] }
0x11e3   :  { %3800 = vmatprep.subr.bf16.mxu1 %v10043_v19  ;;  %7391 = vmatprep.subr.bf16.mxu0 %v11604_v18 }
0x11e6   :  { %3801 = vmatpush1.bf16.msra.mxu1 %v10050_v0  ;;  %7392 = vmatpush3.bf16.msra.mxu0 %v10056_v50 }
0x11e7   :  { %3802 = vmatprep.subr.bf16.mxu1 %v10062_v12  ;;  %7393 = vmatprep.subr.bf16.mxu0 %v11604_v18 }
0x11ea   :  { %3803 = vmatpush1.bf16.msra.mxu1 %v10069_v32  ;;  %7394 = vmatpush3.bf16.msra.mxu0 %v10075_v60 }
0x11eb   :  { %3804 = vmatprep.subr.bf16.mxu1 %v10081_v27  ;;  %7395 = vmatprep.subr.bf16.mxu0 %v11604_v18 }
0x11ee   :  { %3805 = vmatpush1.bf16.msra.mxu1 %v8247_v16  ;;  %7396 = vmatpush3.bf16.msra.mxu0 %v10089_v24  ;;  %v11631_v24 = vld [vmem:[#allocation32_spill] sm:$0xff]  ;;  %v7830_v16 = vld [vmem:[%s11528_s21 + $0x80] ss:$12 sps:$4 sm:$0xff]  }
0x11ef   :  { %3806 = vmatprep.subr.bf16.mxu1 %v8248_v42  ;;  %7397 = vmatprep.subr.bf16.mxu0 %v11604_v18  ;;  %v7834_v42 = vld [vmem:[%s11528_s21 + $0x68] ss:$12 sps:$4 sm:$0xff]  }
0x11f2   :  { %3807 = vmatpush1.bf16.msra.mxu1 %v8249_v54  ;;  %7398 = vmatpush3.bf16.msra.mxu0 %v8250_v21  ;;  %v7831_v54 = vld [vmem:[%s11528_s21 + $0x60] ss:$12 sps:$4 sm:$0xff]  }
0x11f3   :  { %4080 = vmatprep.subr.bf16.mxu1 %v7821_v9  ;;  %7403 = vmatprep.subr.bf16.mxu0 %v7822_v5  ;;  %v7837_v21 = vld [vmem:[%s11528_s21 + $0x4c] ss:$12 sps:$4 sm:$0xff]   ;;  %v7838_v9 = vld [vmem:[%s11528_s21 + $0x50] ss:$12 sps:$4 sm:$0xff]  }
0x1295   :  { %v3723_v30 = vpop.f32.mrf.mxu1  ;;  %v3764_v46 = vpop.f32.mrf.mxu0 }
0x1296   :  { %v3724_v26 = vadd.f32 %v3723_v30, %v9215_v43  ;;  %v3765_v62 = vadd.f32 %v3764_v46, %v9273_v61  ;;  %v7841_v30 = vld [vmem:[%s11528_s21 + $0x34] ss:$12 sps:$4 sm:$0xff]   ;;  %v7842_v46 = vld [vmem:[%s11528_s21 + $0x38] ss:$12 sps:$4 sm:$0xff]  }
0x1297   :  { %v3725_v36 = vpop.f32.mrf.mxu1  ;;  %v7381_v20 = vpop.f32.mrf.mxu0 }
0x1298   :  { %v3770_v19 = vadd.f32 %v3724_v26, %v11630_v37  ;;  %v3726_v32 = vadd.f32 %v3725_v36, %v9229_v23  ;;  %v7839_v26 = vld [vmem:[%s11528_s21 + $0x30] ss:$12 sps:$4 sm:$0xff]   ;;  %v7846_v20 = vld [vmem:[%s11528_s21 + $0x20] ss:$12 sps:$4 sm:$0xff]   ;;  %v7843_v37 = vld [vmem:[%s11528_s21 + $0x18] ss:$12 sps:$4 sm:$0xff]  }
0x1299   :  { %v3727_v0 = vpop.f32.mrf.mxu1  ;;  %v3767_v50 = vpop.f32.mrf.mxu0  ;;  %v7845_v36 = vld [vmem:[%s11528_s21 + $0x1c] ss:$12 sps:$4 sm:$0xff]  }
0x129a   :  { %v6314_v12 = vmul.f32 -1.442695, %v3770_v19  ;;  %v3777_v2 = vadd.f32 %v3726_v32, %v11631_v24  ;;  %v7849_v19 = vld [vmem:[%s11528_s21 + $0x4] ss:$12 sps:$4 sm:$0xff]   ;;  %v7850_v0 = vld [vmem:[%s11528_s21 + $0x8] ss:$12 sps:$4 sm:$0xff]   ;;  %v3897_v32 = vpack.c.bf16 %v9613_v13, %v9490_v7 }
0x129b   :  { %v3728_v60 = vpop.f32.mrf.mxu1  ;;  %v7382_v27 = vpop.f32.mrf.mxu0  ;;  %v7847_v50 = vld [vmem:[%s11528_s21] ss:$12 sps:$4 sm:$0xff]   ;;  %v10266_v13 = vld [vmem:[%s11529_s22 + $0xa8] ss:$12 sps:$4 sm:$0xff]  }
0x129c   :  { %8023 = vpow2.f32 %v6314_v12  ;;  %v6315_v63 = vmul.f32 -1.442695, %v3777_v2  ;;  %v3896_v12 = vpack.c.bf16 %v9424_v59, %v9372_v55  ;;  %v3898_v60 = vpack.c.bf16 %v9726_v25, %v9679_v41  ;;  %v10261_v7 = vld [vmem:[%s11529_s22 + $0xac] ss:$12 sps:$4 sm:$0xff]   ;;  %v10273_v41 = vld [vmem:[%s11529_s22 + $0x94] ss:$12 sps:$4 sm:$0xff]  }
0x129d   :  { %v3899_v27 = vpack.c.bf16 %v9820_v4, %v9772_v53  ;;  %v3900_v55 = vpack.c.bf16 %v9918_v56, %v9866_v8  ;;  %v3901_v59 = vpack.c.bf16 %v10107_v49, %v9984_v58  ;;  %v10278_v25 = vld [vmem:[%s11529_s22 + $0xb0] ss:$12 sps:$4 sm:$0xff]   ;;  %v10297_v8 = vld [vmem:[%s11529_s22 + $0x78] ss:$12 sps:$4 sm:$0xff]   ;;  %v10328_v2 = vld [vmem:[%s11529_s22 + $0x48] ss:$12 sps:$4 sm:$0xff]  }
0x129e   :  { %8025 = vpow2.f32 %v6315_v63  ;;  %v10283_v53 = vld [vmem:[%s11529_s22 + $0x90] ss:$12 sps:$4 sm:$0xff]   ;;  %v10309_v58 = vld [vmem:[%s11529_s22 + $0x98] ss:$12 sps:$4 sm:$0xff]   ;;  %v10335_v63 = vld [vmem:[%s11529_s22 + $0x34] ss:$12 sps:$4 sm:$0xff]  }
0x129f   :  { %v10291_v4 = vld [vmem:[%s11529_s22 + $0x7c] ss:$12 sps:$4 sm:$0xff]   ;;  %v10304_v56 = vld [vmem:[%s11529_s22 + $0x64] ss:$12 sps:$4 sm:$0xff]   ;;  %v10322_v24 = vld [vmem:[%s11529_s22 + $0x4c] ss:$12 sps:$4 sm:$0xff]  }
0x12a9   :  { %v8024_v15 = vpop.eup %8023 }
0x12aa   :  { %v3774_v17 = vadd.f32 1.0, %v8024_v15  ;;  %v10340_v15 = vld [vmem:[%s11529_s22 + $0x80] ss:$12 sps:$4 sm:$0xff]  }
0x12ab   :  { %v8026_v51 = vpop.eup %8025 }
0x12ac   :  { %8027 = vrcp.f32 %v3774_v17  ;;  %v3781_v34 = vadd.f32 1.0, %v8026_v51  ;;  %v10345_v17 = vld [vmem:[%s11529_s22 + $0x30] ss:$12 sps:$4 sm:$0xff]  }
0x12ad   :  { %v10353_v51 = vld [vmem:[%s11529_s22 + $0x1c] ss:$12 sps:$4 sm:$0xff]  }
0x12ae   :  { %8029 = vrcp.f32 %v3781_v34  ;;  %v10359_v34 = vld [vmem:[%s11529_s22 + $0x18] ss:$12 sps:$4 sm:$0xff]  }
0x12b9   :  { %v8028_v33 = vpop.eup %8027 }
0x12ba   :  { %v3784_v28 = vmul.f32 %v8028_v33, %v3765_v62  ;;  %v10366_v62 = vld [vmem:[%s11529_s22 + $0x4] ss:$12 sps:$4 sm:$0xff]   ;;  %v10371_v33 = vld [vmem:[%s11529_s22 + $0x68] ss:$12 sps:$4 sm:$0xff]  }
0x12bb   :  { %v8030_v29 = vpop.eup %8029 }
0x12bc   :  { %v3785_v11 = vadd.f32 %v3784_v28, %v11632_v6  ;;  %v3787_v10 = vsub.f32 1.0, %v8030_v29  ;;  %v3789_v31 = vmul.f32 %v8030_v29, %v10107_v49  ;;  %v10314_v49 = vld [vmem:[%s11529_s22 + $0x60] ss:$12 sps:$4 sm:$0xff]   ;;  %v10386_v6 = vld [vmem:[%s11529_s22 + $0x50] ss:$12 sps:$4 sm:$0xff]  }
0x12bd   :  { %v10376_v28 = vld [vmem:[%s11529_s22] ss:$12 sps:$4 sm:$0xff]  }
0x12be   :  { %8031 = vtanh.f32 %v3785_v11  ;;  %v10393_v11 = vld [vmem:[%s11529_s22 + $0x38] ss:$12 sps:$4 sm:$0xff]   ;;  %v10400_v29 = vld [vmem:[%s11529_s22 + $0x20] ss:$12 sps:$4 sm:$0xff]  }
0x12cb   :  { %v8032_v44 = vpop.eup %8031 }
0x12cc   :  { %v3788_v39 = vmul.f32 %v8032_v44, %v3787_v10  ;;  %v10406_v10 = vld [vmem:[%s11529_s22 + $0x8] ss:$12 sps:$4 sm:$0xff]  }
0x12ce   :  { %v10165_v40 = vadd.f32 %v3789_v31, %v3788_v39 }
0x12d0   :  { %v3791_v57 = vpack.c.bf16 %v10165_v40, %v10165_v40 }
0x12d2   :  { %3825 = vmatmul.mubr.bf16.vlgmr.msra.gmra.mxu1 %v3791_v57  ;;  %7400 = vmatmul.mubr.bf16.vlgmr.msra.gmra.mxu0 %v3791_v57 }
0x12d3   :  { %4081 = vmatpush1.bf16.msra.mxu1 %v7819_v3  ;;  %7404 = vmatpush3.bf16.msra.mxu0 %v7822_v5  ;;  %v7835_v5 = vld [vmem:[%s11528_s21 + $0x48] ss:$12 sps:$4 sm:$0xff]  }
0x12d4   :  { %7419 = vmatprep.mubr.bf16.mxu0 %v3895_v47  ;;  %4082 = vmatprep.subr.bf16.mxu1 %v7825_v14  ;;  %v11633_v14 = vld [vmem:[#allocation33_spill] sm:$0xff] }
0x12d5   :  { %7405 = vmatprep.subr.bf16.mxu0 %v7826_v22  ;;  %4112 = vmatprep.mubr.bf16.mxu1 %v11605_v45 }
0x12d7   :  { %4083 = vmatpush1.bf16.msra.mxu1 %v7823_v1  ;;  %7406 = vmatpush3.bf16.msra.mxu0 %v7826_v22 }
0x12d8   :  { %4084 = vmatprep.subr.bf16.mxu1 %v7829_v35  ;;  %7407 = vmatprep.subr.bf16.mxu0 %v7830_v16 }
0x12db   :  { %4085 = vmatpush1.bf16.msra.mxu1 %v7827_v48  ;;  %7408 = vmatpush3.bf16.msra.mxu0 %v7830_v16 }
0x12dc   :  { %4086 = vmatprep.subr.bf16.mxu1 %v7833_v38  ;;  %7409 = vmatprep.subr.bf16.mxu0 %v7834_v42 }
0x12df   :  { %4087 = vmatpush1.bf16.msra.mxu1 %v7831_v54  ;;  %7410 = vmatpush3.bf16.msra.mxu0 %v7834_v42  ;;  %v11634_v42 = vld [vmem:[#allocation34_spill] sm:$0xff] }
0x12e0   :  { %4088 = vmatprep.subr.bf16.mxu1 %v7837_v21  ;;  %7411 = vmatprep.subr.bf16.mxu0 %v7838_v9  ;;  %v1971_v54 = vadd.f32 %v11634_v42, %v9145_v52 }
0x12e3   :  { %4089 = vmatpush1.bf16.msra.mxu1 %v7835_v5  ;;  %7412 = vmatpush3.bf16.msra.mxu0 %v7838_v9 }
0x12e4   :  { %4090 = vmatprep.subr.bf16.mxu1 %v7841_v30  ;;  %7413 = vmatprep.subr.bf16.mxu0 %v7842_v46 }
0x12e7   :  { %4091 = vmatpush1.bf16.msra.mxu1 %v7839_v26  ;;  %7414 = vmatpush3.bf16.msra.mxu0 %v7842_v46 }
0x12e8   :  { %4092 = vmatprep.subr.bf16.mxu1 %v7845_v36  ;;  %7415 = vmatprep.subr.bf16.mxu0 %v7846_v20 }
0x12eb   :  { %4093 = vmatpush1.bf16.msra.mxu1 %v7843_v37  ;;  %7416 = vmatpush3.bf16.msra.mxu0 %v7846_v20 }
0x12ec   :  { %4094 = vmatprep.subr.bf16.mxu1 %v7849_v19  ;;  %7417 = vmatprep.subr.bf16.mxu0 %v7850_v0 }
0x12ef   :  { %4095 = vmatpush1.bf16.msra.mxu1 %v7847_v50  ;;  %7418 = vmatpush3.bf16.msra.mxu0 %v7850_v0 }
0x12f0   :  { %7435 = vmatprep.subr.bf16.mxu1 %v11604_v18  ;;  %4467 = vmatprep.subr.bf16.mxu0 %v10261_v7 }
0x12f2   :  { %4113 = vmatmul.mubr.bf16.vlgmr.msra.gmra.mxu1 %v3895_v47  ;;  %7420 = vmatmul.mubr.bf16.vlgmr.msra.gmra.mxu0 %v3896_v12 }
0x12f3   :  { %7423 = vmatprep.mubr.bf16.mxu0 %v3897_v32  ;;  %4122 = vmatprep.mubr.bf16.mxu1 %v11605_v45 }
0x12f4   :  { %4468 = vmatpush1.bf16.msra.mxu0 %v10266_v13  ;;  %7436 = vmatpush3.bf16.msra.mxu1 %v10278_v25 }
0x12f5   :  { %4469 = vmatprep.subr.bf16.mxu0 %v10273_v41  ;;  %7437 = vmatprep.subr.bf16.mxu1 %v11604_v18 }
0x12f8   :  { %4470 = vmatpush1.bf16.msra.mxu0 %v10283_v53  ;;  %7438 = vmatpush3.bf16.msra.mxu1 %v10309_v58 }
0x12f9   :  { %4471 = vmatprep.subr.bf16.mxu0 %v10291_v4  ;;  %7439 = vmatprep.subr.bf16.mxu1 %v11604_v18 }
0x12fa   :  { %4123 = vmatmul.mubr.bf16.gmra.mxu1 %v3896_v12  ;;  %7424 = vmatmul.mubr.bf16.gmra.mxu0 %v3898_v60 }
0x12fb   :  { %7427 = vmatprep.mubr.bf16.mxu0 %v3899_v27  ;;  %4132 = vmatprep.mubr.bf16.mxu1 %v11605_v45 }
0x12fc   :  { %4472 = vmatpush1.bf16.msra.mxu0 %v10297_v8  ;;  %7440 = vmatpush3.bf16.msra.mxu1 %v10340_v15 }
0x12fd   :  { %4473 = vmatprep.subr.bf16.mxu0 %v10304_v56  ;;  %7441 = vmatprep.subr.bf16.mxu1 %v11604_v18 }
0x1300   :  { %4474 = vmatpush1.bf16.msra.mxu0 %v10314_v49  ;;  %7442 = vmatpush3.bf16.msra.mxu1 %v10371_v33 }
0x1301   :  { %4475 = vmatprep.subr.bf16.mxu0 %v10322_v24  ;;  %7443 = vmatprep.subr.bf16.mxu1 %v11604_v18 }
0x1302   :  { %4133 = vmatmul.mubr.bf16.gmra.mxu1 %v3897_v32  ;;  %7428 = vmatmul.mubr.bf16.gmra.mxu0 %v3900_v55 }
0x1303   :  { %7431 = vmatprep.mubr.bf16.mxu0 %v3901_v59  ;;  %4142 = vmatprep.mubr.bf16.mxu1 %v11605_v45 }
0x1304   :  { %4476 = vmatpush1.bf16.msra.mxu0 %v10328_v2  ;;  %7444 = vmatpush3.bf16.msra.mxu1 %v10386_v6 }
0x1305   :  { %4477 = vmatprep.subr.bf16.mxu0 %v10335_v63  ;;  %7445 = vmatprep.subr.bf16.mxu1 %v11604_v18 }
0x1308   :  { %4478 = vmatpush1.bf16.msra.mxu0 %v10345_v17  ;;  %7446 = vmatpush3.bf16.msra.mxu1 %v10393_v11 }
0x1309   :  { %4479 = vmatprep.subr.bf16.mxu0 %v10353_v51  ;;  %7447 = vmatprep.subr.bf16.mxu1 %v11604_v18 }
0x130a   :  { %4143 = vmatmul.mubr.bf16.gmra.mxu1 %v3898_v60 }
0x130b   :  { %4152 = vmatprep.mubr.bf16.mxu1 %v11605_v45 }
0x130c   :  { %4480 = vmatpush1.bf16.msra.mxu0 %v10359_v34  ;;  %7448 = vmatpush3.bf16.msra.mxu1 %v10400_v29 }
0x130d   :  { %4481 = vmatprep.subr.bf16.mxu0 %v10366_v62  ;;  %7449 = vmatprep.subr.bf16.mxu1 %v11604_v18 }
0x1310   :  { %4482 = vmatpush1.bf16.msra.mxu0 %v10376_v28  ;;  %7450 = vmatpush3.bf16.msra.mxu1 %v10406_v10 }
0x1311   :  { %4570 = vmatprep.subr.bf16.mxu0 %v10261_v7  ;;  %7455 = vmatprep.subr.bf16.mxu1 %v11604_v18 }
0x1312   :  { %4153 = vmatmul.mubr.bf16.gmra.mxu1 %v3899_v27 }
0x1313   :  { %4162 = vmatprep.mubr.bf16.mxu1 %v11605_v45 }
0x131a   :  { %4163 = vmatmul.mubr.bf16.gmra.mxu1 %v3900_v55 }
0x131b   :  { %4172 = vmatprep.mubr.bf16.mxu1 %v11605_v45 }
0x1322   :  { %4173 = vmatmul.mubr.bf16.gmra.mxu1 %v3901_v59 }
0x1323   :  { %4182 = vmatprep.mubr.bf16.mxu1 %v11605_v45 }
0x1392   :  { %v3826_v44 = vpop.f32.mrf.mxu1  ;;  %v3867_v39 = vpop.f32.mrf.mxu0 }
0x1393   :  { %v3827_v31 = vadd.f32 %v3826_v44, %v9215_v43  ;;  %v3868_v26 = vadd.f32 %v3867_v39, %v9273_v61 }
0x1394   :  { %v3828_v3 = vpop.f32.mrf.mxu1  ;;  %v7401_v57 = vpop.f32.mrf.mxu0 }
0x1395   :  { %v3873_v22 = vadd.f32 %v3827_v31, %v11633_v14  ;;  %v3829_v16 = vadd.f32 %v3828_v3, %v9229_v23  ;;  %v11635_v23 = vld [vmem:[#allocation17_spill] sm:$0xff] }
0x1396   :  { %v3830_v47 = vpop.f32.mrf.mxu1  ;;  %v3870_v1 = vpop.f32.mrf.mxu0 }
0x1397   :  { %v6316_v35 = vmul.f32 -1.442695, %v3873_v22  ;;  %v3880_v21 = vadd.f32 %v3829_v16, %v1971_v54 }
0x1398   :  { %v3831_v48 = vpop.f32.mrf.mxu1  ;;  %v7402_v38 = vpop.f32.mrf.mxu0 }
0x1399   :  { %8033 = vpow2.f32 %v6316_v35  ;;  %v6317_v9 = vmul.f32 -1.442695, %v3880_v21 }
0x139b   :  { %8035 = vpow2.f32 %v6317_v9 }
0x13a6   :  { %v8034_v5 = vpop.eup %8033 }
0x13a7   :  { %v3877_v43 = vadd.f32 1.0, %v8034_v5 }
0x13a8   :  { %v8036_v30 = vpop.eup %8035 }
0x13a9   :  { %8037 = vrcp.f32 %v3877_v43  ;;  %v3884_v46 = vadd.f32 1.0, %v8036_v30 }
0x13ab   :  { %8039 = vrcp.f32 %v3884_v46 }
0x13b2   :  { %v4114_v61 = vpop.f32.mrf.mxu1  ;;  %v10493_v48 = vpop.f32.mrf.mxu0 }
0x13b4   :  { %v10497_v42 = vpop.f32.mrf.mxu0 }
0x13b6   :  { %v8038_v36 = vpop.eup %8037  ;;  %v10501_v21 = vpop.f32.mrf.mxu0 }
0x13b7   :  { %v3887_v20 = vmul.f32 %v8038_v36, %v3868_v26 }
0x13b8   :  { %v8040_v19 = vpop.eup %8039  ;;  %v10505_v5 = vpop.f32.mrf.mxu0 }
0x13b9   :  { %v3888_v37 = vadd.f32 %v3887_v20, %v11635_v23  ;;  %v3890_v0 = vsub.f32 1.0, %v8040_v19  ;;  %v3892_v12 = vmul.f32 %v8040_v19, %v10165_v40 }
0x13ba   :  { %v10509_v30 = vpop.f32.mrf.mxu0 }
0x13bb   :  { %8041 = vtanh.f32 %v3888_v37  ;;  %11646 = vst [vmem:[#allocation22_spill] sm:$0xff] %v10509_v30 }
0x13bc   :  { %v10513_v26 = vpop.f32.mrf.mxu0 }
0x13be   :  { %v10517_v20 = vpop.f32.mrf.mxu0 }
0x13bf   :  { %11649 = vst [vmem:[#allocation24_spill] sm:$0xff] %v10517_v20 }
0x13c0   :  { %v10521_v37 = vpop.f32.mrf.mxu0 }
0x13c1   :  { %11651 = vst [vmem:[#allocation25_spill] sm:$0xff] %v10521_v37 }
0x13c8   :  { %v8042_v52 = vpop.eup %8041 }
0x13c9   :  { %v3891_v50 = vmul.f32 %v8042_v52, %v3890_v0  ;;  %v10525_v0 = vpop.f32.mrf.mxu0 }
0x13ca   :  { %11653 = vst [vmem:[#allocation9_spill] sm:$0xff] %v10525_v0 }
0x13cb   :  { %v3893_v32 = vadd.f32 %v3892_v12, %v3891_v50  ;;  %v10529_v50 = vpop.f32.mrf.mxu0 }
0x13cc   :  { %11655 = vst [vmem:[#allocation28_spill] sm:$0xff] %v10529_v50 }
0x13cd   :  { %3894 = vst [vmem:[%s11530_s25] sm:$0xff] %v3893_v32  ;;  %v3902_v60 = vpack.c.bf16 %v3893_v32, %v10165_v40  ;;  %v10463_v40 = vpop.f32.mrf.mxu1  ;;  %v10533_v32 = vpop.f32.mrf.mxu0 }
0x13ce   :  { %11657 = vst [vmem:[#allocation29_spill] sm:$0xff] %v10533_v32 }
0x13cf   :  { %4183 = vmatmul.mubr.bf16.gmra.mxu1 %v3902_v60  ;;  %7432 = vmatmul.mubr.bf16.gmra.mxu0 %v3902_v60  ;;  %v10465_v27 = vpop.f32.mrf.mxu1 }
0x13d0   :  { %4499 = vmatprep.mubr.bf16.mxu0 %v11605_v45  ;;  %7451 = vmatprep.mubr.msk.bf16.mxu1 %vm8301_vm2, %v11604_v18 }
0x13d1   :  { %v10467_v55 = vpop.f32.mrf.mxu1 }
0x13d3   :  { %v10469_v59 = vpop.f32.mrf.mxu1 }
0x13d5   :  { %v10471_v44 = vpop.f32.mrf.mxu1 }
0x13d7   :  { %4500 = vmatmul.mubr.bf16.vlgmr.msra.gmra.mxu0 %v11605_v45  ;;  %7452 = vmatmul.mubr.bf16.vlgmr.msra.gmra.mxu1 %v11605_v45  ;;  %v10473_v39 = vpop.f32.mrf.mxu1 }
0x13d8   :  { %4571 = vmatpush1.bf16.msra.mxu0 %v10266_v13  ;;  %7456 = vmatpush3.bf16.msra.mxu1 %v10278_v25 }
0x13d9   :  { %4572 = vmatprep.subr.bf16.mxu0 %v10273_v41  ;;  %7457 = vmatprep.subr.bf16.mxu1 %v11604_v18  ;;  %v10475_v31 = vpop.f32.mrf.mxu1 }
0x13da   :  { %4602 = vmatprep.mubr.bf16.mxu0 %v11605_v45  ;;  %7471 = vmatprep.mubr.msk.bf16.mxu1 %vm8301_vm2, %v11604_v18 }
0x13db   :  { %v10477_v3 = vpop.f32.mrf.mxu1 }
0x13dc   :  { %4573 = vmatpush1.bf16.msra.mxu0 %v10283_v53  ;;  %7458 = vmatpush3.bf16.msra.mxu1 %v10309_v58 }
0x13dd   :  { %4574 = vmatprep.subr.bf16.mxu0 %v10291_v4  ;;  %7459 = vmatprep.subr.bf16.mxu1 %v11604_v18  ;;  %v10479_v57 = vpop.f32.mrf.mxu1 }
0x13df   :  { %v10481_v14 = vpop.f32.mrf.mxu1 }
0x13e0   :  { %4575 = vmatpush1.bf16.msra.mxu0 %v10297_v8  ;;  %7460 = vmatpush3.bf16.msra.mxu1 %v10340_v15  ;;  %11636 = vst [vmem:[#allocation11_spill] sm:$0xff] %v10481_v14 }
0x13e1   :  { %4576 = vmatprep.subr.bf16.mxu0 %v10304_v56  ;;  %7461 = vmatprep.subr.bf16.mxu1 %v11604_v18  ;;  %v10483_v22 = vpop.f32.mrf.mxu1 }
0x13e2   :  { %11637 = vst [vmem:[#allocation13_spill] sm:$0xff] %v10483_v22 }
0x13e3   :  { %v10485_v47 = vpop.f32.mrf.mxu1 }
0x13e4   :  { %4577 = vmatpush1.bf16.msra.mxu0 %v10314_v49  ;;  %7462 = vmatpush3.bf16.msra.mxu1 %v10371_v33  ;;  %11638 = vst [vmem:[#allocation5_spill] sm:$0xff] %v10485_v47 }
0x13e5   :  { %4578 = vmatprep.subr.bf16.mxu0 %v10322_v24  ;;  %7463 = vmatprep.subr.bf16.mxu1 %v11604_v18  ;;  %v10487_v1 = vpop.f32.mrf.mxu1 }
0x13e6   :  { %11639 = vst [vmem:[#allocation15_spill] sm:$0xff] %v10487_v1 }
0x13e7   :  { %v10489_v35 = vpop.f32.mrf.mxu1 }
0x13e8   :  { %4579 = vmatpush1.bf16.msra.mxu0 %v10328_v2  ;;  %7464 = vmatpush3.bf16.msra.mxu1 %v10386_v6  ;;  %11640 = vst [vmem:[#allocation16_spill] sm:$0xff] %v10489_v35 }
0x13e9   :  { %4580 = vmatprep.subr.bf16.mxu0 %v10335_v63  ;;  %7465 = vmatprep.subr.bf16.mxu1 %v11604_v18  ;;  %v10491_v16 = vpop.f32.mrf.mxu1 }
0x13ea   :  { %11641 = vst [vmem:[#allocation6_spill] sm:$0xff] %v10491_v16 }
0x13eb   :  { %v10495_v38 = vpop.f32.mrf.mxu1 }
0x13ec   :  { %4581 = vmatpush1.bf16.msra.mxu0 %v10345_v17  ;;  %7466 = vmatpush3.bf16.msra.mxu1 %v10393_v11  ;;  %11642 = vst [vmem:[#allocation19_spill] sm:$0xff] %v10495_v38  ;;  %v11670_v38 = vld [vmem:[#allocation4_spill] sm:$0xff] }
0x13ed   :  { %4582 = vmatprep.subr.bf16.mxu0 %v10353_v51  ;;  %7467 = vmatprep.subr.bf16.mxu1 %v11604_v18  ;;  %v10499_v54 = vpop.f32.mrf.mxu1 }
0x13ee   :  { %11643 = vst [vmem:[#allocation20_spill] sm:$0xff] %v10499_v54 }
0x13ef   :  { %v10503_v9 = vpop.f32.mrf.mxu1 }
0x13f0   :  { %4583 = vmatpush1.bf16.msra.mxu0 %v10359_v34  ;;  %7468 = vmatpush3.bf16.msra.mxu1 %v10400_v29  ;;  %11644 = vst [vmem:[#allocation8_spill] sm:$0xff] %v10503_v9 }
0x13f1   :  { %4584 = vmatprep.subr.bf16.mxu0 %v10366_v62  ;;  %7469 = vmatprep.subr.bf16.mxu1 %v11604_v18  ;;  %v10507_v43 = vpop.f32.mrf.mxu1 }
0x13f2   :  { %11645 = vst [vmem:[#allocation21_spill] sm:$0xff] %v10507_v43 }
0x13f3   :  { %v10511_v46 = vpop.f32.mrf.mxu1 }
0x13f4   :  { %4585 = vmatpush1.bf16.msra.mxu0 %v10376_v28  ;;  %7470 = vmatpush3.bf16.msra.mxu1 %v10406_v10  ;;  %11647 = vst [vmem:[#allocation10_spill] sm:$0xff] %v10511_v46 }
0x13f5   :  { %4673 = vmatprep.subr.bf16.mxu0 %v10261_v7  ;;  %7475 = vmatprep.subr.bf16.mxu1 %v11604_v18  ;;  %v10515_v36 = vpop.f32.mrf.mxu1 }
0x13f6   :  { %11648 = vst [vmem:[#allocation23_spill] sm:$0xff] %v10515_v36  ;;  %v10537_v36 = vpop.f32.mrf.mxu0 }
0x13f7   :  { %v10519_v23 = vpop.f32.mrf.mxu1  ;;  %11659 = vst [vmem:[#allocation18_spill] sm:$0xff] %v10537_v36 }
0x13f8   :  { %11650 = vst [vmem:[#allocation7_spill] sm:$0xff] %v10519_v23 }
0x13f9   :  { %v10523_v19 = vpop.f32.mrf.mxu1 }
0x13fa   :  { %11652 = vst [vmem:[#allocation26_spill] sm:$0xff] %v10523_v19 }
0x13fb   :  { %v10527_v52 = vpop.f32.mrf.mxu1 }
0x13fc   :  { %11654 = vst [vmem:[#allocation27_spill] sm:$0xff] %v10527_v52  ;;  %v3935_v52 = vld [vmem:[%s11531_s23] sm:$0x7] }
0x13fd   :  { %v10531_v12 = vpop.f32.mrf.mxu1  ;;  %v10575_v16 = vrot.slane %v3935_v52, %v11670_v38 }
0x13fe   :  { %11656 = vst [vmem:[#allocation14_spill] sm:$0xff] %v10531_v12 }
0x13ff   :  { %v10535_v60 = vpop.f32.mrf.mxu1 }
0x1400   :  { %11658 = vst [vmem:[#allocation30_spill] sm:$0xff] %v10535_v60  ;;  %v4322_v60 = vld [vmem:[%s11532_s24] sm:$0x7] }
0x1401   :  { %v10539_v46 = vpop.f32.mrf.mxu1 }
0x1402   :  { %11660 = vst [vmem:[#allocation31_spill] sm:$0xff] %v10539_v46  ;;  %v11667_v46 = vld [vmem:[#allocation3_spill] sm:$0xff] }
0x148f   :  { %v10541_v23 = vpop.f32.mrf.mxu1  ;;  %v10543_v43 = vpop.f32.mrf.mxu0 }
0x1490   :  { %11661 = vst [vmem:[#allocation32_spill] sm:$0xff] %v10541_v23  ;;  %11662 = vst [vmem:[#allocation12_spill] sm:$0xff] %v10543_v43  ;;  %v10560_v23 = vrot.slane %v3935_v52, %v11667_v46  ;;  %v10563_v43 = vrot.slane %v4322_v60, %v11667_v46 }
0x1491   :  { %v10548_v19 = vpop.f32.mrf.mxu1  ;;  %v10550_v0 = vpop.f32.mrf.mxu0 }
0x1492   :  { %11663 = vst [vmem:[#allocation33_spill] sm:$0xff] %v10548_v19  ;;  %11664 = vst [vmem:[#allocation34_spill] sm:$0xff] %v10550_v0  ;;  %v4115_v50 = vadd.f32 %v4114_v61, %v10560_v23  ;;  %v4117_v61 = vadd.f32 %v10463_v40, %v10575_v16 }
0x1493   :  { %v10555_v12 = vpop.f32.mrf.mxu1  ;;  %v10557_v32 = vpop.f32.mrf.mxu0 }
0x1494   :  { %11665 = vst [vmem:[#allocation17_spill] sm:$0xff] %v10555_v12  ;;  %11666 = vst [vmem:[#allocation35_spill] sm:$0xff] %v10557_v32  ;;  %v10572_v12 = vrot.slane %v4322_v60, %v11670_v38  ;;  %v11671_v38 = vld [vmem:[#allocation2_spill] sm:$0xff] }
0x1495   :  { %v10565_v36 = vpop.f32.mrf.mxu1  ;;  %v10567_v9 = vpop.f32.mrf.mxu0  ;;  %v10581_v14 = vrot.slane %v4322_v60, %v11671_v38 }
0x1496   :  { %11668 = vst [vmem:[#allocation3_spill] sm:$0xff] %v10565_v36  ;;  %11669 = vst [vmem:[#allocation36_spill] sm:$0xff] %v10567_v9 }
0x1497   :  { %v4501_v19 = vpop.f32.mrf.mxu0  ;;  %v4542_v0 = vpop.f32.mrf.mxu1 }
0x1498   :  { %v4502_v54 = vadd.f32 %v4501_v19, %v10563_v43 }
0x1499   :  { %v4503_v32 = vpop.f32.mrf.mxu0  ;;  %v7453_v20 = vpop.f32.mrf.mxu1 }
0x149a   :  { %v4548_v46 = vadd.f32 %v4502_v54, %v4115_v50  ;;  %v4504_v9 = vadd.f32 %v4503_v32, %v10572_v12 }
0x149b   :  { %v4505_v35 = vpop.f32.mrf.mxu0  ;;  %v4545_v30 = vpop.f32.mrf.mxu1 }
0x149c   :  { %v6366_v36 = vmul.f32 -1.442695, %v4548_v46  ;;  %v4555_v19 = vadd.f32 %v4504_v9, %v4117_v61  ;;  %v4543_v30 = vadd.f32 %v4542_v0, %v10581_v14  ;;  %v4119_v61 = vadd.f32 %v10465_v27, %v10560_v23 }
0x149d   :  { %v4506_v1 = vpop.f32.mrf.mxu0  ;;  %v7454_v47 = vpop.f32.mrf.mxu1 }
0x149e   :  { %8043 = vpow2.f32 %v6366_v36  ;;  %v6367_v37 = vmul.f32 -1.442695, %v4555_v19  ;;  %v10585_v1 = vrot.slane %v3935_v52, %v11671_v38 }
0x14a0   :  { %8045 = vpow2.f32 %v6367_v37  ;;  %v4228_v40 = vadd.f32 %v10497_v42, %v10585_v1 }
0x14ab   :  { %v8044_v22 = vpop.eup %8043 }
0x14ac   :  { %v4552_v20 = vadd.f32 1.0, %v8044_v22 }
0x14ad   :  { %v8046_v35 = vpop.eup %8045 }
0x14ae   :  { %8047 = vrcp.f32 %v4552_v20  ;;  %v4559_v54 = vadd.f32 1.0, %v8046_v35 }
0x14b0   :  { %8049 = vrcp.f32 %v4559_v54 }
0x14bb   :  { %v8048_v47 = vpop.eup %8047 }
0x14bc   :  { %v4562_v9 = vmul.f32 %v8048_v47, %v4543_v30 }
0x14bd   :  { %v8050_v22 = vpop.eup %8049 }
0x14be   :  { %v4563_v36 = vadd.f32 %v4562_v9, %v4228_v40  ;;  %v4565_v37 = vsub.f32 1.0, %v8050_v22  ;;  %v4567_v60 = vmul.f32 0.0, %v8050_v22  ;;  %v4121_v22 = vadd.f32 %v10467_v55, %v10575_v16 }
0x14c0   :  { %8051 = vtanh.f32 %v4563_v36 }
0x14cd   :  { %v8052_v50 = vpop.eup %8051 }
0x14ce   :  { %v4566_v32 = vmul.f32 %v8052_v50, %v4565_v37 }
0x14d0   :  { %v10589_v46 = vadd.f32 %v4567_v60, %v4566_v32 }
0x14d2   :  { %v4569_v0 = vpack.c.bf16 %v10589_v46, %v10589_v46 }
0x14d4   :  { %4603 = vmatmul.mubr.bf16.vlgmr.msra.gmra.mxu0 %v4569_v0  ;;  %7472 = vmatmul.mubr.bf16.vlgmr.msra.gmra.mxu1 %v4569_v0 }
0x14d5   :  { %4674 = vmatpush1.bf16.msra.mxu0 %v10266_v13  ;;  %7476 = vmatpush3.bf16.msra.mxu1 %v10278_v25 }
0x14d6   :  { %4675 = vmatprep.subr.bf16.mxu0 %v10273_v41  ;;  %7477 = vmatprep.subr.bf16.mxu1 %v11604_v18 }
0x14d7   :  { %4705 = vmatprep.mubr.bf16.mxu0 %v11605_v45  ;;  %7491 = vmatprep.mubr.msk.bf16.mxu1 %vm8301_vm2, %v11604_v18 }
0x14d9   :  { %4676 = vmatpush1.bf16.msra.mxu0 %v10283_v53  ;;  %7478 = vmatpush3.bf16.msra.mxu1 %v10309_v58 }
0x14da   :  { %4677 = vmatprep.subr.bf16.mxu0 %v10291_v4  ;;  %7479 = vmatprep.subr.bf16.mxu1 %v11604_v18 }
0x14dd   :  { %4678 = vmatpush1.bf16.msra.mxu0 %v10297_v8  ;;  %7480 = vmatpush3.bf16.msra.mxu1 %v10340_v15 }
0x14de   :  { %4679 = vmatprep.subr.bf16.mxu0 %v10304_v56  ;;  %7481 = vmatprep.subr.bf16.mxu1 %v11604_v18 }
0x14e1   :  { %4680 = vmatpush1.bf16.msra.mxu0 %v10314_v49  ;;  %7482 = vmatpush3.bf16.msra.mxu1 %v10371_v33 }
0x14e2   :  { %4681 = vmatprep.subr.bf16.mxu0 %v10322_v24  ;;  %7483 = vmatprep.subr.bf16.mxu1 %v11604_v18 }
0x14e5   :  { %4682 = vmatpush1.bf16.msra.mxu0 %v10328_v2  ;;  %7484 = vmatpush3.bf16.msra.mxu1 %v10386_v6 }
0x14e6   :  { %4683 = vmatprep.subr.bf16.mxu0 %v10335_v63  ;;  %7485 = vmatprep.subr.bf16.mxu1 %v11604_v18 }
0x14e9   :  { %4684 = vmatpush1.bf16.msra.mxu0 %v10345_v17  ;;  %7486 = vmatpush3.bf16.msra.mxu1 %v10393_v11 }
0x14ea   :  { %4685 = vmatprep.subr.bf16.mxu0 %v10353_v51  ;;  %7487 = vmatprep.subr.bf16.mxu1 %v11604_v18 }
0x14ed   :  { %4686 = vmatpush1.bf16.msra.mxu0 %v10359_v34  ;;  %7488 = vmatpush3.bf16.msra.mxu1 %v10400_v29 }
0x14ee   :  { %4687 = vmatprep.subr.bf16.mxu0 %v10366_v62  ;;  %7489 = vmatprep.subr.bf16.mxu1 %v11604_v18 }
0x14f1   :  { %4688 = vmatpush1.bf16.msra.mxu0 %v10376_v28  ;;  %7490 = vmatpush3.bf16.msra.mxu1 %v10406_v10 }
0x14f2   :  { %4776 = vmatprep.subr.bf16.mxu0 %v10261_v7  ;;  %7495 = vmatprep.subr.bf16.mxu1 %v11604_v18 }
0x1594   :  { %v4604_v42 = vpop.f32.mrf.mxu0  ;;  %v4645_v52 = vpop.f32.mrf.mxu1 }
0x1595   :  { %v4605_v19 = vadd.f32 %v4604_v42, %v10563_v43  ;;  %v4646_v42 = vadd.f32 %v4645_v52, %v10581_v14  ;;  %v4125_v52 = vadd.f32 %v10469_v59, %v10560_v23 }
0x1596   :  { %v4606_v20 = vpop.f32.mrf.mxu0  ;;  %v7473_v38 = vpop.f32.mrf.mxu1 }
0x1597   :  { %v4651_v35 = vadd.f32 %v4605_v19, %v4119_v61  ;;  %v4607_v40 = vadd.f32 %v4606_v20, %v10572_v12  ;;  %v4231_v19 = vadd.f32 %v10505_v5, %v10585_v1 }
0x1598   :  { %v4608_v54 = vpop.f32.mrf.mxu0  ;;  %v4648_v30 = vpop.f32.mrf.mxu1 }
0x1599   :  { %v6368_v47 = vmul.f32 -1.442695, %v4651_v35  ;;  %v4658_v37 = vadd.f32 %v4607_v40, %v4121_v22 }
0x159a   :  { %v4609_v9 = vpop.f32.mrf.mxu0  ;;  %v7474_v36 = vpop.f32.mrf.mxu1 }
0x159b   :  { %8053 = vpow2.f32 %v6368_v47  ;;  %v6369_v50 = vmul.f32 -1.442695, %v4658_v37 }
0x159d   :  { %8055 = vpow2.f32 %v6369_v50 }
0x15a8   :  { %v8054_v27 = vpop.eup %8053 }
0x15a9   :  { %v4655_v32 = vadd.f32 1.0, %v8054_v27 }
0x15aa   :  { %v8056_v60 = vpop.eup %8055 }
0x15ab   :  { %8057 = vrcp.f32 %v4655_v32  ;;  %v4662_v0 = vadd.f32 1.0, %v8056_v60 }
0x15ad   :  { %8059 = vrcp.f32 %v4662_v0 }
0x15b8   :  { %v8058_v61 = vpop.eup %8057 }
0x15b9   :  { %v4665_v20 = vmul.f32 %v8058_v61, %v4646_v42 }
0x15ba   :  { %v8060_v55 = vpop.eup %8059 }
0x15bb   :  { %v4666_v38 = vadd.f32 %v4665_v20, %v4231_v19  ;;  %v4668_v35 = vsub.f32 1.0, %v8060_v55  ;;  %v4670_v47 = vmul.f32 %v8060_v55, %v10589_v46  ;;  %v4127_v19 = vadd.f32 %v10471_v44, %v10575_v16 }
0x15bd   :  { %8061 = vtanh.f32 %v4666_v38 }
0x15ca   :  { %v8062_v54 = vpop.eup %8061 }
0x15cb   :  { %v4669_v30 = vmul.f32 %v8062_v54, %v4668_v35 }
0x15cd   :  { %v10638_v40 = vadd.f32 %v4670_v47, %v4669_v30 }
0x15cf   :  { %v4672_v9 = vpack.c.bf16 %v10638_v40, %v10638_v40 }
0x15d1   :  { %4706 = vmatmul.mubr.bf16.vlgmr.msra.gmra.mxu0 %v4672_v9  ;;  %7492 = vmatmul.mubr.bf16.vlgmr.msra.gmra.mxu1 %v4672_v9  ;;  %v4236_v9 = vadd.f32 %v10493_v48, %v10585_v1 }
0x15d2   :  { %4777 = vmatpush1.bf16.msra.mxu0 %v10266_v13  ;;  %7496 = vmatpush3.bf16.msra.mxu1 %v10278_v25 }
0x15d3   :  { %4778 = vmatprep.subr.bf16.mxu0 %v10273_v41  ;;  %7497 = vmatprep.subr.bf16.mxu1 %v11604_v18 }
0x15d4   :  { %4808 = vmatprep.mubr.bf16.mxu0 %v11605_v45  ;;  %7511 = vmatprep.mubr.msk.bf16.mxu1 %vm8301_vm2, %v11604_v18 }
0x15d6   :  { %4779 = vmatpush1.bf16.msra.mxu0 %v10283_v53  ;;  %7498 = vmatpush3.bf16.msra.mxu1 %v10309_v58 }
0x15d7   :  { %4780 = vmatprep.subr.bf16.mxu0 %v10291_v4  ;;  %7499 = vmatprep.subr.bf16.mxu1 %v11604_v18 }
0x15da   :  { %4781 = vmatpush1.bf16.msra.mxu0 %v10297_v8  ;;  %7500 = vmatpush3.bf16.msra.mxu1 %v10340_v15 }
0x15db   :  { %4782 = vmatprep.subr.bf16.mxu0 %v10304_v56  ;;  %7501 = vmatprep.subr.bf16.mxu1 %v11604_v18 }
0x15de   :  { %4783 = vmatpush1.bf16.msra.mxu0 %v10314_v49  ;;  %7502 = vmatpush3.bf16.msra.mxu1 %v10371_v33 }
0x15df   :  { %4784 = vmatprep.subr.bf16.mxu0 %v10322_v24  ;;  %7503 = vmatprep.subr.bf16.mxu1 %v11604_v18 }
0x15e2   :  { %4785 = vmatpush1.bf16.msra.mxu0 %v10328_v2  ;;  %7504 = vmatpush3.bf16.msra.mxu1 %v10386_v6 }
0x15e3   :  { %4786 = vmatprep.subr.bf16.mxu0 %v10335_v63  ;;  %7505 = vmatprep.subr.bf16.mxu1 %v11604_v18 }
0x15e6   :  { %4787 = vmatpush1.bf16.msra.mxu0 %v10345_v17  ;;  %7506 = vmatpush3.bf16.msra.mxu1 %v10393_v11 }
0x15e7   :  { %4788 = vmatprep.subr.bf16.mxu0 %v10353_v51  ;;  %7507 = vmatprep.subr.bf16.mxu1 %v11604_v18 }
0x15ea   :  { %4789 = vmatpush1.bf16.msra.mxu0 %v10359_v34  ;;  %7508 = vmatpush3.bf16.msra.mxu1 %v10400_v29 }
0x15eb   :  { %4790 = vmatprep.subr.bf16.mxu0 %v10366_v62  ;;  %7509 = vmatprep.subr.bf16.mxu1 %v11604_v18 }
0x15ee   :  { %4791 = vmatpush1.bf16.msra.mxu0 %v10376_v28  ;;  %7510 = vmatpush3.bf16.msra.mxu1 %v10406_v10 }
0x15ef   :  { %4879 = vmatprep.subr.bf16.mxu0 %v10261_v7  ;;  %7515 = vmatprep.subr.bf16.mxu1 %v11604_v18 }
0x1691   :  { %v4707_v5 = vpop.f32.mrf.mxu0  ;;  %v4748_v46 = vpop.f32.mrf.mxu1 }
0x1692   :  { %v4708_v36 = vadd.f32 %v4707_v5, %v10563_v43  ;;  %v4749_v30 = vadd.f32 %v4748_v46, %v10581_v14  ;;  %v4129_v46 = vadd.f32 %v10473_v39, %v10560_v23 }
0x1693   :  { %v4709_v22 = vpop.f32.mrf.mxu0  ;;  %v7493_v37 = vpop.f32.mrf.mxu1 }
0x1694   :  { %v4754_v50 = vadd.f32 %v4708_v36, %v4125_v52  ;;  %v4710_v0 = vadd.f32 %v4709_v22, %v10572_v12 }
0x1695   :  { %v4711_v27 = vpop.f32.mrf.mxu0  ;;  %v4751_v32 = vpop.f32.mrf.mxu1 }
0x1696   :  { %v6370_v60 = vmul.f32 -1.442695, %v4754_v50  ;;  %v4761_v20 = vadd.f32 %v4710_v0, %v4127_v19 }
0x1697   :  { %v4712_v42 = vpop.f32.mrf.mxu0  ;;  %v7494_v61 = vpop.f32.mrf.mxu1 }
0x1698   :  { %8063 = vpow2.f32 %v6370_v60  ;;  %v6371_v38 = vmul.f32 -1.442695, %v4761_v20 }
0x169a   :  { %8065 = vpow2.f32 %v6371_v38 }
0x16a5   :  { %v8064_v59 = vpop.eup %8063 }
0x16a6   :  { %v4758_v55 = vadd.f32 1.0, %v8064_v59 }
0x16a7   :  { %v8066_v35 = vpop.eup %8065 }
0x16a8   :  { %8067 = vrcp.f32 %v4758_v55  ;;  %v4765_v54 = vadd.f32 1.0, %v8066_v35 }
0x16aa   :  { %8069 = vrcp.f32 %v4765_v54 }
0x16b5   :  { %v8068_v47 = vpop.eup %8067 }
0x16b6   :  { %v4768_v5 = vmul.f32 %v8068_v47, %v4749_v30 }
0x16b7   :  { %v8070_v44 = vpop.eup %8069 }
0x16b8   :  { %v4769_v52 = vadd.f32 %v4768_v5, %v4236_v9  ;;  %v4771_v36 = vsub.f32 1.0, %v8070_v44  ;;  %v4773_v50 = vmul.f32 %v8070_v44, %v10638_v40 }
0x16ba   :  { %8071 = vtanh.f32 %v4769_v52 }
0x16c7   :  { %v8072_v22 = vpop.eup %8071 }
0x16c8   :  { %v4772_v37 = vmul.f32 %v8072_v22, %v4771_v36  ;;  %v4239_v36 = vadd.f32 %v10501_v21, %v10585_v1 }
0x16ca   :  { %v10687_v27 = vadd.f32 %v4773_v50, %v4772_v37 }
0x16cc   :  { %v4775_v32 = vpack.c.bf16 %v10687_v27, %v10687_v27 }
0x16ce   :  { %4809 = vmatmul.mubr.bf16.vlgmr.msra.gmra.mxu0 %v4775_v32  ;;  %7512 = vmatmul.mubr.bf16.vlgmr.msra.gmra.mxu1 %v4775_v32 }
0x16cf   :  { %4880 = vmatpush1.bf16.msra.mxu0 %v10266_v13  ;;  %7516 = vmatpush3.bf16.msra.mxu1 %v10278_v25 }
0x16d0   :  { %4881 = vmatprep.subr.bf16.mxu0 %v10273_v41  ;;  %7517 = vmatprep.subr.bf16.mxu1 %v11604_v18 }
0x16d1   :  { %4911 = vmatprep.mubr.bf16.mxu0 %v11605_v45  ;;  %7531 = vmatprep.mubr.msk.bf16.mxu1 %vm8301_vm2, %v11604_v18 }
0x16d3   :  { %4882 = vmatpush1.bf16.msra.mxu0 %v10283_v53  ;;  %7518 = vmatpush3.bf16.msra.mxu1 %v10309_v58 }
0x16d4   :  { %4883 = vmatprep.subr.bf16.mxu0 %v10291_v4  ;;  %7519 = vmatprep.subr.bf16.mxu1 %v11604_v18 }
0x16d7   :  { %4884 = vmatpush1.bf16.msra.mxu0 %v10297_v8  ;;  %7520 = vmatpush3.bf16.msra.mxu1 %v10340_v15 }
0x16d8   :  { %4885 = vmatprep.subr.bf16.mxu0 %v10304_v56  ;;  %7521 = vmatprep.subr.bf16.mxu1 %v11604_v18 }
0x16db   :  { %4886 = vmatpush1.bf16.msra.mxu0 %v10314_v49  ;;  %7522 = vmatpush3.bf16.msra.mxu1 %v10371_v33 }
0x16dc   :  { %4887 = vmatprep.subr.bf16.mxu0 %v10322_v24  ;;  %7523 = vmatprep.subr.bf16.mxu1 %v11604_v18 }
0x16df   :  { %4888 = vmatpush1.bf16.msra.mxu0 %v10328_v2  ;;  %7524 = vmatpush3.bf16.msra.mxu1 %v10386_v6 }
0x16e0   :  { %4889 = vmatprep.subr.bf16.mxu0 %v10335_v63  ;;  %7525 = vmatprep.subr.bf16.mxu1 %v11604_v18 }
0x16e3   :  { %4890 = vmatpush1.bf16.msra.mxu0 %v10345_v17  ;;  %7526 = vmatpush3.bf16.msra.mxu1 %v10393_v11 }
0x16e4   :  { %4891 = vmatprep.subr.bf16.mxu0 %v10353_v51  ;;  %7527 = vmatprep.subr.bf16.mxu1 %v11604_v18 }
0x16e7   :  { %4892 = vmatpush1.bf16.msra.mxu0 %v10359_v34  ;;  %7528 = vmatpush3.bf16.msra.mxu1 %v10400_v29 }
0x16e8   :  { %4893 = vmatprep.subr.bf16.mxu0 %v10366_v62  ;;  %7529 = vmatprep.subr.bf16.mxu1 %v11604_v18 }
0x16eb   :  { %4894 = vmatpush1.bf16.msra.mxu0 %v10376_v28  ;;  %7530 = vmatpush3.bf16.msra.mxu1 %v10406_v10 }
0x16ec   :  { %4982 = vmatprep.subr.bf16.mxu0 %v10261_v7  ;;  %7535 = vmatprep.subr.bf16.mxu1 %v11604_v18  ;;  %v4131_v7 = vadd.f32 %v10475_v31, %v10575_v16 }
0x178e   :  { %v4810_v48 = vpop.f32.mrf.mxu0  ;;  %v4851_v40 = vpop.f32.mrf.mxu1 }
0x178f   :  { %v4811_v60 = vadd.f32 %v4810_v48, %v10563_v43  ;;  %v4852_v52 = vadd.f32 %v4851_v40, %v10581_v14 }
0x1790   :  { %v4812_v0 = vpop.f32.mrf.mxu0  ;;  %v7513_v42 = vpop.f32.mrf.mxu1 }
0x1791   :  { %v4857_v61 = vadd.f32 %v4811_v60, %v4129_v46  ;;  %v4813_v59 = vadd.f32 %v4812_v0, %v10572_v12 }
0x1792   :  { %v4814_v19 = vpop.f32.mrf.mxu0  ;;  %v4854_v20 = vpop.f32.mrf.mxu1 }
0x1793   :  { %v6372_v38 = vmul.f32 -1.442695, %v4857_v61  ;;  %v4864_v54 = vadd.f32 %v4813_v59, %v4131_v7  ;;  %v4244_v19 = vadd.f32 %v10513_v26, %v10585_v1  ;;  %v10797_v26 = vld [vmem:[%s11529_s22 + $0xa8] ss:$12 sps:$4 sm:$0xff]  }
0x1794   :  { %v4815_v55 = vpop.f32.mrf.mxu0  ;;  %v7514_v35 = vpop.f32.mrf.mxu1 }
0x1795   :  { %8073 = vpow2.f32 %v6372_v38  ;;  %v6373_v30 = vmul.f32 -1.442695, %v4864_v54 }
0x1797   :  { %8075 = vpow2.f32 %v6373_v30 }
0x17a2   :  { %v8074_v39 = vpop.eup %8073 }
0x17a3   :  { %v4861_v47 = vadd.f32 1.0, %v8074_v39  ;;  %v10803_v39 = vld [vmem:[%s11529_s22 + $0xb0] ss:$12 sps:$4 sm:$0xff]  }
0x17a4   :  { %v8076_v9 = vpop.eup %8075 }
0x17a5   :  { %8077 = vrcp.f32 %v4861_v47  ;;  %v4868_v5 = vadd.f32 1.0, %v8076_v9  ;;  %v10809_v47 = vld [vmem:[%s11529_s22 + $0x94] ss:$12 sps:$4 sm:$0xff]   ;;  %v10819_v9 = vld [vmem:[%s11529_s22 + $0x90] ss:$12 sps:$4 sm:$0xff]  }
0x17a7   :  { %8079 = vrcp.f32 %v4868_v5  ;;  %v10825_v5 = vld [vmem:[%s11529_s22 + $0x98] ss:$12 sps:$4 sm:$0xff]  }
0x17b2   :  { %v8078_v44 = vpop.eup %8077 }
0x17b3   :  { %v4871_v22 = vmul.f32 %v8078_v44, %v4852_v52  ;;  %v10831_v52 = vld [vmem:[%s11529_s22 + $0x7c] ss:$12 sps:$4 sm:$0xff]   ;;  %v10838_v44 = vld [vmem:[%s11529_s22 + $0x78] ss:$12 sps:$4 sm:$0xff]  }
0x17b4   :  { %v8080_v31 = vpop.eup %8079 }
0x17b5   :  { %v4872_v37 = vadd.f32 %v4871_v22, %v4239_v36  ;;  %v4874_v50 = vsub.f32 1.0, %v8080_v31  ;;  %v4876_v46 = vmul.f32 %v8080_v31, %v10687_v27  ;;  %v10845_v36 = vld [vmem:[%s11529_s22 + $0x64] ss:$12 sps:$4 sm:$0xff]   ;;  %v10852_v22 = vld [vmem:[%s11529_s22 + $0x60] ss:$12 sps:$4 sm:$0xff]  }
0x17b6   :  { %v10880_v31 = vld [vmem:[%s11529_s22 + $0x30] ss:$12 sps:$4 sm:$0xff]  }
0x17b7   :  { %8081 = vtanh.f32 %v4872_v37  ;;  %v10866_v37 = vld [vmem:[%s11529_s22 + $0x48] ss:$12 sps:$4 sm:$0xff]  }
0x17c4   :  { %v8082_v32 = vpop.eup %8081 }
0x17c5   :  { %v4875_v48 = vmul.f32 %v8082_v32, %v4874_v50  ;;  %v10894_v50 = vld [vmem:[%s11529_s22 + $0x18] ss:$12 sps:$4 sm:$0xff]   ;;  %v10908_v32 = vld [vmem:[%s11529_s22] ss:$12 sps:$4 sm:$0xff]  }
0x17c7   :  { %v10736_v60 = vadd.f32 %v4876_v46, %v4875_v48  ;;  %v11672_v46 = vld [vmem:[#allocation11_spill] sm:$0xff] }
0x17c9   :  { %v4878_v0 = vpack.c.bf16 %v10736_v60, %v10736_v60 }
0x17cb   :  { %4912 = vmatmul.mubr.bf16.vlgmr.msra.gmra.mxu0 %v4878_v0  ;;  %7532 = vmatmul.mubr.bf16.vlgmr.msra.gmra.mxu1 %v4878_v0 }
0x17cc   :  { %4983 = vmatpush1.bf16.msra.mxu0 %v10266_v13  ;;  %7536 = vmatpush3.bf16.msra.mxu1 %v10278_v25  ;;  %v10776_v13 = vld [vmem:[%s11529_s22 + $0xac] ss:$12 sps:$4 sm:$0xff]  }
0x17cd   :  { %4984 = vmatprep.subr.bf16.mxu0 %v10273_v41  ;;  %7537 = vmatprep.subr.bf16.mxu1 %v11604_v18 }
0x17ce   :  { %5014 = vmatprep.mubr.bf16.mxu0 %v11605_v45  ;;  %7551 = vmatprep.mubr.msk.bf16.mxu1 %vm8301_vm2, %v11604_v18 }
0x17d0   :  { %4985 = vmatpush1.bf16.msra.mxu0 %v10283_v53  ;;  %7538 = vmatpush3.bf16.msra.mxu1 %v10309_v58  ;;  %v4135_v53 = vadd.f32 %v10477_v3, %v10560_v23 }
0x17d1   :  { %4986 = vmatprep.subr.bf16.mxu0 %v10291_v4  ;;  %7539 = vmatprep.subr.bf16.mxu1 %v11604_v18 }
0x17d4   :  { %4987 = vmatpush1.bf16.msra.mxu0 %v10297_v8  ;;  %7540 = vmatpush3.bf16.msra.mxu1 %v10340_v15 }
0x17d5   :  { %4988 = vmatprep.subr.bf16.mxu0 %v10304_v56  ;;  %7541 = vmatprep.subr.bf16.mxu1 %v11604_v18 }
0x17d8   :  { %4989 = vmatpush1.bf16.msra.mxu0 %v10314_v49  ;;  %7542 = vmatpush3.bf16.msra.mxu1 %v10371_v33 }
0x17d9   :  { %4990 = vmatprep.subr.bf16.mxu0 %v10322_v24  ;;  %7543 = vmatprep.subr.bf16.mxu1 %v11604_v18 }
0x17dc   :  { %4991 = vmatpush1.bf16.msra.mxu0 %v10328_v2  ;;  %7544 = vmatpush3.bf16.msra.mxu1 %v10386_v6 }
0x17dd   :  { %4992 = vmatprep.subr.bf16.mxu0 %v10335_v63  ;;  %7545 = vmatprep.subr.bf16.mxu1 %v11604_v18 }
0x17e0   :  { %4993 = vmatpush1.bf16.msra.mxu0 %v10345_v17  ;;  %7546 = vmatpush3.bf16.msra.mxu1 %v10393_v11 }
0x17e1   :  { %4994 = vmatprep.subr.bf16.mxu0 %v10353_v51  ;;  %7547 = vmatprep.subr.bf16.mxu1 %v11604_v18 }
0x17e4   :  { %4995 = vmatpush1.bf16.msra.mxu0 %v10359_v34  ;;  %7548 = vmatpush3.bf16.msra.mxu1 %v10400_v29  ;;  %v4137_v34 = vadd.f32 %v10479_v57, %v10575_v16 }
0x17e5   :  { %4996 = vmatprep.subr.bf16.mxu0 %v10366_v62  ;;  %7549 = vmatprep.subr.bf16.mxu1 %v11604_v18 }
0x17e8   :  { %4997 = vmatpush1.bf16.msra.mxu0 %v10376_v28  ;;  %7550 = vmatpush3.bf16.msra.mxu1 %v10406_v10 }
0x17e9   :  { %5085 = vmatprep.subr.bf16.mxu0 %v10776_v13  ;;  %7555 = vmatprep.subr.bf16.mxu1 %v11604_v18 }
0x188b   :  { %v4913_v41 = vpop.f32.mrf.mxu0  ;;  %v4954_v25 = vpop.f32.mrf.mxu1 }
0x188c   :  { %v4914_v4 = vadd.f32 %v4913_v41, %v10563_v43  ;;  %v4955_v42 = vadd.f32 %v4954_v25, %v10581_v14 }
0x188d   :  { %v4915_v8 = vpop.f32.mrf.mxu0  ;;  %v7533_v56 = vpop.f32.mrf.mxu1 }
0x188e   :  { %v4960_v58 = vadd.f32 %v4914_v4, %v4135_v53  ;;  %v4916_v63 = vadd.f32 %v4915_v8, %v10572_v12 }
0x188f   :  { %v4917_v49 = vpop.f32.mrf.mxu0  ;;  %v4957_v24 = vpop.f32.mrf.mxu1 }
0x1890   :  { %v6374_v2 = vmul.f32 -1.442695, %v4960_v58  ;;  %v4967_v62 = vadd.f32 %v4916_v63, %v4137_v34  ;;  %v11673_v24 = vld [vmem:[#allocation13_spill] sm:$0xff] }
0x1891   :  { %v4918_v17 = vpop.f32.mrf.mxu0  ;;  %v7534_v51 = vpop.f32.mrf.mxu1 }
0x1892   :  { %8083 = vpow2.f32 %v6374_v2  ;;  %v6375_v28 = vmul.f32 -1.442695, %v4967_v62  ;;  %v4141_v2 = vadd.f32 %v11673_v24, %v10575_v16 }
0x1894   :  { %8085 = vpow2.f32 %v6375_v28 }
0x189f   :  { %v8084_v3 = vpop.eup %8083 }
0x18a0   :  { %v4964_v21 = vadd.f32 1.0, %v8084_v3 }
0x18a1   :  { %v8086_v27 = vpop.eup %8085 }
0x18a2   :  { %8087 = vrcp.f32 %v4964_v21  ;;  %v4971_v40 = vadd.f32 1.0, %v8086_v27  ;;  %v11674_v27 = vld [vmem:[#allocation25_spill] sm:$0xff] }
0x18a4   :  { %8089 = vrcp.f32 %v4971_v40  ;;  %v4247_v40 = vadd.f32 %v11674_v27, %v10585_v1 }
0x18af   :  { %v8088_v61 = vpop.eup %8087 }
0x18b0   :  { %v4974_v20 = vmul.f32 %v8088_v61, %v4955_v42 }
0x18b1   :  { %v8090_v57 = vpop.eup %8089 }
0x18b2   :  { %v4975_v38 = vadd.f32 %v4974_v20, %v4244_v19  ;;  %v4977_v59 = vsub.f32 1.0, %v8090_v57  ;;  %v4979_v7 = vmul.f32 %v8090_v57, %v10736_v60  ;;  %v4139_v60 = vadd.f32 %v11672_v46, %v10560_v23  ;;  %v10988_v46 = vld [vmem:[%s11529_s22 + $0x8] ss:$12 sps:$4 sm:$0xff]  }
0x18b4   :  { %8091 = vtanh.f32 %v4975_v38 }
0x18c1   :  { %v8092_v55 = vpop.eup %8091 }
0x18c2   :  { %v4978_v35 = vmul.f32 %v8092_v55, %v4977_v59 }
0x18c4   :  { %v10790_v54 = vadd.f32 %v4979_v7, %v4978_v35  ;;  %v10943_v7 = vld [vmem:[%s11529_s22 + $0x80] ss:$12 sps:$4 sm:$0xff]  }
0x18c6   :  { %v4981_v30 = vpack.c.bf16 %v10790_v54, %v10790_v54 }
0x18c8   :  { %5015 = vmatmul.mubr.bf16.vlgmr.msra.gmra.mxu0 %v4981_v30  ;;  %7552 = vmatmul.mubr.bf16.vlgmr.msra.gmra.mxu1 %v4981_v30  ;;  %v10961_v30 = vld [vmem:[%s11529_s22 + $0x50] ss:$12 sps:$4 sm:$0xff]  }
0x18c9   :  { %5086 = vmatpush1.bf16.msra.mxu0 %v10797_v26  ;;  %7556 = vmatpush3.bf16.msra.mxu1 %v10803_v39 }
0x18ca   :  { %5087 = vmatprep.subr.bf16.mxu0 %v10809_v47  ;;  %7557 = vmatprep.subr.bf16.mxu1 %v11604_v18 }
0x18cb   :  { %5117 = vmatprep.mubr.bf16.mxu0 %v11605_v45  ;;  %7571 = vmatprep.mubr.msk.bf16.mxu1 %vm8301_vm2, %v11604_v18 }
0x18cd   :  { %5088 = vmatpush1.bf16.msra.mxu0 %v10819_v9  ;;  %7558 = vmatpush3.bf16.msra.mxu1 %v10825_v5 }
0x18ce   :  { %5089 = vmatprep.subr.bf16.mxu0 %v10831_v52  ;;  %7559 = vmatprep.subr.bf16.mxu1 %v11604_v18 }
0x18d1   :  { %5090 = vmatpush1.bf16.msra.mxu0 %v10838_v44  ;;  %7560 = vmatpush3.bf16.msra.mxu1 %v10340_v15  ;;  %v10859_v15 = vld [vmem:[%s11529_s22 + $0x4c] ss:$12 sps:$4 sm:$0xff]  }
0x18d2   :  { %5091 = vmatprep.subr.bf16.mxu0 %v10845_v36  ;;  %7561 = vmatprep.subr.bf16.mxu1 %v11604_v18 }
0x18d5   :  { %5092 = vmatpush1.bf16.msra.mxu0 %v10852_v22  ;;  %7562 = vmatpush3.bf16.msra.mxu1 %v10371_v33  ;;  %v10873_v33 = vld [vmem:[%s11529_s22 + $0x34] ss:$12 sps:$4 sm:$0xff]  }
0x18d6   :  { %5093 = vmatprep.subr.bf16.mxu0 %v10859_v15  ;;  %7563 = vmatprep.subr.bf16.mxu1 %v11604_v18 }
0x18d9   :  { %5094 = vmatpush1.bf16.msra.mxu0 %v10866_v37  ;;  %7564 = vmatpush3.bf16.msra.mxu1 %v10386_v6  ;;  %v10887_v6 = vld [vmem:[%s11529_s22 + $0x1c] ss:$12 sps:$4 sm:$0xff]  }
0x18da   :  { %5095 = vmatprep.subr.bf16.mxu0 %v10873_v33  ;;  %7565 = vmatprep.subr.bf16.mxu1 %v11604_v18 }
0x18dd   :  { %5096 = vmatpush1.bf16.msra.mxu0 %v10880_v31  ;;  %7566 = vmatpush3.bf16.msra.mxu1 %v10393_v11  ;;  %v10901_v11 = vld [vmem:[%s11529_s22 + $0x4] ss:$12 sps:$4 sm:$0xff]  }
0x18de   :  { %5097 = vmatprep.subr.bf16.mxu0 %v10887_v6  ;;  %7567 = vmatprep.subr.bf16.mxu1 %v11604_v18 }
0x18e1   :  { %5098 = vmatpush1.bf16.msra.mxu0 %v10894_v50  ;;  %7568 = vmatpush3.bf16.msra.mxu1 %v10400_v29 }
0x18e2   :  { %5099 = vmatprep.subr.bf16.mxu0 %v10901_v11  ;;  %7569 = vmatprep.subr.bf16.mxu1 %v11604_v18 }
0x18e5   :  { %5100 = vmatpush1.bf16.msra.mxu0 %v10908_v32  ;;  %7570 = vmatpush3.bf16.msra.mxu1 %v10406_v10 }
0x18e6   :  { %5188 = vmatprep.subr.bf16.mxu0 %v10776_v13  ;;  %7575 = vmatprep.subr.bf16.mxu1 %v11604_v18 }
0x1988   :  { %v5016_v29 = vpop.f32.mrf.mxu0  ;;  %v5057_v48 = vpop.f32.mrf.mxu1 }
0x1989   :  { %v5017_v0 = vadd.f32 %v5016_v29, %v10563_v43  ;;  %v5058_v3 = vadd.f32 %v5057_v48, %v10581_v14  ;;  %v10970_v29 = vld [vmem:[%s11529_s22 + $0x38] ss:$12 sps:$4 sm:$0xff]   ;;  %v10979_v48 = vld [vmem:[%s11529_s22 + $0x20] ss:$12 sps:$4 sm:$0xff]  }
0x198a   :  { %v5018_v41 = vpop.f32.mrf.mxu0  ;;  %v7553_v25 = vpop.f32.mrf.mxu1 }
0x198b   :  { %v5063_v53 = vadd.f32 %v5017_v0, %v4139_v60  ;;  %v5019_v58 = vadd.f32 %v5018_v41, %v10572_v12  ;;  %v11675_v41 = vld [vmem:[#allocation5_spill] sm:$0xff] }
0x198c   :  { %v5020_v4 = vpop.f32.mrf.mxu0  ;;  %v5060_v8 = vpop.f32.mrf.mxu1  ;;  %v4145_v25 = vadd.f32 %v11675_v41, %v10560_v23 }
0x198d   :  { %v6376_v56 = vmul.f32 -1.442695, %v5063_v53  ;;  %v5070_v63 = vadd.f32 %v5019_v58, %v4141_v2 }
0x198e   :  { %v5021_v10 = vpop.f32.mrf.mxu0  ;;  %v7554_v49 = vpop.f32.mrf.mxu1 }
0x198f   :  { %8093 = vpow2.f32 %v6376_v56  ;;  %v6377_v17 = vmul.f32 -1.442695, %v5070_v63 }
0x1991   :  { %8095 = vpow2.f32 %v6377_v17  ;;  %v11676_v17 = vld [vmem:[#allocation15_spill] sm:$0xff] }
0x199c   :  { %v8094_v51 = vpop.eup %8093 }
0x199d   :  { %v5067_v34 = vadd.f32 1.0, %v8094_v51  ;;  %v4147_v51 = vadd.f32 %v11676_v17, %v10575_v16 }
0x199e   :  { %v8096_v62 = vpop.eup %8095 }
0x199f   :  { %8097 = vrcp.f32 %v5067_v34  ;;  %v5074_v28 = vadd.f32 1.0, %v8096_v62 }
0x19a1   :  { %8099 = vrcp.f32 %v5074_v28 }
0x19ac   :  { %v8098_v21 = vpop.eup %8097 }
0x19ad   :  { %v5077_v42 = vmul.f32 %v8098_v21, %v5058_v3 }
0x19ae   :  { %v8100_v19 = vpop.eup %8099 }
0x19af   :  { %v5078_v61 = vadd.f32 %v5077_v42, %v4247_v40  ;;  %v5080_v20 = vsub.f32 1.0, %v8100_v19  ;;  %v5082_v59 = vmul.f32 %v8100_v19, %v10790_v54  ;;  %v10952_v54 = vld [vmem:[%s11529_s22 + $0x68] ss:$12 sps:$4 sm:$0xff]  }
0x19b1   :  { %8101 = vtanh.f32 %v5078_v61  ;;  %v11677_v61 = vld [vmem:[#allocation22_spill] sm:$0xff] }
0x19b2   :  { %v4252_v19 = vadd.f32 %v11677_v61, %v10585_v1 }
0x19be   :  { %v8102_v38 = vpop.eup %8101 }
0x19bf   :  { %v5081_v57 = vmul.f32 %v8102_v38, %v5080_v20 }
0x19c1   :  { %v10924_v55 = vadd.f32 %v5082_v59, %v5081_v57 }
0x19c3   :  { %v5084_v35 = vpack.c.bf16 %v10924_v55, %v10924_v55 }
0x19c5   :  { %5118 = vmatmul.mubr.bf16.vlgmr.msra.gmra.mxu0 %v5084_v35  ;;  %7572 = vmatmul.mubr.bf16.vlgmr.msra.gmra.mxu1 %v5084_v35 }
0x19c6   :  { %5189 = vmatpush1.bf16.msra.mxu0 %v10797_v26  ;;  %7576 = vmatpush3.bf16.msra.mxu1 %v10803_v39 }
0x19c7   :  { %5190 = vmatprep.subr.bf16.mxu0 %v10809_v47  ;;  %7577 = vmatprep.subr.bf16.mxu1 %v11604_v18 }
0x19c8   :  { %5220 = vmatprep.mubr.bf16.mxu0 %v11605_v45  ;;  %7591 = vmatprep.mubr.msk.bf16.mxu1 %vm8301_vm2, %v11604_v18 }
0x19ca   :  { %5191 = vmatpush1.bf16.msra.mxu0 %v10819_v9  ;;  %7578 = vmatpush3.bf16.msra.mxu1 %v10825_v5 }
0x19cb   :  { %5192 = vmatprep.subr.bf16.mxu0 %v10831_v52  ;;  %7579 = vmatprep.subr.bf16.mxu1 %v11604_v18 }
0x19ce   :  { %5193 = vmatpush1.bf16.msra.mxu0 %v10838_v44  ;;  %7580 = vmatpush3.bf16.msra.mxu1 %v10943_v7 }
0x19cf   :  { %5194 = vmatprep.subr.bf16.mxu0 %v10845_v36  ;;  %7581 = vmatprep.subr.bf16.mxu1 %v11604_v18 }
0x19d2   :  { %5195 = vmatpush1.bf16.msra.mxu0 %v10852_v22  ;;  %7582 = vmatpush3.bf16.msra.mxu1 %v10952_v54 }
0x19d3   :  { %5196 = vmatprep.subr.bf16.mxu0 %v10859_v15  ;;  %7583 = vmatprep.subr.bf16.mxu1 %v11604_v18 }
0x19d6   :  { %5197 = vmatpush1.bf16.msra.mxu0 %v10866_v37  ;;  %7584 = vmatpush3.bf16.msra.mxu1 %v10961_v30 }
0x19d7   :  { %5198 = vmatprep.subr.bf16.mxu0 %v10873_v33  ;;  %7585 = vmatprep.subr.bf16.mxu1 %v11604_v18 }
0x19da   :  { %5199 = vmatpush1.bf16.msra.mxu0 %v10880_v31  ;;  %7586 = vmatpush3.bf16.msra.mxu1 %v10970_v29 }
0x19db   :  { %5200 = vmatprep.subr.bf16.mxu0 %v10887_v6  ;;  %7587 = vmatprep.subr.bf16.mxu1 %v11604_v18 }
0x19de   :  { %5201 = vmatpush1.bf16.msra.mxu0 %v10894_v50  ;;  %7588 = vmatpush3.bf16.msra.mxu1 %v10979_v48 }
0x19df   :  { %5202 = vmatprep.subr.bf16.mxu0 %v10901_v11  ;;  %7589 = vmatprep.subr.bf16.mxu1 %v11604_v18 }
0x19e2   :  { %5203 = vmatpush1.bf16.msra.mxu0 %v10908_v32  ;;  %7590 = vmatpush3.bf16.msra.mxu1 %v10988_v46 }
0x19e3   :  { %5291 = vmatprep.subr.bf16.mxu0 %v10776_v13  ;;  %7595 = vmatprep.subr.bf16.mxu1 %v11604_v18 }
0x1a85   :  { %v5119_v60 = vpop.f32.mrf.mxu0  ;;  %v5160_v0 = vpop.f32.mrf.mxu1 }
0x1a86   :  { %v5120_v53 = vadd.f32 %v5119_v60, %v10563_v43  ;;  %v5161_v40 = vadd.f32 %v5160_v0, %v10581_v14 }
0x1a87   :  { %v5121_v4 = vpop.f32.mrf.mxu0  ;;  %v7573_v8 = vpop.f32.mrf.mxu1 }
0x1a88   :  { %v5166_v56 = vadd.f32 %v5120_v53, %v4145_v25  ;;  %v5122_v24 = vadd.f32 %v5121_v4, %v10572_v12  ;;  %v11678_v4 = vld [vmem:[#allocation16_spill] sm:$0xff] }
0x1a89   :  { %v5123_v58 = vpop.f32.mrf.mxu0  ;;  %v5163_v10 = vpop.f32.mrf.mxu1  ;;  %v4149_v8 = vadd.f32 %v11678_v4, %v10560_v23 }
0x1a8a   :  { %v6378_v49 = vmul.f32 -1.442695, %v5166_v56  ;;  %v5173_v34 = vadd.f32 %v5122_v24, %v4147_v51 }
0x1a8b   :  { %v5124_v2 = vpop.f32.mrf.mxu0  ;;  %v7574_v63 = vpop.f32.mrf.mxu1 }
0x1a8c   :  { %8103 = vpow2.f32 %v6378_v49  ;;  %v6379_v62 = vmul.f32 -1.442695, %v5173_v34 }
0x1a8e   :  { %8105 = vpow2.f32 %v6379_v62  ;;  %v11679_v62 = vld [vmem:[#allocation6_spill] sm:$0xff] }
0x1a99   :  { %v8104_v28 = vpop.eup %8103 }
0x1a9a   :  { %v5170_v3 = vadd.f32 1.0, %v8104_v28  ;;  %v4151_v28 = vadd.f32 %v11679_v62, %v10575_v16 }
0x1a9b   :  { %v8106_v21 = vpop.eup %8105 }
0x1a9c   :  { %8107 = vrcp.f32 %v5170_v3  ;;  %v5177_v27 = vadd.f32 1.0, %v8106_v21 }
0x1a9e   :  { %8109 = vrcp.f32 %v5177_v27 }
0x1aa9   :  { %v8108_v42 = vpop.eup %8107 }
0x1aaa   :  { %v5180_v20 = vmul.f32 %v8108_v42, %v5161_v40 }
0x1aab   :  { %v8110_v57 = vpop.eup %8109 }
0x1aac   :  { %v5181_v38 = vadd.f32 %v5180_v20, %v4252_v19  ;;  %v5183_v59 = vsub.f32 1.0, %v8110_v57  ;;  %v5185_v41 = vmul.f32 %v8110_v57, %v10924_v55 }
0x1aae   :  { %8111 = vtanh.f32 %v5181_v38  ;;  %v11680_v38 = vld [vmem:[#allocation24_spill] sm:$0xff] }
0x1aaf   :  { %v4255_v57 = vadd.f32 %v11680_v38, %v10585_v1 }
0x1abb   :  { %v8112_v35 = vpop.eup %8111 }
0x1abc   :  { %v5184_v60 = vmul.f32 %v8112_v35, %v5183_v59 }
0x1abe   :  { %v11003_v25 = vadd.f32 %v5185_v41, %v5184_v60 }
0x1ac0   :  { %v5187_v53 = vpack.c.bf16 %v11003_v25, %v11003_v25 }
0x1ac2   :  { %5221 = vmatmul.mubr.bf16.vlgmr.msra.gmra.mxu0 %v5187_v53  ;;  %7592 = vmatmul.mubr.bf16.vlgmr.msra.gmra.mxu1 %v5187_v53 }
0x1ac3   :  { %5292 = vmatpush1.bf16.msra.mxu0 %v10797_v26  ;;  %7596 = vmatpush3.bf16.msra.mxu1 %v10803_v39 }
0x1ac4   :  { %5293 = vmatprep.subr.bf16.mxu0 %v10809_v47  ;;  %7597 = vmatprep.subr.bf16.mxu1 %v11604_v18 }
0x1ac5   :  { %5323 = vmatprep.mubr.bf16.mxu0 %v11605_v45  ;;  %7611 = vmatprep.mubr.msk.bf16.mxu1 %vm8301_vm2, %v11604_v18 }
0x1ac7   :  { %5294 = vmatpush1.bf16.msra.mxu0 %v10819_v9  ;;  %7598 = vmatpush3.bf16.msra.mxu1 %v10825_v5 }
0x1ac8   :  { %5295 = vmatprep.subr.bf16.mxu0 %v10831_v52  ;;  %7599 = vmatprep.subr.bf16.mxu1 %v11604_v18 }
0x1acb   :  { %5296 = vmatpush1.bf16.msra.mxu0 %v10838_v44  ;;  %7600 = vmatpush3.bf16.msra.mxu1 %v10943_v7 }
0x1acc   :  { %5297 = vmatprep.subr.bf16.mxu0 %v10845_v36  ;;  %7601 = vmatprep.subr.bf16.mxu1 %v11604_v18 }
0x1acf   :  { %5298 = vmatpush1.bf16.msra.mxu0 %v10852_v22  ;;  %7602 = vmatpush3.bf16.msra.mxu1 %v10952_v54 }
0x1ad0   :  { %5299 = vmatprep.subr.bf16.mxu0 %v10859_v15  ;;  %7603 = vmatprep.subr.bf16.mxu1 %v11604_v18 }
0x1ad3   :  { %5300 = vmatpush1.bf16.msra.mxu0 %v10866_v37  ;;  %7604 = vmatpush3.bf16.msra.mxu1 %v10961_v30 }
0x1ad4   :  { %5301 = vmatprep.subr.bf16.mxu0 %v10873_v33  ;;  %7605 = vmatprep.subr.bf16.mxu1 %v11604_v18 }
0x1ad7   :  { %5302 = vmatpush1.bf16.msra.mxu0 %v10880_v31  ;;  %7606 = vmatpush3.bf16.msra.mxu1 %v10970_v29 }
0x1ad8   :  { %5303 = vmatprep.subr.bf16.mxu0 %v10887_v6  ;;  %7607 = vmatprep.subr.bf16.mxu1 %v11604_v18 }
0x1adb   :  { %5304 = vmatpush1.bf16.msra.mxu0 %v10894_v50  ;;  %7608 = vmatpush3.bf16.msra.mxu1 %v10979_v48 }
0x1adc   :  { %5305 = vmatprep.subr.bf16.mxu0 %v10901_v11  ;;  %7609 = vmatprep.subr.bf16.mxu1 %v11604_v18 }
0x1adf   :  { %5306 = vmatpush1.bf16.msra.mxu0 %v10908_v32  ;;  %7610 = vmatpush3.bf16.msra.mxu1 %v10988_v46 }
0x1ae0   :  { %5394 = vmatprep.subr.bf16.mxu0 %v10776_v13  ;;  %7615 = vmatprep.subr.bf16.mxu1 %v11604_v18 }
0x1b82   :  { %v5222_v55 = vpop.f32.mrf.mxu0  ;;  %v5263_v0 = vpop.f32.mrf.mxu1 }
0x1b83   :  { %v5223_v56 = vadd.f32 %v5222_v55, %v10563_v43  ;;  %v5264_v19 = vadd.f32 %v5263_v0, %v10581_v14 }
0x1b84   :  { %v5224_v58 = vpop.f32.mrf.mxu0  ;;  %v7593_v10 = vpop.f32.mrf.mxu1 }
0x1b85   :  { %v5269_v49 = vadd.f32 %v5223_v56, %v4149_v8  ;;  %v5225_v17 = vadd.f32 %v5224_v58, %v10572_v12  ;;  %v11681_v58 = vld [vmem:[#allocation19_spill] sm:$0xff] }
0x1b86   :  { %v5226_v24 = vpop.f32.mrf.mxu0  ;;  %v5266_v2 = vpop.f32.mrf.mxu1  ;;  %v4155_v10 = vadd.f32 %v11681_v58, %v10560_v23 }
0x1b87   :  { %v6380_v63 = vmul.f32 -1.442695, %v5269_v49  ;;  %v5276_v3 = vadd.f32 %v5225_v17, %v4151_v28 }
0x1b88   :  { %v5227_v51 = vpop.f32.mrf.mxu0  ;;  %v7594_v34 = vpop.f32.mrf.mxu1 }
0x1b89   :  { %8113 = vpow2.f32 %v6380_v63  ;;  %v6381_v21 = vmul.f32 -1.442695, %v5276_v3 }
0x1b8b   :  { %8115 = vpow2.f32 %v6381_v21  ;;  %v11682_v21 = vld [vmem:[#allocation20_spill] sm:$0xff] }
0x1b96   :  { %v8114_v27 = vpop.eup %8113 }
0x1b97   :  { %v5273_v40 = vadd.f32 1.0, %v8114_v27  ;;  %v4157_v27 = vadd.f32 %v11682_v21, %v10575_v16 }
0x1b98   :  { %v8116_v42 = vpop.eup %8115 }
0x1b99   :  { %8117 = vrcp.f32 %v5273_v40  ;;  %v5280_v61 = vadd.f32 1.0, %v8116_v42 }
0x1b9b   :  { %8119 = vrcp.f32 %v5280_v61 }
0x1ba6   :  { %v8118_v20 = vpop.eup %8117 }
0x1ba7   :  { %v5283_v59 = vmul.f32 %v8118_v20, %v5264_v19 }
0x1ba8   :  { %v8120_v60 = vpop.eup %8119 }
0x1ba9   :  { %v5284_v35 = vadd.f32 %v5283_v59, %v4255_v57  ;;  %v5286_v41 = vsub.f32 1.0, %v8120_v60  ;;  %v5288_v4 = vmul.f32 %v8120_v60, %v11003_v25 }
0x1bab   :  { %8121 = vtanh.f32 %v5284_v35  ;;  %v11683_v35 = vld [vmem:[#allocation28_spill] sm:$0xff] }
0x1bac   :  { %v4260_v60 = vadd.f32 %v11683_v35, %v10585_v1 }
0x1bb8   :  { %v8122_v53 = vpop.eup %8121 }
0x1bb9   :  { %v5287_v55 = vmul.f32 %v8122_v53, %v5286_v41 }
0x1bbb   :  { %v11052_v8 = vadd.f32 %v5288_v4, %v5287_v55 }
0x1bbd   :  { %v5290_v56 = vpack.c.bf16 %v11052_v8, %v11052_v8 }
0x1bbf   :  { %5324 = vmatmul.mubr.bf16.vlgmr.msra.gmra.mxu0 %v5290_v56  ;;  %7612 = vmatmul.mubr.bf16.vlgmr.msra.gmra.mxu1 %v5290_v56 }
0x1bc0   :  { %5395 = vmatpush1.bf16.msra.mxu0 %v10797_v26  ;;  %7616 = vmatpush3.bf16.msra.mxu1 %v10803_v39 }
0x1bc1   :  { %5396 = vmatprep.subr.bf16.mxu0 %v10809_v47  ;;  %7617 = vmatprep.subr.bf16.mxu1 %v11604_v18 }
0x1bc2   :  { %5426 = vmatprep.mubr.bf16.mxu0 %v11605_v45  ;;  %7631 = vmatprep.mubr.msk.bf16.mxu1 %vm8301_vm2, %v11604_v18 }
0x1bc4   :  { %5397 = vmatpush1.bf16.msra.mxu0 %v10819_v9  ;;  %7618 = vmatpush3.bf16.msra.mxu1 %v10825_v5 }
0x1bc5   :  { %5398 = vmatprep.subr.bf16.mxu0 %v10831_v52  ;;  %7619 = vmatprep.subr.bf16.mxu1 %v11604_v18 }
0x1bc8   :  { %5399 = vmatpush1.bf16.msra.mxu0 %v10838_v44  ;;  %7620 = vmatpush3.bf16.msra.mxu1 %v10943_v7 }
0x1bc9   :  { %5400 = vmatprep.subr.bf16.mxu0 %v10845_v36  ;;  %7621 = vmatprep.subr.bf16.mxu1 %v11604_v18 }
0x1bcc   :  { %5401 = vmatpush1.bf16.msra.mxu0 %v10852_v22  ;;  %7622 = vmatpush3.bf16.msra.mxu1 %v10952_v54 }
0x1bcd   :  { %5402 = vmatprep.subr.bf16.mxu0 %v10859_v15  ;;  %7623 = vmatprep.subr.bf16.mxu1 %v11604_v18 }
0x1bd0   :  { %5403 = vmatpush1.bf16.msra.mxu0 %v10866_v37  ;;  %7624 = vmatpush3.bf16.msra.mxu1 %v10961_v30 }
0x1bd1   :  { %5404 = vmatprep.subr.bf16.mxu0 %v10873_v33  ;;  %7625 = vmatprep.subr.bf16.mxu1 %v11604_v18 }
0x1bd4   :  { %5405 = vmatpush1.bf16.msra.mxu0 %v10880_v31  ;;  %7626 = vmatpush3.bf16.msra.mxu1 %v10970_v29 }
0x1bd5   :  { %5406 = vmatprep.subr.bf16.mxu0 %v10887_v6  ;;  %7627 = vmatprep.subr.bf16.mxu1 %v11604_v18 }
0x1bd8   :  { %5407 = vmatpush1.bf16.msra.mxu0 %v10894_v50  ;;  %7628 = vmatpush3.bf16.msra.mxu1 %v10979_v48 }
0x1bd9   :  { %5408 = vmatprep.subr.bf16.mxu0 %v10901_v11  ;;  %7629 = vmatprep.subr.bf16.mxu1 %v11604_v18 }
0x1bdc   :  { %5409 = vmatpush1.bf16.msra.mxu0 %v10908_v32  ;;  %7630 = vmatpush3.bf16.msra.mxu1 %v10988_v46 }
0x1bdd   :  { %5497 = vmatprep.subr.bf16.mxu0 %v10776_v13  ;;  %7635 = vmatprep.subr.bf16.mxu1 %v11604_v18 }
0x1c7f   :  { %v5325_v25 = vpop.f32.mrf.mxu0  ;;  %v5366_v0 = vpop.f32.mrf.mxu1 }
0x1c80   :  { %v5326_v49 = vadd.f32 %v5325_v25, %v10563_v43  ;;  %v5367_v57 = vadd.f32 %v5366_v0, %v10581_v14 }
0x1c81   :  { %v5327_v24 = vpop.f32.mrf.mxu0  ;;  %v7613_v2 = vpop.f32.mrf.mxu1 }
0x1c82   :  { %v5372_v63 = vadd.f32 %v5326_v49, %v4155_v10  ;;  %v5328_v62 = vadd.f32 %v5327_v24, %v10572_v12  ;;  %v11684_v24 = vld [vmem:[#allocation8_spill] sm:$0xff] }
0x1c83   :  { %v5329_v17 = vpop.f32.mrf.mxu0  ;;  %v5369_v51 = vpop.f32.mrf.mxu1  ;;  %v4159_v2 = vadd.f32 %v11684_v24, %v10560_v23 }
0x1c84   :  { %v6382_v34 = vmul.f32 -1.442695, %v5372_v63  ;;  %v5379_v40 = vadd.f32 %v5328_v62, %v4157_v27 }
0x1c85   :  { %v5330_v28 = vpop.f32.mrf.mxu0  ;;  %v7614_v3 = vpop.f32.mrf.mxu1 }
0x1c86   :  { %8123 = vpow2.f32 %v6382_v34  ;;  %v6383_v42 = vmul.f32 -1.442695, %v5379_v40 }
0x1c88   :  { %8125 = vpow2.f32 %v6383_v42  ;;  %v11685_v42 = vld [vmem:[#allocation21_spill] sm:$0xff] }
0x1c93   :  { %v8124_v61 = vpop.eup %8123 }
0x1c94   :  { %v5376_v19 = vadd.f32 1.0, %v8124_v61  ;;  %v4161_v61 = vadd.f32 %v11685_v42, %v10575_v16 }
0x1c95   :  { %v8126_v20 = vpop.eup %8125 }
0x1c96   :  { %8127 = vrcp.f32 %v5376_v19  ;;  %v5383_v38 = vadd.f32 1.0, %v8126_v20 }
0x1c98   :  { %8129 = vrcp.f32 %v5383_v38 }
0x1ca3   :  { %v8128_v59 = vpop.eup %8127 }
0x1ca4   :  { %v5386_v41 = vmul.f32 %v8128_v59, %v5367_v57 }
0x1ca5   :  { %v8130_v55 = vpop.eup %8129 }
0x1ca6   :  { %v5387_v53 = vadd.f32 %v5386_v41, %v4260_v60  ;;  %v5389_v4 = vsub.f32 1.0, %v8130_v55  ;;  %v5391_v58 = vmul.f32 %v8130_v55, %v11052_v8 }
0x1ca8   :  { %8131 = vtanh.f32 %v5387_v53  ;;  %v11686_v53 = vld [vmem:[#allocation18_spill] sm:$0xff] }
0x1ca9   :  { %v4263_v55 = vadd.f32 %v11686_v53, %v10585_v1 }
0x1cb5   :  { %v8132_v56 = vpop.eup %8131 }
0x1cb6   :  { %v5390_v25 = vmul.f32 %v8132_v56, %v5389_v4 }
0x1cb8   :  { %v11101_v10 = vadd.f32 %v5391_v58, %v5390_v25 }
0x1cba   :  { %v5393_v49 = vpack.c.bf16 %v11101_v10, %v11101_v10 }
0x1cbc   :  { %5427 = vmatmul.mubr.bf16.vlgmr.msra.gmra.mxu0 %v5393_v49  ;;  %7632 = vmatmul.mubr.bf16.vlgmr.msra.gmra.mxu1 %v5393_v49 }
0x1cbd   :  { %5498 = vmatpush1.bf16.msra.mxu0 %v10797_v26  ;;  %7636 = vmatpush3.bf16.msra.mxu1 %v10803_v39 }
0x1cbe   :  { %5499 = vmatprep.subr.bf16.mxu0 %v10809_v47  ;;  %7637 = vmatprep.subr.bf16.mxu1 %v11604_v18 }
0x1cbf   :  { %5529 = vmatprep.mubr.bf16.mxu0 %v11605_v45  ;;  %7651 = vmatprep.mubr.msk.bf16.mxu1 %vm8301_vm2, %v11604_v18 }
0x1cc1   :  { %5500 = vmatpush1.bf16.msra.mxu0 %v10819_v9  ;;  %7638 = vmatpush3.bf16.msra.mxu1 %v10825_v5 }
0x1cc2   :  { %5501 = vmatprep.subr.bf16.mxu0 %v10831_v52  ;;  %7639 = vmatprep.subr.bf16.mxu1 %v11604_v18 }
0x1cc5   :  { %5502 = vmatpush1.bf16.msra.mxu0 %v10838_v44  ;;  %7640 = vmatpush3.bf16.msra.mxu1 %v10943_v7 }
0x1cc6   :  { %5503 = vmatprep.subr.bf16.mxu0 %v10845_v36  ;;  %7641 = vmatprep.subr.bf16.mxu1 %v11604_v18 }
0x1cc9   :  { %5504 = vmatpush1.bf16.msra.mxu0 %v10852_v22  ;;  %7642 = vmatpush3.bf16.msra.mxu1 %v10952_v54 }
0x1cca   :  { %5505 = vmatprep.subr.bf16.mxu0 %v10859_v15  ;;  %7643 = vmatprep.subr.bf16.mxu1 %v11604_v18 }
0x1ccd   :  { %5506 = vmatpush1.bf16.msra.mxu0 %v10866_v37  ;;  %7644 = vmatpush3.bf16.msra.mxu1 %v10961_v30 }
0x1cce   :  { %5507 = vmatprep.subr.bf16.mxu0 %v10873_v33  ;;  %7645 = vmatprep.subr.bf16.mxu1 %v11604_v18 }
0x1cd1   :  { %5508 = vmatpush1.bf16.msra.mxu0 %v10880_v31  ;;  %7646 = vmatpush3.bf16.msra.mxu1 %v10970_v29 }
0x1cd2   :  { %5509 = vmatprep.subr.bf16.mxu0 %v10887_v6  ;;  %7647 = vmatprep.subr.bf16.mxu1 %v11604_v18 }
0x1cd5   :  { %5510 = vmatpush1.bf16.msra.mxu0 %v10894_v50  ;;  %7648 = vmatpush3.bf16.msra.mxu1 %v10979_v48 }
0x1cd6   :  { %5511 = vmatprep.subr.bf16.mxu0 %v10901_v11  ;;  %7649 = vmatprep.subr.bf16.mxu1 %v11604_v18 }
0x1cd9   :  { %5512 = vmatpush1.bf16.msra.mxu0 %v10908_v32  ;;  %7650 = vmatpush3.bf16.msra.mxu1 %v10988_v46 }
0x1cda   :  { %5600 = vmatprep.subr.bf16.mxu0 %v10776_v13  ;;  %7655 = vmatprep.subr.bf16.mxu1 %v11604_v18 }
0x1d7c   :  { %v5428_v8 = vpop.f32.mrf.mxu0  ;;  %v5469_v0 = vpop.f32.mrf.mxu1 }
0x1d7d   :  { %v5429_v63 = vadd.f32 %v5428_v8, %v10563_v43  ;;  %v5470_v60 = vadd.f32 %v5469_v0, %v10581_v14 }
0x1d7e   :  { %v5430_v17 = vpop.f32.mrf.mxu0  ;;  %v7633_v51 = vpop.f32.mrf.mxu1 }
0x1d7f   :  { %v5475_v34 = vadd.f32 %v5429_v63, %v4159_v2  ;;  %v5431_v21 = vadd.f32 %v5430_v17, %v10572_v12  ;;  %v11687_v17 = vld [vmem:[#allocation10_spill] sm:$0xff] }
0x1d80   :  { %v5432_v62 = vpop.f32.mrf.mxu0  ;;  %v5472_v28 = vpop.f32.mrf.mxu1  ;;  %v4165_v51 = vadd.f32 %v11687_v17, %v10560_v23 }
0x1d81   :  { %v6384_v3 = vmul.f32 -1.442695, %v5475_v34  ;;  %v5482_v19 = vadd.f32 %v5431_v21, %v4161_v61 }
0x1d82   :  { %v5433_v27 = vpop.f32.mrf.mxu0  ;;  %v7634_v40 = vpop.f32.mrf.mxu1 }
0x1d83   :  { %8133 = vpow2.f32 %v6384_v3  ;;  %v6385_v20 = vmul.f32 -1.442695, %v5482_v19 }
0x1d85   :  { %8135 = vpow2.f32 %v6385_v20  ;;  %v11688_v20 = vld [vmem:[#allocation23_spill] sm:$0xff] }
0x1d90   :  { %v8134_v38 = vpop.eup %8133 }
0x1d91   :  { %v5479_v57 = vadd.f32 1.0, %v8134_v38  ;;  %v4167_v38 = vadd.f32 %v11688_v20, %v10575_v16 }
0x1d92   :  { %v8136_v59 = vpop.eup %8135 }
0x1d93   :  { %8137 = vrcp.f32 %v5479_v57  ;;  %v5486_v35 = vadd.f32 1.0, %v8136_v59 }
0x1d95   :  { %8139 = vrcp.f32 %v5486_v35 }
0x1da0   :  { %v8138_v41 = vpop.eup %8137 }
0x1da1   :  { %v5489_v4 = vmul.f32 %v8138_v41, %v5470_v60 }
0x1da2   :  { %v8140_v25 = vpop.eup %8139 }
0x1da3   :  { %v5490_v56 = vadd.f32 %v5489_v4, %v4263_v55  ;;  %v5492_v58 = vsub.f32 1.0, %v8140_v25  ;;  %v5494_v24 = vmul.f32 %v8140_v25, %v11101_v10 }
0x1da5   :  { %8141 = vtanh.f32 %v5490_v56  ;;  %v11689_v56 = vld [vmem:[#allocation9_spill] sm:$0xff] }
0x1da6   :  { %v4268_v25 = vadd.f32 %v11689_v56, %v10585_v1 }
0x1db2   :  { %v8142_v49 = vpop.eup %8141 }
0x1db3   :  { %v5493_v8 = vmul.f32 %v8142_v49, %v5492_v58 }
0x1db5   :  { %v11150_v2 = vadd.f32 %v5494_v24, %v5493_v8 }
0x1db7   :  { %v5496_v63 = vpack.c.bf16 %v11150_v2, %v11150_v2 }
0x1db9   :  { %5530 = vmatmul.mubr.bf16.vlgmr.msra.gmra.mxu0 %v5496_v63  ;;  %7652 = vmatmul.mubr.bf16.vlgmr.msra.gmra.mxu1 %v5496_v63 }
0x1dba   :  { %5601 = vmatpush1.bf16.msra.mxu0 %v10797_v26  ;;  %7656 = vmatpush3.bf16.msra.mxu1 %v10803_v39 }
0x1dbb   :  { %5602 = vmatprep.subr.bf16.mxu0 %v10809_v47  ;;  %7657 = vmatprep.subr.bf16.mxu1 %v11604_v18 }
0x1dbc   :  { %5632 = vmatprep.mubr.bf16.mxu0 %v11605_v45  ;;  %7671 = vmatprep.mubr.msk.bf16.mxu1 %vm8301_vm2, %v11604_v18 }
0x1dbe   :  { %5603 = vmatpush1.bf16.msra.mxu0 %v10819_v9  ;;  %7658 = vmatpush3.bf16.msra.mxu1 %v10825_v5 }
0x1dbf   :  { %5604 = vmatprep.subr.bf16.mxu0 %v10831_v52  ;;  %7659 = vmatprep.subr.bf16.mxu1 %v11604_v18 }
0x1dc2   :  { %5605 = vmatpush1.bf16.msra.mxu0 %v10838_v44  ;;  %7660 = vmatpush3.bf16.msra.mxu1 %v10943_v7 }
0x1dc3   :  { %5606 = vmatprep.subr.bf16.mxu0 %v10845_v36  ;;  %7661 = vmatprep.subr.bf16.mxu1 %v11604_v18 }
0x1dc6   :  { %5607 = vmatpush1.bf16.msra.mxu0 %v10852_v22  ;;  %7662 = vmatpush3.bf16.msra.mxu1 %v10952_v54 }
0x1dc7   :  { %5608 = vmatprep.subr.bf16.mxu0 %v10859_v15  ;;  %7663 = vmatprep.subr.bf16.mxu1 %v11604_v18 }
0x1dca   :  { %5609 = vmatpush1.bf16.msra.mxu0 %v10866_v37  ;;  %7664 = vmatpush3.bf16.msra.mxu1 %v10961_v30 }
0x1dcb   :  { %5610 = vmatprep.subr.bf16.mxu0 %v10873_v33  ;;  %7665 = vmatprep.subr.bf16.mxu1 %v11604_v18 }
0x1dce   :  { %5611 = vmatpush1.bf16.msra.mxu0 %v10880_v31  ;;  %7666 = vmatpush3.bf16.msra.mxu1 %v10970_v29 }
0x1dcf   :  { %5612 = vmatprep.subr.bf16.mxu0 %v10887_v6  ;;  %7667 = vmatprep.subr.bf16.mxu1 %v11604_v18 }
0x1dd2   :  { %5613 = vmatpush1.bf16.msra.mxu0 %v10894_v50  ;;  %7668 = vmatpush3.bf16.msra.mxu1 %v10979_v48 }
0x1dd3   :  { %5614 = vmatprep.subr.bf16.mxu0 %v10901_v11  ;;  %7669 = vmatprep.subr.bf16.mxu1 %v11604_v18 }
0x1dd6   :  { %5615 = vmatpush1.bf16.msra.mxu0 %v10908_v32  ;;  %7670 = vmatpush3.bf16.msra.mxu1 %v10988_v46 }
0x1dd7   :  { %5703 = vmatprep.subr.bf16.mxu0 %v10776_v13  ;;  %7675 = vmatprep.subr.bf16.mxu1 %v11604_v18 }
0x1e79   :  { %v5531_v10 = vpop.f32.mrf.mxu0  ;;  %v5572_v0 = vpop.f32.mrf.mxu1 }
0x1e7a   :  { %v5532_v34 = vadd.f32 %v5531_v10, %v10563_v43  ;;  %v5573_v55 = vadd.f32 %v5572_v0, %v10581_v14 }
0x1e7b   :  { %v5533_v62 = vpop.f32.mrf.mxu0  ;;  %v7653_v28 = vpop.f32.mrf.mxu1 }
0x1e7c   :  { %v5578_v3 = vadd.f32 %v5532_v34, %v4165_v51  ;;  %v5534_v42 = vadd.f32 %v5533_v62, %v10572_v12  ;;  %v11690_v62 = vld [vmem:[#allocation7_spill] sm:$0xff] }
0x1e7d   :  { %v5535_v21 = vpop.f32.mrf.mxu0  ;;  %v5575_v27 = vpop.f32.mrf.mxu1  ;;  %v4169_v28 = vadd.f32 %v11690_v62, %v10560_v23 }
0x1e7e   :  { %v6386_v40 = vmul.f32 -1.442695, %v5578_v3  ;;  %v5585_v57 = vadd.f32 %v5534_v42, %v4167_v38 }
0x1e7f   :  { %v5536_v61 = vpop.f32.mrf.mxu0  ;;  %v7654_v19 = vpop.f32.mrf.mxu1 }
0x1e80   :  { %8143 = vpow2.f32 %v6386_v40  ;;  %v6387_v59 = vmul.f32 -1.442695, %v5585_v57 }
0x1e82   :  { %8145 = vpow2.f32 %v6387_v59 }
0x1e8d   :  { %v8144_v35 = vpop.eup %8143 }
0x1e8e   :  { %v5582_v60 = vadd.f32 1.0, %v8144_v35 }
0x1e8f   :  { %v8146_v41 = vpop.eup %8145 }
0x1e90   :  { %8147 = vrcp.f32 %v5582_v60  ;;  %v5589_v53 = vadd.f32 1.0, %v8146_v41 }
0x1e92   :  { %8149 = vrcp.f32 %v5589_v53 }
0x1e9d   :  { %v8148_v4 = vpop.eup %8147 }
0x1e9e   :  { %v5592_v58 = vmul.f32 %v8148_v4, %v5573_v55 }
0x1e9f   :  { %v8150_v8 = vpop.eup %8149 }
0x1ea0   :  { %v5593_v49 = vadd.f32 %v5592_v58, %v4268_v25  ;;  %v5595_v24 = vsub.f32 1.0, %v8150_v8  ;;  %v5597_v17 = vmul.f32 %v8150_v8, %v11150_v2  ;;  %v11692_v58 = vld [vmem:[#allocation29_spill] sm:$0xff] }
0x1ea2   :  { %8151 = vtanh.f32 %v5593_v49  ;;  %v4271_v49 = vadd.f32 %v11692_v58, %v10585_v1  ;;  %v11331_v58 = vld [vmem:[%s11529_s22 + $0x90] ss:$12 sps:$4 sm:$0xff]  }
0x1eaf   :  { %v8152_v63 = vpop.eup %8151 }
0x1eb0   :  { %v5596_v10 = vmul.f32 %v8152_v63, %v5595_v24 }
0x1eb2   :  { %v11199_v51 = vadd.f32 %v5597_v17, %v5596_v10 }
0x1eb4   :  { %v5599_v34 = vpack.c.bf16 %v11199_v51, %v11199_v51 }
0x1eb6   :  { %5633 = vmatmul.mubr.bf16.vlgmr.msra.gmra.mxu0 %v5599_v34  ;;  %7672 = vmatmul.mubr.bf16.vlgmr.msra.gmra.mxu1 %v5599_v34 }
0x1eb7   :  { %5704 = vmatpush1.bf16.msra.mxu0 %v10797_v26  ;;  %7676 = vmatpush3.bf16.msra.mxu1 %v10803_v39 }
0x1eb8   :  { %5705 = vmatprep.subr.bf16.mxu0 %v10809_v47  ;;  %7677 = vmatprep.subr.bf16.mxu1 %v11604_v18 }
0x1eb9   :  { %5735 = vmatprep.mubr.bf16.mxu0 %v11605_v45  ;;  %7691 = vmatprep.mubr.msk.bf16.mxu1 %vm8301_vm2, %v11604_v18 }
0x1ebb   :  { %5706 = vmatpush1.bf16.msra.mxu0 %v10819_v9  ;;  %7678 = vmatpush3.bf16.msra.mxu1 %v10825_v5 }
0x1ebc   :  { %5707 = vmatprep.subr.bf16.mxu0 %v10831_v52  ;;  %7679 = vmatprep.subr.bf16.mxu1 %v11604_v18 }
0x1ebf   :  { %5708 = vmatpush1.bf16.msra.mxu0 %v10838_v44  ;;  %7680 = vmatpush3.bf16.msra.mxu1 %v10943_v7 }
0x1ec0   :  { %5709 = vmatprep.subr.bf16.mxu0 %v10845_v36  ;;  %7681 = vmatprep.subr.bf16.mxu1 %v11604_v18 }
0x1ec3   :  { %5710 = vmatpush1.bf16.msra.mxu0 %v10852_v22  ;;  %7682 = vmatpush3.bf16.msra.mxu1 %v10952_v54 }
0x1ec4   :  { %5711 = vmatprep.subr.bf16.mxu0 %v10859_v15  ;;  %7683 = vmatprep.subr.bf16.mxu1 %v11604_v18 }
0x1ec7   :  { %5712 = vmatpush1.bf16.msra.mxu0 %v10866_v37  ;;  %7684 = vmatpush3.bf16.msra.mxu1 %v10961_v30 }
0x1ec8   :  { %5713 = vmatprep.subr.bf16.mxu0 %v10873_v33  ;;  %7685 = vmatprep.subr.bf16.mxu1 %v11604_v18 }
0x1ecb   :  { %5714 = vmatpush1.bf16.msra.mxu0 %v10880_v31  ;;  %7686 = vmatpush3.bf16.msra.mxu1 %v10970_v29 }
0x1ecc   :  { %5715 = vmatprep.subr.bf16.mxu0 %v10887_v6  ;;  %7687 = vmatprep.subr.bf16.mxu1 %v11604_v18 }
0x1ecf   :  { %5716 = vmatpush1.bf16.msra.mxu0 %v10894_v50  ;;  %7688 = vmatpush3.bf16.msra.mxu1 %v10979_v48 }
0x1ed0   :  { %5717 = vmatprep.subr.bf16.mxu0 %v10901_v11  ;;  %7689 = vmatprep.subr.bf16.mxu1 %v11604_v18 }
0x1ed3   :  { %5718 = vmatpush1.bf16.msra.mxu0 %v10908_v32  ;;  %7690 = vmatpush3.bf16.msra.mxu1 %v10988_v46 }
0x1ed4   :  { %5806 = vmatprep.subr.bf16.mxu0 %v10776_v13  ;;  %7695 = vmatprep.subr.bf16.mxu1 %v11604_v18  ;;  %v11691_v13 = vld [vmem:[#allocation26_spill] sm:$0xff] }
0x1ed5   :  { %v4171_v59 = vadd.f32 %v11691_v13, %v10575_v16 }
0x1f76   :  { %v5634_v2 = vpop.f32.mrf.mxu0  ;;  %v5675_v0 = vpop.f32.mrf.mxu1 }
0x1f77   :  { %v5635_v3 = vadd.f32 %v5634_v2, %v10563_v43  ;;  %v5676_v56 = vadd.f32 %v5675_v0, %v10581_v14 }
0x1f78   :  { %v5636_v21 = vpop.f32.mrf.mxu0  ;;  %v7673_v27 = vpop.f32.mrf.mxu1 }
0x1f79   :  { %v5681_v40 = vadd.f32 %v5635_v3, %v4169_v28  ;;  %v5637_v20 = vadd.f32 %v5636_v21, %v10572_v12 }
0x1f7a   :  { %v5638_v42 = vpop.f32.mrf.mxu0  ;;  %v5678_v61 = vpop.f32.mrf.mxu1 }
0x1f7b   :  { %v6388_v19 = vmul.f32 -1.442695, %v5681_v40  ;;  %v5688_v35 = vadd.f32 %v5637_v20, %v4171_v59 }
0x1f7c   :  { %v5639_v38 = vpop.f32.mrf.mxu0  ;;  %v7674_v57 = vpop.f32.mrf.mxu1 }
0x1f7d   :  { %8153 = vpow2.f32 %v6388_v19  ;;  %v6389_v60 = vmul.f32 -1.442695, %v5688_v35  ;;  %v11695_v19 = vld [vmem:[#allocation34_spill] sm:$0xff] }
0x1f7e   :  { %v4276_v20 = vadd.f32 %v11695_v19, %v10585_v1 }
0x1f7f   :  { %8155 = vpow2.f32 %v6389_v60 }
0x1f8a   :  { %v8154_v41 = vpop.eup %8153 }
0x1f8b   :  { %v5685_v53 = vadd.f32 1.0, %v8154_v41 }
0x1f8c   :  { %v8156_v55 = vpop.eup %8155 }
0x1f8d   :  { %8157 = vrcp.f32 %v5685_v53  ;;  %v5692_v4 = vadd.f32 1.0, %v8156_v55 }
0x1f8f   :  { %8159 = vrcp.f32 %v5692_v4  ;;  %v11309_v4 = vld [vmem:[%s11529_s22 + $0xa8] ss:$12 sps:$4 sm:$0xff]  }
0x1f9a   :  { %v8158_v25 = vpop.eup %8157 }
0x1f9b   :  { %v5695_v8 = vmul.f32 %v8158_v25, %v5676_v56  ;;  %v11315_v56 = vld [vmem:[%s11529_s22 + $0xb0] ss:$12 sps:$4 sm:$0xff]   ;;  %v11321_v25 = vld [vmem:[%s11529_s22 + $0x94] ss:$12 sps:$4 sm:$0xff]  }
0x1f9c   :  { %v8160_v63 = vpop.eup %8159 }
0x1f9d   :  { %v5696_v24 = vadd.f32 %v5695_v8, %v4271_v49  ;;  %v5698_v10 = vsub.f32 1.0, %v8160_v63  ;;  %v5700_v2 = vmul.f32 %v8160_v63, %v11199_v51  ;;  %v11337_v49 = vld [vmem:[%s11529_s22 + $0x98] ss:$12 sps:$4 sm:$0xff]   ;;  %v11343_v8 = vld [vmem:[%s11529_s22 + $0x7c] ss:$12 sps:$4 sm:$0xff]  }
0x1f9e   :  { %v11357_v63 = vld [vmem:[%s11529_s22 + $0x64] ss:$12 sps:$4 sm:$0xff]  }
0x1f9f   :  { %8161 = vtanh.f32 %v5696_v24  ;;  %v11350_v24 = vld [vmem:[%s11529_s22 + $0x78] ss:$12 sps:$4 sm:$0xff]  }
0x1fac   :  { %v8162_v17 = vpop.eup %8161 }
0x1fad   :  { %v5699_v34 = vmul.f32 %v8162_v17, %v5698_v10  ;;  %v11364_v10 = vld [vmem:[%s11529_s22 + $0x60] ss:$12 sps:$4 sm:$0xff]   ;;  %v11378_v17 = vld [vmem:[%s11529_s22 + $0x48] ss:$12 sps:$4 sm:$0xff]  }
0x1faf   :  { %v11248_v62 = vadd.f32 %v5700_v2, %v5699_v34  ;;  %v11392_v34 = vld [vmem:[%s11529_s22 + $0x30] ss:$12 sps:$4 sm:$0xff]   ;;  %v11406_v2 = vld [vmem:[%s11529_s22 + $0x18] ss:$12 sps:$4 sm:$0xff]  }
0x1fb1   :  { %v5702_v28 = vpack.c.bf16 %v11248_v62, %v11248_v62 }
0x1fb3   :  { %5736 = vmatmul.mubr.bf16.vlgmr.msra.gmra.mxu0 %v5702_v28  ;;  %7692 = vmatmul.mubr.bf16.vlgmr.msra.gmra.mxu1 %v5702_v28 }
0x1fb4   :  { %5807 = vmatpush1.bf16.msra.mxu0 %v10797_v26  ;;  %7696 = vmatpush3.bf16.msra.mxu1 %v10803_v39  ;;  %v11288_v26 = vld [vmem:[%s11529_s22 + $0xac] ss:$12 sps:$4 sm:$0xff]  }
0x1fb5   :  { %5808 = vmatprep.subr.bf16.mxu0 %v10809_v47  ;;  %7697 = vmatprep.subr.bf16.mxu1 %v11604_v18 }
0x1fb6   :  { %5838 = vmatprep.mubr.bf16.mxu0 %v11605_v45  ;;  %7711 = vmatprep.mubr.msk.bf16.mxu1 %vm8301_vm2, %v11604_v18 }
0x1fb8   :  { %5809 = vmatpush1.bf16.msra.mxu0 %v10819_v9  ;;  %7698 = vmatpush3.bf16.msra.mxu1 %v10825_v5  ;;  %v11693_v9 = vld [vmem:[#allocation27_spill] sm:$0xff] }
0x1fb9   :  { %5810 = vmatprep.subr.bf16.mxu0 %v10831_v52  ;;  %7699 = vmatprep.subr.bf16.mxu1 %v11604_v18  ;;  %v4175_v5 = vadd.f32 %v11693_v9, %v10560_v23 }
0x1fbc   :  { %5811 = vmatpush1.bf16.msra.mxu0 %v10838_v44  ;;  %7700 = vmatpush3.bf16.msra.mxu1 %v10943_v7 }
0x1fbd   :  { %5812 = vmatprep.subr.bf16.mxu0 %v10845_v36  ;;  %7701 = vmatprep.subr.bf16.mxu1 %v11604_v18 }
0x1fc0   :  { %5813 = vmatpush1.bf16.msra.mxu0 %v10852_v22  ;;  %7702 = vmatpush3.bf16.msra.mxu1 %v10952_v54 }
0x1fc1   :  { %5814 = vmatprep.subr.bf16.mxu0 %v10859_v15  ;;  %7703 = vmatprep.subr.bf16.mxu1 %v11604_v18 }
0x1fc4   :  { %5815 = vmatpush1.bf16.msra.mxu0 %v10866_v37  ;;  %7704 = vmatpush3.bf16.msra.mxu1 %v10961_v30 }
0x1fc5   :  { %5816 = vmatprep.subr.bf16.mxu0 %v10873_v33  ;;  %7705 = vmatprep.subr.bf16.mxu1 %v11604_v18 }
0x1fc8   :  { %5817 = vmatpush1.bf16.msra.mxu0 %v10880_v31  ;;  %7706 = vmatpush3.bf16.msra.mxu1 %v10970_v29 }
0x1fc9   :  { %5818 = vmatprep.subr.bf16.mxu0 %v10887_v6  ;;  %7707 = vmatprep.subr.bf16.mxu1 %v11604_v18 }
0x1fcc   :  { %5819 = vmatpush1.bf16.msra.mxu0 %v10894_v50  ;;  %7708 = vmatpush3.bf16.msra.mxu1 %v10979_v48 }
0x1fcd   :  { %5820 = vmatprep.subr.bf16.mxu0 %v10901_v11  ;;  %7709 = vmatprep.subr.bf16.mxu1 %v11604_v18  ;;  %v11694_v11 = vld [vmem:[#allocation14_spill] sm:$0xff] }
0x1fd0   :  { %5821 = vmatpush1.bf16.msra.mxu0 %v10908_v32  ;;  %7710 = vmatpush3.bf16.msra.mxu1 %v10988_v46  ;;  %v4177_v32 = vadd.f32 %v11694_v11, %v10575_v16 }
0x1fd1   :  { %5909 = vmatprep.subr.bf16.mxu0 %v11288_v26  ;;  %7715 = vmatprep.subr.bf16.mxu1 %v11604_v18 }
0x2073   :  { %v5737_v39 = vpop.f32.mrf.mxu0  ;;  %v5778_v47 = vpop.f32.mrf.mxu1 }
0x2074   :  { %v5738_v52 = vadd.f32 %v5737_v39, %v10563_v43  ;;  %v5779_v42 = vadd.f32 %v5778_v47, %v10581_v14  ;;  %v11696_v39 = vld [vmem:[#allocation30_spill] sm:$0xff] }
0x2075   :  { %v5739_v44 = vpop.f32.mrf.mxu0  ;;  %v7693_v36 = vpop.f32.mrf.mxu1  ;;  %v4179_v47 = vadd.f32 %v11696_v39, %v10560_v23 }
0x2076   :  { %v5784_v22 = vadd.f32 %v5738_v52, %v4175_v5  ;;  %v5740_v31 = vadd.f32 %v5739_v44, %v10572_v12 }
0x2077   :  { %v5741_v15 = vpop.f32.mrf.mxu0  ;;  %v5781_v37 = vpop.f32.mrf.mxu1 }
0x2078   :  { %v6390_v33 = vmul.f32 -1.442695, %v5784_v22  ;;  %v5791_v51 = vadd.f32 %v5740_v31, %v4177_v32 }
0x2079   :  { %v5742_v6 = vpop.f32.mrf.mxu0  ;;  %v7694_v50 = vpop.f32.mrf.mxu1 }
0x207a   :  { %8163 = vpow2.f32 %v6390_v33  ;;  %v6391_v0 = vmul.f32 -1.442695, %v5791_v51 }
0x207c   :  { %8165 = vpow2.f32 %v6391_v0 }
0x2087   :  { %v8164_v3 = vpop.eup %8163 }
0x2088   :  { %v5788_v21 = vadd.f32 1.0, %v8164_v3 }
0x2089   :  { %v8166_v27 = vpop.eup %8165 }
0x208a   :  { %8167 = vrcp.f32 %v5788_v21  ;;  %v5795_v40 = vadd.f32 1.0, %v8166_v27  ;;  %v11698_v27 = vld [vmem:[#allocation36_spill] sm:$0xff] }
0x208c   :  { %8169 = vrcp.f32 %v5795_v40  ;;  %v4279_v40 = vadd.f32 %v11698_v27, %v10585_v1 }
0x2097   :  { %v8168_v61 = vpop.eup %8167 }
0x2098   :  { %v5798_v38 = vmul.f32 %v8168_v61, %v5779_v42 }
0x2099   :  { %v8170_v13 = vpop.eup %8169 }
0x209a   :  { %v5799_v57 = vadd.f32 %v5798_v38, %v4276_v20  ;;  %v5801_v59 = vsub.f32 1.0, %v8170_v13  ;;  %v5803_v41 = vmul.f32 %v8170_v13, %v11248_v62  ;;  %v11420_v62 = vld [vmem:[%s11529_s22] ss:$12 sps:$4 sm:$0xff]  }
0x209c   :  { %8171 = vtanh.f32 %v5799_v57 }
0x20a9   :  { %v8172_v35 = vpop.eup %8171 }
0x20aa   :  { %v5802_v60 = vmul.f32 %v8172_v35, %v5801_v59 }
0x20ac   :  { %v11302_v53 = vadd.f32 %v5803_v41, %v5802_v60  ;;  %v8293_v60 = vld [vmem:[%s11529_s22 + $0x80] ss:$12 sps:$4 sm:$0xff]   ;;  %v8295_v41 = vld [vmem:[%s11529_s22 + $0x50] ss:$12 sps:$4 sm:$0xff]  }
0x20ae   :  { %v5805_v55 = vpack.c.bf16 %v11302_v53, %v11302_v53 }
0x20b0   :  { %5839 = vmatmul.mubr.bf16.vlgmr.msra.gmra.mxu0 %v5805_v55  ;;  %7712 = vmatmul.mubr.bf16.vlgmr.msra.gmra.mxu1 %v5805_v55  ;;  %v8297_v55 = vld [vmem:[%s11529_s22 + $0x20] ss:$12 sps:$4 sm:$0xff]  }
0x20b1   :  { %5910 = vmatpush1.bf16.msra.mxu0 %v11309_v4  ;;  %7716 = vmatpush3.bf16.msra.mxu1 %v11315_v56 }
0x20b2   :  { %5911 = vmatprep.subr.bf16.mxu0 %v11321_v25  ;;  %7717 = vmatprep.subr.bf16.mxu1 %v11604_v18 }
0x20b3   :  { %5941 = vmatprep.mubr.bf16.mxu0 %v11605_v45  ;;  %7731 = vmatprep.mubr.msk.bf16.mxu1 %vm8301_vm2, %v11604_v18 }
0x20b5   :  { %5912 = vmatpush1.bf16.msra.mxu0 %v11331_v58  ;;  %7718 = vmatpush3.bf16.msra.mxu1 %v11337_v49 }
0x20b6   :  { %5913 = vmatprep.subr.bf16.mxu0 %v11343_v8  ;;  %7719 = vmatprep.subr.bf16.mxu1 %v11604_v18 }
0x20b9   :  { %5914 = vmatpush1.bf16.msra.mxu0 %v11350_v24  ;;  %7720 = vmatpush3.bf16.msra.mxu1 %v10943_v7  ;;  %v11371_v7 = vld [vmem:[%s11529_s22 + $0x4c] ss:$12 sps:$4 sm:$0xff]  }
0x20ba   :  { %5915 = vmatprep.subr.bf16.mxu0 %v11357_v63  ;;  %7721 = vmatprep.subr.bf16.mxu1 %v11604_v18 }
0x20bd   :  { %5916 = vmatpush1.bf16.msra.mxu0 %v11364_v10  ;;  %7722 = vmatpush3.bf16.msra.mxu1 %v10952_v54  ;;  %v11385_v54 = vld [vmem:[%s11529_s22 + $0x34] ss:$12 sps:$4 sm:$0xff]  }
0x20be   :  { %5917 = vmatprep.subr.bf16.mxu0 %v11371_v7  ;;  %7723 = vmatprep.subr.bf16.mxu1 %v11604_v18 }
0x20c1   :  { %5918 = vmatpush1.bf16.msra.mxu0 %v11378_v17  ;;  %7724 = vmatpush3.bf16.msra.mxu1 %v10961_v30  ;;  %v11399_v30 = vld [vmem:[%s11529_s22 + $0x1c] ss:$12 sps:$4 sm:$0xff]  }
0x20c2   :  { %5919 = vmatprep.subr.bf16.mxu0 %v11385_v54  ;;  %7725 = vmatprep.subr.bf16.mxu1 %v11604_v18 }
0x20c5   :  { %5920 = vmatpush1.bf16.msra.mxu0 %v11392_v34  ;;  %7726 = vmatpush3.bf16.msra.mxu1 %v10970_v29  ;;  %v11413_v29 = vld [vmem:[%s11529_s22 + $0x4] ss:$12 sps:$4 sm:$0xff]  }
0x20c6   :  { %5921 = vmatprep.subr.bf16.mxu0 %v11399_v30  ;;  %7727 = vmatprep.subr.bf16.mxu1 %v11604_v18 }
0x20c9   :  { %5922 = vmatpush1.bf16.msra.mxu0 %v11406_v2  ;;  %7728 = vmatpush3.bf16.msra.mxu1 %v10979_v48 }
0x20ca   :  { %5923 = vmatprep.subr.bf16.mxu0 %v11413_v29  ;;  %7729 = vmatprep.subr.bf16.mxu1 %v11604_v18 }
0x20cd   :  { %5924 = vmatpush1.bf16.msra.mxu0 %v11420_v62  ;;  %7730 = vmatpush3.bf16.msra.mxu1 %v10988_v46 }
0x20ce   :  { %6012 = vmatprep.subr.bf16.mxu0 %v11288_v26  ;;  %7735 = vmatprep.subr.bf16.mxu1 %v11604_v18  ;;  %v11697_v26 = vld [vmem:[#allocation31_spill] sm:$0xff] }
0x20cf   :  { %v4181_v31 = vadd.f32 %v11697_v26, %v10575_v16 }
0x2170   :  { %v5840_v48 = vpop.f32.mrf.mxu0  ;;  %v5881_v28 = vpop.f32.mrf.mxu1 }
0x2171   :  { %v5841_v9 = vadd.f32 %v5840_v48, %v10563_v43  ;;  %v5882_v3 = vadd.f32 %v5881_v28, %v10581_v14 }
0x2172   :  { %v5842_v5 = vpop.f32.mrf.mxu0  ;;  %v7713_v52 = vpop.f32.mrf.mxu1 }
0x2173   :  { %v5887_v44 = vadd.f32 %v5841_v9, %v4179_v47  ;;  %v5843_v37 = vadd.f32 %v5842_v5, %v10572_v12 }
0x2174   :  { %v5844_v36 = vpop.f32.mrf.mxu0  ;;  %v5884_v22 = vpop.f32.mrf.mxu1 }
0x2175   :  { %v6392_v15 = vmul.f32 -1.442695, %v5887_v44  ;;  %v5894_v6 = vadd.f32 %v5843_v37, %v4181_v31  ;;  %v11701_v44 = vld [vmem:[#allocation12_spill] sm:$0xff] }
0x2176   :  { %v5845_v46 = vpop.f32.mrf.mxu0  ;;  %v7714_v33 = vpop.f32.mrf.mxu1  ;;  %v4284_v36 = vadd.f32 %v11701_v44, %v10585_v1 }
0x2177   :  { %8173 = vpow2.f32 %v6392_v15  ;;  %v6393_v50 = vmul.f32 -1.442695, %v5894_v6 }
0x2179   :  { %8175 = vpow2.f32 %v6393_v50 }
0x2184   :  { %v8174_v11 = vpop.eup %8173 }
0x2185   :  { %v5891_v32 = vadd.f32 1.0, %v8174_v11 }
0x2186   :  { %v8176_v51 = vpop.eup %8175 }
0x2187   :  { %8177 = vrcp.f32 %v5891_v32  ;;  %v5898_v0 = vadd.f32 1.0, %v8176_v51  ;;  %v11702_v51 = vld [vmem:[#allocation17_spill] sm:$0xff] }
0x2189   :  { %8179 = vrcp.f32 %v5898_v0  ;;  %v4189_v0 = vadd.f32 %v11702_v51, %v10560_v23 }
0x2194   :  { %v8178_v21 = vpop.eup %8177 }
0x2195   :  { %v5901_v42 = vmul.f32 %v8178_v21, %v5882_v3 }
0x2196   :  { %v8180_v19 = vpop.eup %8179 }
0x2197   :  { %v5902_v61 = vadd.f32 %v5901_v42, %v4279_v40  ;;  %v5904_v20 = vsub.f32 1.0, %v8180_v19  ;;  %v5906_v13 = vmul.f32 %v8180_v19, %v11302_v53  ;;  %v8296_v53 = vld [vmem:[%s11529_s22 + $0x38] ss:$12 sps:$4 sm:$0xff]  }
0x2199   :  { %8181 = vtanh.f32 %v5902_v61 }
0x21a6   :  { %v8182_v38 = vpop.eup %8181 }
0x21a7   :  { %v5905_v57 = vmul.f32 %v8182_v38, %v5904_v20 }
0x21a9   :  { %v11436_v59 = vadd.f32 %v5906_v13, %v5905_v57  ;;  %v11703_v13 = vld [vmem:[#allocation3_spill] sm:$0xff] }
0x21ab   :  { %v5908_v35 = vpack.c.bf16 %v11436_v59, %v11436_v59 }
0x21ad   :  { %5942 = vmatmul.mubr.bf16.vlgmr.msra.gmra.mxu0 %v5908_v35  ;;  %7732 = vmatmul.mubr.bf16.vlgmr.msra.gmra.mxu1 %v5908_v35 }
0x21ae   :  { %6013 = vmatpush1.bf16.msra.mxu0 %v11309_v4  ;;  %7736 = vmatpush3.bf16.msra.mxu1 %v11315_v56  ;;  %v8298_v4 = vld [vmem:[%s11529_s22 + $0x8] ss:$12 sps:$4 sm:$0xff]  }
0x21af   :  { %6014 = vmatprep.subr.bf16.mxu0 %v11321_v25  ;;  %7737 = vmatprep.subr.bf16.mxu1 %v11604_v18 }
0x21b0   :  { %6044 = vmatprep.mubr.bf16.mxu0 %v11605_v45  ;;  %7751 = vmatprep.mubr.msk.bf16.mxu1 %vm8301_vm2, %v11604_v18  ;;  %v8294_v45 = vld [vmem:[%s11529_s22 + $0x68] ss:$12 sps:$4 sm:$0xff]  }
0x21b2   :  { %6015 = vmatpush1.bf16.msra.mxu0 %v11331_v58  ;;  %7738 = vmatpush3.bf16.msra.mxu1 %v11337_v49  ;;  %v11699_v58 = vld [vmem:[#allocation32_spill] sm:$0xff] }
0x21b3   :  { %6016 = vmatprep.subr.bf16.mxu0 %v11343_v8  ;;  %7739 = vmatprep.subr.bf16.mxu1 %v11604_v18  ;;  %v4185_v49 = vadd.f32 %v11699_v58, %v10560_v23 }
0x21b6   :  { %6017 = vmatpush1.bf16.msra.mxu0 %v11350_v24  ;;  %7740 = vmatpush3.bf16.msra.mxu1 %v8293_v60 }
0x21b7   :  { %6018 = vmatprep.subr.bf16.mxu0 %v11357_v63  ;;  %7741 = vmatprep.subr.bf16.mxu1 %v11604_v18 }
0x21ba   :  { %6019 = vmatpush1.bf16.msra.mxu0 %v11364_v10  ;;  %7742 = vmatpush3.bf16.msra.mxu1 %v8294_v45 }
0x21bb   :  { %6020 = vmatprep.subr.bf16.mxu0 %v11371_v7  ;;  %7743 = vmatprep.subr.bf16.mxu1 %v11604_v18 }
0x21be   :  { %6021 = vmatpush1.bf16.msra.mxu0 %v11378_v17  ;;  %7744 = vmatpush3.bf16.msra.mxu1 %v8295_v41 }
0x21bf   :  { %6022 = vmatprep.subr.bf16.mxu0 %v11385_v54  ;;  %7745 = vmatprep.subr.bf16.mxu1 %v11604_v18 }
0x21c2   :  { %6023 = vmatpush1.bf16.msra.mxu0 %v11392_v34  ;;  %7746 = vmatpush3.bf16.msra.mxu1 %v8296_v53 }
0x21c3   :  { %6024 = vmatprep.subr.bf16.mxu0 %v11399_v30  ;;  %7747 = vmatprep.subr.bf16.mxu1 %v11604_v18 }
0x21c6   :  { %6025 = vmatpush1.bf16.msra.mxu0 %v11406_v2  ;;  %7748 = vmatpush3.bf16.msra.mxu1 %v8297_v55  ;;  %v11700_v2 = vld [vmem:[#allocation33_spill] sm:$0xff] }
0x21c7   :  { %6026 = vmatprep.subr.bf16.mxu0 %v11413_v29  ;;  %7749 = vmatprep.subr.bf16.mxu1 %v11604_v18  ;;  %v4187_v29 = vadd.f32 %v11700_v2, %v10575_v16 }
0x21ca   :  { %6027 = vmatpush1.bf16.msra.mxu0 %v11420_v62  ;;  %7750 = vmatpush3.bf16.msra.mxu1 %v8298_v4  ;;  %v11704_v4 = vld [vmem:[#allocation35_spill] sm:$0xff] }
0x226d   :  { %v5943_v56 = vpop.f32.mrf.mxu0  ;;  %v5984_v25 = vpop.f32.mrf.mxu1 }
0x226e   :  { %v5944_v8 = vadd.f32 %v5943_v56, %v10563_v43  ;;  %v5985_v5 = vadd.f32 %v5984_v25, %v10581_v14 }
0x226f   :  { %v5945_v24 = vpop.f32.mrf.mxu0  ;;  %v7733_v63 = vpop.f32.mrf.mxu1 }
0x2270   :  { %v5990_v10 = vadd.f32 %v5944_v8, %v4185_v49  ;;  %v5946_v54 = vadd.f32 %v5945_v24, %v10572_v12 }
0x2271   :  { %v5947_v7 = vpop.f32.mrf.mxu0  ;;  %v5987_v17 = vpop.f32.mrf.mxu1 }
0x2272   :  { %v6394_v18 = vmul.f32 -1.442695, %v5990_v10  ;;  %v5997_v62 = vadd.f32 %v5946_v54, %v4187_v29 }
0x2273   :  { %v5948_v34 = vpop.f32.mrf.mxu0  ;;  %v7734_v30 = vpop.f32.mrf.mxu1 }
0x2274   :  { %8183 = vpow2.f32 %v6394_v18  ;;  %v6395_v48 = vmul.f32 -1.442695, %v5997_v62 }
0x2276   :  { %8185 = vpow2.f32 %v6395_v48 }
0x2281   :  { %v8184_v28 = vpop.eup %8183 }
0x2282   :  { %v5994_v39 = vadd.f32 1.0, %v8184_v28 }
0x2283   :  { %v8186_v47 = vpop.eup %8185 }
0x2284   :  { %8187 = vrcp.f32 %v5994_v39  ;;  %v6001_v9 = vadd.f32 1.0, %v8186_v47 }
0x2286   :  { %8189 = vrcp.f32 %v6001_v9 }
0x2291   :  { %v8188_v52 = vpop.eup %8187 }
0x2292   :  { %v6004_v22 = vmul.f32 %v8188_v52, %v5985_v5 }
0x2293   :  { %v8190_v37 = vpop.eup %8189 }
0x2294   :  { %v6005_v15 = vadd.f32 %v6004_v22, %v4284_v36  ;;  %v6007_v46 = vsub.f32 1.0, %v8190_v37  ;;  %v6009_v31 = vmul.f32 %v8190_v37, %v11436_v59  ;;  %v4191_v59 = vadd.f32 %v11703_v13, %v10575_v16 }
0x2296   :  { %8191 = vtanh.f32 %v6005_v15 }
0x22a3   :  { %v8192_v33 = vpop.eup %8191 }
0x22a4   :  { %v6008_v26 = vmul.f32 %v8192_v33, %v6007_v46 }
0x22a6   :  { %v6010_v6 = vadd.f32 %v6009_v31, %v6008_v26 }
0x22a8   :  { %v6011_v50 = vpack.c.bf16 %v6010_v6, %v6010_v6 }
0x22aa   :  { %6045 = vmatmul.mubr.bf16.vlgmr.msra.gmra.mxu0 %v6011_v50  ;;  %7752 = vmatmul.mubr.bf16.vlgmr.msra.gmra.mxu1 %v6011_v50 }
0x236a   :  { %v6046_v11 = vpop.f32.mrf.mxu0  ;;  %v6087_v32 = vpop.f32.mrf.mxu1 }
0x236b   :  { %v6047_v3 = vadd.f32 %v6046_v11, %v10563_v43  ;;  %v6088_v53 = vadd.f32 %v6087_v32, %v10581_v14 }
0x236c   :  { %v6048_v21 = vpop.f32.mrf.mxu0  ;;  %v7753_v27 = vpop.f32.mrf.mxu1 }
0x236d   :  { %v6093_v40 = vadd.f32 %v6047_v3, %v4189_v0  ;;  %v6049_v20 = vadd.f32 %v6048_v21, %v10572_v12  ;;  %v4287_v12 = vadd.f32 %v11704_v4, %v10585_v1 }
0x236e   :  { %v6050_v42 = vpop.f32.mrf.mxu0  ;;  %v6090_v61 = vpop.f32.mrf.mxu1 }
0x236f   :  { %v6396_v19 = vmul.f32 -1.442695, %v6093_v40  ;;  %v6100_v35 = vadd.f32 %v6049_v20, %v4191_v59 }
0x2370   :  { %v6051_v38 = vpop.f32.mrf.mxu0  ;;  %v7754_v57 = vpop.f32.mrf.mxu1 }
0x2371   :  { %8193 = vpow2.f32 %v6396_v19  ;;  %v6397_v60 = vmul.f32 -1.442695, %v6100_v35 }
0x2373   :  { %8195 = vpow2.f32 %v6397_v60 }
0x237e   :  { %v8194_v23 = vpop.eup %8193 }
0x237f   :  { %v6097_v45 = vadd.f32 1.0, %v8194_v23 }
0x2380   :  { %v8196_v43 = vpop.eup %8195 }
0x2381   :  { %8197 = vrcp.f32 %v6097_v45  ;;  %v6104_v41 = vadd.f32 1.0, %v8196_v43 }
0x2383   :  { %8199 = vrcp.f32 %v6104_v41 }
0x238e   :  { %v8198_v55 = vpop.eup %8197 }
0x238f   :  { %v6107_v56 = vmul.f32 %v8198_v55, %v6088_v53 }
0x2390   :  { %v8200_v16 = vpop.eup %8199 }
0x2391   :  { %v6108_v25 = vadd.f32 %v6107_v56, %v4287_v12  ;;  %v6110_v58 = vsub.f32 1.0, %v8200_v16  ;;  %v6112_v24 = vmul.f32 %v8200_v16, %v6010_v6 }
0x2393   :  { %8201 = vtanh.f32 %v6108_v25 }
0x23a0   :  { %v8202_v49 = vpop.eup %8201 }
0x23a1   :  { %v6111_v8 = vmul.f32 %v8202_v49, %v6110_v58 }
0x23a3   :  { %v6113_v63 = vadd.f32 %v6112_v24, %v6111_v8 }
0x23a5   :  { %6114 = vst [vmem:[%s11530_s25 + $0x8] sm:$0xff] %v6113_v63 }

</bundles_post_ra>
